<compile_context>
chip_gen: v7x
topology: tpu7x:2x2x1
jax: 0.10.0
libtpu: 0.0.40
codegen_flags: <defaults>
</compile_context>

<pallas_src>
import jax
import jax.numpy as jnp
from jax.experimental import pallas as pl
from jax.experimental.pallas import tpu as pltpu

H, W = 14, 14
HW = H * W                      # 196
CIN, COUT = 128, 32
KH = KW = 3
C_BN = 544
EPS = 1e-5
BN_CHUNK = 64                   # channels normalized per inner chunk (small live set)

PAD = (KH // 2) * W + (KW // 2)  # 15 = largest |tap shift| in flat (H*W) layout
PADW = HW + 2 * PAD              # 226-wide padded conv-input slab

HALF = C_BN // 2                 # 272 output channels per grid step
OFF_CONV = 480                   # conv (x196) rows in the concat
OFF_X203 = 512                   # x203 rows in the concat


def _fused_kernel(xpad_ref, w_ref,
                  x140_ref, x147_ref, x154_ref, x161_ref, x168_ref,
                  x175_ref, x182_ref, x189_ref, x203_ref,
                  gamma_ref, beta_ref, o_ref):
    inv_n = 1.0 / HW
    step = pl.program_id(0)

    def bn_store(x, off):
        # x: (c, HW) f32 for LOCAL output rows [off, off+c) of this step's block.
        # Single-pass batch stats over the HW (lane) axis, fused affine.
        c = x.shape[0]
        mean = jnp.sum(x, axis=1, keepdims=True) * inv_n
        ex2 = jnp.sum(x * x, axis=1, keepdims=True) * inv_n
        var = jnp.maximum(ex2 - mean * mean, 0.0)           # guard cancellation
        scale = jax.lax.rsqrt(var + EPS) * gamma_ref[off:off + c, :]
        bias = beta_ref[off:off + c, :] - mean * scale
        o_ref[off:off + c, :] = x * scale + bias

    # ---- step 0: global rows [0, 272) = x140 (256 ch) + x147[:16] -----------
    @pl.when(step == 0)
    def _():
        for c0 in range(0, 256, BN_CHUNK):
            bn_store(x140_ref[c0:c0 + BN_CHUNK, :], c0)
        bn_store(x147_ref[0:16, :], 256)

    # ---- step 1: global rows [272, 544) --------------------------------------
    @pl.when(step == 1)
    def _():
        bn_store(x147_ref[16:32, :], 0)
        off = 16
        for ref in (x154_ref, x161_ref, x168_ref, x175_ref, x182_ref, x189_ref):
            bn_store(ref[...], off)
            off += 32

        # conv2d(128->32, 3x3, pad 1): 9 bf16 tap matmuls with f32 accumulation.
        xp = xpad_ref[...]                                   # (128, 226) f32
        col = jax.lax.broadcasted_iota(jnp.int32, (1, HW), 1) % W
        ok_left = col >= 1                                   # kw==0 needs o_c-1 >= 0
        ok_right = col <= W - 2                              # kw==2 needs o_c+1 <= 13
        acc = jnp.zeros((COUT, HW), jnp.float32)
        for kh in range(KH):
            for kw in range(KW):
                start = PAD + (kh - 1) * W + (kw - 1)        # static lane offset
                tap = xp[:, start:start + HW]                # (128, 196) shifted view
                if kw == 0:
                    tap = jnp.where(ok_left, tap, 0.0)
                elif kw == 2:
                    tap = jnp.where(ok_right, tap, 0.0)
                acc = acc + jnp.dot(w_ref[kh * KW + kw],     # (32,128) bf16
                                    tap.astype(jnp.bfloat16),
                                    preferred_element_type=jnp.float32)
        bn_store(acc, OFF_CONV - HALF)                       # local rows 208:240
        bn_store(x203_ref[...], OFF_X203 - HALF)             # local rows 240:272


@jax.jit
def forward(x195, x140, x147, x154, x161, x168, x175, x182, x189, x203,
            conv_w, gamma, beta):
    # NCHW (N=1) -> (C, H*W): contiguous reshape, no transpose.
    flat = lambda t: t.reshape(t.shape[1], HW)

    # Conv input: flat slab zero-padded by 15 lanes on each side (no im2col dup).
    xpad = jnp.pad(flat(x195), ((0, 0), (PAD, PAD)))                 # (128, 226) f32
    # Conv weight OIHW -> (kh*3+kw, O, I), bf16 for the MXU.
    w9 = jnp.transpose(conv_w, (2, 3, 0, 1)).reshape(KH * KW, COUT, CIN)
    w9 = w9.astype(jnp.bfloat16)

    def full(shape):
        return pl.BlockSpec(shape, lambda i, _n=len(shape): (0,) * _n)

    small = full((32, HW))

    cost = pl.CostEstimate(
        flops=2 * COUT * CIN * KH * KW * HW + 6 * C_BN * HW,
        transcendentals=C_BN,
        bytes_accessed=1_000_000)

    out = pl.pallas_call(
        _fused_kernel,
        out_shape=jax.ShapeDtypeStruct((C_BN, HW), jnp.float32),
        grid_spec=pltpu.PrefetchScalarGridSpec(
            num_scalar_prefetch=0,
            grid=(2,),
            in_specs=[
                full((CIN, PADW)),                 # padded conv input (resident)
                full((KH * KW, COUT, CIN)),        # conv weights (resident)
                full((256, HW)),                   # x140
                small, small, small, small,        # x147, x154, x161, x168
                small, small, small,               # x175, x182, x189
                small,                             # x203
                pl.BlockSpec((HALF, 1), lambda i: (i, 0)),   # gamma (slides)
                pl.BlockSpec((HALF, 1), lambda i: (i, 0)),   # beta  (slides)
            ],
            out_specs=pl.BlockSpec((HALF, HW), lambda i: (i, 0)),
        ),
        compiler_params=pltpu.CompilerParams(
            dimension_semantics=("parallel",)),
        cost_estimate=cost,
    )(xpad, w9,
      flat(x140), flat(x147), flat(x154), flat(x161), flat(x168),
      flat(x175), flat(x182), flat(x189), flat(x203),
      gamma.reshape(C_BN, 1), beta.reshape(C_BN, 1))

    return out.reshape(1, C_BN, H, W)                        # NCHW, free reshape


# ------------------------------ reference -----------------------------------
def reference(x195, others_before, x203, conv_w, gamma, beta):
    y = jax.lax.conv_general_dilated(
        x195, conv_w, window_strides=(1, 1), padding=((1, 1), (1, 1)),
        dimension_numbers=("NCHW", "OIHW", "NCHW"))
    cat = jnp.concatenate(others_before + [y, x203], axis=1)
    mean = jnp.mean(cat, axis=(0, 2, 3), keepdims=True)
    var = jnp.mean((cat - mean) ** 2, axis=(0, 2, 3), keepdims=True)
    g = gamma.reshape(1, -1, 1, 1)
    b = beta.reshape(1, -1, 1, 1)
    return (cat - mean) * jax.lax.rsqrt(var + EPS) * g + b


if __name__ == "__main__":
    key = jax.random.PRNGKey(0)
    keys = jax.random.split(key, 14)

    x140 = jax.random.normal(keys[0], (1, 256, H, W), jnp.float32)
    x147 = jax.random.normal(keys[1], (1, 32, H, W), jnp.float32)
    x154 = jax.random.normal(keys[2], (1, 32, H, W), jnp.float32)
    x161 = jax.random.normal(keys[3], (1, 32, H, W), jnp.float32)
    x168 = jax.random.normal(keys[4], (1, 32, H, W), jnp.float32)
    x175 = jax.random.normal(keys[5], (1, 32, H, W), jnp.float32)
    x182 = jax.random.normal(keys[6], (1, 32, H, W), jnp.float32)
    x189 = jax.random.normal(keys[7], (1, 32, H, W), jnp.float32)
    x195 = jax.random.normal(keys[8], (1, 128, H, W), jnp.float32)
    x203 = jax.random.normal(keys[9], (1, 32, H, W), jnp.float32)

    # deterministic parameter init (Conv2d weight OIHW, BN affine params)
    conv_w = jax.random.normal(keys[10], (COUT, CIN, 3, 3), jnp.float32) * 0.05
    gamma = jax.random.normal(keys[11], (C_BN,), jnp.float32) * 0.1 + 1.0
    beta = jax.random.normal(keys[12], (C_BN,), jnp.float32) * 0.1

    out = forward(x195, x140, x147, x154, x161, x168, x175, x182, x189, x203,
                  conv_w, gamma, beta)
    out = jax.block_until_ready(out)
    assert out.shape == (1, C_BN, H, W), out.shape

    ref = reference(x195,
                    [x140, x147, x154, x161, x168, x175, x182, x189],
                    x203, conv_w, gamma, beta)
    ref = jax.block_until_ready(ref)
    assert jnp.allclose(out, ref, rtol=1e-2, atol=1e-2), \
        float(jnp.max(jnp.abs(out - ref)))

    # TODO(synk): BatchNorm2d running_mean/running_var momentum updates (module
    # state side effect) are not produced; only the forward output is returned.
    print("KERNEL_OK")
</pallas_src>

<mosaic_0001>
module attributes {stable_mosaic.version = 11 : i64} {
  func.func @_fused_kernel(%arg0: i32, %arg1: memref<128x226xf32, #tpu.memory_space<vmem>>, %arg2: memref<9x32x128xbf16, #tpu.memory_space<vmem>>, %arg3: memref<256x196xf32, #tpu.memory_space<vmem>>, %arg4: memref<32x196xf32, #tpu.memory_space<vmem>>, %arg5: memref<32x196xf32, #tpu.memory_space<vmem>>, %arg6: memref<32x196xf32, #tpu.memory_space<vmem>>, %arg7: memref<32x196xf32, #tpu.memory_space<vmem>>, %arg8: memref<32x196xf32, #tpu.memory_space<vmem>>, %arg9: memref<32x196xf32, #tpu.memory_space<vmem>>, %arg10: memref<32x196xf32, #tpu.memory_space<vmem>>, %arg11: memref<32x196xf32, #tpu.memory_space<vmem>>, %arg12: memref<272x1xf32, #tpu.memory_space<vmem>>, %arg13: memref<272x1xf32, #tpu.memory_space<vmem>>, %arg14: memref<272x196xf32, #tpu.memory_space<vmem>>) attributes {dimension_semantics = [#tpu.dimension_semantics<parallel>], iteration_bounds = array<i64: 2>, scalar_prefetch = 0 : i64, scratch_operands = 0 : i64, tpu.core_type = #tpu.core_type<tc>, window_params = [{pipeline_mode = #tpu.pipeline_mode<synchronous>, transform_indices = @transform_0, window_bounds = array<i64: 128, 226>}, {pipeline_mode = #tpu.pipeline_mode<synchronous>, transform_indices = @transform_1, window_bounds = array<i64: 9, 32, 128>}, {pipeline_mode = #tpu.pipeline_mode<synchronous>, transform_indices = @transform_2, window_bounds = array<i64: 256, 196>}, {pipeline_mode = #tpu.pipeline_mode<synchronous>, transform_indices = @transform_3, window_bounds = array<i64: 32, 196>}, {pipeline_mode = #tpu.pipeline_mode<synchronous>, transform_indices = @transform_4, window_bounds = array<i64: 32, 196>}, {pipeline_mode = #tpu.pipeline_mode<synchronous>, transform_indices = @transform_5, window_bounds = array<i64: 32, 196>}, {pipeline_mode = #tpu.pipeline_mode<synchronous>, transform_indices = @transform_6, window_bounds = array<i64: 32, 196>}, {pipeline_mode = #tpu.pipeline_mode<synchronous>, transform_indices = @transform_7, window_bounds = array<i64: 32, 196>}, {pipeline_mode = #tpu.pipeline_mode<synchronous>, transform_indices = @transform_8, window_bounds = array<i64: 32, 196>}, {pipeline_mode = #tpu.pipeline_mode<synchronous>, transform_indices = @transform_9, window_bounds = array<i64: 32, 196>}, {pipeline_mode = #tpu.pipeline_mode<synchronous>, transform_indices = @transform_10, window_bounds = array<i64: 32, 196>}, {transform_indices = @transform_11, window_bounds = array<i64: 272, 1>}, {transform_indices = @transform_12, window_bounds = array<i64: 272, 1>}, {transform_indices = @transform_13, window_bounds = array<i64: 272, 196>}]} {
    %c0_i32 = arith.constant 0 : i32
    %0 = arith.cmpi eq, %arg0, %c0_i32 : i32
    %1 = arith.extui %0 : i1 to i32
    %c0_i32_0 = arith.constant 0 : i32
    %2 = arith.cmpi ne, %1, %c0_i32_0 : i32
    scf.if %2 {
      %c0 = arith.constant 0 : index
      %c0_2 = arith.constant 0 : index
      %6 = vector.load %arg3[%c0, %c0_2] : memref<256x196xf32, #tpu.memory_space<vmem>>, vector<64x196xf32>
      %cst = arith.constant dense<0.000000e+00> : vector<64xf32>
      %7 = vector.multi_reduction <add>, %6, %cst [1] : vector<64x196xf32> to vector<64xf32>
      %8 = vector.shape_cast %7 : vector<64xf32> to vector<64x1xf32>
      %cst_3 = arith.constant 0.00510204071 : f32
      %9 = vector.broadcast %cst_3 : f32 to vector<64x1xf32>
      %10 = arith.mulf %8, %9 : vector<64x1xf32>
      %11 = arith.mulf %6, %6 : vector<64x196xf32>
      %cst_4 = arith.constant dense<0.000000e+00> : vector<64xf32>
      %12 = vector.multi_reduction <add>, %11, %cst_4 [1] : vector<64x196xf32> to vector<64xf32>
      %13 = vector.shape_cast %12 : vector<64xf32> to vector<64x1xf32>
      %cst_5 = arith.constant 0.00510204071 : f32
      %14 = vector.broadcast %cst_5 : f32 to vector<64x1xf32>
      %15 = arith.mulf %13, %14 : vector<64x1xf32>
      %16 = arith.mulf %10, %10 : vector<64x1xf32>
      %17 = arith.subf %15, %16 : vector<64x1xf32>
      %cst_6 = arith.constant 0.000000e+00 : f32
      %18 = vector.broadcast %cst_6 : f32 to vector<64x1xf32>
      %19 = arith.maximumf %17, %18 : vector<64x1xf32>
      %cst_7 = arith.constant 9.99999974E-6 : f32
      %20 = vector.broadcast %cst_7 : f32 to vector<64x1xf32>
      %21 = arith.addf %19, %20 : vector<64x1xf32>
      %22 = math.rsqrt %21 : vector<64x1xf32>
      %c0_8 = arith.constant 0 : index
      %c0_9 = arith.constant 0 : index
      %23 = vector.load %arg12[%c0_8, %c0_9] : memref<272x1xf32, #tpu.memory_space<vmem>>, vector<64x1xf32>
      %24 = arith.mulf %22, %23 : vector<64x1xf32>
      %c0_10 = arith.constant 0 : index
      %c0_11 = arith.constant 0 : index
      %25 = vector.load %arg13[%c0_10, %c0_11] : memref<272x1xf32, #tpu.memory_space<vmem>>, vector<64x1xf32>
      %26 = arith.mulf %10, %24 : vector<64x1xf32>
      %27 = arith.subf %25, %26 : vector<64x1xf32>
      %28 = vector.broadcast %24 : vector<64x1xf32> to vector<64x196xf32>
      %29 = arith.mulf %6, %28 : vector<64x196xf32>
      %30 = vector.broadcast %27 : vector<64x1xf32> to vector<64x196xf32>
      %31 = arith.addf %29, %30 : vector<64x196xf32>
      %c0_12 = arith.constant 0 : index
      %c0_13 = arith.constant 0 : index
      %32 = vector.load %arg14[%c0_12, %c0_13] : memref<272x196xf32, #tpu.memory_space<vmem>>, vector<64x196xf32>
      tpu.vector_store %arg14[%c0_12, %c0_13], %31 {strides = array<i32>} : memref<272x196xf32, #tpu.memory_space<vmem>>, vector<64x196xf32>,
      %c64 = arith.constant 64 : index
      %c0_14 = arith.constant 0 : index
      %33 = vector.load %arg3[%c64, %c0_14] : memref<256x196xf32, #tpu.memory_space<vmem>>, vector<64x196xf32>
      %cst_15 = arith.constant dense<0.000000e+00> : vector<64xf32>
      %34 = vector.multi_reduction <add>, %33, %cst_15 [1] : vector<64x196xf32> to vector<64xf32>
      %35 = vector.shape_cast %34 : vector<64xf32> to vector<64x1xf32>
      %cst_16 = arith.constant 0.00510204071 : f32
      %36 = vector.broadcast %cst_16 : f32 to vector<64x1xf32>
      %37 = arith.mulf %35, %36 : vector<64x1xf32>
      %38 = arith.mulf %33, %33 : vector<64x196xf32>
      %cst_17 = arith.constant dense<0.000000e+00> : vector<64xf32>
      %39 = vector.multi_reduction <add>, %38, %cst_17 [1] : vector<64x196xf32> to vector<64xf32>
      %40 = vector.shape_cast %39 : vector<64xf32> to vector<64x1xf32>
      %cst_18 = arith.constant 0.00510204071 : f32
      %41 = vector.broadcast %cst_18 : f32 to vector<64x1xf32>
      %42 = arith.mulf %40, %41 : vector<64x1xf32>
      %43 = arith.mulf %37, %37 : vector<64x1xf32>
      %44 = arith.subf %42, %43 : vector<64x1xf32>
      %cst_19 = arith.constant 0.000000e+00 : f32
      %45 = vector.broadcast %cst_19 : f32 to vector<64x1xf32>
      %46 = arith.maximumf %44, %45 : vector<64x1xf32>
      %cst_20 = arith.constant 9.99999974E-6 : f32
      %47 = vector.broadcast %cst_20 : f32 to vector<64x1xf32>
      %48 = arith.addf %46, %47 : vector<64x1xf32>
      %49 = math.rsqrt %48 : vector<64x1xf32>
      %c64_21 = arith.constant 64 : index
      %c0_22 = arith.constant 0 : index
      %50 = vector.load %arg12[%c64_21, %c0_22] : memref<272x1xf32, #tpu.memory_space<vmem>>, vector<64x1xf32>
      %51 = arith.mulf %49, %50 : vector<64x1xf32>
      %c64_23 = arith.constant 64 : index
      %c0_24 = arith.constant 0 : index
      %52 = vector.load %arg13[%c64_23, %c0_24] : memref<272x1xf32, #tpu.memory_space<vmem>>, vector<64x1xf32>
      %53 = arith.mulf %37, %51 : vector<64x1xf32>
      %54 = arith.subf %52, %53 : vector<64x1xf32>
      %55 = vector.broadcast %51 : vector<64x1xf32> to vector<64x196xf32>
      %56 = arith.mulf %33, %55 : vector<64x196xf32>
      %57 = vector.broadcast %54 : vector<64x1xf32> to vector<64x196xf32>
      %58 = arith.addf %56, %57 : vector<64x196xf32>
      %c64_25 = arith.constant 64 : index
      %c0_26 = arith.constant 0 : index
      %59 = vector.load %arg14[%c64_25, %c0_26] : memref<272x196xf32, #tpu.memory_space<vmem>>, vector<64x196xf32>
      tpu.vector_store %arg14[%c64_25, %c0_26], %58 {strides = array<i32>} : memref<272x196xf32, #tpu.memory_space<vmem>>, vector<64x196xf32>,
      %c128 = arith.constant 128 : index
      %c0_27 = arith.constant 0 : index
      %60 = vector.load %arg3[%c128, %c0_27] : memref<256x196xf32, #tpu.memory_space<vmem>>, vector<64x196xf32>
      %cst_28 = arith.constant dense<0.000000e+00> : vector<64xf32>
      %61 = vector.multi_reduction <add>, %60, %cst_28 [1] : vector<64x196xf32> to vector<64xf32>
      %62 = vector.shape_cast %61 : vector<64xf32> to vector<64x1xf32>
      %cst_29 = arith.constant 0.00510204071 : f32
      %63 = vector.broadcast %cst_29 : f32 to vector<64x1xf32>
      %64 = arith.mulf %62, %63 : vector<64x1xf32>
      %65 = arith.mulf %60, %60 : vector<64x196xf32>
      %cst_30 = arith.constant dense<0.000000e+00> : vector<64xf32>
      %66 = vector.multi_reduction <add>, %65, %cst_30 [1] : vector<64x196xf32> to vector<64xf32>
      %67 = vector.shape_cast %66 : vector<64xf32> to vector<64x1xf32>
      %cst_31 = arith.constant 0.00510204071 : f32
      %68 = vector.broadcast %cst_31 : f32 to vector<64x1xf32>
      %69 = arith.mulf %67, %68 : vector<64x1xf32>
      %70 = arith.mulf %64, %64 : vector<64x1xf32>
      %71 = arith.subf %69, %70 : vector<64x1xf32>
      %cst_32 = arith.constant 0.000000e+00 : f32
      %72 = vector.broadcast %cst_32 : f32 to vector<64x1xf32>
      %73 = arith.maximumf %71, %72 : vector<64x1xf32>
      %cst_33 = arith.constant 9.99999974E-6 : f32
      %74 = vector.broadcast %cst_33 : f32 to vector<64x1xf32>
      %75 = arith.addf %73, %74 : vector<64x1xf32>
      %76 = math.rsqrt %75 : vector<64x1xf32>
      %c128_34 = arith.constant 128 : index
      %c0_35 = arith.constant 0 : index
      %77 = vector.load %arg12[%c128_34, %c0_35] : memref<272x1xf32, #tpu.memory_space<vmem>>, vector<64x1xf32>
      %78 = arith.mulf %76, %77 : vector<64x1xf32>
      %c128_36 = arith.constant 128 : index
      %c0_37 = arith.constant 0 : index
      %79 = vector.load %arg13[%c128_36, %c0_37] : memref<272x1xf32, #tpu.memory_space<vmem>>, vector<64x1xf32>
      %80 = arith.mulf %64, %78 : vector<64x1xf32>
      %81 = arith.subf %79, %80 : vector<64x1xf32>
      %82 = vector.broadcast %78 : vector<64x1xf32> to vector<64x196xf32>
      %83 = arith.mulf %60, %82 : vector<64x196xf32>
      %84 = vector.broadcast %81 : vector<64x1xf32> to vector<64x196xf32>
      %85 = arith.addf %83, %84 : vector<64x196xf32>
      %c128_38 = arith.constant 128 : index
      %c0_39 = arith.constant 0 : index
      %86 = vector.load %arg14[%c128_38, %c0_39] : memref<272x196xf32, #tpu.memory_space<vmem>>, vector<64x196xf32>
      tpu.vector_store %arg14[%c128_38, %c0_39], %85 {strides = array<i32>} : memref<272x196xf32, #tpu.memory_space<vmem>>, vector<64x196xf32>,
      %c192 = arith.constant 192 : index
      %c0_40 = arith.constant 0 : index
      %87 = vector.load %arg3[%c192, %c0_40] : memref<256x196xf32, #tpu.memory_space<vmem>>, vector<64x196xf32>
      %cst_41 = arith.constant dense<0.000000e+00> : vector<64xf32>
      %88 = vector.multi_reduction <add>, %87, %cst_41 [1] : vector<64x196xf32> to vector<64xf32>
      %89 = vector.shape_cast %88 : vector<64xf32> to vector<64x1xf32>
      %cst_42 = arith.constant 0.00510204071 : f32
      %90 = vector.broadcast %cst_42 : f32 to vector<64x1xf32>
      %91 = arith.mulf %89, %90 : vector<64x1xf32>
      %92 = arith.mulf %87, %87 : vector<64x196xf32>
      %cst_43 = arith.constant dense<0.000000e+00> : vector<64xf32>
      %93 = vector.multi_reduction <add>, %92, %cst_43 [1] : vector<64x196xf32> to vector<64xf32>
      %94 = vector.shape_cast %93 : vector<64xf32> to vector<64x1xf32>
      %cst_44 = arith.constant 0.00510204071 : f32
      %95 = vector.broadcast %cst_44 : f32 to vector<64x1xf32>
      %96 = arith.mulf %94, %95 : vector<64x1xf32>
      %97 = arith.mulf %91, %91 : vector<64x1xf32>
      %98 = arith.subf %96, %97 : vector<64x1xf32>
      %cst_45 = arith.constant 0.000000e+00 : f32
      %99 = vector.broadcast %cst_45 : f32 to vector<64x1xf32>
      %100 = arith.maximumf %98, %99 : vector<64x1xf32>
      %cst_46 = arith.constant 9.99999974E-6 : f32
      %101 = vector.broadcast %cst_46 : f32 to vector<64x1xf32>
      %102 = arith.addf %100, %101 : vector<64x1xf32>
      %103 = math.rsqrt %102 : vector<64x1xf32>
      %c192_47 = arith.constant 192 : index
      %c0_48 = arith.constant 0 : index
      %104 = vector.load %arg12[%c192_47, %c0_48] : memref<272x1xf32, #tpu.memory_space<vmem>>, vector<64x1xf32>
      %105 = arith.mulf %103, %104 : vector<64x1xf32>
      %c192_49 = arith.constant 192 : index
      %c0_50 = arith.constant 0 : index
      %106 = vector.load %arg13[%c192_49, %c0_50] : memref<272x1xf32, #tpu.memory_space<vmem>>, vector<64x1xf32>
      %107 = arith.mulf %91, %105 : vector<64x1xf32>
      %108 = arith.subf %106, %107 : vector<64x1xf32>
      %109 = vector.broadcast %105 : vector<64x1xf32> to vector<64x196xf32>
      %110 = arith.mulf %87, %109 : vector<64x196xf32>
      %111 = vector.broadcast %108 : vector<64x1xf32> to vector<64x196xf32>
      %112 = arith.addf %110, %111 : vector<64x196xf32>
      %c192_51 = arith.constant 192 : index
      %c0_52 = arith.constant 0 : index
      %113 = vector.load %arg14[%c192_51, %c0_52] : memref<272x196xf32, #tpu.memory_space<vmem>>, vector<64x196xf32>
      tpu.vector_store %arg14[%c192_51, %c0_52], %112 {strides = array<i32>} : memref<272x196xf32, #tpu.memory_space<vmem>>, vector<64x196xf32>,
      %c0_53 = arith.constant 0 : index
      %c0_54 = arith.constant 0 : index
      %114 = vector.load %arg4[%c0_53, %c0_54] : memref<32x196xf32, #tpu.memory_space<vmem>>, vector<16x196xf32>
      %cst_55 = arith.constant dense<0.000000e+00> : vector<16xf32>
      %115 = vector.multi_reduction <add>, %114, %cst_55 [1] : vector<16x196xf32> to vector<16xf32>
      %116 = vector.shape_cast %115 : vector<16xf32> to vector<16x1xf32>
      %cst_56 = arith.constant 0.00510204071 : f32
      %117 = vector.broadcast %cst_56 : f32 to vector<16x1xf32>
      %118 = arith.mulf %116, %117 : vector<16x1xf32>
      %119 = arith.mulf %114, %114 : vector<16x196xf32>
      %cst_57 = arith.constant dense<0.000000e+00> : vector<16xf32>
      %120 = vector.multi_reduction <add>, %119, %cst_57 [1] : vector<16x196xf32> to vector<16xf32>
      %121 = vector.shape_cast %120 : vector<16xf32> to vector<16x1xf32>
      %cst_58 = arith.constant 0.00510204071 : f32
      %122 = vector.broadcast %cst_58 : f32 to vector<16x1xf32>
      %123 = arith.mulf %121, %122 : vector<16x1xf32>
      %124 = arith.mulf %118, %118 : vector<16x1xf32>
      %125 = arith.subf %123, %124 : vector<16x1xf32>
      %cst_59 = arith.constant 0.000000e+00 : f32
      %126 = vector.broadcast %cst_59 : f32 to vector<16x1xf32>
      %127 = arith.maximumf %125, %126 : vector<16x1xf32>
      %cst_60 = arith.constant 9.99999974E-6 : f32
      %128 = vector.broadcast %cst_60 : f32 to vector<16x1xf32>
      %129 = arith.addf %127, %128 : vector<16x1xf32>
      %130 = math.rsqrt %129 : vector<16x1xf32>
      %c256 = arith.constant 256 : index
      %c0_61 = arith.constant 0 : index
      %131 = vector.load %arg12[%c256, %c0_61] : memref<272x1xf32, #tpu.memory_space<vmem>>, vector<16x1xf32>
      %132 = arith.mulf %130, %131 : vector<16x1xf32>
      %c256_62 = arith.constant 256 : index
      %c0_63 = arith.constant 0 : index
      %133 = vector.load %arg13[%c256_62, %c0_63] : memref<272x1xf32, #tpu.memory_space<vmem>>, vector<16x1xf32>
      %134 = arith.mulf %118, %132 : vector<16x1xf32>
      %135 = arith.subf %133, %134 : vector<16x1xf32>
      %136 = vector.broadcast %132 : vector<16x1xf32> to vector<16x196xf32>
      %137 = arith.mulf %114, %136 : vector<16x196xf32>
      %138 = vector.broadcast %135 : vector<16x1xf32> to vector<16x196xf32>
      %139 = arith.addf %137, %138 : vector<16x196xf32>
      %c256_64 = arith.constant 256 : index
      %c0_65 = arith.constant 0 : index
      %140 = vector.load %arg14[%c256_64, %c0_65] : memref<272x196xf32, #tpu.memory_space<vmem>>, vector<16x196xf32>
      tpu.vector_store %arg14[%c256_64, %c0_65], %139 {strides = array<i32>} : memref<272x196xf32, #tpu.memory_space<vmem>>, vector<16x196xf32>,
    } else {
    }
    %c1_i32 = arith.constant 1 : i32
    %3 = arith.cmpi eq, %arg0, %c1_i32 : i32
    %4 = arith.extui %3 : i1 to i32
    %c0_i32_1 = arith.constant 0 : i32
    %5 = arith.cmpi ne, %4, %c0_i32_1 : i32
    scf.if %5 {
      %c16 = arith.constant 16 : index
      %c0 = arith.constant 0 : index
      %6 = vector.load %arg4[%c16, %c0] : memref<32x196xf32, #tpu.memory_space<vmem>>, vector<16x196xf32>
      %cst = arith.constant dense<0.000000e+00> : vector<16xf32>
      %7 = vector.multi_reduction <add>, %6, %cst [1] : vector<16x196xf32> to vector<16xf32>
      %8 = vector.shape_cast %7 : vector<16xf32> to vector<16x1xf32>
      %cst_2 = arith.constant 0.00510204071 : f32
      %9 = vector.broadcast %cst_2 : f32 to vector<16x1xf32>
      %10 = arith.mulf %8, %9 : vector<16x1xf32>
      %11 = arith.mulf %6, %6 : vector<16x196xf32>
      %cst_3 = arith.constant dense<0.000000e+00> : vector<16xf32>
      %12 = vector.multi_reduction <add>, %11, %cst_3 [1] : vector<16x196xf32> to vector<16xf32>
      %13 = vector.shape_cast %12 : vector<16xf32> to vector<16x1xf32>
      %cst_4 = arith.constant 0.00510204071 : f32
      %14 = vector.broadcast %cst_4 : f32 to vector<16x1xf32>
      %15 = arith.mulf %13, %14 : vector<16x1xf32>
      %16 = arith.mulf %10, %10 : vector<16x1xf32>
      %17 = arith.subf %15, %16 : vector<16x1xf32>
      %cst_5 = arith.constant 0.000000e+00 : f32
      %18 = vector.broadcast %cst_5 : f32 to vector<16x1xf32>
      %19 = arith.maximumf %17, %18 : vector<16x1xf32>
      %cst_6 = arith.constant 9.99999974E-6 : f32
      %20 = vector.broadcast %cst_6 : f32 to vector<16x1xf32>
      %21 = arith.addf %19, %20 : vector<16x1xf32>
      %22 = math.rsqrt %21 : vector<16x1xf32>
      %c0_7 = arith.constant 0 : index
      %c0_8 = arith.constant 0 : index
      %23 = vector.load %arg12[%c0_7, %c0_8] : memref<272x1xf32, #tpu.memory_space<vmem>>, vector<16x1xf32>
      %24 = arith.mulf %22, %23 : vector<16x1xf32>
      %c0_9 = arith.constant 0 : index
      %c0_10 = arith.constant 0 : index
      %25 = vector.load %arg13[%c0_9, %c0_10] : memref<272x1xf32, #tpu.memory_space<vmem>>, vector<16x1xf32>
      %26 = arith.mulf %10, %24 : vector<16x1xf32>
      %27 = arith.subf %25, %26 : vector<16x1xf32>
      %28 = vector.broadcast %24 : vector<16x1xf32> to vector<16x196xf32>
      %29 = arith.mulf %6, %28 : vector<16x196xf32>
      %30 = vector.broadcast %27 : vector<16x1xf32> to vector<16x196xf32>
      %31 = arith.addf %29, %30 : vector<16x196xf32>
      %c0_11 = arith.constant 0 : index
      %c0_12 = arith.constant 0 : index
      %32 = vector.load %arg14[%c0_11, %c0_12] : memref<272x196xf32, #tpu.memory_space<vmem>>, vector<16x196xf32>
      tpu.vector_store %arg14[%c0_11, %c0_12], %31 {strides = array<i32>} : memref<272x196xf32, #tpu.memory_space<vmem>>, vector<16x196xf32>,
      %c0_13 = arith.constant 0 : index
      %c0_14 = arith.constant 0 : index
      %33 = vector.load %arg5[%c0_13, %c0_14] : memref<32x196xf32, #tpu.memory_space<vmem>>, vector<32x196xf32>
      %cst_15 = arith.constant dense<0.000000e+00> : vector<32xf32>
      %34 = vector.multi_reduction <add>, %33, %cst_15 [1] : vector<32x196xf32> to vector<32xf32>
      %35 = vector.shape_cast %34 : vector<32xf32> to vector<32x1xf32>
      %cst_16 = arith.constant 0.00510204071 : f32
      %36 = vector.broadcast %cst_16 : f32 to vector<32x1xf32>
      %37 = arith.mulf %35, %36 : vector<32x1xf32>
      %38 = arith.mulf %33, %33 : vector<32x196xf32>
      %cst_17 = arith.constant dense<0.000000e+00> : vector<32xf32>
      %39 = vector.multi_reduction <add>, %38, %cst_17 [1] : vector<32x196xf32> to vector<32xf32>
      %40 = vector.shape_cast %39 : vector<32xf32> to vector<32x1xf32>
      %cst_18 = arith.constant 0.00510204071 : f32
      %41 = vector.broadcast %cst_18 : f32 to vector<32x1xf32>
      %42 = arith.mulf %40, %41 : vector<32x1xf32>
      %43 = arith.mulf %37, %37 : vector<32x1xf32>
      %44 = arith.subf %42, %43 : vector<32x1xf32>
      %cst_19 = arith.constant 0.000000e+00 : f32
      %45 = vector.broadcast %cst_19 : f32 to vector<32x1xf32>
      %46 = arith.maximumf %44, %45 : vector<32x1xf32>
      %cst_20 = arith.constant 9.99999974E-6 : f32
      %47 = vector.broadcast %cst_20 : f32 to vector<32x1xf32>
      %48 = arith.addf %46, %47 : vector<32x1xf32>
      %49 = math.rsqrt %48 : vector<32x1xf32>
      %c16_21 = arith.constant 16 : index
      %c0_22 = arith.constant 0 : index
      %50 = vector.load %arg12[%c16_21, %c0_22] : memref<272x1xf32, #tpu.memory_space<vmem>>, vector<32x1xf32>
      %51 = arith.mulf %49, %50 : vector<32x1xf32>
      %c16_23 = arith.constant 16 : index
      %c0_24 = arith.constant 0 : index
      %52 = vector.load %arg13[%c16_23, %c0_24] : memref<272x1xf32, #tpu.memory_space<vmem>>, vector<32x1xf32>
      %53 = arith.mulf %37, %51 : vector<32x1xf32>
      %54 = arith.subf %52, %53 : vector<32x1xf32>
      %55 = vector.broadcast %51 : vector<32x1xf32> to vector<32x196xf32>
      %56 = arith.mulf %33, %55 : vector<32x196xf32>
      %57 = vector.broadcast %54 : vector<32x1xf32> to vector<32x196xf32>
      %58 = arith.addf %56, %57 : vector<32x196xf32>
      %c16_25 = arith.constant 16 : index
      %c0_26 = arith.constant 0 : index
      %59 = vector.load %arg14[%c16_25, %c0_26] : memref<272x196xf32, #tpu.memory_space<vmem>>, vector<32x196xf32>
      tpu.vector_store %arg14[%c16_25, %c0_26], %58 {strides = array<i32>} : memref<272x196xf32, #tpu.memory_space<vmem>>, vector<32x196xf32>,
      %c0_27 = arith.constant 0 : index
      %c0_28 = arith.constant 0 : index
      %60 = vector.load %arg6[%c0_27, %c0_28] : memref<32x196xf32, #tpu.memory_space<vmem>>, vector<32x196xf32>
      %cst_29 = arith.constant dense<0.000000e+00> : vector<32xf32>
      %61 = vector.multi_reduction <add>, %60, %cst_29 [1] : vector<32x196xf32> to vector<32xf32>
      %62 = vector.shape_cast %61 : vector<32xf32> to vector<32x1xf32>
      %cst_30 = arith.constant 0.00510204071 : f32
      %63 = vector.broadcast %cst_30 : f32 to vector<32x1xf32>
      %64 = arith.mulf %62, %63 : vector<32x1xf32>
      %65 = arith.mulf %60, %60 : vector<32x196xf32>
      %cst_31 = arith.constant dense<0.000000e+00> : vector<32xf32>
      %66 = vector.multi_reduction <add>, %65, %cst_31 [1] : vector<32x196xf32> to vector<32xf32>
      %67 = vector.shape_cast %66 : vector<32xf32> to vector<32x1xf32>
      %cst_32 = arith.constant 0.00510204071 : f32
      %68 = vector.broadcast %cst_32 : f32 to vector<32x1xf32>
      %69 = arith.mulf %67, %68 : vector<32x1xf32>
      %70 = arith.mulf %64, %64 : vector<32x1xf32>
      %71 = arith.subf %69, %70 : vector<32x1xf32>
      %cst_33 = arith.constant 0.000000e+00 : f32
      %72 = vector.broadcast %cst_33 : f32 to vector<32x1xf32>
      %73 = arith.maximumf %71, %72 : vector<32x1xf32>
      %cst_34 = arith.constant 9.99999974E-6 : f32
      %74 = vector.broadcast %cst_34 : f32 to vector<32x1xf32>
      %75 = arith.addf %73, %74 : vector<32x1xf32>
      %76 = math.rsqrt %75 : vector<32x1xf32>
      %c48 = arith.constant 48 : index
      %c0_35 = arith.constant 0 : index
      %77 = vector.load %arg12[%c48, %c0_35] : memref<272x1xf32, #tpu.memory_space<vmem>>, vector<32x1xf32>
      %78 = arith.mulf %76, %77 : vector<32x1xf32>
      %c48_36 = arith.constant 48 : index
      %c0_37 = arith.constant 0 : index
      %79 = vector.load %arg13[%c48_36, %c0_37] : memref<272x1xf32, #tpu.memory_space<vmem>>, vector<32x1xf32>
      %80 = arith.mulf %64, %78 : vector<32x1xf32>
      %81 = arith.subf %79, %80 : vector<32x1xf32>
      %82 = vector.broadcast %78 : vector<32x1xf32> to vector<32x196xf32>
      %83 = arith.mulf %60, %82 : vector<32x196xf32>
      %84 = vector.broadcast %81 : vector<32x1xf32> to vector<32x196xf32>
      %85 = arith.addf %83, %84 : vector<32x196xf32>
      %c48_38 = arith.constant 48 : index
      %c0_39 = arith.constant 0 : index
      %86 = vector.load %arg14[%c48_38, %c0_39] : memref<272x196xf32, #tpu.memory_space<vmem>>, vector<32x196xf32>
      tpu.vector_store %arg14[%c48_38, %c0_39], %85 {strides = array<i32>} : memref<272x196xf32, #tpu.memory_space<vmem>>, vector<32x196xf32>,
      %c0_40 = arith.constant 0 : index
      %c0_41 = arith.constant 0 : index
      %87 = vector.load %arg7[%c0_40, %c0_41] : memref<32x196xf32, #tpu.memory_space<vmem>>, vector<32x196xf32>
      %cst_42 = arith.constant dense<0.000000e+00> : vector<32xf32>
      %88 = vector.multi_reduction <add>, %87, %cst_42 [1] : vector<32x196xf32> to vector<32xf32>
      %89 = vector.shape_cast %88 : vector<32xf32> to vector<32x1xf32>
      %cst_43 = arith.constant 0.00510204071 : f32
      %90 = vector.broadcast %cst_43 : f32 to vector<32x1xf32>
      %91 = arith.mulf %89, %90 : vector<32x1xf32>
      %92 = arith.mulf %87, %87 : vector<32x196xf32>
      %cst_44 = arith.constant dense<0.000000e+00> : vector<32xf32>
      %93 = vector.multi_reduction <add>, %92, %cst_44 [1] : vector<32x196xf32> to vector<32xf32>
      %94 = vector.shape_cast %93 : vector<32xf32> to vector<32x1xf32>
      %cst_45 = arith.constant 0.00510204071 : f32
      %95 = vector.broadcast %cst_45 : f32 to vector<32x1xf32>
      %96 = arith.mulf %94, %95 : vector<32x1xf32>
      %97 = arith.mulf %91, %91 : vector<32x1xf32>
      %98 = arith.subf %96, %97 : vector<32x1xf32>
      %cst_46 = arith.constant 0.000000e+00 : f32
      %99 = vector.broadcast %cst_46 : f32 to vector<32x1xf32>
      %100 = arith.maximumf %98, %99 : vector<32x1xf32>
      %cst_47 = arith.constant 9.99999974E-6 : f32
      %101 = vector.broadcast %cst_47 : f32 to vector<32x1xf32>
      %102 = arith.addf %100, %101 : vector<32x1xf32>
      %103 = math.rsqrt %102 : vector<32x1xf32>
      %c80 = arith.constant 80 : index
      %c0_48 = arith.constant 0 : index
      %104 = vector.load %arg12[%c80, %c0_48] : memref<272x1xf32, #tpu.memory_space<vmem>>, vector<32x1xf32>
      %105 = arith.mulf %103, %104 : vector<32x1xf32>
      %c80_49 = arith.constant 80 : index
      %c0_50 = arith.constant 0 : index
      %106 = vector.load %arg13[%c80_49, %c0_50] : memref<272x1xf32, #tpu.memory_space<vmem>>, vector<32x1xf32>
      %107 = arith.mulf %91, %105 : vector<32x1xf32>
      %108 = arith.subf %106, %107 : vector<32x1xf32>
      %109 = vector.broadcast %105 : vector<32x1xf32> to vector<32x196xf32>
      %110 = arith.mulf %87, %109 : vector<32x196xf32>
      %111 = vector.broadcast %108 : vector<32x1xf32> to vector<32x196xf32>
      %112 = arith.addf %110, %111 : vector<32x196xf32>
      %c80_51 = arith.constant 80 : index
      %c0_52 = arith.constant 0 : index
      %113 = vector.load %arg14[%c80_51, %c0_52] : memref<272x196xf32, #tpu.memory_space<vmem>>, vector<32x196xf32>
      tpu.vector_store %arg14[%c80_51, %c0_52], %112 {strides = array<i32>} : memref<272x196xf32, #tpu.memory_space<vmem>>, vector<32x196xf32>,
      %c0_53 = arith.constant 0 : index
      %c0_54 = arith.constant 0 : index
      %114 = vector.load %arg8[%c0_53, %c0_54] : memref<32x196xf32, #tpu.memory_space<vmem>>, vector<32x196xf32>
      %cst_55 = arith.constant dense<0.000000e+00> : vector<32xf32>
      %115 = vector.multi_reduction <add>, %114, %cst_55 [1] : vector<32x196xf32> to vector<32xf32>
      %116 = vector.shape_cast %115 : vector<32xf32> to vector<32x1xf32>
      %cst_56 = arith.constant 0.00510204071 : f32
      %117 = vector.broadcast %cst_56 : f32 to vector<32x1xf32>
      %118 = arith.mulf %116, %117 : vector<32x1xf32>
      %119 = arith.mulf %114, %114 : vector<32x196xf32>
      %cst_57 = arith.constant dense<0.000000e+00> : vector<32xf32>
      %120 = vector.multi_reduction <add>, %119, %cst_57 [1] : vector<32x196xf32> to vector<32xf32>
      %121 = vector.shape_cast %120 : vector<32xf32> to vector<32x1xf32>
      %cst_58 = arith.constant 0.00510204071 : f32
      %122 = vector.broadcast %cst_58 : f32 to vector<32x1xf32>
      %123 = arith.mulf %121, %122 : vector<32x1xf32>
      %124 = arith.mulf %118, %118 : vector<32x1xf32>
      %125 = arith.subf %123, %124 : vector<32x1xf32>
      %cst_59 = arith.constant 0.000000e+00 : f32
      %126 = vector.broadcast %cst_59 : f32 to vector<32x1xf32>
      %127 = arith.maximumf %125, %126 : vector<32x1xf32>
      %cst_60 = arith.constant 9.99999974E-6 : f32
      %128 = vector.broadcast %cst_60 : f32 to vector<32x1xf32>
      %129 = arith.addf %127, %128 : vector<32x1xf32>
      %130 = math.rsqrt %129 : vector<32x1xf32>
      %c112 = arith.constant 112 : index
      %c0_61 = arith.constant 0 : index
      %131 = vector.load %arg12[%c112, %c0_61] : memref<272x1xf32, #tpu.memory_space<vmem>>, vector<32x1xf32>
      %132 = arith.mulf %130, %131 : vector<32x1xf32>
      %c112_62 = arith.constant 112 : index
      %c0_63 = arith.constant 0 : index
      %133 = vector.load %arg13[%c112_62, %c0_63] : memref<272x1xf32, #tpu.memory_space<vmem>>, vector<32x1xf32>
      %134 = arith.mulf %118, %132 : vector<32x1xf32>
      %135 = arith.subf %133, %134 : vector<32x1xf32>
      %136 = vector.broadcast %132 : vector<32x1xf32> to vector<32x196xf32>
      %137 = arith.mulf %114, %136 : vector<32x196xf32>
      %138 = vector.broadcast %135 : vector<32x1xf32> to vector<32x196xf32>
      %139 = arith.addf %137, %138 : vector<32x196xf32>
      %c112_64 = arith.constant 112 : index
      %c0_65 = arith.constant 0 : index
      %140 = vector.load %arg14[%c112_64, %c0_65] : memref<272x196xf32, #tpu.memory_space<vmem>>, vector<32x196xf32>
      tpu.vector_store %arg14[%c112_64, %c0_65], %139 {strides = array<i32>} : memref<272x196xf32, #tpu.memory_space<vmem>>, vector<32x196xf32>,
      %c0_66 = arith.constant 0 : index
      %c0_67 = arith.constant 0 : index
      %141 = vector.load %arg9[%c0_66, %c0_67] : memref<32x196xf32, #tpu.memory_space<vmem>>, vector<32x196xf32>
      %cst_68 = arith.constant dense<0.000000e+00> : vector<32xf32>
      %142 = vector.multi_reduction <add>, %141, %cst_68 [1] : vector<32x196xf32> to vector<32xf32>
      %143 = vector.shape_cast %142 : vector<32xf32> to vector<32x1xf32>
      %cst_69 = arith.constant 0.00510204071 : f32
      %144 = vector.broadcast %cst_69 : f32 to vector<32x1xf32>
      %145 = arith.mulf %143, %144 : vector<32x1xf32>
      %146 = arith.mulf %141, %141 : vector<32x196xf32>
      %cst_70 = arith.constant dense<0.000000e+00> : vector<32xf32>
      %147 = vector.multi_reduction <add>, %146, %cst_70 [1] : vector<32x196xf32> to vector<32xf32>
      %148 = vector.shape_cast %147 : vector<32xf32> to vector<32x1xf32>
      %cst_71 = arith.constant 0.00510204071 : f32
      %149 = vector.broadcast %cst_71 : f32 to vector<32x1xf32>
      %150 = arith.mulf %148, %149 : vector<32x1xf32>
      %151 = arith.mulf %145, %145 : vector<32x1xf32>
      %152 = arith.subf %150, %151 : vector<32x1xf32>
      %cst_72 = arith.constant 0.000000e+00 : f32
      %153 = vector.broadcast %cst_72 : f32 to vector<32x1xf32>
      %154 = arith.maximumf %152, %153 : vector<32x1xf32>
      %cst_73 = arith.constant 9.99999974E-6 : f32
      %155 = vector.broadcast %cst_73 : f32 to vector<32x1xf32>
      %156 = arith.addf %154, %155 : vector<32x1xf32>
      %157 = math.rsqrt %156 : vector<32x1xf32>
      %c144 = arith.constant 144 : index
      %c0_74 = arith.constant 0 : index
      %158 = vector.load %arg12[%c144, %c0_74] : memref<272x1xf32, #tpu.memory_space<vmem>>, vector<32x1xf32>
      %159 = arith.mulf %157, %158 : vector<32x1xf32>
      %c144_75 = arith.constant 144 : index
      %c0_76 = arith.constant 0 : index
      %160 = vector.load %arg13[%c144_75, %c0_76] : memref<272x1xf32, #tpu.memory_space<vmem>>, vector<32x1xf32>
      %161 = arith.mulf %145, %159 : vector<32x1xf32>
      %162 = arith.subf %160, %161 : vector<32x1xf32>
      %163 = vector.broadcast %159 : vector<32x1xf32> to vector<32x196xf32>
      %164 = arith.mulf %141, %163 : vector<32x196xf32>
      %165 = vector.broadcast %162 : vector<32x1xf32> to vector<32x196xf32>
      %166 = arith.addf %164, %165 : vector<32x196xf32>
      %c144_77 = arith.constant 144 : index
      %c0_78 = arith.constant 0 : index
      %167 = vector.load %arg14[%c144_77, %c0_78] : memref<272x196xf32, #tpu.memory_space<vmem>>, vector<32x196xf32>
      tpu.vector_store %arg14[%c144_77, %c0_78], %166 {strides = array<i32>} : memref<272x196xf32, #tpu.memory_space<vmem>>, vector<32x196xf32>,
      %c0_79 = arith.constant 0 : index
      %c0_80 = arith.constant 0 : index
      %168 = vector.load %arg10[%c0_79, %c0_80] : memref<32x196xf32, #tpu.memory_space<vmem>>, vector<32x196xf32>
      %cst_81 = arith.constant dense<0.000000e+00> : vector<32xf32>
      %169 = vector.multi_reduction <add>, %168, %cst_81 [1] : vector<32x196xf32> to vector<32xf32>
      %170 = vector.shape_cast %169 : vector<32xf32> to vector<32x1xf32>
      %cst_82 = arith.constant 0.00510204071 : f32
      %171 = vector.broadcast %cst_82 : f32 to vector<32x1xf32>
      %172 = arith.mulf %170, %171 : vector<32x1xf32>
      %173 = arith.mulf %168, %168 : vector<32x196xf32>
      %cst_83 = arith.constant dense<0.000000e+00> : vector<32xf32>
      %174 = vector.multi_reduction <add>, %173, %cst_83 [1] : vector<32x196xf32> to vector<32xf32>
      %175 = vector.shape_cast %174 : vector<32xf32> to vector<32x1xf32>
      %cst_84 = arith.constant 0.00510204071 : f32
      %176 = vector.broadcast %cst_84 : f32 to vector<32x1xf32>
      %177 = arith.mulf %175, %176 : vector<32x1xf32>
      %178 = arith.mulf %172, %172 : vector<32x1xf32>
      %179 = arith.subf %177, %178 : vector<32x1xf32>
      %cst_85 = arith.constant 0.000000e+00 : f32
      %180 = vector.broadcast %cst_85 : f32 to vector<32x1xf32>
      %181 = arith.maximumf %179, %180 : vector<32x1xf32>
      %cst_86 = arith.constant 9.99999974E-6 : f32
      %182 = vector.broadcast %cst_86 : f32 to vector<32x1xf32>
      %183 = arith.addf %181, %182 : vector<32x1xf32>
      %184 = math.rsqrt %183 : vector<32x1xf32>
      %c176 = arith.constant 176 : index
      %c0_87 = arith.constant 0 : index
      %185 = vector.load %arg12[%c176, %c0_87] : memref<272x1xf32, #tpu.memory_space<vmem>>, vector<32x1xf32>
      %186 = arith.mulf %184, %185 : vector<32x1xf32>
      %c176_88 = arith.constant 176 : index
      %c0_89 = arith.constant 0 : index
      %187 = vector.load %arg13[%c176_88, %c0_89] : memref<272x1xf32, #tpu.memory_space<vmem>>, vector<32x1xf32>
      %188 = arith.mulf %172, %186 : vector<32x1xf32>
      %189 = arith.subf %187, %188 : vector<32x1xf32>
      %190 = vector.broadcast %186 : vector<32x1xf32> to vector<32x196xf32>
      %191 = arith.mulf %168, %190 : vector<32x196xf32>
      %192 = vector.broadcast %189 : vector<32x1xf32> to vector<32x196xf32>
      %193 = arith.addf %191, %192 : vector<32x196xf32>
      %c176_90 = arith.constant 176 : index
      %c0_91 = arith.constant 0 : index
      %194 = vector.load %arg14[%c176_90, %c0_91] : memref<272x196xf32, #tpu.memory_space<vmem>>, vector<32x196xf32>
      tpu.vector_store %arg14[%c176_90, %c0_91], %193 {strides = array<i32>} : memref<272x196xf32, #tpu.memory_space<vmem>>, vector<32x196xf32>,
      %c0_92 = arith.constant 0 : index
      %c0_93 = arith.constant 0 : index
      %195 = vector.load %arg1[%c0_92, %c0_93] : memref<128x226xf32, #tpu.memory_space<vmem>>, vector<128x226xf32>
      %196 = tpu.iota {dimensions = array<i32: 1>} : vector<1x196xi32>
      %c14_i32 = arith.constant 14 : i32
      %c0_i32_94 = arith.constant 0 : i32
      %197 = arith.cmpi eq, %c14_i32, %c0_i32_94 : i32
      %c1_i32_95 = arith.constant 1 : i32
      %198 = arith.select %197, %c1_i32_95, %c14_i32 : i32
      %199 = vector.broadcast %198 : i32 to vector<1x196xi32>
      %200 = arith.remsi %196, %199 : vector<1x196xi32>
      %c0_i32_96 = arith.constant 0 : i32
      %201 = vector.broadcast %c0_i32_96 : i32 to vector<1x196xi32>
      %202 = arith.cmpi ne, %200, %201 : vector<1x196xi32>
      %c0_i32_97 = arith.constant 0 : i32
      %203 = vector.broadcast %c0_i32_97 : i32 to vector<1x196xi32>
      %204 = arith.cmpi slt, %200, %203 : vector<1x196xi32>
      %c0_i32_98 = arith.constant 0 : i32
      %205 = arith.cmpi slt, %198, %c0_i32_98 : i32
      %206 = vector.broadcast %205 : i1 to vector<1x196xi1>
      %207 = vector.broadcast %206 : vector<1x196xi1> to vector<1x196xi1>
      %208 = arith.xori %204, %207 : vector<1x196xi1>
      %209 = arith.andi %208, %202 : vector<1x196xi1>
      %210 = vector.broadcast %198 : i32 to vector<1x196xi32>
      %211 = arith.addi %200, %210 : vector<1x196xi32>
      %212 = arith.select %209, %211, %200 : vector<1x196xi1>, vector<1x196xi32>
      %c1_i32_99 = arith.constant 1 : i32
      %213 = vector.broadcast %c1_i32_99 : i32 to vector<1x196xi32>
      %214 = arith.cmpi sge, %212, %213 : vector<1x196xi32>
      %c12_i32 = arith.constant 12 : i32
      %215 = vector.broadcast %c12_i32 : i32 to vector<1x196xi32>
      %216 = arith.cmpi sle, %212, %215 : vector<1x196xi32>
      %cst_100 = arith.constant 0.000000e+00 : f32
      %217 = vector.broadcast %cst_100 : f32 to vector<32x196xf32>
      %218 = vector.extract_strided_slice %195 {offsets = [0, 0], sizes = [128, 196], strides = [1, 1]} : vector<128x226xf32> to vector<128x196xf32>
      %cst_101 = arith.constant 0.000000e+00 : f32
      %219 = vector.shape_cast %214 : vector<1x196xi1> to vector<1x196xi1>
      %220 = vector.broadcast %219 : vector<1x196xi1> to vector<128x196xi1>
      %221 = vector.broadcast %cst_101 : f32 to vector<128x196xf32>
      %222 = arith.select %220, %218, %221 : vector<128x196xi1>, vector<128x196xf32>
      %c0_102 = arith.constant 0 : index
      %c0_103 = arith.constant 0 : index
      %c0_104 = arith.constant 0 : index
      %223 = vector.load %arg2[%c0_102, %c0_103, %c0_104] : memref<9x32x128xbf16, #tpu.memory_space<vmem>>, vector<1x32x128xbf16>
      %224 = vector.shape_cast %223 : vector<1x32x128xbf16> to vector<32x128xbf16>
      %225 = arith.truncf %222 : vector<128x196xf32> to vector<128x196xbf16>
      %cst_105 = arith.constant dense<0.000000e+00> : vector<32x196xf32>
      %226 = tpu.matmul %224, %225, %cst_105 {dimension_numbers = #tpu.dot_dimension_numbers<[1], [0], [0], [1], [0, 0, 1, 1], [], []>} : vector<32x128xbf16>, vector<128x196xbf16>, vector<32x196xf32> -> vector<32x196xf32>
      %227 = arith.addf %217, %226 : vector<32x196xf32>
      %228 = vector.extract_strided_slice %195 {offsets = [0, 1], sizes = [128, 196], strides = [1, 1]} : vector<128x226xf32> to vector<128x196xf32>
      %c1 = arith.constant 1 : index
      %c0_106 = arith.constant 0 : index
      %c0_107 = arith.constant 0 : index
      %229 = vector.load %arg2[%c1, %c0_106, %c0_107] : memref<9x32x128xbf16, #tpu.memory_space<vmem>>, vector<1x32x128xbf16>
      %230 = vector.shape_cast %229 : vector<1x32x128xbf16> to vector<32x128xbf16>
      %231 = arith.truncf %228 : vector<128x196xf32> to vector<128x196xbf16>
      %cst_108 = arith.constant dense<0.000000e+00> : vector<32x196xf32>
      %232 = tpu.matmul %230, %231, %cst_108 {dimension_numbers = #tpu.dot_dimension_numbers<[1], [0], [0], [1], [0, 0, 1, 1], [], []>} : vector<32x128xbf16>, vector<128x196xbf16>, vector<32x196xf32> -> vector<32x196xf32>
      %233 = arith.addf %227, %232 : vector<32x196xf32>
      %234 = vector.extract_strided_slice %195 {offsets = [0, 2], sizes = [128, 196], strides = [1, 1]} : vector<128x226xf32> to vector<128x196xf32>
      %cst_109 = arith.constant 0.000000e+00 : f32
      %235 = vector.shape_cast %216 : vector<1x196xi1> to vector<1x196xi1>
      %236 = vector.broadcast %235 : vector<1x196xi1> to vector<128x196xi1>
      %237 = vector.broadcast %cst_109 : f32 to vector<128x196xf32>
      %238 = arith.select %236, %234, %237 : vector<128x196xi1>, vector<128x196xf32>
      %c2 = arith.constant 2 : index
      %c0_110 = arith.constant 0 : index
      %c0_111 = arith.constant 0 : index
      %239 = vector.load %arg2[%c2, %c0_110, %c0_111] : memref<9x32x128xbf16, #tpu.memory_space<vmem>>, vector<1x32x128xbf16>
      %240 = vector.shape_cast %239 : vector<1x32x128xbf16> to vector<32x128xbf16>
      %241 = arith.truncf %238 : vector<128x196xf32> to vector<128x196xbf16>
      %cst_112 = arith.constant dense<0.000000e+00> : vector<32x196xf32>
      %242 = tpu.matmul %240, %241, %cst_112 {dimension_numbers = #tpu.dot_dimension_numbers<[1], [0], [0], [1], [0, 0, 1, 1], [], []>} : vector<32x128xbf16>, vector<128x196xbf16>, vector<32x196xf32> -> vector<32x196xf32>
      %243 = arith.addf %233, %242 : vector<32x196xf32>
      %244 = vector.extract_strided_slice %195 {offsets = [0, 14], sizes = [128, 196], strides = [1, 1]} : vector<128x226xf32> to vector<128x196xf32>
      %cst_113 = arith.constant 0.000000e+00 : f32
      %245 = vector.shape_cast %214 : vector<1x196xi1> to vector<1x196xi1>
      %246 = vector.broadcast %245 : vector<1x196xi1> to vector<128x196xi1>
      %247 = vector.broadcast %cst_113 : f32 to vector<128x196xf32>
      %248 = arith.select %246, %244, %247 : vector<128x196xi1>, vector<128x196xf32>
      %c3 = arith.constant 3 : index
      %c0_114 = arith.constant 0 : index
      %c0_115 = arith.constant 0 : index
      %249 = vector.load %arg2[%c3, %c0_114, %c0_115] : memref<9x32x128xbf16, #tpu.memory_space<vmem>>, vector<1x32x128xbf16>
      %250 = vector.shape_cast %249 : vector<1x32x128xbf16> to vector<32x128xbf16>
      %251 = arith.truncf %248 : vector<128x196xf32> to vector<128x196xbf16>
      %cst_116 = arith.constant dense<0.000000e+00> : vector<32x196xf32>
      %252 = tpu.matmul %250, %251, %cst_116 {dimension_numbers = #tpu.dot_dimension_numbers<[1], [0], [0], [1], [0, 0, 1, 1], [], []>} : vector<32x128xbf16>, vector<128x196xbf16>, vector<32x196xf32> -> vector<32x196xf32>
      %253 = arith.addf %243, %252 : vector<32x196xf32>
      %254 = vector.extract_strided_slice %195 {offsets = [0, 15], sizes = [128, 196], strides = [1, 1]} : vector<128x226xf32> to vector<128x196xf32>
      %c4 = arith.constant 4 : index
      %c0_117 = arith.constant 0 : index
      %c0_118 = arith.constant 0 : index
      %255 = vector.load %arg2[%c4, %c0_117, %c0_118] : memref<9x32x128xbf16, #tpu.memory_space<vmem>>, vector<1x32x128xbf16>
      %256 = vector.shape_cast %255 : vector<1x32x128xbf16> to vector<32x128xbf16>
      %257 = arith.truncf %254 : vector<128x196xf32> to vector<128x196xbf16>
      %cst_119 = arith.constant dense<0.000000e+00> : vector<32x196xf32>
      %258 = tpu.matmul %256, %257, %cst_119 {dimension_numbers = #tpu.dot_dimension_numbers<[1], [0], [0], [1], [0, 0, 1, 1], [], []>} : vector<32x128xbf16>, vector<128x196xbf16>, vector<32x196xf32> -> vector<32x196xf32>
      %259 = arith.addf %253, %258 : vector<32x196xf32>
      %260 = vector.extract_strided_slice %195 {offsets = [0, 16], sizes = [128, 196], strides = [1, 1]} : vector<128x226xf32> to vector<128x196xf32>
      %cst_120 = arith.constant 0.000000e+00 : f32
      %261 = vector.shape_cast %216 : vector<1x196xi1> to vector<1x196xi1>
      %262 = vector.broadcast %261 : vector<1x196xi1> to vector<128x196xi1>
      %263 = vector.broadcast %cst_120 : f32 to vector<128x196xf32>
      %264 = arith.select %262, %260, %263 : vector<128x196xi1>, vector<128x196xf32>
      %c5 = arith.constant 5 : index
      %c0_121 = arith.constant 0 : index
      %c0_122 = arith.constant 0 : index
      %265 = vector.load %arg2[%c5, %c0_121, %c0_122] : memref<9x32x128xbf16, #tpu.memory_space<vmem>>, vector<1x32x128xbf16>
      %266 = vector.shape_cast %265 : vector<1x32x128xbf16> to vector<32x128xbf16>
      %267 = arith.truncf %264 : vector<128x196xf32> to vector<128x196xbf16>
      %cst_123 = arith.constant dense<0.000000e+00> : vector<32x196xf32>
      %268 = tpu.matmul %266, %267, %cst_123 {dimension_numbers = #tpu.dot_dimension_numbers<[1], [0], [0], [1], [0, 0, 1, 1], [], []>} : vector<32x128xbf16>, vector<128x196xbf16>, vector<32x196xf32> -> vector<32x196xf32>
      %269 = arith.addf %259, %268 : vector<32x196xf32>
      %270 = vector.extract_strided_slice %195 {offsets = [0, 28], sizes = [128, 196], strides = [1, 1]} : vector<128x226xf32> to vector<128x196xf32>
      %cst_124 = arith.constant 0.000000e+00 : f32
      %271 = vector.shape_cast %214 : vector<1x196xi1> to vector<1x196xi1>
      %272 = vector.broadcast %271 : vector<1x196xi1> to vector<128x196xi1>
      %273 = vector.broadcast %cst_124 : f32 to vector<128x196xf32>
      %274 = arith.select %272, %270, %273 : vector<128x196xi1>, vector<128x196xf32>
      %c6 = arith.constant 6 : index
      %c0_125 = arith.constant 0 : index
      %c0_126 = arith.constant 0 : index
      %275 = vector.load %arg2[%c6, %c0_125, %c0_126] : memref<9x32x128xbf16, #tpu.memory_space<vmem>>, vector<1x32x128xbf16>
      %276 = vector.shape_cast %275 : vector<1x32x128xbf16> to vector<32x128xbf16>
      %277 = arith.truncf %274 : vector<128x196xf32> to vector<128x196xbf16>
      %cst_127 = arith.constant dense<0.000000e+00> : vector<32x196xf32>
      %278 = tpu.matmul %276, %277, %cst_127 {dimension_numbers = #tpu.dot_dimension_numbers<[1], [0], [0], [1], [0, 0, 1, 1], [], []>} : vector<32x128xbf16>, vector<128x196xbf16>, vector<32x196xf32> -> vector<32x196xf32>
      %279 = arith.addf %269, %278 : vector<32x196xf32>
      %280 = vector.extract_strided_slice %195 {offsets = [0, 29], sizes = [128, 196], strides = [1, 1]} : vector<128x226xf32> to vector<128x196xf32>
      %c7 = arith.constant 7 : index
      %c0_128 = arith.constant 0 : index
      %c0_129 = arith.constant 0 : index
      %281 = vector.load %arg2[%c7, %c0_128, %c0_129] : memref<9x32x128xbf16, #tpu.memory_space<vmem>>, vector<1x32x128xbf16>
      %282 = vector.shape_cast %281 : vector<1x32x128xbf16> to vector<32x128xbf16>
      %283 = arith.truncf %280 : vector<128x196xf32> to vector<128x196xbf16>
      %cst_130 = arith.constant dense<0.000000e+00> : vector<32x196xf32>
      %284 = tpu.matmul %282, %283, %cst_130 {dimension_numbers = #tpu.dot_dimension_numbers<[1], [0], [0], [1], [0, 0, 1, 1], [], []>} : vector<32x128xbf16>, vector<128x196xbf16>, vector<32x196xf32> -> vector<32x196xf32>
      %285 = arith.addf %279, %284 : vector<32x196xf32>
      %286 = vector.extract_strided_slice %195 {offsets = [0, 30], sizes = [128, 196], strides = [1, 1]} : vector<128x226xf32> to vector<128x196xf32>
      %cst_131 = arith.constant 0.000000e+00 : f32
      %287 = vector.shape_cast %216 : vector<1x196xi1> to vector<1x196xi1>
      %288 = vector.broadcast %287 : vector<1x196xi1> to vector<128x196xi1>
      %289 = vector.broadcast %cst_131 : f32 to vector<128x196xf32>
      %290 = arith.select %288, %286, %289 : vector<128x196xi1>, vector<128x196xf32>
      %c8 = arith.constant 8 : index
      %c0_132 = arith.constant 0 : index
      %c0_133 = arith.constant 0 : index
      %291 = vector.load %arg2[%c8, %c0_132, %c0_133] : memref<9x32x128xbf16, #tpu.memory_space<vmem>>, vector<1x32x128xbf16>
      %292 = vector.shape_cast %291 : vector<1x32x128xbf16> to vector<32x128xbf16>
      %293 = arith.truncf %290 : vector<128x196xf32> to vector<128x196xbf16>
      %cst_134 = arith.constant dense<0.000000e+00> : vector<32x196xf32>
      %294 = tpu.matmul %292, %293, %cst_134 {dimension_numbers = #tpu.dot_dimension_numbers<[1], [0], [0], [1], [0, 0, 1, 1], [], []>} : vector<32x128xbf16>, vector<128x196xbf16>, vector<32x196xf32> -> vector<32x196xf32>
      %295 = arith.addf %285, %294 : vector<32x196xf32>
      %cst_135 = arith.constant dense<0.000000e+00> : vector<32xf32>
      %296 = vector.multi_reduction <add>, %295, %cst_135 [1] : vector<32x196xf32> to vector<32xf32>
      %297 = vector.shape_cast %296 : vector<32xf32> to vector<32x1xf32>
      %cst_136 = arith.constant 0.00510204071 : f32
      %298 = vector.broadcast %cst_136 : f32 to vector<32x1xf32>
      %299 = arith.mulf %297, %298 : vector<32x1xf32>
      %300 = arith.mulf %295, %295 : vector<32x196xf32>
      %cst_137 = arith.constant dense<0.000000e+00> : vector<32xf32>
      %301 = vector.multi_reduction <add>, %300, %cst_137 [1] : vector<32x196xf32> to vector<32xf32>
      %302 = vector.shape_cast %301 : vector<32xf32> to vector<32x1xf32>
      %cst_138 = arith.constant 0.00510204071 : f32
      %303 = vector.broadcast %cst_138 : f32 to vector<32x1xf32>
      %304 = arith.mulf %302, %303 : vector<32x1xf32>
      %305 = arith.mulf %299, %299 : vector<32x1xf32>
      %306 = arith.subf %304, %305 : vector<32x1xf32>
      %cst_139 = arith.constant 0.000000e+00 : f32
      %307 = vector.broadcast %cst_139 : f32 to vector<32x1xf32>
      %308 = arith.maximumf %306, %307 : vector<32x1xf32>
      %cst_140 = arith.constant 9.99999974E-6 : f32
      %309 = vector.broadcast %cst_140 : f32 to vector<32x1xf32>
      %310 = arith.addf %308, %309 : vector<32x1xf32>
      %311 = math.rsqrt %310 : vector<32x1xf32>
      %c208 = arith.constant 208 : index
      %c0_141 = arith.constant 0 : index
      %312 = vector.load %arg12[%c208, %c0_141] : memref<272x1xf32, #tpu.memory_space<vmem>>, vector<32x1xf32>
      %313 = arith.mulf %311, %312 : vector<32x1xf32>
      %c208_142 = arith.constant 208 : index
      %c0_143 = arith.constant 0 : index
      %314 = vector.load %arg13[%c208_142, %c0_143] : memref<272x1xf32, #tpu.memory_space<vmem>>, vector<32x1xf32>
      %315 = arith.mulf %299, %313 : vector<32x1xf32>
      %316 = arith.subf %314, %315 : vector<32x1xf32>
      %317 = vector.broadcast %313 : vector<32x1xf32> to vector<32x196xf32>
      %318 = arith.mulf %295, %317 : vector<32x196xf32>
      %319 = vector.broadcast %316 : vector<32x1xf32> to vector<32x196xf32>
      %320 = arith.addf %318, %319 : vector<32x196xf32>
      %c208_144 = arith.constant 208 : index
      %c0_145 = arith.constant 0 : index
      %321 = vector.load %arg14[%c208_144, %c0_145] : memref<272x196xf32, #tpu.memory_space<vmem>>, vector<32x196xf32>
      tpu.vector_store %arg14[%c208_144, %c0_145], %320 {strides = array<i32>} : memref<272x196xf32, #tpu.memory_space<vmem>>, vector<32x196xf32>,
      %c0_146 = arith.constant 0 : index
      %c0_147 = arith.constant 0 : index
      %322 = vector.load %arg11[%c0_146, %c0_147] : memref<32x196xf32, #tpu.memory_space<vmem>>, vector<32x196xf32>
      %cst_148 = arith.constant dense<0.000000e+00> : vector<32xf32>
      %323 = vector.multi_reduction <add>, %322, %cst_148 [1] : vector<32x196xf32> to vector<32xf32>
      %324 = vector.shape_cast %323 : vector<32xf32> to vector<32x1xf32>
      %cst_149 = arith.constant 0.00510204071 : f32
      %325 = vector.broadcast %cst_149 : f32 to vector<32x1xf32>
      %326 = arith.mulf %324, %325 : vector<32x1xf32>
      %327 = arith.mulf %322, %322 : vector<32x196xf32>
      %cst_150 = arith.constant dense<0.000000e+00> : vector<32xf32>
      %328 = vector.multi_reduction <add>, %327, %cst_150 [1] : vector<32x196xf32> to vector<32xf32>
      %329 = vector.shape_cast %328 : vector<32xf32> to vector<32x1xf32>
      %cst_151 = arith.constant 0.00510204071 : f32
      %330 = vector.broadcast %cst_151 : f32 to vector<32x1xf32>
      %331 = arith.mulf %329, %330 : vector<32x1xf32>
      %332 = arith.mulf %326, %326 : vector<32x1xf32>
      %333 = arith.subf %331, %332 : vector<32x1xf32>
      %cst_152 = arith.constant 0.000000e+00 : f32
      %334 = vector.broadcast %cst_152 : f32 to vector<32x1xf32>
      %335 = arith.maximumf %333, %334 : vector<32x1xf32>
      %cst_153 = arith.constant 9.99999974E-6 : f32
      %336 = vector.broadcast %cst_153 : f32 to vector<32x1xf32>
      %337 = arith.addf %335, %336 : vector<32x1xf32>
      %338 = math.rsqrt %337 : vector<32x1xf32>
      %c240 = arith.constant 240 : index
      %c0_154 = arith.constant 0 : index
      %339 = vector.load %arg12[%c240, %c0_154] : memref<272x1xf32, #tpu.memory_space<vmem>>, vector<32x1xf32>
      %340 = arith.mulf %338, %339 : vector<32x1xf32>
      %c240_155 = arith.constant 240 : index
      %c0_156 = arith.constant 0 : index
      %341 = vector.load %arg13[%c240_155, %c0_156] : memref<272x1xf32, #tpu.memory_space<vmem>>, vector<32x1xf32>
      %342 = arith.mulf %326, %340 : vector<32x1xf32>
      %343 = arith.subf %341, %342 : vector<32x1xf32>
      %344 = vector.broadcast %340 : vector<32x1xf32> to vector<32x196xf32>
      %345 = arith.mulf %322, %344 : vector<32x196xf32>
      %346 = vector.broadcast %343 : vector<32x1xf32> to vector<32x196xf32>
      %347 = arith.addf %345, %346 : vector<32x196xf32>
      %c240_157 = arith.constant 240 : index
      %c0_158 = arith.constant 0 : index
      %348 = vector.load %arg14[%c240_157, %c0_158] : memref<272x196xf32, #tpu.memory_space<vmem>>, vector<32x196xf32>
      tpu.vector_store %arg14[%c240_157, %c0_158], %347 {strides = array<i32>} : memref<272x196xf32, #tpu.memory_space<vmem>>, vector<32x196xf32>,
    } else {
    }
    return
  }
  func.func @transform_0(%arg0: i32) -> (i32, i32) {
    %c0_i32 = arith.constant 0 : i32
    %c0_i32_0 = arith.constant 0 : i32
    %c0_i32_1 = arith.constant 0 : i32
    return %c0_i32, %c0_i32_0 : i32, i32
  }
  func.func @transform_1(%arg0: i32) -> (i32, i32, i32) {
    %c0_i32 = arith.constant 0 : i32
    %c0_i32_0 = arith.constant 0 : i32
    %c0_i32_1 = arith.constant 0 : i32
    %c0_i32_2 = arith.constant 0 : i32
    return %c0_i32, %c0_i32_0, %c0_i32_1 : i32, i32, i32
  }
  func.func @transform_2(%arg0: i32) -> (i32, i32) {
    %c0_i32 = arith.constant 0 : i32
    %c0_i32_0 = arith.constant 0 : i32
    %c0_i32_1 = arith.constant 0 : i32
    return %c0_i32, %c0_i32_0 : i32, i32
  }
  func.func @transform_3(%arg0: i32) -> (i32, i32) {
    %c0_i32 = arith.constant 0 : i32
    %c0_i32_0 = arith.constant 0 : i32
    %c0_i32_1 = arith.constant 0 : i32
    return %c0_i32, %c0_i32_0 : i32, i32
  }
  func.func @transform_4(%arg0: i32) -> (i32, i32) {
    %c0_i32 = arith.constant 0 : i32
    %c0_i32_0 = arith.constant 0 : i32
    %c0_i32_1 = arith.constant 0 : i32
    return %c0_i32, %c0_i32_0 : i32, i32
  }
  func.func @transform_5(%arg0: i32) -> (i32, i32) {
    %c0_i32 = arith.constant 0 : i32
    %c0_i32_0 = arith.constant 0 : i32
    %c0_i32_1 = arith.constant 0 : i32
    return %c0_i32, %c0_i32_0 : i32, i32
  }
  func.func @transform_6(%arg0: i32) -> (i32, i32) {
    %c0_i32 = arith.constant 0 : i32
    %c0_i32_0 = arith.constant 0 : i32
    %c0_i32_1 = arith.constant 0 : i32
    return %c0_i32, %c0_i32_0 : i32, i32
  }
  func.func @transform_7(%arg0: i32) -> (i32, i32) {
    %c0_i32 = arith.constant 0 : i32
    %c0_i32_0 = arith.constant 0 : i32
    %c0_i32_1 = arith.constant 0 : i32
    return %c0_i32, %c0_i32_0 : i32, i32
  }
  func.func @transform_8(%arg0: i32) -> (i32, i32) {
    %c0_i32 = arith.constant 0 : i32
    %c0_i32_0 = arith.constant 0 : i32
    %c0_i32_1 = arith.constant 0 : i32
    return %c0_i32, %c0_i32_0 : i32, i32
  }
  func.func @transform_9(%arg0: i32) -> (i32, i32) {
    %c0_i32 = arith.constant 0 : i32
    %c0_i32_0 = arith.constant 0 : i32
    %c0_i32_1 = arith.constant 0 : i32
    return %c0_i32, %c0_i32_0 : i32, i32
  }
  func.func @transform_10(%arg0: i32) -> (i32, i32) {
    %c0_i32 = arith.constant 0 : i32
    %c0_i32_0 = arith.constant 0 : i32
    %c0_i32_1 = arith.constant 0 : i32
    return %c0_i32, %c0_i32_0 : i32, i32
  }
  func.func @transform_11(%arg0: i32) -> (i32, i32) {
    %c0_i32 = arith.constant 0 : i32
    %c0_i32_0 = arith.constant 0 : i32
    return %arg0, %c0_i32 : i32, i32
  }
  func.func @transform_12(%arg0: i32) -> (i32, i32) {
    %c0_i32 = arith.constant 0 : i32
    %c0_i32_0 = arith.constant 0 : i32
    return %arg0, %c0_i32 : i32, i32
  }
  func.func @transform_13(%arg0: i32) -> (i32, i32) {
    %c0_i32 = arith.constant 0 : i32
    %c0_i32_0 = arith.constant 0 : i32
    return %arg0, %c0_i32 : i32, i32
  }
}

</mosaic_0001>

<bundles_post_ra>
// kernel: forward.1
= control target key start
LH: loop header
LB: loop body
LE: loop exit
PB: predicated region body
PF: predicated region fallthrough
CT: control target
= control target key end

     0   :  { %s6363_s25 = smov 0   ;;  %s9426_s0 = inlined_call_operand.vmem [shape: f32[128,226], index: 0, kind: input, shape index: {}]   ;;  %s9427_s1 = inlined_call_operand.vmem [shape: bf16[9,32,128], index: 1, kind: input, shape index: {}]   ;;  %s9428_s2 = inlined_call_operand.vmem [shape: f32[256,196], index: 2, kind: input, shape index: {}]   ;;  %s9429_s3 = inlined_call_operand.vmem [shape: f32[32,196], index: 3, kind: input, shape index: {}]   ;;  %s9430_s4 = inlined_call_operand.vmem [shape: f32[32,196], index: 4, kind: input, shape index: {}]   ;;  %s9431_s5 = inlined_call_operand.vmem [shape: f32[32,196], index: 5, kind: input, shape index: {}]   ;;  %s9432_s6 = inlined_call_operand.vmem [shape: f32[32,196], index: 6, kind: input, shape index: {}]   ;;  %s9433_s7 = inlined_call_operand.vmem [shape: f32[32,196], index: 7, kind: input, shape index: {}]   ;;  %s9434_s8 = inlined_call_operand.vmem [shape: f32[32,196], index: 8, kind: input, shape index: {}]   ;;  %s9435_s9 = inlined_call_operand.vmem [shape: f32[32,196], index: 9, kind: input, shape index: {}]   ;;  %s9436_s10 = inlined_call_operand.vmem [shape: f32[32,196], index: 10, kind: input, shape index: {}]   ;;  %s9437_s11 = inlined_call_operand.vmem [shape: f32[544,1], index: 11, kind: input, shape index: {}]   ;;  %s9438_s12 = inlined_call_operand.vmem [shape: f32[544,1], index: 12, kind: input, shape index: {}]   ;;  %s9439_s13 = inlined_call_operand.vmem [shape: f32[544,196], index: 13, kind: output, shape index: {}]  }
   0x1 LB: > { %s6369_s26 = sadd.s32 4294967295, %s6281_s25   ;;  %p5123_p0 = scmp.ge.s32.totalorder %s6281_s25, 1  ;;  %s6281_s25 = sphi %s6363_s25, %s23_s25  }
   0x2   : > { %p399_p1 = scmp.lt.s32.totalorder %s6281_s25, 3 }
   0x4   : > { %p400_p2 = pnand %p5123_p0, %p399_p1 }
   0x5   : > { %s449_s27 = smul.u32 (!%p400_p2), 34, %s6369_s26  ;;  %p5128_p4 = scmp.ne.s32.totalorder (!%p400_p2), %s6369_s26, 0 }
   0x6   : > { %403 = sbr.rel (%p400_p2) target bundleno = 1568 (0x620), region = 72 }
   0x7   : > { %p450_p3 = scmp.lt.s32.totalorder (!%p400_p2), %s449_s27, 67 }
   0xd   : > { %s9534_s27 = smov (!%p450_p3, %s449_s27), 67  ;;  %472 = sbr.rel (%p5128_p4) target bundleno = 473 (0x1d9), region = 76 }
   0xe   : > { %s5124_s28 = sshll.u32 %s9534_s27, 3  ;;  %s5470_s29 = sshll.u32 %s9534_s27, 4  ;;  %v477_v0 = vld [vmem:[%s9428_s2 + $0x20] sm:$0xff] (!%p5128_p4)  ;;  %v478_v1 = vld [vmem:[%s9428_s2 + $0x28] sm:$0xff] (!%p5128_p4)  ;;  %vm489_vm0 = vcmask (!%p5128_p4), 556032   ;;  %v479_v5 = vld [vmem:[%s9428_s2 + $0x30] sm:$0xff] (!%p5128_p4) }
   0xf   : > { %s6377_s15 = scalar_lea.vmem %s9437_s11, %s5124_s28  ;;  %s6382_s18 = scalar_lea.vmem %s9438_s12, %s5124_s28  ;;  %v473_v2 = vld [vmem:[%s9428_s2] sm:$0xff] (!%p5128_p4)  ;;  %v498_v3 = vsel (!%p5128_p4), %vm489_vm0, %v478_v1, 0.0  ;;  %v474_v4 = vld [vmem:[%s9428_s2 + $0x8] sm:$0xff] (!%p5128_p4)  ;;  %v480_v6 = vld [vmem:[%s9428_s2 + $0x38] sm:$0xff] (!%p5128_p4)  ;;  %v535_v39 = vmul.f32 (!%p5128_p4), %v478_v1, %v478_v1  ;;  %v536_v41 = vmul.f32 (!%p5128_p4), %v479_v5, %v479_v5  ;;  %v534_v44 = vmul.f32 (!%p5128_p4), %v477_v0, %v477_v0 }
  0x10   : > { %s6387_s21 = scalar_lea.vmem %s9439_s13, %s5470_s29  ;;  %v499_v7 = vadd.f32 (!%p5128_p4), %v498_v3, %v477_v0  ;;  %v490_v8 = vsel (!%p5128_p4), %vm489_vm0, %v474_v4, 0.0  ;;  %v502_v9 = vsel (!%p5128_p4), %vm489_vm0, %v480_v6, 0.0  ;;  %v475_v10 = vld [vmem:[%s9428_s2 + $0x10] sm:$0xff] (!%p5128_p4)  ;;  %v476_v11 = vld [vmem:[%s9428_s2 + $0x18] sm:$0xff] (!%p5128_p4)  ;;  %v482_v15 = vld [vmem:[%s9428_s2 + $0x48] sm:$0xff] (!%p5128_p4)  ;;  %v531_v31 = vmul.f32 (!%p5128_p4), %v474_v4, %v474_v4 }
  0x11   : > { %v491_v12 = vadd.f32 (!%p5128_p4), %v490_v8, %v473_v2  ;;  %v494_v13 = vsel (!%p5128_p4), %vm489_vm0, %v476_v11, 0.0  ;;  %v484_v14 = vld [vmem:[%s9428_s2 + $0x58] sm:$0xff] (!%p5128_p4)  ;;  %v503_v16 = vadd.f32 (!%p5128_p4), %v502_v9, %v479_v5  ;;  %v483_v18 = vld [vmem:[%s9428_s2 + $0x50] sm:$0xff] (!%p5128_p4)  ;;  %v481_v20 = vld [vmem:[%s9428_s2 + $0x40] sm:$0xff] (!%p5128_p4)  ;;  %v506_v21 = vsel (!%p5128_p4), %vm489_vm0, %v482_v15, 0.0 }
  0x12   : > { %500 = vadd.xlane.f32.xlu1 (!%p5128_p4), %v499_v7  ;;  %v495_v17 = vadd.f32 (!%p5128_p4), %v494_v13, %v475_v10  ;;  %v510_v19 = vsel (!%p5128_p4), %vm489_vm0, %v484_v14, 0.0  ;;  %v488_v22 = vld [vmem:[%s9428_s2 + $0x78] sm:$0xff] (!%p5128_p4)  ;;  %v486_v23 = vld [vmem:[%s9428_s2 + $0x68] sm:$0xff] (!%p5128_p4)  ;;  %v507_v25 = vadd.f32 (!%p5128_p4), %v506_v21, %v481_v20  ;;  %v487_v26 = vld [vmem:[%s9428_s2 + $0x70] sm:$0xff] (!%p5128_p4)  ;;  %v533_v28 = vmul.f32 (!%p5128_p4), %v476_v11, %v476_v11 }
  0x13   : > { %492 = vadd.xlane.f32.xlu0 (!%p5128_p4), %v491_v12  ;;  %v511_v24 = vadd.f32 (!%p5128_p4), %v510_v19, %v483_v18  ;;  %v518_v27 = vsel (!%p5128_p4), %vm489_vm0, %v488_v22, 0.0  ;;  %v485_v29 = vld [vmem:[%s9428_s2 + $0x60] sm:$0xff] (!%p5128_p4)  ;;  %v514_v30 = vsel (!%p5128_p4), %vm489_vm0, %v486_v23, 0.0  ;;  %v532_v33 = vmul.f32 (!%p5128_p4), %v475_v10, %v475_v10  ;;  %v795_v62 = vld [vmem:[%s9428_s2 + $0x88] sm:$0xff] (!%p5128_p4)  ;;  %v797_v63 = vld [vmem:[%s9428_s2 + $0x98] sm:$0xff] (!%p5128_p4) }
  0x14   : > { %v519_v32 = vadd.f32 %v518_v27, %v487_v26  ;;  %v515_v34 = vadd.f32 %v514_v30, %v485_v29  ;;  %v550_v35 = vsel %vm489_vm0, %v533_v28, 0.0  ;;  %v530_v36 = vmul.f32 %v473_v2, %v473_v2  ;;  %v794_v2 = vld [vmem:[%s9428_s2 + $0x80] sm:$0xff]  ;;  %v796_v4 = vld [vmem:[%s9428_s2 + $0x90] sm:$0xff]  ;;  %v799_v7 = vld [vmem:[%s9428_s2 + $0xa8] sm:$0xff] }
  0x15   : > { %v537_v37 = vmul.f32 %v480_v6, %v480_v6  ;;  %v546_v38 = vsel %vm489_vm0, %v531_v31, 0.0  ;;  %v551_v40 = vadd.f32 %v550_v35, %v532_v33  ;;  %v541_v45 = vmul.f32 %v484_v14, %v484_v14  ;;  %v801_v6 = vld [vmem:[%s9428_s2 + $0xb8] sm:$0xff]  ;;  %v800_v10 = vld [vmem:[%s9428_s2 + $0xb0] sm:$0xff]  ;;  %v798_v12 = vld [vmem:[%s9428_s2 + $0xa0] sm:$0xff] }
  0x16   : > { %504 = vadd.xlane.f32.xlu1 %v503_v16  ;;  %v547_v42 = vadd.f32 %v546_v38, %v530_v36  ;;  %v554_v46 = vsel %vm489_vm0, %v535_v39, 0.0  ;;  %v539_v47 = vmul.f32 %v482_v15, %v482_v15  ;;  %v540_v49 = vmul.f32 %v483_v18, %v483_v18  ;;  %v805_v14 = vld [vmem:[%s9428_s2 + $0xd8] sm:$0xff]  ;;  %v803_v15 = vld [vmem:[%s9428_s2 + $0xc8] sm:$0xff]  ;;  %v804_v18 = vld [vmem:[%s9428_s2 + $0xd0] sm:$0xff] }
  0x17   : > { %496 = vadd.xlane.f32.xlu0 %v495_v17  ;;  %v558_v43 = vsel %vm489_vm0, %v537_v37, 0.0  ;;  %v555_v50 = vadd.f32 %v554_v46, %v534_v44  ;;  %v566_v51 = vsel %vm489_vm0, %v541_v45, 0.0  ;;  %v538_v52 = vmul.f32 %v481_v20, %v481_v20  ;;  %v802_v20 = vld [vmem:[%s9428_s2 + $0xc0] sm:$0xff] }
  0x18   : > { %v559_v48 = vadd.f32 %v558_v43, %v536_v41  ;;  %v545_v53 = vmul.f32 %v488_v22, %v488_v22  ;;  %v562_v54 = vsel %vm489_vm0, %v539_v47, 0.0  ;;  %v543_v55 = vmul.f32 %v486_v23, %v486_v23  ;;  %v809_v22 = vld [vmem:[%s9428_s2 + $0xf8] sm:$0xff]  ;;  %v807_v23 = vld [vmem:[%s9428_s2 + $0xe8] sm:$0xff] }
  0x19   : > { %v567_v56 = vadd.f32 %v566_v51, %v540_v49  ;;  %v544_v57 = vmul.f32 %v487_v26, %v487_v26  ;;  %v563_v58 = vadd.f32 %v562_v54, %v538_v52  ;;  %v542_v60 = vmul.f32 %v485_v29, %v485_v29  ;;  %v808_v26 = vld [vmem:[%s9428_s2 + $0xf0] sm:$0xff]  ;;  %v806_v29 = vld [vmem:[%s9428_s2 + $0xe0] sm:$0xff] }
  0x1a   : > { %512 = vadd.xlane.f32.xlu1 %v511_v24  ;;  %v574_v59 = vsel %vm489_vm0, %v545_v53, 0.0  ;;  %v570_v61 = vsel %vm489_vm0, %v543_v55, 0.0  ;;  %v810_v3 = vsel %vm489_vm0, %v795_v62, 0.0  ;;  %v814_v5 = vsel %vm489_vm0, %v797_v63, 0.0 }
  0x1b   : > { %508 = vadd.xlane.f32.xlu0 %v507_v25  ;;  %v575_v0 = vadd.f32 %v574_v59, %v544_v57  ;;  %v571_v1 = vadd.f32 %v570_v61, %v542_v60  ;;  %v811_v8 = vadd.f32 %v810_v3, %v794_v2  ;;  %v815_v9 = vadd.f32 %v814_v5, %v796_v4  ;;  %v1114_v3 = vld [vmem:[%s9428_s2 + $0x100] sm:$0xff]  ;;  %v1116_v5 = vld [vmem:[%s9428_s2 + $0x110] sm:$0xff] }
  0x1c   : > { %v822_v11 = vsel %vm489_vm0, %v801_v6, 0.0  ;;  %v818_v13 = vsel %vm489_vm0, %v799_v7, 0.0  ;;  %v830_v19 = vsel %vm489_vm0, %v805_v14, 0.0  ;;  %v826_v21 = vsel %vm489_vm0, %v803_v15, 0.0 }
  0x1d   : > { %v823_v16 = vadd.f32 %v822_v11, %v800_v10  ;;  %v819_v17 = vadd.f32 %v818_v13, %v798_v12  ;;  %v831_v24 = vadd.f32 %v830_v19, %v804_v18  ;;  %v827_v25 = vadd.f32 %v826_v21, %v802_v20  ;;  %v1120_v11 = vld [vmem:[%s9428_s2 + $0x130] sm:$0xff]  ;;  %v1118_v13 = vld [vmem:[%s9428_s2 + $0x120] sm:$0xff] }
  0x1e   : > { %520 = vadd.xlane.f32.xlu1 %v519_v32  ;;  %v838_v27 = vsel %vm489_vm0, %v809_v22, 0.0  ;;  %v853_v28 = vmul.f32 %v797_v63, %v797_v63  ;;  %v834_v30 = vsel %vm489_vm0, %v807_v23, 0.0  ;;  %v851_v31 = vmul.f32 %v795_v62, %v795_v62  ;;  %v1115_v63 = vld [vmem:[%s9428_s2 + $0x108] sm:$0xff]  ;;  %v1124_v19 = vld [vmem:[%s9428_s2 + $0x150] sm:$0xff]  ;;  %v1122_v21 = vld [vmem:[%s9428_s2 + $0x140] sm:$0xff] }
  0x1f   : > { %516 = vadd.xlane.f32.xlu0 %v515_v34  ;;  %v839_v32 = vadd.f32 %v838_v27, %v808_v26  ;;  %v852_v33 = vmul.f32 %v796_v4, %v796_v4  ;;  %v835_v34 = vadd.f32 %v834_v30, %v806_v29  ;;  %v850_v36 = vmul.f32 %v794_v2, %v794_v2  ;;  %v1128_v27 = vld [vmem:[%s9428_s2 + $0x170] sm:$0xff]  ;;  %v1126_v30 = vld [vmem:[%s9428_s2 + $0x160] sm:$0xff] }
  0x20   : > { %v870_v35 = vsel %vm489_vm0, %v853_v28, 0.0  ;;  %v857_v37 = vmul.f32 %v801_v6, %v801_v6  ;;  %v866_v38 = vsel %vm489_vm0, %v851_v31, 0.0  ;;  %v855_v39 = vmul.f32 %v799_v7, %v799_v7  ;;  %v1121_v7 = vld [vmem:[%s9428_s2 + $0x138] sm:$0xff] }
  0x21   : > { %v856_v41 = vmul.f32 %v800_v10, %v800_v10  ;;  %v854_v44 = vmul.f32 %v798_v12, %v798_v12  ;;  %v861_v45 = vmul.f32 %v805_v14, %v805_v14  ;;  %v859_v47 = vmul.f32 %v803_v15, %v803_v15  ;;  %v1125_v15 = vld [vmem:[%s9428_s2 + $0x158] sm:$0xff] }
  0x22   : > { %552 = vadd.xlane.f32.xlu1 %v551_v40  ;;  %v871_v40 = vadd.f32 %v870_v35, %v852_v33  ;;  %v878_v43 = vsel %vm489_vm0, %v857_v37, 0.0  ;;  %v874_v46 = vsel %vm489_vm0, %v855_v39, 0.0  ;;  %v860_v49 = vmul.f32 %v804_v18, %v804_v18 }
  0x23   : > { %548 = vadd.xlane.f32.xlu0 %v547_v42  ;;  %v867_v42 = vadd.f32 %v866_v38, %v850_v36  ;;  %v886_v51 = vsel %vm489_vm0, %v861_v45, 0.0  ;;  %v858_v52 = vmul.f32 %v802_v20, %v802_v20  ;;  %v865_v53 = vmul.f32 %v809_v22, %v809_v22 }
  0x24   : > { %v882_v54 = vsel %vm489_vm0, %v859_v47, 0.0  ;;  %v863_v55 = vmul.f32 %v807_v23, %v807_v23  ;;  %v887_v57 = vadd.f32 %v886_v51, %v860_v49  ;;  %v862_v61 = vmul.f32 %v806_v29, %v806_v29  ;;  %v1129_v23 = vld [vmem:[%s9428_s2 + $0x178] sm:$0xff] }
  0x25   : > { %v883_v59 = vadd.f32 %v882_v54, %v858_v52  ;;  %v894_v60 = vsel %vm489_vm0, %v865_v53, 0.0  ;;  %v1130_v4 = vsel %vm489_vm0, %v1115_v63, 0.0  ;;  %v1142_v12 = vsel %vm489_vm0, %v1121_v7, 0.0 }
  0x26   : > { %560 = vadd.xlane.f32.xlu1 %v559_v48  ;;  %v879_v48 = vadd.f32 %v878_v43, %v856_v41  ;;  %v890_v62 = vsel %vm489_vm0, %v863_v55, 0.0  ;;  %v1150_v20 = vsel %vm489_vm0, %v1125_v15, 0.0  ;;  %v1158_v28 = vsel %vm489_vm0, %v1129_v23, 0.0 }
  0x27   : > { %556 = vadd.xlane.f32.xlu0 %v555_v50  ;;  %v875_v50 = vadd.f32 %v874_v46, %v854_v44  ;;  %v891_v2 = vadd.f32 %v890_v62, %v862_v61  ;;  %v1159_v33 = vadd.f32 %v1158_v28, %v1128_v27  ;;  %v1170_v37 = vmul.f32 %v1114_v3, %v1114_v3 }
  0x28   : > { %v1177_v38 = vmul.f32 %v1121_v7, %v1121_v7  ;;  %v1174_v45 = vmul.f32 %v1118_v13, %v1118_v13  ;;  %v1181_v46 = vmul.f32 %v1125_v15, %v1125_v15  ;;  %v1178_v53 = vmul.f32 %v1122_v21, %v1122_v21  ;;  %v1441_v7 = vld [vmem:[%s9428_s2 + $0x1b8] sm:$0xff] }
  0x29   : > { %v1185_v54 = vmul.f32 %v1129_v23, %v1129_v23  ;;  %v1182_v61 = vmul.f32 %v1126_v30, %v1126_v30  ;;  %v1445_v15 = vld [vmem:[%s9428_s2 + $0x1d8] sm:$0xff] }
  0x2a   : > { %568 = vadd.xlane.f32.xlu1 %v567_v56  ;;  %v6283_v56 = vmov 0   ;;  %v1198_v44 = vsel %vm489_vm0, %v1177_v38, 0.0  ;;  %v1206_v52 = vsel %vm489_vm0, %v1181_v46, 0.0  ;;  %v1449_v23 = vld [vmem:[%s9428_s2 + $0x1f8] sm:$0xff]  ;;  %v1754_v38 = vld [vmem:[%s9429_s3] sm:$0xff]  ;;  %v1497_v46 = vmul.f32 %v1441_v7, %v1441_v7 }
  0x2b   : > { %564 = vadd.xlane.f32.xlu0 %v563_v58  ;;  %5574 = vset.pattern.permute.xlu1 %v6283_v56  ;;  %v864_v58 = vmul.f32 %v808_v26, %v808_v26  ;;  %v1478_v28 = vsel %vm489_vm0, %v1449_v23, 0.0 }
  0x2c   : > { %5573 = vset.pattern.permute.xlu0 %v6283_v56 }
  0x2e   : > { %576 = vadd.xlane.f32.xlu1 %v575_v0  ;;  %v1117_v0 = vld [vmem:[%s9428_s2 + $0x118] sm:$0xff] }
  0x2f   : > { %572 = vadd.xlane.f32.xlu0 %v571_v1  ;;  %v895_v1 = vadd.f32 %v894_v60, %v864_v58  ;;  %v1134_v6 = vsel %vm489_vm0, %v1117_v0, 0.0  ;;  %v1173_v29 = vmul.f32 %v1117_v0, %v1117_v0  ;;  %v1184_v58 = vmul.f32 %v1128_v27, %v1128_v27  ;;  %v1437_v0 = vld [vmem:[%s9428_s2 + $0x198] sm:$0xff]  ;;  %v1448_v27 = vld [vmem:[%s9428_s2 + $0x1f0] sm:$0xff] }
  0x30   : > { %v1135_v10 = vadd.f32 %v1134_v6, %v1116_v5  ;;  %v1214_v60 = vsel %vm489_vm0, %v1185_v54, 0.0  ;;  %v1454_v6 = vsel %vm489_vm0, %v1437_v0, 0.0  ;;  %v1501_v54 = vmul.f32 %v1445_v15, %v1445_v15 }
  0x31   : > { %v1190_v36 = vsel %vm489_vm0, %v1173_v29, 0.0  ;;  %v1446_v29 = vld [vmem:[%s9428_s2 + $0x1e0] sm:$0xff] }
  0x32   : > { %812 = vadd.xlane.f32.xlu1 %v811_v8  ;;  %v1119_v8 = vld [vmem:[%s9428_s2 + $0x128] sm:$0xff] }
  0x33   : > { %816 = vadd.xlane.f32.xlu0 %v815_v9  ;;  %v1131_v9 = vadd.f32 %v1130_v4, %v1114_v3  ;;  %v1138_v14 = vsel %vm489_vm0, %v1119_v8, 0.0  ;;  %v1434_v3 = vld [vmem:[%s9428_s2 + $0x180] sm:$0xff] }
  0x34   : > { %v1139_v18 = vadd.f32 %v1138_v14, %v1118_v13  ;;  %v1438_v13 = vld [vmem:[%s9428_s2 + $0x1a0] sm:$0xff] }
  0x36   : > { %824 = vadd.xlane.f32.xlu1 %v823_v16  ;;  %v1123_v16 = vld [vmem:[%s9428_s2 + $0x148] sm:$0xff] }
  0x37   : > { %820 = vadd.xlane.f32.xlu0 %v819_v17  ;;  %v1143_v17 = vadd.f32 %v1142_v12, %v1120_v11  ;;  %v1146_v22 = vsel %vm489_vm0, %v1123_v16, 0.0  ;;  %v1462_v12 = vsel %vm489_vm0, %v1441_v7, 0.0 }
  0x38   : > { %v1147_v26 = vadd.f32 %v1146_v22, %v1122_v21  ;;  %v1442_v21 = vld [vmem:[%s9428_s2 + $0x1c0] sm:$0xff] }
  0x3a   : > { %832 = vadd.xlane.f32.xlu1 %v831_v24  ;;  %v1127_v24 = vld [vmem:[%s9428_s2 + $0x168] sm:$0xff] }
  0x3b   : > { %828 = vadd.xlane.f32.xlu0 %v827_v25  ;;  %v1151_v25 = vadd.f32 %v1150_v20, %v1124_v19  ;;  %v1154_v31 = vsel %vm489_vm0, %v1127_v24, 0.0  ;;  %v1183_v56 = vmul.f32 %v1127_v24, %v1127_v24  ;;  %v1470_v20 = vsel %vm489_vm0, %v1445_v15, 0.0  ;;  %v1447_v24 = vld [vmem:[%s9428_s2 + $0x1e8] sm:$0xff] }
  0x3c   : > { %v1155_v35 = vadd.f32 %v1154_v31, %v1126_v30  ;;  %v1474_v30 = vsel %vm489_vm0, %v1447_v24, 0.0  ;;  %v1757_v31 = vld [vmem:[%s9429_s3 + $0x18] sm:$0xff] }
  0x3d   : > { %v1210_v62 = vsel %vm489_vm0, %v1183_v56, 0.0 }
  0x3e   : > { %840 = vadd.xlane.f32.xlu1 %v839_v32  ;;  %v1171_v32 = vmul.f32 %v1115_v63, %v1115_v63  ;;  %v1435_v63 = vld [vmem:[%s9428_s2 + $0x188] sm:$0xff] }
  0x3f   : > { %836 = vadd.xlane.f32.xlu0 %v835_v34  ;;  %v1172_v34 = vmul.f32 %v1116_v5, %v1116_v5  ;;  %v1450_v4 = vsel %vm489_vm0, %v1435_v63, 0.0  ;;  %v1436_v5 = vld [vmem:[%s9428_s2 + $0x190] sm:$0xff] }
  0x40   : > { %v1186_v39 = vsel %vm489_vm0, %v1171_v32, 0.0  ;;  %v1755_v32 = vld [vmem:[%s9429_s3 + $0x8] sm:$0xff] }
  0x41   : > { %v1191_v41 = vadd.f32 %v1190_v36, %v1172_v34  ;;  %v1187_v43 = vadd.f32 %v1186_v39, %v1170_v37  ;;  %v1475_v34 = vadd.f32 %v1474_v30, %v1446_v29  ;;  %v1762_v36 = vsel %vm489_vm0, %v1757_v31, 0.0 }
  0x42   : > { %872 = vadd.xlane.f32.xlu1 %v871_v40  ;;  %v1175_v40 = vmul.f32 %v1119_v8, %v1119_v8  ;;  %v1439_v8 = vld [vmem:[%s9428_s2 + $0x1a8] sm:$0xff]  ;;  %v1493_v37 = vmul.f32 %v1437_v0, %v1437_v0  ;;  %v1758_v39 = vsel %vm489_vm0, %v1755_v32, 0.0  ;;  %v1503_v0 = vmul.f32 %v1447_v24, %v1447_v24 }
  0x43   : > { %868 = vadd.xlane.f32.xlu0 %v867_v42  ;;  %v1176_v42 = vmul.f32 %v1120_v11, %v1120_v11  ;;  %v1440_v11 = vld [vmem:[%s9428_s2 + $0x1b0] sm:$0xff]  ;;  %v1458_v14 = vsel %vm489_vm0, %v1439_v8, 0.0 }
  0x44   : > { %v1194_v47 = vsel %vm489_vm0, %v1175_v40, 0.0  ;;  %v1491_v40 = vmul.f32 %v1435_v63, %v1435_v63  ;;  %v1530_v7 = vsel %vm489_vm0, %v1503_v0, 0.0 }
  0x45   : > { %v1199_v49 = vadd.f32 %v1198_v44, %v1176_v42  ;;  %v1195_v51 = vadd.f32 %v1194_v47, %v1174_v45  ;;  %v1492_v42 = vmul.f32 %v1436_v5, %v1436_v5  ;;  %v1510_v44 = vsel %vm489_vm0, %v1493_v37, 0.0 }
  0x46   : > { %880 = vadd.xlane.f32.xlu1 %v879_v48  ;;  %v1179_v48 = vmul.f32 %v1123_v16, %v1123_v16  ;;  %v1443_v16 = vld [vmem:[%s9428_s2 + $0x1c8] sm:$0xff]  ;;  %v1490_v45 = vmul.f32 %v1434_v3, %v1434_v3  ;;  %v1506_v47 = vsel %vm489_vm0, %v1491_v40, 0.0 }
  0x47   : > { %876 = vadd.xlane.f32.xlu0 %v875_v50  ;;  %v1180_v50 = vmul.f32 %v1124_v19, %v1124_v19  ;;  %v1444_v19 = vld [vmem:[%s9428_s2 + $0x1d0] sm:$0xff]  ;;  %v1466_v22 = vsel %vm489_vm0, %v1443_v16, 0.0  ;;  %v1499_v56 = vmul.f32 %v1443_v16, %v1443_v16 }
  0x48   : > { %v1202_v55 = vsel %vm489_vm0, %v1179_v48, 0.0  ;;  %v1495_v48 = vmul.f32 %v1439_v8, %v1439_v8  ;;  %v1769_v8 = vmul.f32 %v1755_v32, %v1755_v32 }
  0x49   : > { %v1522_v63 = vsel %vm489_vm0, %v1499_v56, 0.0 }
  0x4a   : > { %888 = vadd.xlane.f32.xlu1 %v887_v57  ;;  %v1207_v57 = vadd.f32 %v1206_v52, %v1180_v50  ;;  %v1496_v50 = vmul.f32 %v1440_v11, %v1440_v11  ;;  %v1518_v52 = vsel %vm489_vm0, %v1497_v46, 0.0 }
  0x4b   : > { %884 = vadd.xlane.f32.xlu0 %v883_v59  ;;  %v1203_v59 = vadd.f32 %v1202_v55, %v1178_v53  ;;  %v1494_v53 = vmul.f32 %v1438_v13, %v1438_v13  ;;  %v1514_v55 = vsel %vm489_vm0, %v1495_v48, 0.0 }
  0x4e   : > { %896 = vadd.xlane.f32.xlu1 %v895_v1  ;;  %v1215_v1 = vadd.f32 %v1214_v60, %v1184_v58  ;;  %v1500_v58 = vmul.f32 %v1444_v19, %v1444_v19  ;;  %v1526_v60 = vsel %vm489_vm0, %v1501_v54, 0.0 }
  0x4f   : > { %892 = vadd.xlane.f32.xlu0 %v891_v2  ;;  %v1211_v2 = vadd.f32 %v1210_v62, %v1182_v61  ;;  %v1498_v61 = vmul.f32 %v1442_v21, %v1442_v21  ;;  %v1505_v62 = vmul.f32 %v1449_v23, %v1449_v23 }
  0x52   : > { %1132 = vadd.xlane.f32.xlu1 %v1131_v9  ;;  %v1451_v9 = vadd.f32 %v1450_v4, %v1434_v3  ;;  %v1523_v3 = vadd.f32 %v1522_v63, %v1498_v61  ;;  %v1534_v4 = vsel %vm489_vm0, %v1505_v62, 0.0 }
  0x53   : > { %1136 = vadd.xlane.f32.xlu0 %v1135_v10  ;;  %v1455_v10 = vadd.f32 %v1454_v6, %v1436_v5  ;;  %v1502_v5 = vmul.f32 %v1446_v29, %v1446_v29  ;;  %v1771_v6 = vmul.f32 %v1757_v31, %v1757_v31 }
  0x56   : > { %1144 = vadd.xlane.f32.xlu1 %v1143_v17  ;;  %v1463_v17 = vadd.f32 %v1462_v12, %v1440_v11  ;;  %v1531_v11 = vadd.f32 %v1530_v7, %v1502_v5  ;;  %v1776_v12 = vsel %vm489_vm0, %v1771_v6, 0.0 }
  0x57   : > { %1140 = vadd.xlane.f32.xlu0 %v1139_v18  ;;  %v1459_v18 = vadd.f32 %v1458_v14, %v1438_v13  ;;  %v1768_v13 = vmul.f32 %v1754_v38, %v1754_v38  ;;  %v1772_v14 = vsel %vm489_vm0, %v1769_v8, 0.0 }
  0x59   : > { %v1773_v16 = vadd.f32 %v1772_v14, %v1768_v13 }
  0x5a   : > { %1152 = vadd.xlane.f32.xlu1 %v1151_v25  ;;  %v1471_v25 = vadd.f32 %v1470_v20, %v1444_v19 }
  0x5b   : > { %1148 = vadd.xlane.f32.xlu0 %v1147_v26  ;;  %v1467_v26 = vadd.f32 %v1466_v22, %v1442_v21 }
  0x5e   : > { %1160 = vadd.xlane.f32.xlu1 %v1159_v33  ;;  %v1479_v33 = vadd.f32 %v1478_v28, %v1448_v27 }
  0x5f   : > { %1156 = vadd.xlane.f32.xlu0 %v1155_v35  ;;  %v1756_v35 = vld [vmem:[%s9429_s3 + $0x10] sm:$0xff] }
  0x62   : > { %1192 = vadd.xlane.f32.xlu1 %v1191_v41  ;;  %v1763_v41 = vadd.f32 %v1762_v36, %v1756_v35 }
  0x63   : > { %1188 = vadd.xlane.f32.xlu0 %v1187_v43  ;;  %v1759_v43 = vadd.f32 %v1758_v39, %v1754_v38 }
  0x66   : > { %1200 = vadd.xlane.f32.xlu1 %v1199_v49  ;;  %v1511_v49 = vadd.f32 %v1510_v44, %v1492_v42 }
  0x67   : > { %1196 = vadd.xlane.f32.xlu0 %v1195_v51  ;;  %v1507_v51 = vadd.f32 %v1506_v47, %v1490_v45 }
  0x6a   : > { %1208 = vadd.xlane.f32.xlu1 %v1207_v57  ;;  %v1519_v57 = vadd.f32 %v1518_v52, %v1496_v50 }
  0x6b   : > { %1204 = vadd.xlane.f32.xlu0 %v1203_v59  ;;  %v1515_v59 = vadd.f32 %v1514_v55, %v1494_v53 }
  0x6e   : > { %1216 = vadd.xlane.f32.xlu1 %v1215_v1  ;;  %v1527_v1 = vadd.f32 %v1526_v60, %v1500_v58 }
  0x6f   : > { %1212 = vadd.xlane.f32.xlu0 %v1211_v2  ;;  %v1504_v2 = vmul.f32 %v1448_v27, %v1448_v27 }
  0x72   : > { %1452 = vadd.xlane.f32.xlu1 %v1451_v9  ;;  %v1535_v9 = vadd.f32 %v1534_v4, %v1504_v2 }
  0x73   : > { %1456 = vadd.xlane.f32.xlu0 %v1455_v10  ;;  %v1770_v10 = vmul.f32 %v1756_v35, %v1756_v35 }
  0x75   : > { %v1777_v15 = vadd.f32 %v1776_v12, %v1770_v10 }
  0x76   : > { %1464 = vadd.xlane.f32.xlu1 %v1463_v17 }
  0x77   : > { %1460 = vadd.xlane.f32.xlu0 %v1459_v18 }
  0x7a   : > { %1472 = vadd.xlane.f32.xlu1 %v1471_v25 }
  0x7b   : > { %1468 = vadd.xlane.f32.xlu0 %v1467_v26 }
  0x7e   : > { %1480 = vadd.xlane.f32.xlu1 %v1479_v33 }
  0x7f   : > { %1476 = vadd.xlane.f32.xlu0 %v1475_v34 }
  0x82   : > { %1764 = vadd.xlane.f32.xlu1 %v1763_v41 }
  0x83   : > { %1760 = vadd.xlane.f32.xlu0 %v1759_v43 }
  0x86   : > { %1512 = vadd.xlane.f32.xlu1 %v1511_v49 }
  0x87   : > { %1508 = vadd.xlane.f32.xlu0 %v1507_v51 }
  0x8a   : > { %1520 = vadd.xlane.f32.xlu1 %v1519_v57 }
  0x8b   : > { %1516 = vadd.xlane.f32.xlu0 %v1515_v59 }
  0x8e   : > { %1528 = vadd.xlane.f32.xlu1 %v1527_v1 }
  0x8f   : > { %1524 = vadd.xlane.f32.xlu0 %v1523_v3 }
  0x92   : > { %1536 = vadd.xlane.f32.xlu1 %v1535_v9 }
  0x93   : > { %1532 = vadd.xlane.f32.xlu0 %v1531_v11 }
  0x96   : > { %1778 = vadd.xlane.f32.xlu1 %v1777_v15 }
  0x97   : > { %1774 = vadd.xlane.f32.xlu0 %v1773_v16  ;;  %v627_v16 = vld [vmem:[%s6377_s15 + $0x8] sm:$0xff] }
  0x9f   : > { %v501_v17 = vpop.xlane.xlu1 %500 }
  0xa0   : > { %v493_v18 = vpop.xlane.xlu0 %492  ;;  %v6670_v32 = vmul.f32 0.0051020407, %v501_v17  ;;  %v626_v17 = vld [vmem:[%s6377_s15] sm:$0xff] }
  0xa1   : > { %v6664_v26 = vmul.f32 0.0051020407, %v493_v18 }
  0xa2   : > { %v588_v44 = vmul.f32 %v6670_v32, %v6670_v32 }
  0xa3   : > { %v505_v19 = vpop.xlane.xlu1 %504  ;;  %v586_v33 = vmul.f32 %v6664_v26, %v6664_v26 }
  0xa4   : > { %v497_v20 = vpop.xlane.xlu0 %496  ;;  %v6666_v28 = vmul.f32 0.0051020407, %v505_v19 }
  0xa5   : > { %v6662_v24 = vmul.f32 0.0051020407, %v497_v20 }
  0xa6   : > { %v589_v40 = vmul.f32 %v6666_v28, %v6666_v28 }
  0xa7   : > { %v513_v21 = vpop.xlane.xlu1 %512  ;;  %v587_v29 = vmul.f32 %v6662_v24, %v6662_v24 }
  0xa8   : > { %v509_v22 = vpop.xlane.xlu0 %508  ;;  %v6674_v36 = vmul.f32 0.0051020407, %v513_v21 }
  0xa9   : > { %v6676_v37 = vmul.f32 0.0051020407, %v509_v22 }
  0xaa   : > { %v591_v49 = vmul.f32 %v6674_v36, %v6674_v36 }
  0xab   : > { %v521_v23 = vpop.xlane.xlu1 %520  ;;  %v590_v50 = vmul.f32 %v6676_v37, %v6676_v37 }
  0xac   : > { %v517_v25 = vpop.xlane.xlu0 %516  ;;  %v6686_v54 = vmul.f32 0.0051020407, %v521_v23 }
  0xad   : > { %v6688_v58 = vmul.f32 0.0051020407, %v517_v25 }
  0xae   : > { %v593_v2 = vmul.f32 %v6686_v54, %v6686_v54 }
  0xaf   : > { %v553_v27 = vpop.xlane.xlu1 %552  ;;  %v592_v6 = vmul.f32 %v6688_v58, %v6688_v58 }
  0xb0   : > { %v579_v30 = vmul.f32 0.0051020407, %v553_v27  ;;  %v549_v31 = vpop.xlane.xlu0 %548 }
  0xb1   : > { %v578_v34 = vmul.f32 0.0051020407, %v549_v31 }
  0xb2   : > { %v595_v35 = vsub.f32 %v579_v30, %v587_v29  ;;  %v643_v29 = vld [vmem:[%s6382_s18 + $0x8] sm:$0xff]  ;;  %v629_v30 = vld [vmem:[%s6377_s15 + $0x18] sm:$0xff] }
  0xb3   : > { %v594_v38 = vsub.f32 %v578_v34, %v586_v33  ;;  %v561_v39 = vpop.xlane.xlu1 %560  ;;  %v628_v33 = vld [vmem:[%s6377_s15 + $0x10] sm:$0xff] }
  0xb4   : > { %v603_v41 = vmax.f32 %v595_v35, 0.0  ;;  %v581_v42 = vmul.f32 0.0051020407, %v561_v39  ;;  %v557_v43 = vpop.xlane.xlu0 %556 }
  0xb5   : > { %v602_v45 = vmax.f32 %v594_v38, 0.0  ;;  %v580_v46 = vmul.f32 0.0051020407, %v557_v43 }
  0xb6   : > { %v611_v47 = vadd.f32 1e-05, %v603_v41  ;;  %v597_v48 = vsub.f32 %v581_v42, %v589_v40 }
  0xb7   : > { %v610_v51 = vadd.f32 1e-05, %v602_v45  ;;  %v596_v52 = vsub.f32 %v580_v46, %v588_v44  ;;  %v569_v53 = vpop.xlane.xlu1 %568  ;;  %v645_v44 = vld [vmem:[%s6382_s18 + $0x18] sm:$0xff]  ;;  %v631_v45 = vld [vmem:[%s6377_s15 + $0x28] sm:$0xff] }
  0xb8   : > { %5575 = vrsqrt.f32 %v611_v47  ;;  %v605_v55 = vmax.f32 %v597_v48, 0.0  ;;  %v583_v56 = vmul.f32 0.0051020407, %v569_v53  ;;  %v565_v57 = vpop.xlane.xlu0 %564 }
  0xb9   : > { %5577 = vrsqrt.f32 %v610_v51  ;;  %v604_v59 = vmax.f32 %v596_v52, 0.0  ;;  %v582_v60 = vmul.f32 0.0051020407, %v565_v57  ;;  %v647_v51 = vld [vmem:[%s6382_s18 + $0x28] sm:$0xff]  ;;  %v633_v52 = vld [vmem:[%s6377_s15 + $0x38] sm:$0xff] }
  0xba   : > { %v613_v61 = vadd.f32 1e-05, %v605_v55  ;;  %v599_v62 = vsub.f32 %v583_v56, %v591_v49 }
  0xbb   : > { %v612_v63 = vadd.f32 1e-05, %v604_v59  ;;  %v598_v0 = vsub.f32 %v582_v60, %v590_v50  ;;  %v577_v1 = vpop.xlane.xlu1 %576 }
  0xbc   : > { %5579 = vrsqrt.f32 %v613_v61  ;;  %v607_v3 = vmax.f32 %v599_v62, 0.0  ;;  %v585_v4 = vmul.f32 0.0051020407, %v577_v1  ;;  %v573_v5 = vpop.xlane.xlu0 %572 }
  0xbd   : > { %5581 = vrsqrt.f32 %v612_v63  ;;  %v606_v7 = vmax.f32 %v598_v0, 0.0  ;;  %v584_v8 = vmul.f32 0.0051020407, %v573_v5 }
  0xbe   : > { %v615_v9 = vadd.f32 1e-05, %v607_v3  ;;  %v601_v10 = vsub.f32 %v585_v4, %v593_v2  ;;  %v649_v3 = vld [vmem:[%s6382_s18 + $0x38] sm:$0xff] }
  0xbf   : > { %v614_v11 = vadd.f32 1e-05, %v606_v7  ;;  %v600_v12 = vsub.f32 %v584_v8, %v592_v6  ;;  %v813_v13 = vpop.xlane.xlu1 %812 }
  0xc0   : > { %5583 = vrsqrt.f32 %v615_v9  ;;  %v609_v14 = vmax.f32 %v601_v10, 0.0  ;;  %v817_v15 = vpop.xlane.xlu0 %816  ;;  %v6713_v55 = vmul.f32 0.0051020407, %v813_v13 }
  0xc1   : > { %5585 = vrsqrt.f32 %v614_v11  ;;  %v608_v21 = vmax.f32 %v600_v12, 0.0  ;;  %v6715_v56 = vmul.f32 0.0051020407, %v817_v15 }
  0xc2   : > { %v5576_v18 = vpop.eup %5575  ;;  %v617_v19 = vadd.f32 1e-05, %v609_v14  ;;  %v906_v4 = vmul.f32 %v6713_v55, %v6713_v55 }
  0xc3   : > { %v5578_v20 = vpop.eup %5577  ;;  %v825_v22 = vpop.xlane.xlu1 %824  ;;  %v635_v23 = vmul.f32 %v5576_v18, %v627_v16  ;;  %v616_v38 = vadd.f32 1e-05, %v608_v21  ;;  %v632_v18 = vld [vmem:[%s6377_s15 + $0x30] sm:$0xff] }
  0xc4   : > { %5587 = vrsqrt.f32 %v617_v19  ;;  %v821_v25 = vpop.xlane.xlu0 %820  ;;  %v6696_v27 = vmul.f32 %v5578_v20, %v626_v17  ;;  %v6719_v63 = vmul.f32 0.0051020407, %v825_v22 }
  0xc5   : > { %673 = vperm.xlu1 %5574, %v635_v23   ;;  %v651_v31 = vmul.f32 %v635_v23, %v6662_v24  ;;  %5589 = vrsqrt.f32 %v616_v38  ;;  %v6734_v16 = vmul.f32 0.0051020407, %v821_v25 }
  0xc6   : > { %v5580_v34 = vpop.eup %5579  ;;  %668 = vperm.xlu0 %5573, %v6696_v27   ;;  %v909_v12 = vmul.f32 %v6719_v63, %v6719_v63 }
  0xc7   : > { %v5582_v35 = vpop.eup %5581  ;;  %v833_v39 = vpop.xlane.xlu1 %832  ;;  %v659_v40 = vsub.f32 %v643_v29, %v651_v31  ;;  %v637_v41 = vmul.f32 %v5580_v34, %v629_v30  ;;  %v908_v25 = vmul.f32 %v6734_v16, %v6734_v16 }
  0xc8   : > { %v6703_v42 = vpop.xlane.xlu0 %828  ;;  %v6705_v43 = vmul.f32 %v5582_v35, %v628_v33  ;;  %v6730_v7 = vmul.f32 0.0051020407, %v833_v39 }
  0xc9   : > { %v653_v24 = vmul.f32 %v637_v41, %v6666_v28  ;;  %v630_v28 = vld [vmem:[%s6377_s15 + $0x20] sm:$0xff]  ;;  %v6744_v35 = vmul.f32 0.0051020407, %v6703_v42 }
  0xca   : > { %v5584_v46 = vpop.eup %5583  ;;  %729 = vperm.xlu0 %5573, %v659_v40   ;;  %678 = vperm.xlu1 %5574, %v6705_v43   ;;  %v911_v19 = vmul.f32 %v6730_v7, %v6730_v7  ;;  %v650_v40 = vmul.f32 %v6696_v27, %v6664_v26 }
  0xcb   : > { %v841_v47 = vpop.xlane.xlu1 %840  ;;  %v661_v48 = vsub.f32 %v645_v44, %v653_v24  ;;  %v639_v49 = vmul.f32 %v5584_v46, %v631_v45  ;;  %v5586_v53 = vpop.eup %5585 }
  0xcc   : > { %v837_v50 = vpop.xlane.xlu0 %836  ;;  %v6721_v2 = vmul.f32 %v5586_v53, %v630_v28  ;;  %v6739_v29 = vmul.f32 0.0051020407, %v841_v47 }
  0xcd   : > { %v655_v57 = vmul.f32 %v639_v49, %v6674_v36  ;;  %v907_v36 = vmul.f32 %v6715_v56, %v6715_v56 }
  0xce   : > { %v5588_v59 = vpop.eup %5587  ;;  %739 = vperm.xlu0 %5573, %v661_v48   ;;  %683 = vperm.xlu1 %5574, %v637_v41   ;;  %v6748_v41 = vmul.f32 0.0051020407, %v837_v50  ;;  %v913_v47 = vmul.f32 %v6739_v29, %v6739_v29 }
  0xcf   : > { %v873_v60 = vpop.xlane.xlu1 %872  ;;  %v663_v61 = vsub.f32 %v647_v51, %v655_v57  ;;  %v641_v62 = vmul.f32 %v5588_v59, %v633_v52  ;;  %v5590_v15 = vpop.eup %5589  ;;  %v642_v51 = vld [vmem:[%s6382_s18] sm:$0xff]  ;;  %v910_v52 = vmul.f32 %v6744_v35, %v6744_v35 }
  0xd0   : > { %v899_v0 = vmul.f32 0.0051020407, %v873_v60  ;;  %v869_v1 = vpop.xlane.xlu0 %868  ;;  %v640_v34 = vmul.f32 %v5590_v15, %v632_v18  ;;  %v658_v59 = vsub.f32 %v642_v51, %v650_v40  ;;  %v912_v60 = vmul.f32 %v6748_v41, %v6748_v41 }
  0xd1   : > { %v898_v5 = vmul.f32 0.0051020407, %v869_v1  ;;  %v657_v6 = vmul.f32 %v641_v62, %v6686_v54  ;;  %v652_v1 = vmul.f32 %v6705_v43, %v6670_v32  ;;  %v949_v32 = vld [vmem:[%s6377_s15 + $0x58] sm:$0xff]  ;;  %v646_v43 = vld [vmem:[%s6382_s18 + $0x20] sm:$0xff] }
  0xd2   : > { %749 = vperm.xlu0 %5573, %v663_v61   ;;  %688 = vperm.xlu1 %5574, %v6721_v2   ;;  %v915_v8 = vsub.f32 %v899_v0, %v907_v36 }
  0xd3   : > { %v914_v9 = vsub.f32 %v898_v5, %v906_v4  ;;  %v881_v10 = vpop.xlane.xlu1 %880  ;;  %v665_v11 = vsub.f32 %v649_v3, %v657_v6  ;;  %v644_v3 = vld [vmem:[%s6382_s18 + $0x10] sm:$0xff]  ;;  %v946_v4 = vld [vmem:[%s6377_s15 + $0x40] sm:$0xff] }
  0xd4   : > { %v901_v13 = vmul.f32 0.0051020407, %v881_v10  ;;  %v877_v14 = vpop.xlane.xlu0 %876  ;;  %v923_v20 = vmax.f32 %v915_v8, 0.0 }
  0xd5   : > { %v922_v17 = vmax.f32 %v914_v9, 0.0  ;;  %v900_v22 = vmul.f32 0.0051020407, %v877_v14 }
  0xd6   : > { %v917_v54 = vsub.f32 %v901_v13, %v909_v12  ;;  %759 = vperm.xlu0 %5573, %v665_v11   ;;  %693 = vperm.xlu1 %5574, %v639_v49   ;;  %v931_v44 = vadd.f32 1e-05, %v923_v20  ;;  %v660_v11 = vsub.f32 %v644_v3, %v652_v1  ;;  %v654_v13 = vmul.f32 %v6721_v2, %v6676_v37  ;;  %v951_v37 = vld [vmem:[%s6377_s15 + $0x68] sm:$0xff] }
  0xd7   : > { %v930_v21 = vadd.f32 1e-05, %v922_v17  ;;  %v889_v23 = vpop.xlane.xlu1 %888  ;;  %v916_v45 = vsub.f32 %v900_v22, %v908_v25  ;;  %v648_v22 = vld [vmem:[%s6382_s18 + $0x30] sm:$0xff] }
  0xd8   : > { %v925_v30 = vmax.f32 %v917_v54, 0.0  ;;  %v903_v31 = vmul.f32 0.0051020407, %v889_v23  ;;  %v885_v33 = vpop.xlane.xlu0 %884  ;;  %v662_v20 = vsub.f32 %v646_v43, %v654_v13  ;;  %v947_v23 = vld [vmem:[%s6377_s15 + $0x48] sm:$0xff] }
  0xd9   : > { %5591 = vrsqrt.f32 %v930_v21  ;;  %v902_v24 = vmul.f32 0.0051020407, %v885_v33  ;;  %v924_v53 = vmax.f32 %v916_v45, 0.0  ;;  %v656_v21 = vmul.f32 %v640_v34, %v6688_v58 }
  0xda   : > { %v933_v38 = vadd.f32 1e-05, %v925_v30  ;;  %v919_v39 = vsub.f32 %v903_v31, %v911_v19  ;;  %698 = vperm.xlu1 %5574, %v640_v34  }
  0xdb   : > { %v897_v46 = vpop.xlane.xlu1 %896  ;;  %v918_v57 = vsub.f32 %v902_v24, %v910_v52  ;;  %v932_v6 = vadd.f32 1e-05, %v924_v53  ;;  %v948_v53 = vld [vmem:[%s6377_s15 + $0x50] sm:$0xff] }
  0xdc   : > { %5593 = vrsqrt.f32 %v933_v38  ;;  %v927_v42 = vmax.f32 %v919_v39, 0.0  ;;  %v905_v48 = vmul.f32 0.0051020407, %v897_v46  ;;  %v893_v49 = vpop.xlane.xlu0 %892  ;;  %v664_v39 = vsub.f32 %v648_v22, %v656_v21 }
  0xdd   : > { %v904_v50 = vmul.f32 0.0051020407, %v893_v49  ;;  %5595 = vrsqrt.f32 %v931_v44  ;;  %v926_v8 = vmax.f32 %v918_v57, 0.0  ;;  %v953_v44 = vld [vmem:[%s6377_s15 + $0x78] sm:$0xff] }
  0xde   : > { %v935_v26 = vadd.f32 1e-05, %v927_v42  ;;  %v921_v27 = vsub.f32 %v905_v48, %v913_v47  ;;  %703 = vperm.xlu1 %5574, %v641_v62  }
  0xdf   : > { %v1133_v28 = vpop.xlane.xlu1 %1132  ;;  %v920_v62 = vsub.f32 %v904_v50, %v912_v60  ;;  %v934_v17 = vadd.f32 1e-05, %v926_v8  ;;  %v963_v50 = vld [vmem:[%s6382_s18 + $0x48] sm:$0xff]  ;;  %v950_v8 = vld [vmem:[%s6377_s15 + $0x60] sm:$0xff] }
  0xe0   : > { %5597 = vrsqrt.f32 %v935_v26  ;;  %v929_v61 = vmax.f32 %v921_v27, 0.0  ;;  %v1137_v0 = vpop.xlane.xlu0 %1136  ;;  %v6777_v45 = vmul.f32 0.0051020407, %v1133_v28 }
  0xe1   : > { %v928_v15 = vmax.f32 %v920_v62, 0.0  ;;  %v6779_v58 = vmul.f32 0.0051020407, %v1137_v0 }
  0xe2   : > { %v937_v36 = vadd.f32 1e-05, %v929_v61  ;;  %724 = vperm.xlu1 %5574, %v658_v59   ;;  %v1226_v52 = vmul.f32 %v6777_v45, %v6777_v45 }
  0xe3   : > { %v5592_v5 = vpop.eup %5591  ;;  %v1145_v9 = vpop.xlane.xlu1 %1144  ;;  %v936_v31 = vadd.f32 1e-05, %v928_v15  ;;  %v1227_v26 = vmul.f32 %v6779_v58, %v6779_v58 }
  0xe4   : > { %5599 = vrsqrt.f32 %v937_v36  ;;  %v1141_v10 = vpop.xlane.xlu0 %1140  ;;  %v6761_v12 = vmul.f32 %v5592_v5, %v946_v4  ;;  %v6781_v24 = vmul.f32 0.0051020407, %v1145_v9 }
  0xe5   : > { %5601 = vrsqrt.f32 %v932_v6  ;;  %v6798_v62 = vmul.f32 0.0051020407, %v1141_v10  ;;  %v965_v6 = vld [vmem:[%s6382_s18 + $0x58] sm:$0xff]  ;;  %v967_v10 = vld [vmem:[%s6382_s18 + $0x68] sm:$0xff] }
  0xe6   : > { %v5594_v14 = vpop.eup %5593  ;;  %734 = vperm.xlu1 %5574, %v660_v11   ;;  %988 = vperm.xlu0 %5573, %v6761_v12   ;;  %5603 = vrsqrt.f32 %v934_v17  ;;  %v1229_v57 = vmul.f32 %v6781_v24, %v6781_v24 }
  0xe7   : > { %v1153_v18 = vpop.xlane.xlu1 %1152  ;;  %v957_v54 = vmul.f32 %v5594_v14, %v949_v32  ;;  %v5596_v2 = vpop.eup %5595  ;;  %5605 = vrsqrt.f32 %v936_v31  ;;  %v1228_v22 = vmul.f32 %v6798_v62, %v6798_v62 }
  0xe8   : > { %v6768_v19 = vpop.xlane.xlu0 %1148  ;;  %v955_v40 = vmul.f32 %v5596_v2, %v947_v23  ;;  %v6795_v28 = vmul.f32 0.0051020407, %v1153_v18  ;;  %v952_v2 = vld [vmem:[%s6377_s15 + $0x70] sm:$0xff] }
  0xe9   : > { %v973_v4 = vmul.f32 %v957_v54, %v6719_v63  ;;  %v6814_v23 = vmul.f32 0.0051020407, %v6768_v19 }
  0xea   : > { %v5598_v30 = vpop.eup %5597  ;;  %744 = vperm.xlu1 %5574, %v662_v20   ;;  %1003 = vperm.xlu0 %5573, %v957_v54   ;;  %v971_v49 = vmul.f32 %v955_v40, %v6715_v56  ;;  %v1231_v32 = vmul.f32 %v6795_v28, %v6795_v28 }
  0xeb   : > { %v1161_v33 = vpop.xlane.xlu1 %1160  ;;  %v959_v25 = vmul.f32 %v5598_v30, %v951_v37  ;;  %v981_v21 = vsub.f32 %v965_v6, %v973_v4 }
  0xec   : > { %v6774_v38 = vpop.xlane.xlu0 %1156  ;;  %v979_v1 = vsub.f32 %v963_v50, %v971_v49  ;;  %v6802_v9 = vmul.f32 0.0051020407, %v1161_v33  ;;  %v1230_v49 = vmul.f32 %v6814_v23, %v6814_v23 }
  0xed   : > { %v975_v13 = vmul.f32 %v959_v25, %v6730_v7  ;;  %v970_v7 = vmul.f32 %v6761_v12, %v6713_v55 }
  0xee   : > { %v5600_v34 = vpop.eup %5599  ;;  %754 = vperm.xlu1 %5574, %v664_v39   ;;  %1013 = vperm.xlu0 %5573, %v959_v25   ;;  %v1233_v30 = vmul.f32 %v6802_v9, %v6802_v9 }
  0xef   : > { %v1193_v46 = vpop.xlane.xlu1 %1192  ;;  %v6783_v47 = vmul.f32 %v5600_v34, %v953_v44  ;;  %v5602_v51 = vpop.eup %5601  ;;  %v983_v25 = vsub.f32 %v967_v10, %v975_v13 }
  0xf0   : > { %v1219_v42 = vmul.f32 0.0051020407, %v1193_v46  ;;  %v1189_v48 = vpop.xlane.xlu0 %1188  ;;  %v956_v3 = vmul.f32 %v5602_v51, %v948_v53  ;;  %v5604_v36 = vpop.eup %5603  ;;  %v6824_v51 = vmul.f32 0.0051020407, %v6774_v38 }
  0xf1   : > { %v1218_v27 = vmul.f32 0.0051020407, %v1189_v48  ;;  %v5606_v17 = vpop.eup %5605  ;;  %v958_v37 = vmul.f32 %v5604_v36, %v950_v8  ;;  %v977_v48 = vmul.f32 %v6783_v47, %v6739_v29 }
  0xf2   : > { %993 = vperm.xlu1 %5574, %v955_v40   ;;  %1023 = vperm.xlu0 %5573, %v6783_v47   ;;  %v1235_v56 = vsub.f32 %v1219_v42, %v1227_v26  ;;  %v960_v46 = vmul.f32 %v5606_v17, %v952_v2  ;;  %v962_v42 = vld [vmem:[%s6382_s18 + $0x40] sm:$0xff]  ;;  %v972_v29 = vmul.f32 %v956_v3, %v6734_v16  ;;  %v968_v2 = vld [vmem:[%s6382_s18 + $0x70] sm:$0xff] }
  0xf3   : > { %v1234_v59 = vsub.f32 %v1218_v27, %v1226_v52  ;;  %v1201_v60 = vpop.xlane.xlu1 %1200  ;;  %v969_v52 = vld [vmem:[%s6382_s18 + $0x78] sm:$0xff]  ;;  %v978_v50 = vsub.f32 %v962_v42, %v970_v7  ;;  %v974_v16 = vmul.f32 %v958_v37, %v6744_v35 }
  0xf4   : > { %v1221_v61 = vmul.f32 0.0051020407, %v1201_v60  ;;  %v1197_v0 = vpop.xlane.xlu0 %1196  ;;  %v1243_v43 = vmax.f32 %v1235_v56, 0.0  ;;  %v985_v38 = vsub.f32 %v969_v52, %v977_v48  ;;  %v976_v35 = vmul.f32 %v960_v46, %v6748_v41  ;;  %v1268_v52 = vld [vmem:[%s6377_s15 + $0x90] sm:$0xff] }
  0xf5   : > { %v1242_v5 = vmax.f32 %v1234_v59, 0.0  ;;  %v1220_v14 = vmul.f32 0.0051020407, %v1197_v0  ;;  %v964_v0 = vld [vmem:[%s6382_s18 + $0x50] sm:$0xff] }
  0xf6   : > { %v1237_v11 = vsub.f32 %v1221_v61, %v1229_v57  ;;  %1049 = vperm.xlu0 %5573, %v979_v1   ;;  %998 = vperm.xlu1 %5574, %v956_v3   ;;  %v1251_v39 = vadd.f32 1e-05, %v1243_v43  ;;  %v1232_v61 = vmul.f32 %v6824_v51, %v6824_v51  ;;  %v1266_v1 = vld [vmem:[%s6377_s15 + $0x80] sm:$0xff]  ;;  %v980_v13 = vsub.f32 %v964_v0, %v972_v29  ;;  %v1269_v43 = vld [vmem:[%s6377_s15 + $0x98] sm:$0xff] }
  0xf7   : > { %v1250_v63 = vadd.f32 1e-05, %v1242_v5  ;;  %v1209_v15 = vpop.xlane.xlu1 %1208  ;;  %v1236_v40 = vsub.f32 %v1220_v14, %v1228_v22  ;;  %v1267_v22 = vld [vmem:[%s6377_s15 + $0x88] sm:$0xff]  ;;  %v1270_v0 = vld [vmem:[%s6377_s15 + $0xa0] sm:$0xff] }
  0xf8   : > { %v1245_v18 = vmax.f32 %v1237_v11, 0.0  ;;  %v1223_v54 = vmul.f32 0.0051020407, %v1209_v15  ;;  %v1205_v20 = vpop.xlane.xlu0 %1204 }
  0xf9   : > { %5607 = vrsqrt.f32 %v1250_v63  ;;  %v1222_v44 = vmul.f32 0.0051020407, %v1205_v20  ;;  %v1244_v53 = vmax.f32 %v1236_v40, 0.0  ;;  %v966_v63 = vld [vmem:[%s6382_s18 + $0x60] sm:$0xff]  ;;  %v1273_v40 = vld [vmem:[%s6377_s15 + $0xb8] sm:$0xff] }
  0xfa   : > { %v1253_v31 = vadd.f32 1e-05, %v1245_v18  ;;  %v1239_v33 = vsub.f32 %v1223_v54, %v1231_v32  ;;  %1059 = vperm.xlu0 %5573, %v981_v21   ;;  %1008 = vperm.xlu1 %5574, %v958_v37   ;;  %v982_v20 = vsub.f32 %v966_v63, %v974_v16  ;;  %v1271_v21 = vld [vmem:[%s6377_s15 + $0xa8] sm:$0xff] }
  0xfb   : > { %v1217_v34 = vpop.xlane.xlu1 %1216  ;;  %v1238_v57 = vsub.f32 %v1222_v44, %v1230_v49  ;;  %v1252_v5 = vadd.f32 1e-05, %v1244_v53  ;;  %v1283_v49 = vld [vmem:[%s6382_s18 + $0x88] sm:$0xff] }
  0xfc   : > { %5609 = vrsqrt.f32 %v1253_v31  ;;  %v1247_v55 = vmax.f32 %v1239_v33, 0.0  ;;  %v1225_v12 = vmul.f32 0.0051020407, %v1217_v34  ;;  %v1213_v19 = vpop.xlane.xlu0 %1212 }
  0xfd   : > { %5611 = vrsqrt.f32 %v1251_v39  ;;  %v1224_v56 = vmul.f32 0.0051020407, %v1213_v19  ;;  %v1246_v6 = vmax.f32 %v1238_v57, 0.0  ;;  %v984_v39 = vsub.f32 %v968_v2, %v976_v35 }
  0xfe   : > { %v1255_v26 = vadd.f32 1e-05, %v1247_v55  ;;  %v1241_v27 = vsub.f32 %v1225_v12, %v1233_v30  ;;  %1069 = vperm.xlu0 %5573, %v983_v25   ;;  %1018 = vperm.xlu1 %5574, %v960_v46  }
  0xff   : > { %v1453_v59 = vpop.xlane.xlu1 %1452  ;;  %v1240_v8 = vsub.f32 %v1224_v56, %v1232_v61  ;;  %v1254_v15 = vadd.f32 1e-05, %v1246_v6  ;;  %v1285_v61 = vld [vmem:[%s6382_s18 + $0x98] sm:$0xff] }
 0x100   : > { %5613 = vrsqrt.f32 %v1255_v26  ;;  %v1249_v47 = vmax.f32 %v1241_v27, 0.0  ;;  %v1457_v60 = vpop.xlane.xlu0 %1456  ;;  %v6850_v19 = vmul.f32 0.0051020407, %v1453_v59 }
 0x101   : > { %v1248_v10 = vmax.f32 %v1240_v8, 0.0  ;;  %v6852_v48 = vmul.f32 0.0051020407, %v1457_v60 }
 0x102   : > { %v1257_v4 = vadd.f32 1e-05, %v1249_v47  ;;  %1079 = vperm.xlu0 %5573, %v985_v38   ;;  %1044 = vperm.xlu1 %5574, %v978_v50   ;;  %v1546_v59 = vmul.f32 %v6850_v19, %v6850_v19 }
 0x103   : > { %v5608_v36 = vpop.eup %5607  ;;  %v1465_v11 = vpop.xlane.xlu1 %1464  ;;  %v1256_v30 = vadd.f32 1e-05, %v1248_v10  ;;  %v1547_v47 = vmul.f32 %v6852_v48, %v6852_v48 }
 0x104   : > { %5615 = vrsqrt.f32 %v1257_v4  ;;  %v1461_v3 = vpop.xlane.xlu0 %1460  ;;  %v6833_v32 = vmul.f32 %v5608_v36, %v1266_v1  ;;  %v6856_v26 = vmul.f32 0.0051020407, %v1465_v11 }
 0x105   : > { %5617 = vrsqrt.f32 %v1252_v5  ;;  %v6863_v60 = vmul.f32 0.0051020407, %v1461_v3 }
 0x106   : > { %v5610_v14 = vpop.eup %5609  ;;  %1054 = vperm.xlu1 %5574, %v980_v13   ;;  %1308 = vperm.xlu0 %5573, %v6833_v32   ;;  %5619 = vrsqrt.f32 %v1254_v15  ;;  %v1549_v6 = vmul.f32 %v6856_v26, %v6856_v26  ;;  %v1287_v13 = vld [vmem:[%s6382_s18 + $0xa8] sm:$0xff] }
 0x107   : > { %v1473_v17 = vpop.xlane.xlu1 %1472  ;;  %v1277_v18 = vmul.f32 %v5610_v14, %v1269_v43  ;;  %v5612_v37 = vpop.eup %5611  ;;  %5621 = vrsqrt.f32 %v1256_v30  ;;  %v1548_v63 = vmul.f32 %v6863_v60, %v6863_v60 }
 0x108   : > { %v1469_v54 = vpop.xlane.xlu0 %1468  ;;  %v1275_v41 = vmul.f32 %v5612_v37, %v1267_v22  ;;  %v6867_v1 = vmul.f32 0.0051020407, %v1473_v17  ;;  %v1272_v17 = vld [vmem:[%s6377_s15 + $0xb0] sm:$0xff] }
 0x109   : > { %v1293_v50 = vmul.f32 %v1277_v18, %v6781_v24  ;;  %v6875_v14 = vmul.f32 0.0051020407, %v1469_v54 }
 0x10a   : > { %v5614_v7 = vpop.eup %5613  ;;  %1064 = vperm.xlu1 %5574, %v982_v20   ;;  %1323 = vperm.xlu0 %5573, %v1277_v18   ;;  %v1291_v55 = vmul.f32 %v1275_v41, %v6779_v58  ;;  %v1551_v18 = vmul.f32 %v6867_v1, %v6867_v1 }
 0x10b   : > { %v1481_v31 = vpop.xlane.xlu1 %1480  ;;  %v1279_v33 = vmul.f32 %v5614_v7, %v1271_v21  ;;  %v1301_v16 = vsub.f32 %v1285_v61, %v1293_v50  ;;  %v1282_v7 = vld [vmem:[%s6382_s18 + $0x80] sm:$0xff] }
 0x10c   : > { %v6842_v25 = vpop.xlane.xlu0 %1476  ;;  %v1299_v56 = vsub.f32 %v1283_v49, %v1291_v55  ;;  %v6882_v35 = vmul.f32 0.0051020407, %v1481_v31 }
 0x10d   : > { %v1295_v5 = vmul.f32 %v1279_v33, %v6795_v28  ;;  %v1290_v28 = vmul.f32 %v6833_v32, %v6777_v45  ;;  %v1550_v32 = vmul.f32 %v6875_v14, %v6875_v14  ;;  %v6889_v31 = vmul.f32 0.0051020407, %v6842_v25 }
 0x10e   : > { %v5616_v44 = vpop.eup %5615  ;;  %1074 = vperm.xlu1 %5574, %v984_v39   ;;  %1333 = vperm.xlu0 %5573, %v1279_v33  }
 0x10f   : > { %v6845_v34 = vpop.xlane.xlu1 %1764  ;;  %v1281_v46 = vmul.f32 %v5616_v44, %v1273_v40  ;;  %v5618_v12 = vpop.eup %5617  ;;  %v1303_v22 = vsub.f32 %v1287_v13, %v1295_v5  ;;  %v1289_v44 = vld [vmem:[%s6382_s18 + $0xb8] sm:$0xff]  ;;  %v1298_v49 = vsub.f32 %v1282_v7, %v1290_v28 }
 0x110   : > { %v6847_v42 = vpop.xlane.xlu0 %1760  ;;  %v1276_v58 = vmul.f32 %v5618_v12, %v1268_v52  ;;  %v5620_v29 = vpop.eup %5619 }
 0x111   : > { %v1278_v3 = vmul.f32 %v5620_v29, %v1270_v0  ;;  %v5622_v43 = vpop.eup %5621  ;;  %v1297_v45 = vmul.f32 %v1281_v46, %v6802_v9  ;;  %v1553_v9 = vmul.f32 %v6882_v35, %v6882_v35 }
 0x112   : > { %1313 = vperm.xlu1 %5574, %v1275_v41   ;;  %1343 = vperm.xlu0 %5573, %v1281_v46   ;;  %v1280_v41 = vmul.f32 %v5622_v43, %v1272_v17  ;;  %v1292_v52 = vmul.f32 %v1276_v58, %v6798_v62  ;;  %v1586_v43 = vld [vmem:[%s6377_s15 + $0xc0] sm:$0xff] }
 0x113   : > { %v1513_v27 = vpop.xlane.xlu1 %1512  ;;  %v1305_v29 = vsub.f32 %v1289_v44, %v1297_v45  ;;  %v1294_v0 = vmul.f32 %v1278_v3, %v6814_v23 }
 0x114   : > { %v1539_v53 = vmul.f32 0.0051020407, %v1513_v27  ;;  %v1509_v57 = vpop.xlane.xlu0 %1508 }
 0x115   : > { %v1538_v38 = vmul.f32 0.0051020407, %v1509_v57 }
 0x116   : > { %1369 = vperm.xlu0 %5573, %v1299_v56   ;;  %1318 = vperm.xlu1 %5574, %v1276_v58   ;;  %v1555_v24 = vsub.f32 %v1539_v53, %v1547_v47  ;;  %v6898_v47 = vmul.f32 0.0051020407, %v6847_v42  ;;  %v1284_v58 = vld [vmem:[%s6382_s18 + $0x90] sm:$0xff]  ;;  %v1286_v42 = vld [vmem:[%s6382_s18 + $0xa0] sm:$0xff] }
 0x117   : > { %v1554_v4 = vsub.f32 %v1538_v38, %v1546_v59  ;;  %v1521_v36 = vpop.xlane.xlu1 %1520  ;;  %v1552_v59 = vmul.f32 %v6889_v31, %v6889_v31  ;;  %v1302_v28 = vsub.f32 %v1286_v42, %v1294_v0  ;;  %v1792_v0 = vld [vmem:[%s6377_s15 + $0x100] sm:$0xff] }
 0x118   : > { %v1541_v8 = vmul.f32 0.0051020407, %v1521_v36  ;;  %v1517_v11 = vpop.xlane.xlu0 %1516  ;;  %v1563_v21 = vmax.f32 %v1555_v24, 0.0 }
 0x119   : > { %v1562_v15 = vmax.f32 %v1554_v4, 0.0  ;;  %v1540_v10 = vmul.f32 0.0051020407, %v1517_v11  ;;  %v1782_v11 = vmul.f32 %v6898_v47, %v6898_v47 }
 0x11a   : > { %v1557_v20 = vsub.f32 %v1541_v8, %v1549_v6  ;;  %1379 = vperm.xlu0 %5573, %v1301_v16   ;;  %1328 = vperm.xlu1 %5574, %v1278_v3   ;;  %v1571_v46 = vadd.f32 1e-05, %v1563_v21  ;;  %v1300_v8 = vsub.f32 %v1284_v58, %v1292_v52  ;;  %v1296_v21 = vmul.f32 %v1280_v41, %v6824_v51 }
 0x11b   : > { %v1570_v37 = vadd.f32 1e-05, %v1562_v15  ;;  %v1556_v2 = vsub.f32 %v1540_v10, %v1548_v63  ;;  %v1529_v54 = vpop.xlane.xlu1 %1528  ;;  %v6907_v63 = vmul.f32 0.0051020407, %v6845_v34 }
 0x11c   : > { %v1565_v30 = vmax.f32 %v1557_v20, 0.0  ;;  %v1543_v33 = vmul.f32 0.0051020407, %v1529_v54  ;;  %v1525_v39 = vpop.xlane.xlu0 %1524  ;;  %v1288_v54 = vld [vmem:[%s6382_s18 + $0xb0] sm:$0xff] }
 0x11d   : > { %5623 = vrsqrt.f32 %v1570_v37  ;;  %v1542_v40 = vmul.f32 0.0051020407, %v1525_v39  ;;  %v1564_v27 = vmax.f32 %v1556_v2, 0.0  ;;  %v1589_v37 = vld [vmem:[%s6377_s15 + $0xd8] sm:$0xff]  ;;  %v1304_v45 = vsub.f32 %v1288_v54, %v1296_v21 }
 0x11e   : > { %v1573_v55 = vadd.f32 1e-05, %v1565_v30  ;;  %v1559_v12 = vsub.f32 %v1543_v33, %v1551_v18  ;;  %1389 = vperm.xlu0 %5573, %v1303_v22   ;;  %1338 = vperm.xlu1 %5574, %v1280_v41   ;;  %v1783_v22 = vmul.f32 %v6907_v63, %v6907_v63  ;;  %v1587_v41 = vld [vmem:[%s6377_s15 + $0xc8] sm:$0xff] }
 0x11f   : > { %v1558_v50 = vsub.f32 %v1542_v40, %v1550_v32  ;;  %v1537_v53 = vpop.xlane.xlu1 %1536  ;;  %v1572_v24 = vadd.f32 1e-05, %v1564_v27  ;;  %v1591_v32 = vld [vmem:[%s6377_s15 + $0xe8] sm:$0xff] }
 0x120   : > { %5625 = vrsqrt.f32 %v1573_v55  ;;  %v1567_v25 = vmax.f32 %v1559_v12, 0.0  ;;  %v1545_v57 = vmul.f32 0.0051020407, %v1537_v53  ;;  %v1533_v56 = vpop.xlane.xlu0 %1532 }
 0x121   : > { %v1544_v62 = vmul.f32 0.0051020407, %v1533_v56  ;;  %5627 = vrsqrt.f32 %v1571_v46  ;;  %v1566_v4 = vmax.f32 %v1558_v50, 0.0  ;;  %v1603_v56 = vld [vmem:[%s6382_s18 + $0xc8] sm:$0xff] }
 0x122   : > { %v1575_v38 = vadd.f32 1e-05, %v1567_v25  ;;  %v1561_v61 = vsub.f32 %v1545_v57, %v1553_v9  ;;  %1399 = vperm.xlu0 %5573, %v1305_v29   ;;  %1364 = vperm.xlu1 %5574, %v1298_v49   ;;  %v1593_v49 = vld [vmem:[%s6377_s15 + $0xf8] sm:$0xff]  ;;  %v1588_v9 = vld [vmem:[%s6377_s15 + $0xd0] sm:$0xff]  ;;  %v1590_v29 = vld [vmem:[%s6377_s15 + $0xe0] sm:$0xff] }
 0x123   : > { %v1560_v36 = vsub.f32 %v1544_v62, %v1552_v59  ;;  %v1779_v16 = vpop.xlane.xlu1 %1778  ;;  %v1574_v10 = vadd.f32 1e-05, %v1566_v4 }
 0x124   : > { %5629 = vrsqrt.f32 %v1575_v38  ;;  %v1569_v5 = vmax.f32 %v1561_v61, 0.0  ;;  %v1775_v6 = vpop.xlane.xlu0 %1774  ;;  %v1781_v18 = vmul.f32 0.0051020407, %v1779_v16  ;;  %v1592_v61 = vld [vmem:[%s6377_s15 + $0xf0] sm:$0xff] }
 0x125   : > { %v1780_v13 = vmul.f32 0.0051020407, %v1775_v6  ;;  %v1568_v3 = vmax.f32 %v1560_v36, 0.0  ;;  %5631 = vrsqrt.f32 %v1572_v24  ;;  %v1605_v6 = vld [vmem:[%s6382_s18 + $0xd8] sm:$0xff] }
 0x126   : > { %v1577_v23 = vadd.f32 1e-05, %v1569_v5  ;;  %1374 = vperm.xlu1 %5574, %v1300_v8   ;;  %v1785_v39 = vsub.f32 %v1781_v18, %v1783_v22  ;;  %v1602_v5 = vld [vmem:[%s6382_s18 + $0xc0] sm:$0xff] }
 0x127   : > { %v5624_v15 = vpop.eup %5623  ;;  %v1784_v17 = vsub.f32 %v1780_v13, %v1782_v11  ;;  %v1576_v7 = vadd.f32 1e-05, %v1568_v3  ;;  %v1604_v13 = vld [vmem:[%s6382_s18 + $0xd0] sm:$0xff]  ;;  %v1793_v3 = vld [vmem:[%s6377_s15 + $0x108] sm:$0xff] }
 0x128   : > { %5633 = vrsqrt.f32 %v1577_v23  ;;  %v1594_v20 = vmul.f32 %v5624_v15, %v1586_v43  ;;  %v1787_v55 = vmax.f32 %v1785_v39, 0.0  ;;  %v1607_v43 = vld [vmem:[%s6382_s18 + $0xe8] sm:$0xff] }
 0x129   : > { %v1786_v2 = vmax.f32 %v1784_v17, 0.0  ;;  %5635 = vrsqrt.f32 %v1574_v10 }
 0x12a   : > { %v5626_v34 = vpop.eup %5625  ;;  %1384 = vperm.xlu1 %5574, %v1302_v28   ;;  %1628 = vperm.xlu0 %5573, %v1594_v20   ;;  %5637 = vrsqrt.f32 %v1576_v7  ;;  %v1789_v50 = vadd.f32 1e-05, %v1787_v55  ;;  %v1610_v4 = vmul.f32 %v1594_v20, %v6850_v19  ;;  %v5644_v20 = vld [vmem:[%s9428_s2 + $0x18] sm:$0xff] }
 0x12b   : > { %v1788_v30 = vadd.f32 1e-05, %v1786_v2  ;;  %v1597_v33 = vmul.f32 %v5626_v34, %v1589_v37  ;;  %v5628_v51 = vpop.eup %5627  ;;  %v1606_v34 = vld [vmem:[%s6382_s18 + $0xe0] sm:$0xff] }
 0x12c   : > { %v1595_v12 = vmul.f32 %v5628_v51, %v1587_v41  ;;  %v1618_v8 = vsub.f32 %v1602_v5, %v1610_v4  ;;  %v1608_v51 = vld [vmem:[%s6382_s18 + $0xf0] sm:$0xff]  ;;  %v5651_v4 = vld [vmem:[%s9428_s2] sm:$0xff]  ;;  %v5652_v5 = vld [vmem:[%s9428_s2 + $0x8] sm:$0xff] }
 0x12d   : > { %5639 = vrsqrt.f32 %v1788_v30  ;;  %v1613_v36 = vmul.f32 %v1597_v33, %v6856_v26 }
 0x12e   : > { %v5630_v40 = vpop.eup %5629  ;;  %1394 = vperm.xlu1 %5574, %v1304_v45   ;;  %1643 = vperm.xlu0 %5573, %v1597_v33   ;;  %v1611_v25 = vmul.f32 %v1595_v12, %v6852_v48  ;;  %5641 = vrsqrt.f32 %v1789_v50  ;;  %v1797_v33 = vld [vmem:[%s6382_s18 + $0x108] sm:$0xff] }
 0x12f   : > { %v1599_v44 = vmul.f32 %v5630_v40, %v1591_v32  ;;  %v5632_v52 = vpop.eup %5631  ;;  %v1621_v42 = vsub.f32 %v1605_v6, %v1613_v36  ;;  %v5646_v40 = vld [vmem:[%s9428_s2 + $0x38] sm:$0xff] }
 0x130   : > { %v1596_v53 = vmul.f32 %v5632_v52, %v1588_v9  ;;  %v1619_v62 = vsub.f32 %v1603_v56, %v1611_v25 }
 0x131   : > { %v1615_v16 = vmul.f32 %v1599_v44, %v6867_v1  ;;  %v5643_v1 = vld [vmem:[%s9428_s2 + $0x10] sm:$0xff] }
 0x132   : > { %v5634_v46 = vpop.eup %5633  ;;  %1633 = vperm.xlu1 %5574, %v1595_v12   ;;  %1653 = vperm.xlu0 %5573, %v1599_v44   ;;  %v1612_v11 = vmul.f32 %v1596_v53, %v6863_v60  ;;  %v1609_v60 = vld [vmem:[%s6382_s18 + $0xf8] sm:$0xff] }
 0x133   : > { %v1601_v27 = vmul.f32 %v5634_v46, %v1593_v49  ;;  %v5636_v57 = vpop.eup %5635  ;;  %v1623_v26 = vsub.f32 %v1607_v43, %v1615_v16  ;;  %v1796_v46 = vld [vmem:[%s6382_s18 + $0x100] sm:$0xff] }
 0x134   : > { %v5638_v59 = vpop.eup %5637  ;;  %v1598_v58 = vmul.f32 %v5636_v57, %v1590_v29  ;;  %v1620_v15 = vsub.f32 %v1604_v13, %v1612_v11  ;;  %v5648_v57 = vld [vmem:[%s9428_s2 + $0x58] sm:$0xff]  ;;  %v5653_v43 = vld [vmem:[%s9428_s2 + $0x20] sm:$0xff] }
 0x135   : > { %v1600_v24 = vmul.f32 %v5638_v59, %v1592_v61  ;;  %v1617_v28 = vmul.f32 %v1601_v27, %v6882_v35 }
 0x136   : > { %1663 = vperm.xlu0 %5573, %v1601_v27   ;;  %1638 = vperm.xlu1 %5574, %v1596_v53   ;;  %v1614_v37 = vmul.f32 %v1598_v58, %v6875_v14  ;;  %v5647_v53 = vld [vmem:[%s9428_s2 + $0x50] sm:$0xff] }
 0x137   : > { %v5640_v38 = vpop.eup %5639  ;;  %v1625_v54 = vsub.f32 %v1609_v60, %v1617_v28  ;;  %v1616_v45 = vmul.f32 %v1600_v24, %v6889_v31  ;;  %v5655_v28 = vld [vmem:[%s9428_s2 + $0x40] sm:$0xff] }
 0x138   : > { %v1794_v48 = vmul.f32 %v5640_v38, %v1792_v0  ;;  %v5642_v23 = vpop.eup %5641  ;;  %v1622_v39 = vsub.f32 %v1606_v34, %v1614_v37  ;;  %v5649_v38 = vld [vmem:[%s9428_s2 + $0x70] sm:$0xff]  ;;  %v5650_v0 = vld [vmem:[%s9428_s2 + $0x78] sm:$0xff]  ;;  %v5658_v34 = vld [vmem:[%s9428_s2 + $0x68] sm:$0xff] }
 0x139   : > { %v1795_v17 = vmul.f32 %v5642_v23, %v1793_v3  ;;  %v1624_v49 = vsub.f32 %v1608_v51, %v1616_v45  ;;  %v5654_v3 = vld [vmem:[%s9428_s2 + $0x28] sm:$0xff] }
 0x13a   : > { %1689 = vperm.xlu0 %5573, %v1619_v62   ;;  %1648 = vperm.xlu1 %5574, %v1598_v58   ;;  %v1798_v52 = vmul.f32 %v1794_v48, %v6898_v47 }
 0x13b   : > { %v1799_v22 = vmul.f32 %v1795_v17, %v6907_v63  ;;  %v5645_v63 = vld [vmem:[%s9428_s2 + $0x30] sm:$0xff] }
 0x13c   : > { %v1800_v27 = vsub.f32 %v1796_v46, %v1798_v52  ;;  %v5662_v52 = vld [vmem:[%s9428_s2 + $0xb8] sm:$0xff] }
 0x13d   : > { %v1801_v32 = vsub.f32 %v1797_v33, %v1799_v22 }
 0x13e   : > { %1658 = vperm.xlu1 %5574, %v1600_v24   ;;  %1804 = vperm.xlu0 %5573, %v1794_v48  }
 0x142   : > { %1684 = vperm.xlu1 %5574, %v1618_v8   ;;  %1699 = vperm.xlu0 %5573, %v1621_v42  }
 0x144   : > { %v674_v19 = vpop.permute.xlu1 %673 }
 0x145   : > { %v6932_v10 = vpop.permute.xlu0 %668  ;;  %v708_v18 = vmul.f32 %v5643_v1, %v674_v19  ;;  %v709_v21 = vmul.f32 %v5644_v20, %v674_v19  ;;  %v5656_v1 = vld [vmem:[%s9428_s2 + $0x48] sm:$0xff] }
 0x146   : > { %1694 = vperm.xlu1 %5574, %v1620_v15   ;;  %1709 = vperm.xlu0 %5573, %v1623_v26   ;;  %v706_v36 = vmul.f32 %v5651_v4, %v6932_v10  ;;  %v707_v6 = vmul.f32 %v5652_v5, %v6932_v10 }
 0x149   : > { %v6943_v2 = vpop.permute.xlu1 %678  ;;  %v730_v35 = vpop.permute.xlu0 %729 }
 0x14a   : > { %v764_v7 = vadd.f32 %v730_v35, %v708_v18  ;;  %v765_v30 = vadd.f32 %v730_v35, %v709_v21  ;;  %1809 = vperm.xlu1 %5574, %v1795_v17   ;;  %1719 = vperm.xlu0 %5573, %v1625_v54   ;;  %v710_v23 = vmul.f32 %v5653_v43, %v6943_v2  ;;  %v5657_v35 = vld [vmem:[%s9428_s2 + $0x60] sm:$0xff] }
 0x14b   : > { %v711_v19 = vmul.f32 %v5654_v3, %v6943_v2  ;;  %v5669_v43 = vld [vmem:[%s9428_s2 + $0xa0] sm:$0xff]  ;;  %v5670_v3 = vld [vmem:[%s9428_s2 + $0xa8] sm:$0xff] }
 0x14c   : > { %780 = vst [vmem:[%s6387_s21 + $0x10] sm:$0xff] %v764_v7  ;;  %781 = vst.msk [vmem:[%s6387_s21 + $0x18] sm:$0xff] %vm489_vm0, %v765_v30 }
 0x14d   : > { %v684_v14 = vpop.permute.xlu1 %683  ;;  %v740_v55 = vpop.permute.xlu0 %739 }
 0x14e   : > { %v712_v41 = vmul.f32 %v5645_v63, %v684_v14  ;;  %v713_v44 = vmul.f32 %v5646_v40, %v684_v14  ;;  %1704 = vperm.xlu1 %5574, %v1622_v39   ;;  %1823 = vperm.xlu0 %5573, %v1801_v32   ;;  %v5659_v32 = vld [vmem:[%s9428_s2 + $0x90] sm:$0xff]  ;;  %v5660_v63 = vld [vmem:[%s9428_s2 + $0x98] sm:$0xff] }
 0x150   : > { %v768_v31 = vadd.f32 %v740_v55, %v712_v41  ;;  %v769_v12 = vadd.f32 %v740_v55, %v713_v44 }
 0x151   : > { %v689_v9 = vpop.permute.xlu1 %688  ;;  %v750_v56 = vpop.permute.xlu0 %749 }
 0x152   : > { %784 = vst [vmem:[%s6387_s21 + $0x30] sm:$0xff] %v768_v31  ;;  %785 = vst.msk [vmem:[%s6387_s21 + $0x38] sm:$0xff] %vm489_vm0, %v769_v12  ;;  %1714 = vperm.xlu1 %5574, %v1624_v49   ;;  %v714_v60 = vmul.f32 %v5655_v28, %v689_v9  ;;  %v715_v18 = vmul.f32 %v5656_v1, %v689_v9  ;;  %v5661_v12 = vld [vmem:[%s9428_s2 + $0xb0] sm:$0xff]  ;;  %v5671_v28 = vld [vmem:[%s9428_s2 + $0xc0] sm:$0xff] }
 0x153   : > { %v5672_v1 = vld [vmem:[%s9428_s2 + $0xc8] sm:$0xff] }
 0x155   : > { %v694_v50 = vpop.permute.xlu1 %693  ;;  %v760_v48 = vpop.permute.xlu0 %759 }
 0x156   : > { %v716_v25 = vmul.f32 %v5647_v53, %v694_v50  ;;  %v717_v47 = vmul.f32 %v5648_v57, %v694_v50  ;;  %1818 = vperm.xlu1 %5574, %v1800_v27  }
 0x158   : > { %v772_v29 = vadd.f32 %v750_v56, %v716_v25  ;;  %v773_v59 = vadd.f32 %v750_v56, %v717_v47  ;;  %v5663_v25 = vld [vmem:[%s9428_s2 + $0xd0] sm:$0xff]  ;;  %v5664_v47 = vld [vmem:[%s9428_s2 + $0xd8] sm:$0xff] }
 0x159   : > { %v699_v62 = vpop.permute.xlu1 %698 }
 0x15a   : > { %788 = vst [vmem:[%s6387_s21 + $0x50] sm:$0xff] %v772_v29  ;;  %789 = vst.msk [vmem:[%s6387_s21 + $0x58] sm:$0xff] %vm489_vm0, %v773_v59  ;;  %v718_v54 = vmul.f32 %v5657_v35, %v699_v62  ;;  %v719_v22 = vmul.f32 %v5658_v34, %v699_v62  ;;  %v5673_v35 = vld [vmem:[%s9428_s2 + $0xe0] sm:$0xff]  ;;  %v5674_v34 = vld [vmem:[%s9428_s2 + $0xe8] sm:$0xff] }
 0x15d   : > { %v704_v58 = vpop.permute.xlu1 %703 }
 0x15e   : > { %v720_v61 = vmul.f32 %v5649_v38, %v704_v58  ;;  %v721_v24 = vmul.f32 %v5650_v0, %v704_v58  ;;  %v5665_v38 = vld [vmem:[%s9428_s2 + $0x80] sm:$0xff]  ;;  %v5666_v0 = vld [vmem:[%s9428_s2 + $0x88] sm:$0xff] }
 0x160   : > { %v776_v8 = vadd.f32 %v760_v48, %v720_v61  ;;  %v777_v42 = vadd.f32 %v760_v48, %v721_v24  ;;  %v5667_v48 = vld [vmem:[%s9428_s2 + $0xf0] sm:$0xff] }
 0x161   : > { %v725_v11 = vpop.permute.xlu1 %724 }
 0x162   : > { %792 = vst [vmem:[%s6387_s21 + $0x70] sm:$0xff] %v776_v8  ;;  %793 = vst.msk [vmem:[%s6387_s21 + $0x78] sm:$0xff] %vm489_vm0, %v777_v42  ;;  %v762_v16 = vadd.f32 %v725_v11, %v706_v36  ;;  %v763_v13 = vadd.f32 %v725_v11, %v707_v6  ;;  %v5668_v36 = vld [vmem:[%s9428_s2 + $0xf8] sm:$0xff] }
 0x164   : > { %778 = vst [vmem:[%s6387_s21] sm:$0xff] %v762_v16  ;;  %779 = vst.msk [vmem:[%s6387_s21 + $0x8] sm:$0xff] %vm489_vm0, %v763_v13 }
 0x165   : > { %v735_v15 = vpop.permute.xlu1 %734  ;;  %v989_v26 = vpop.permute.xlu0 %988 }
 0x166   : > { %v766_v10 = vadd.f32 %v735_v15, %v710_v23  ;;  %v767_v17 = vadd.f32 %v735_v15, %v711_v19  ;;  %v1026_v61 = vmul.f32 %v5665_v38, %v989_v26  ;;  %v1027_v24 = vmul.f32 %v5666_v0, %v989_v26  ;;  %v5681_v38 = vld [vmem:[%s9428_s2 + $0x100] sm:$0xff]  ;;  %v5682_v0 = vld [vmem:[%s9428_s2 + $0x108] sm:$0xff] }
 0x168   : > { %782 = vst [vmem:[%s6387_s21 + $0x20] sm:$0xff] %v766_v10  ;;  %783 = vst.msk [vmem:[%s6387_s21 + $0x28] sm:$0xff] %vm489_vm0, %v767_v17 }
 0x169   : > { %v745_v20 = vpop.permute.xlu1 %744  ;;  %v1004_v21 = vpop.permute.xlu0 %1003 }
 0x16a   : > { %v770_v37 = vadd.f32 %v745_v20, %v714_v60  ;;  %v771_v2 = vadd.f32 %v745_v20, %v715_v18  ;;  %v1032_v49 = vmul.f32 %v5661_v12, %v1004_v21  ;;  %v1033_v9 = vmul.f32 %v5662_v52, %v1004_v21  ;;  %v5677_v12 = vld [vmem:[%s9428_s2 + $0x130] sm:$0xff]  ;;  %v5678_v52 = vld [vmem:[%s9428_s2 + $0x138] sm:$0xff] }
 0x16c   : > { %786 = vst [vmem:[%s6387_s21 + $0x40] sm:$0xff] %v770_v37  ;;  %787 = vst.msk [vmem:[%s6387_s21 + $0x48] sm:$0xff] %vm489_vm0, %v771_v2 }
 0x16d   : > { %v755_v7 = vpop.permute.xlu1 %754  ;;  %v1014_v30 = vpop.permute.xlu0 %1013 }
 0x16e   : > { %v774_v33 = vadd.f32 %v755_v7, %v718_v54  ;;  %v775_v39 = vadd.f32 %v755_v7, %v719_v22  ;;  %v1036_v57 = vmul.f32 %v5663_v25, %v1014_v30  ;;  %v1037_v56 = vmul.f32 %v5664_v47, %v1014_v30  ;;  %v5679_v25 = vld [vmem:[%s9428_s2 + $0x150] sm:$0xff]  ;;  %v5680_v47 = vld [vmem:[%s9428_s2 + $0x158] sm:$0xff] }
 0x170   : > { %790 = vst [vmem:[%s6387_s21 + $0x60] sm:$0xff] %v774_v33  ;;  %791 = vst.msk [vmem:[%s6387_s21 + $0x68] sm:$0xff] %vm489_vm0, %v775_v39 }
 0x171   : > { %v994_v45 = vpop.permute.xlu1 %993  ;;  %v1024_v14 = vpop.permute.xlu0 %1023 }
 0x172   : > { %v1028_v51 = vmul.f32 %v5659_v32, %v994_v45  ;;  %v1029_v41 = vmul.f32 %v5660_v63, %v994_v45  ;;  %v1040_v4 = vmul.f32 %v5667_v48, %v1024_v14  ;;  %v1041_v5 = vmul.f32 %v5668_v36, %v1024_v14  ;;  %v5675_v32 = vld [vmem:[%s9428_s2 + $0x110] sm:$0xff]  ;;  %v5676_v63 = vld [vmem:[%s9428_s2 + $0x118] sm:$0xff] }
 0x173   : > { %v5683_v48 = vld [vmem:[%s9428_s2 + $0x170] sm:$0xff]  ;;  %v5684_v36 = vld [vmem:[%s9428_s2 + $0x178] sm:$0xff] }
 0x175   : > { %v999_v40 = vpop.permute.xlu1 %998  ;;  %v1050_v44 = vpop.permute.xlu0 %1049 }
 0x176   : > { %v1084_v55 = vadd.f32 %v1050_v44, %v1028_v51  ;;  %v1085_v31 = vadd.f32 %v1050_v44, %v1029_v41  ;;  %v1030_v23 = vmul.f32 %v5669_v43, %v999_v40  ;;  %v1031_v19 = vmul.f32 %v5670_v3, %v999_v40  ;;  %v5685_v43 = vld [vmem:[%s9428_s2 + $0x120] sm:$0xff]  ;;  %v5686_v3 = vld [vmem:[%s9428_s2 + $0x128] sm:$0xff] }
 0x178   : > { %1100 = vst [vmem:[%s6387_s21 + $0x90] sm:$0xff] %v1084_v55  ;;  %1101 = vst.msk [vmem:[%s6387_s21 + $0x98] sm:$0xff] %vm489_vm0, %v1085_v31 }
 0x179   : > { %v1009_v46 = vpop.permute.xlu1 %1008  ;;  %v1060_v27 = vpop.permute.xlu0 %1059 }
 0x17a   : > { %v1088_v50 = vadd.f32 %v1060_v27, %v1032_v49  ;;  %v1089_v53 = vadd.f32 %v1060_v27, %v1033_v9  ;;  %v1034_v60 = vmul.f32 %v5671_v28, %v1009_v46  ;;  %v1035_v18 = vmul.f32 %v5672_v1, %v1009_v46 }
 0x17c   : > { %1104 = vst [vmem:[%s6387_s21 + $0xb0] sm:$0xff] %v1088_v50  ;;  %1105 = vst.msk [vmem:[%s6387_s21 + $0xb8] sm:$0xff] %vm489_vm0, %v1089_v53 }
 0x17d   : > { %v1019_v29 = vpop.permute.xlu1 %1018  ;;  %v1070_v59 = vpop.permute.xlu0 %1069 }
 0x17e   : > { %v1092_v62 = vadd.f32 %v1070_v59, %v1036_v57  ;;  %v1093_v58 = vadd.f32 %v1070_v59, %v1037_v56  ;;  %v1038_v54 = vmul.f32 %v5673_v35, %v1019_v29  ;;  %v1039_v22 = vmul.f32 %v5674_v34, %v1019_v29 }
 0x180   : > { %1108 = vst [vmem:[%s6387_s21 + $0xd0] sm:$0xff] %v1092_v62  ;;  %1109 = vst.msk [vmem:[%s6387_s21 + $0xd8] sm:$0xff] %vm489_vm0, %v1093_v58 }
 0x181   : > { %v1045_v6 = vpop.permute.xlu1 %1044  ;;  %v1080_v8 = vpop.permute.xlu0 %1079 }
 0x182   : > { %v1082_v42 = vadd.f32 %v1045_v6, %v1026_v61  ;;  %v1083_v11 = vadd.f32 %v1045_v6, %v1027_v24  ;;  %v1096_v16 = vadd.f32 %v1080_v8, %v1040_v4  ;;  %v1097_v13 = vadd.f32 %v1080_v8, %v1041_v5 }
 0x184   : > { %1098 = vst [vmem:[%s6387_s21 + $0x80] sm:$0xff] %v1082_v42  ;;  %1099 = vst.msk [vmem:[%s6387_s21 + $0x88] sm:$0xff] %vm489_vm0, %v1083_v11 }
 0x185   : > { %1112 = vst [vmem:[%s6387_s21 + $0xf0] sm:$0xff] %v1096_v16  ;;  %1113 = vst.msk [vmem:[%s6387_s21 + $0xf8] sm:$0xff] %vm489_vm0, %v1097_v13  ;;  %v1055_v15 = vpop.permute.xlu1 %1054  ;;  %v1309_v26 = vpop.permute.xlu0 %1308 }
 0x186   : > { %v1086_v10 = vadd.f32 %v1055_v15, %v1030_v23  ;;  %v1087_v17 = vadd.f32 %v1055_v15, %v1031_v19  ;;  %v1346_v61 = vmul.f32 %v5681_v38, %v1309_v26  ;;  %v1347_v24 = vmul.f32 %v5682_v0, %v1309_v26 }
 0x188   : > { %1102 = vst [vmem:[%s6387_s21 + $0xa0] sm:$0xff] %v1086_v10  ;;  %1103 = vst.msk [vmem:[%s6387_s21 + $0xa8] sm:$0xff] %vm489_vm0, %v1087_v17  ;;  %v5687_v17 = vld [vmem:[%s9428_s2 + $0x140] sm:$0xff] }
 0x189   : > { %v1065_v20 = vpop.permute.xlu1 %1064  ;;  %v1324_v21 = vpop.permute.xlu0 %1323 }
 0x18a   : > { %v1090_v37 = vadd.f32 %v1065_v20, %v1034_v60  ;;  %v1091_v2 = vadd.f32 %v1065_v20, %v1035_v18  ;;  %v1352_v49 = vmul.f32 %v5677_v12, %v1324_v21  ;;  %v1353_v9 = vmul.f32 %v5678_v52, %v1324_v21  ;;  %v5688_v60 = vld [vmem:[%s9428_s2 + $0x148] sm:$0xff] }
 0x18c   : > { %1106 = vst [vmem:[%s6387_s21 + $0xc0] sm:$0xff] %v1090_v37  ;;  %1107 = vst.msk [vmem:[%s6387_s21 + $0xc8] sm:$0xff] %vm489_vm0, %v1091_v2  ;;  %v5689_v2 = vld [vmem:[%s9428_s2 + $0x160] sm:$0xff] }
 0x18d   : > { %v1075_v7 = vpop.permute.xlu1 %1074  ;;  %v1334_v30 = vpop.permute.xlu0 %1333 }
 0x18e   : > { %v1094_v33 = vadd.f32 %v1075_v7, %v1038_v54  ;;  %v1095_v39 = vadd.f32 %v1075_v7, %v1039_v22  ;;  %v1356_v57 = vmul.f32 %v5679_v25, %v1334_v30  ;;  %v1357_v56 = vmul.f32 %v5680_v47, %v1334_v30  ;;  %v5690_v54 = vld [vmem:[%s9428_s2 + $0x168] sm:$0xff] }
 0x190   : > { %1110 = vst [vmem:[%s6387_s21 + $0xe0] sm:$0xff] %v1094_v33  ;;  %1111 = vst.msk [vmem:[%s6387_s21 + $0xe8] sm:$0xff] %vm489_vm0, %v1095_v39 }
 0x191   : > { %v1314_v45 = vpop.permute.xlu1 %1313  ;;  %v1344_v14 = vpop.permute.xlu0 %1343 }
 0x192   : > { %v1348_v51 = vmul.f32 %v5675_v32, %v1314_v45  ;;  %v1349_v41 = vmul.f32 %v5676_v63, %v1314_v45  ;;  %v1360_v4 = vmul.f32 %v5683_v48, %v1344_v14  ;;  %v1361_v5 = vmul.f32 %v5684_v36, %v1344_v14 }
 0x195   : > { %v1319_v40 = vpop.permute.xlu1 %1318  ;;  %v1370_v44 = vpop.permute.xlu0 %1369 }
 0x196   : > { %v1404_v55 = vadd.f32 %v1370_v44, %v1348_v51  ;;  %v1405_v31 = vadd.f32 %v1370_v44, %v1349_v41  ;;  %v1350_v23 = vmul.f32 %v5685_v43, %v1319_v40  ;;  %v1351_v19 = vmul.f32 %v5686_v3, %v1319_v40  ;;  %v5691_v51 = vld [vmem:[%s9428_s2 + $0x190] sm:$0xff]  ;;  %v5692_v41 = vld [vmem:[%s9428_s2 + $0x198] sm:$0xff] }
 0x198   : > { %1420 = vst [vmem:[%s6387_s21 + $0x110] sm:$0xff] %v1404_v55  ;;  %1421 = vst.msk [vmem:[%s6387_s21 + $0x118] sm:$0xff] %vm489_vm0, %v1405_v31 }
 0x199   : > { %v1329_v46 = vpop.permute.xlu1 %1328  ;;  %v1380_v27 = vpop.permute.xlu0 %1379 }
 0x19a   : > { %v1408_v50 = vadd.f32 %v1380_v27, %v1352_v49  ;;  %v1409_v53 = vadd.f32 %v1380_v27, %v1353_v9  ;;  %v1354_v28 = vmul.f32 %v5687_v17, %v1329_v46  ;;  %v1355_v1 = vmul.f32 %v5688_v60, %v1329_v46  ;;  %v5693_v9 = vld [vmem:[%s9428_s2 + $0x180] sm:$0xff]  ;;  %v5694_v27 = vld [vmem:[%s9428_s2 + $0x188] sm:$0xff] }
 0x19b   : > { %v5703_v60 = vld [vmem:[%s9428_s2 + $0x1c0] sm:$0xff] }
 0x19c   : > { %1424 = vst [vmem:[%s6387_s21 + $0x130] sm:$0xff] %v1408_v50  ;;  %1425 = vst.msk [vmem:[%s6387_s21 + $0x138] sm:$0xff] %vm489_vm0, %v1409_v53  ;;  %v5695_v53 = vld [vmem:[%s9428_s2 + $0x1b0] sm:$0xff] }
 0x19d   : > { %v1339_v29 = vpop.permute.xlu1 %1338  ;;  %v1390_v59 = vpop.permute.xlu0 %1389 }
 0x19e   : > { %v1412_v62 = vadd.f32 %v1390_v59, %v1356_v57  ;;  %v1413_v58 = vadd.f32 %v1390_v59, %v1357_v56  ;;  %v1358_v35 = vmul.f32 %v5689_v2, %v1339_v29  ;;  %v1359_v34 = vmul.f32 %v5690_v54, %v1339_v29  ;;  %v5696_v57 = vld [vmem:[%s9428_s2 + $0x1b8] sm:$0xff] }
 0x19f   : > { %v5706_v2 = vld [vmem:[%s9429_s3 + $0x18] sm:$0xff] }
 0x1a0   : > { %1428 = vst [vmem:[%s6387_s21 + $0x150] sm:$0xff] %v1412_v62  ;;  %1429 = vst.msk [vmem:[%s6387_s21 + $0x158] sm:$0xff] %vm489_vm0, %v1413_v58 }
 0x1a1   : > { %v1365_v6 = vpop.permute.xlu1 %1364  ;;  %v1400_v8 = vpop.permute.xlu0 %1399 }
 0x1a2   : > { %v1402_v42 = vadd.f32 %v1365_v6, %v1346_v61  ;;  %v1403_v11 = vadd.f32 %v1365_v6, %v1347_v24  ;;  %v1416_v16 = vadd.f32 %v1400_v8, %v1360_v4  ;;  %v1417_v13 = vadd.f32 %v1400_v8, %v1361_v5  ;;  %v5697_v61 = vld [vmem:[%s9428_s2 + $0x1d0] sm:$0xff]  ;;  %v5698_v24 = vld [vmem:[%s9428_s2 + $0x1d8] sm:$0xff]  ;;  %v5699_v4 = vld [vmem:[%s9428_s2 + $0x1a0] sm:$0xff] }
 0x1a3   : > { %v5700_v5 = vld [vmem:[%s9428_s2 + $0x1a8] sm:$0xff] }
 0x1a4   : > { %1418 = vst [vmem:[%s6387_s21 + $0x100] sm:$0xff] %v1402_v42  ;;  %1419 = vst.msk [vmem:[%s6387_s21 + $0x108] sm:$0xff] %vm489_vm0, %v1403_v11 }
 0x1a5   : > { %1432 = vst [vmem:[%s6387_s21 + $0x170] sm:$0xff] %v1416_v16  ;;  %1433 = vst.msk [vmem:[%s6387_s21 + $0x178] sm:$0xff] %vm489_vm0, %v1417_v13  ;;  %v1375_v15 = vpop.permute.xlu1 %1374 }
 0x1a6   : > { %v1406_v26 = vadd.f32 %v1375_v15, %v1350_v23  ;;  %v1407_v10 = vadd.f32 %v1375_v15, %v1351_v19  ;;  %v5701_v23 = vld [vmem:[%s9428_s2 + $0x1f0] sm:$0xff]  ;;  %v5702_v19 = vld [vmem:[%s9428_s2 + $0x1f8] sm:$0xff] }
 0x1a8   : > { %1422 = vst [vmem:[%s6387_s21 + $0x120] sm:$0xff] %v1406_v26  ;;  %1423 = vst.msk [vmem:[%s6387_s21 + $0x128] sm:$0xff] %vm489_vm0, %v1407_v10 }
 0x1a9   : > { %v1385_v18 = vpop.permute.xlu1 %1384  ;;  %v1629_v20 = vpop.permute.xlu0 %1628 }
 0x1aa   : > { %v1410_v21 = vadd.f32 %v1385_v18, %v1354_v28  ;;  %v1411_v37 = vadd.f32 %v1385_v18, %v1355_v1  ;;  %v1666_v46 = vmul.f32 %v5693_v9, %v1629_v20  ;;  %v1667_v50 = vmul.f32 %v5694_v27, %v1629_v20  ;;  %v5704_v18 = vld [vmem:[%s9428_s2 + $0x1c8] sm:$0xff] }
 0x1ac   : > { %1426 = vst [vmem:[%s6387_s21 + $0x140] sm:$0xff] %v1410_v21  ;;  %1427 = vst.msk [vmem:[%s6387_s21 + $0x148] sm:$0xff] %vm489_vm0, %v1411_v37  ;;  %v5705_v21 = vld [vmem:[%s9429_s3 + $0x10] sm:$0xff] }
 0x1ad   : > { %v1395_v22 = vpop.permute.xlu1 %1394  ;;  %v1644_v7 = vpop.permute.xlu0 %1643 }
 0x1ae   : > { %v1414_v30 = vadd.f32 %v1395_v22, %v1358_v35  ;;  %v1415_v33 = vadd.f32 %v1395_v22, %v1359_v34  ;;  %v1672_v25 = vmul.f32 %v5695_v53, %v1644_v7  ;;  %v1673_v47 = vmul.f32 %v5696_v57, %v1644_v7 }
 0x1b0   : > { %1430 = vst [vmem:[%s6387_s21 + $0x160] sm:$0xff] %v1414_v30  ;;  %1431 = vst.msk [vmem:[%s6387_s21 + $0x168] sm:$0xff] %vm489_vm0, %v1415_v33 }
 0x1b1   : > { %v1634_v39 = vpop.permute.xlu1 %1633  ;;  %v1654_v45 = vpop.permute.xlu0 %1653 }
 0x1b2   : > { %v1668_v63 = vmul.f32 %v5691_v51, %v1634_v39  ;;  %v1669_v40 = vmul.f32 %v5692_v41, %v1634_v39  ;;  %v1676_v0 = vmul.f32 %v5697_v61, %v1654_v45  ;;  %v1677_v48 = vmul.f32 %v5698_v24, %v1654_v45  ;;  %v5707_v39 = vld [vmem:[%s9428_s2 + $0x1e0] sm:$0xff] }
 0x1b5   : > { %v1639_v14 = vpop.permute.xlu1 %1638  ;;  %v1664_v32 = vpop.permute.xlu0 %1663 }
 0x1b6   : > { %v1670_v36 = vmul.f32 %v5699_v4, %v1639_v14  ;;  %v1671_v6 = vmul.f32 %v5700_v5, %v1639_v14  ;;  %v1680_v3 = vmul.f32 %v5701_v23, %v1664_v32  ;;  %v1681_v15 = vmul.f32 %v5702_v19, %v1664_v32  ;;  %v5708_v14 = vld [vmem:[%s9428_s2 + $0x1e8] sm:$0xff] }
 0x1b9   : > { %v1649_v44 = vpop.permute.xlu1 %1648  ;;  %v1690_v55 = vpop.permute.xlu0 %1689 }
 0x1ba   : > { %v1724_v31 = vadd.f32 %v1690_v55, %v1668_v63  ;;  %v1725_v12 = vadd.f32 %v1690_v55, %v1669_v40  ;;  %v1674_v1 = vmul.f32 %v5703_v60, %v1649_v44  ;;  %v1675_v20 = vmul.f32 %v5704_v18, %v1649_v44  ;;  %v5709_v40 = vld [vmem:[%s9429_s3] sm:$0xff]  ;;  %v5710_v55 = vld [vmem:[%s9429_s3 + $0x8] sm:$0xff] }
 0x1bc   : > { %1740 = vst [vmem:[%s6387_s21 + $0x190] sm:$0xff] %v1724_v31  ;;  %1741 = vst.msk [vmem:[%s6387_s21 + $0x198] sm:$0xff] %vm489_vm0, %v1725_v12 }
 0x1bd   : > { %v7175_v49 = vpop.permute.xlu1 %1658  ;;  %v7177_v52 = vpop.permute.xlu0 %1804 }
 0x1be   : > { %v1678_v45 = vmul.f32 %v5707_v39, %v7175_v49  ;;  %v1679_v32 = vmul.f32 %v5708_v14, %v7175_v49  ;;  %v1812_v44 = vmul.f32 %v5709_v40, %v7177_v52  ;;  %v1813_v31 = vmul.f32 %v5710_v55, %v7177_v52 }
 0x1c1   : > { %v1685_v56 = vpop.permute.xlu1 %1684  ;;  %v1700_v29 = vpop.permute.xlu0 %1699 }
 0x1c2   : > { %v1722_v59 = vadd.f32 %v1685_v56, %v1666_v46  ;;  %v1723_v62 = vadd.f32 %v1685_v56, %v1667_v50  ;;  %v1728_v58 = vadd.f32 %v1700_v29, %v1672_v25  ;;  %v1729_v38 = vadd.f32 %v1700_v29, %v1673_v47 }
 0x1c4   : > { %1738 = vst [vmem:[%s6387_s21 + $0x180] sm:$0xff] %v1722_v59  ;;  %1739 = vst.msk [vmem:[%s6387_s21 + $0x188] sm:$0xff] %vm489_vm0, %v1723_v62 }
 0x1c5   : > { %1744 = vst [vmem:[%s6387_s21 + $0x1b0] sm:$0xff] %v1728_v58  ;;  %1745 = vst.msk [vmem:[%s6387_s21 + $0x1b8] sm:$0xff] %vm489_vm0, %v1729_v38  ;;  %v1695_v8 = vpop.permute.xlu1 %1694  ;;  %v1710_v42 = vpop.permute.xlu0 %1709 }
 0x1c6   : > { %v1726_v11 = vadd.f32 %v1695_v8, %v1670_v36  ;;  %v1727_v16 = vadd.f32 %v1695_v8, %v1671_v6  ;;  %v1732_v13 = vadd.f32 %v1710_v42, %v1676_v0  ;;  %v1733_v43 = vadd.f32 %v1710_v42, %v1677_v48 }
 0x1c8   : > { %1742 = vst [vmem:[%s6387_s21 + $0x1a0] sm:$0xff] %v1726_v11  ;;  %1743 = vst.msk [vmem:[%s6387_s21 + $0x1a8] sm:$0xff] %vm489_vm0, %v1727_v16 }
 0x1c9   : > { %1748 = vst [vmem:[%s6387_s21 + $0x1d0] sm:$0xff] %v1732_v13  ;;  %1749 = vst.msk [vmem:[%s6387_s21 + $0x1d8] sm:$0xff] %vm489_vm0, %v1733_v43  ;;  %v1810_v26 = vpop.permute.xlu1 %1809  ;;  %v1720_v10 = vpop.permute.xlu0 %1719 }
 0x1ca   : > { %v1736_v17 = vadd.f32 %v1720_v10, %v1680_v3  ;;  %v1737_v28 = vadd.f32 %v1720_v10, %v1681_v15  ;;  %v1814_v37 = vmul.f32 %v5705_v21, %v1810_v26  ;;  %v1815_v35 = vmul.f32 %v5706_v2, %v1810_v26 }
 0x1cc   : > { %1752 = vst [vmem:[%s6387_s21 + $0x1f0] sm:$0xff] %v1736_v17  ;;  %1753 = vst.msk [vmem:[%s6387_s21 + $0x1f8] sm:$0xff] %vm489_vm0, %v1737_v28 }
 0x1cd   : > { %v1705_v54 = vpop.permute.xlu1 %1704  ;;  %v1824_v7 = vpop.permute.xlu0 %1823 }
 0x1ce   : > { %v1730_v34 = vadd.f32 %v1705_v54, %v1674_v1  ;;  %v1731_v22 = vadd.f32 %v1705_v54, %v1675_v20  ;;  %v1828_v30 = vadd.f32 %v1824_v7, %v1814_v37  ;;  %v1829_v33 = vadd.f32 %v1824_v7, %v1815_v35 }
 0x1d0   : > { %1746 = vst [vmem:[%s6387_s21 + $0x1c0] sm:$0xff] %v1730_v34  ;;  %1747 = vst.msk [vmem:[%s6387_s21 + $0x1c8] sm:$0xff] %vm489_vm0, %v1731_v22 }
 0x1d1   : > { %1832 = vst [vmem:[%s6387_s21 + $0x210] sm:$0xff] %v1828_v30  ;;  %1833 = vst.msk [vmem:[%s6387_s21 + $0x218] sm:$0xff] %vm489_vm0, %v1829_v33  ;;  %v1715_v51 = vpop.permute.xlu1 %1714 }
 0x1d2   : > { %v1734_v63 = vadd.f32 %v1715_v51, %v1678_v45  ;;  %v1735_v41 = vadd.f32 %v1715_v51, %v1679_v32 }
 0x1d4   : > { %1750 = vst [vmem:[%s6387_s21 + $0x1e0] sm:$0xff] %v1734_v63  ;;  %1751 = vst.msk [vmem:[%s6387_s21 + $0x1e8] sm:$0xff] %vm489_vm0, %v1735_v41 }
 0x1d5   : > { %v1819_v12 = vpop.permute.xlu1 %1818 }
 0x1d6   : > { %v1826_v49 = vadd.f32 %v1819_v12, %v1812_v44  ;;  %v1827_v9 = vadd.f32 %v1819_v12, %v1813_v31 }
 0x1d8   : > { %1830 = vst [vmem:[%s6387_s21 + $0x200] sm:$0xff] %v1826_v49  ;;  %1831 = vst.msk [vmem:[%s6387_s21 + $0x208] sm:$0xff] %vm489_vm0, %v1827_v9 }
 0x1d9 PF: > { %p5129_p5 = scmp.ne.s32.totalorder %s6369_s26, 1 }
 0x1db   : > { %1837 = sbr.rel (%p5129_p5) target bundleno = 1568 (0x620), region = 80 }
 0x1e2   : > { %v1838_v46 = vld [vmem:[%s9429_s3 + $0x20] sm:$0xff]  ;;  %v1839_v52 = vld [vmem:[%s9429_s3 + $0x28] sm:$0xff]  ;;  %vm1842_vm1 = vcmask 556032   ;;  %v1840_v27 = vld [vmem:[%s9429_s3 + $0x30] sm:$0xff]  ;;  %s6284_s27 = smov 113   ;;  %s6285_s30 = smov 127  }
 0x1e3   : > { %v1843_v50 = vsel %vm1842_vm1, %v1839_v52, 0.0  ;;  %v1853_v53 = vmul.f32 %v1838_v46, %v1838_v46  ;;  %v1854_v25 = vmul.f32 %v1839_v52, %v1839_v52  ;;  %v1841_v57 = vld [vmem:[%s9429_s3 + $0x38] sm:$0xff]  ;;  %v1855_v29 = vmul.f32 %v1840_v27, %v1840_v27  ;;  %v1924_v38 = vld [vmem:[%s9430_s4 + $0x28] sm:$0xff]  ;;  %v1921_v4 = vld [vmem:[%s9430_s4 + $0x10] sm:$0xff]  ;;  %s6286_s23 = smov 112   ;;  %s6290_s14 = smov 114  }
 0x1e4   : > { %v1844_v47 = vadd.f32 %v1843_v50, %v1838_v46  ;;  %v1847_v56 = vsel %vm1842_vm1, %v1841_v57, 0.0  ;;  %v1856_v59 = vmul.f32 %v1841_v57, %v1841_v57  ;;  %v1922_v62 = vld [vmem:[%s9430_s4 + $0x18] sm:$0xff]  ;;  %v1920_v48 = vld [vmem:[%s9430_s4 + $0x8] sm:$0xff]  ;;  %v1923_v5 = vld [vmem:[%s9430_s4 + $0x20] sm:$0xff]  ;;  %v1952_v6 = vmul.f32 %v1924_v38, %v1924_v38  ;;  %s6291_s16 = smov 99   ;;  %s6292_s29 = smov 98  }
 0x1e5   : > { %v1857_v58 = vsel %vm1842_vm1, %v1854_v25, 0.0  ;;  %v1848_v0 = vadd.f32 %v1847_v56, %v1840_v27  ;;  %v1931_v36 = vsel %vm1842_vm1, %v1922_v62, 0.0  ;;  %v1919_v42 = vld [vmem:[%s9430_s4] sm:$0xff]  ;;  %v1927_v11 = vsel %vm1842_vm1, %v1920_v48, 0.0  ;;  %v7305_v3 = vld [vmem:[%s9431_s5 + $0x18] sm:$0xff]  ;;  %v7314_v10 = vld [vmem:[%s9431_s5 + $0x10] sm:$0xff] }
 0x1e6   : > { %1845 = vadd.xlane.f32.xlu0 %v1844_v47  ;;  %v1858_v61 = vadd.f32 %v1857_v58, %v1853_v53  ;;  %v1861_v24 = vsel %vm1842_vm1, %v1856_v59, 0.0  ;;  %v1932_v16 = vadd.f32 %v1931_v36, %v1921_v4  ;;  %v1951_v13 = vmul.f32 %v1923_v5, %v1923_v5  ;;  %v1926_v26 = vld [vmem:[%s9430_s4 + $0x38] sm:$0xff]  ;;  %v2080_v28 = vld [vmem:[%s9431_s5 + $0x8] sm:$0xff]  ;;  %v1925_v20 = vld [vmem:[%s9430_s4 + $0x30] sm:$0xff] }
 0x1e7   : > { %v1862_v8 = vadd.f32 %v1861_v24, %v1855_v29  ;;  %v1963_v43 = vsel %vm1842_vm1, %v1952_v6, 0.0  ;;  %v1928_v23 = vadd.f32 %v1927_v11, %v1919_v42  ;;  %v1935_v19 = vsel %vm1842_vm1, %v1924_v38, 0.0  ;;  %v2084_v1 = vld [vmem:[%s9431_s5 + $0x28] sm:$0xff]  ;;  %v2083_v35 = vld [vmem:[%s9431_s5 + $0x20] sm:$0xff]  ;;  %v2242_v9 = vld [vmem:[%s9432_s6 + $0x18] sm:$0xff] }
 0x1e8   : > { %1859 = vadd.xlane.f32.xlu1 %v1858_v61  ;;  %v1964_v15 = vadd.f32 %v1963_v43, %v1951_v13  ;;  %v2091_v17 = vsel %vm1842_vm1, %v7305_v3, 0.0  ;;  %v1936_v60 = vadd.f32 %v1935_v19, %v1923_v5  ;;  %v1948_v18 = vmul.f32 %v1920_v48, %v1920_v48  ;;  %v2079_v34 = vld [vmem:[%s9431_s5] sm:$0xff]  ;;  %v7347_v27 = vld [vmem:[%s9432_s6 + $0x10] sm:$0xff]  ;;  %v2244_v53 = vld [vmem:[%s9432_s6 + $0x28] sm:$0xff] }
 0x1e9   : > { %v1939_v21 = vsel %vm1842_vm1, %v1926_v26, 0.0  ;;  %v2092_v37 = vadd.f32 %v2091_v17, %v7314_v10  ;;  %v2108_v2 = vmul.f32 %v2080_v28, %v2080_v28  ;;  %v2095_v54 = vsel %vm1842_vm1, %v2084_v1, 0.0  ;;  %v2240_v47 = vld [vmem:[%s9432_s6 + $0x8] sm:$0xff]  ;;  %v2243_v56 = vld [vmem:[%s9432_s6 + $0x20] sm:$0xff] }
 0x1ea   : > { %1849 = vadd.xlane.f32.xlu0 %v1848_v0  ;;  %v1940_v22 = vadd.f32 %v1939_v21, %v1925_v20  ;;  %v1947_v7 = vmul.f32 %v1919_v42, %v1919_v42  ;;  %v1955_v30 = vsel %vm1842_vm1, %v1948_v18, 0.0  ;;  %v1950_v33 = vmul.f32 %v1922_v62, %v1922_v62  ;;  %v2086_v62 = vld [vmem:[%s9431_s5 + $0x38] sm:$0xff]  ;;  %v2239_v58 = vld [vmem:[%s9432_s6] sm:$0xff]  ;;  %v2085_v0 = vld [vmem:[%s9431_s5 + $0x30] sm:$0xff] }
 0x1eb   : > { %v2096_v39 = vadd.f32 %v2095_v54, %v2083_v35  ;;  %v2107_v45 = vmul.f32 %v2079_v34, %v2079_v34  ;;  %v2115_v14 = vsel %vm1842_vm1, %v2108_v2, 0.0  ;;  %v2112_v32 = vmul.f32 %v2084_v1, %v2084_v1  ;;  %v2404_v1 = vld [vmem:[%s9433_s7 + $0x28] sm:$0xff]  ;;  %v2403_v2 = vld [vmem:[%s9433_s7 + $0x20] sm:$0xff] }
 0x1ec   : > { %1863 = vadd.xlane.f32.xlu1 %v1862_v8  ;;  %v1956_v51 = vadd.f32 %v1955_v30, %v1947_v7  ;;  %v1949_v63 = vmul.f32 %v1921_v4, %v1921_v4  ;;  %v1959_v41 = vsel %vm1842_vm1, %v1950_v33, 0.0  ;;  %v1954_v40 = vmul.f32 %v1926_v26, %v1926_v26  ;;  %v2400_v18 = vld [vmem:[%s9433_s7 + $0x8] sm:$0xff]  ;;  %v2399_v54 = vld [vmem:[%s9433_s7] sm:$0xff]  ;;  %v2245_v7 = vld [vmem:[%s9432_s6 + $0x30] sm:$0xff] }
 0x1ed   : > { %v2116_v44 = vadd.f32 %v2115_v14, %v2107_v45  ;;  %v2111_v55 = vmul.f32 %v2083_v35, %v2083_v35  ;;  %v2123_v31 = vsel %vm1842_vm1, %v2112_v32, 0.0  ;;  %v1953_v49 = vmul.f32 %v1925_v20, %v1925_v20 }
 0x1ee   : > { %1933 = vadd.xlane.f32.xlu0 %v1932_v16  ;;  %v1960_v12 = vadd.f32 %v1959_v41, %v1949_v63  ;;  %v1967_v46 = vsel %vm1842_vm1, %v1954_v40, 0.0  ;;  %v2251_v50 = vsel %vm1842_vm1, %v2242_v9, 0.0  ;;  %v2087_v57 = vsel %vm1842_vm1, %v2080_v28, 0.0 }
 0x1ef   : > { %v2124_v52 = vadd.f32 %v2123_v31, %v2111_v55  ;;  %v1968_v25 = vadd.f32 %v1967_v46, %v1953_v49  ;;  %v2252_v29 = vadd.f32 %v2251_v50, %v7347_v27  ;;  %v2255_v59 = vsel %vm1842_vm1, %v2244_v53, 0.0 }
 0x1f0   : > { %1929 = vadd.xlane.f32.xlu1 %v1928_v23  ;;  %v2268_v38 = vmul.f32 %v2240_v47, %v2240_v47  ;;  %v2088_v61 = vadd.f32 %v2087_v57, %v2079_v34  ;;  %v2099_v24 = vsel %vm1842_vm1, %v2086_v62, 0.0  ;;  %v2110_v48 = vmul.f32 %v7305_v3, %v7305_v3  ;;  %v2560_v57 = vld [vmem:[%s9434_s8 + $0x8] sm:$0xff] }
 0x1f1   : > { %v2256_v4 = vadd.f32 %v2255_v59, %v2243_v56  ;;  %v2267_v36 = vmul.f32 %v2239_v58, %v2239_v58  ;;  %v2272_v6 = vmul.f32 %v2244_v53, %v2244_v53  ;;  %v2100_v8 = vadd.f32 %v2099_v24, %v2085_v0  ;;  %v2563_v59 = vld [vmem:[%s9434_s8 + $0x20] sm:$0xff] }
 0x1f2   : > { %1965 = vadd.xlane.f32.xlu0 %v1964_v15  ;;  %v2275_v5 = vsel %vm1842_vm1, %v2268_v38, 0.0  ;;  %v2109_v42 = vmul.f32 %v7314_v10, %v7314_v10  ;;  %v2119_v11 = vsel %vm1842_vm1, %v2110_v48, 0.0  ;;  %v2114_v16 = vmul.f32 %v2086_v62, %v2086_v62  ;;  %v2402_v15 = vld [vmem:[%s9433_s7 + $0x18] sm:$0xff]  ;;  %v7386_v10 = vld [vmem:[%s9433_s7 + $0x10] sm:$0xff] }
 0x1f3   : > { %v2276_v13 = vadd.f32 %v2275_v5, %v2267_v36  ;;  %v2271_v43 = vmul.f32 %v2243_v56, %v2243_v56  ;;  %v2283_v23 = vsel %vm1842_vm1, %v2272_v6, 0.0  ;;  %v2113_v19 = vmul.f32 %v2085_v0, %v2085_v0  ;;  %v2405_v0 = vld [vmem:[%s9433_s7 + $0x30] sm:$0xff] }
 0x1f4   : > { %1937 = vadd.xlane.f32.xlu1 %v1936_v60  ;;  %v2120_v3 = vadd.f32 %v2119_v11, %v2109_v42  ;;  %v2127_v26 = vsel %vm1842_vm1, %v2114_v16, 0.0  ;;  %v2411_v28 = vsel %vm1842_vm1, %v2402_v15, 0.0  ;;  %v2247_v20 = vsel %vm1842_vm1, %v2240_v47, 0.0 }
 0x1f5   : > { %v2284_v17 = vadd.f32 %v2283_v23, %v2271_v43  ;;  %v2128_v60 = vadd.f32 %v2127_v26, %v2113_v19  ;;  %v2412_v21 = vadd.f32 %v2411_v28, %v7386_v10  ;;  %v2415_v35 = vsel %vm1842_vm1, %v2404_v1, 0.0 }
 0x1f6   : > { %2093 = vadd.xlane.f32.xlu0 %v2092_v37  ;;  %v2246_v37 = vld [vmem:[%s9432_s6 + $0x38] sm:$0xff]  ;;  %v2428_v34 = vmul.f32 %v2400_v18, %v2400_v18  ;;  %v2270_v33 = vmul.f32 %v2242_v9, %v2242_v9  ;;  %v2427_v45 = vmul.f32 %v2399_v54, %v2399_v54  ;;  %v2432_v32 = vmul.f32 %v2404_v1, %v2404_v1  ;;  %v2724_v1 = vld [vmem:[%s9435_s9 + $0x28] sm:$0xff] }
 0x1f7   : > { %v2259_v30 = vsel %vm1842_vm1, %v2246_v37, 0.0  ;;  %v2269_v63 = vmul.f32 %v7347_v27, %v7347_v27  ;;  %v2274_v40 = vmul.f32 %v2246_v37, %v2246_v37  ;;  %v2431_v55 = vmul.f32 %v2403_v2, %v2403_v2  ;;  %v2562_v9 = vld [vmem:[%s9434_s8 + $0x18] sm:$0xff]  ;;  %v7423_v27 = vld [vmem:[%s9434_s8 + $0x10] sm:$0xff] }
 0x1f8   : > { %1941 = vadd.xlane.f32.xlu1 %v1940_v22  ;;  %v2248_v22 = vadd.f32 %v2247_v20, %v2239_v58  ;;  %v2435_v14 = vsel %vm1842_vm1, %v2428_v34, 0.0  ;;  %v2279_v41 = vsel %vm1842_vm1, %v2270_v33, 0.0  ;;  %v2443_v31 = vsel %vm1842_vm1, %v2432_v32, 0.0  ;;  %v2559_v58 = vld [vmem:[%s9434_s8] sm:$0xff]  ;;  %v2566_v37 = vld [vmem:[%s9434_s8 + $0x38] sm:$0xff] }
 0x1f9   : > { %v2273_v49 = vmul.f32 %v2245_v7, %v2245_v7  ;;  %v2287_v46 = vsel %vm1842_vm1, %v2274_v40, 0.0  ;;  %v2571_v50 = vsel %vm1842_vm1, %v2562_v9, 0.0  ;;  %v2407_v47 = vsel %vm1842_vm1, %v2400_v18, 0.0  ;;  %v2720_v18 = vld [vmem:[%s9435_s9 + $0x8] sm:$0xff] }
 0x1fa   : > { %2097 = vadd.xlane.f32.xlu0 %v2096_v39  ;;  %v2416_v39 = vadd.f32 %v2415_v35, %v2403_v2  ;;  %v2572_v56 = vadd.f32 %v2571_v50, %v7423_v27  ;;  %v2588_v38 = vmul.f32 %v2560_v57, %v2560_v57  ;;  %v2430_v48 = vmul.f32 %v2402_v15, %v2402_v15  ;;  %v2722_v15 = vld [vmem:[%s9435_s9 + $0x18] sm:$0xff]  ;;  %v2723_v2 = vld [vmem:[%s9435_s9 + $0x20] sm:$0xff] }
 0x1fb   : > { %v2288_v53 = vadd.f32 %v2287_v46, %v2273_v49  ;;  %v2587_v36 = vmul.f32 %v2559_v58, %v2559_v58  ;;  %v2429_v42 = vmul.f32 %v7386_v10, %v7386_v10  ;;  %v2591_v43 = vmul.f32 %v2563_v59, %v2563_v59  ;;  %v2721_v10 = vld [vmem:[%s9435_s9 + $0x10] sm:$0xff] }
 0x1fc   : > { %1957 = vadd.xlane.f32.xlu1 %v1956_v51  ;;  %v2260_v51 = vadd.f32 %v2259_v30, %v2245_v7  ;;  %v2595_v5 = vsel %vm1842_vm1, %v2588_v38, 0.0  ;;  %v2439_v11 = vsel %vm1842_vm1, %v2430_v48, 0.0  ;;  %v2433_v19 = vmul.f32 %v2405_v0, %v2405_v0  ;;  %v2565_v7 = vld [vmem:[%s9434_s8 + $0x30] sm:$0xff] }
 0x1fd   : > { %v2731_v28 = vsel %vm1842_vm1, %v2722_v15, 0.0  ;;  %v2567_v20 = vsel %vm1842_vm1, %v2560_v57, 0.0  ;;  %v2735_v35 = vsel %vm1842_vm1, %v2724_v1, 0.0  ;;  %v2748_v34 = vmul.f32 %v2720_v18, %v2720_v18  ;;  %v7506_v48 = vld [vmem:[%s9426_s0 + $0x10] sm:$0xff] }
 0x1fe   : > { %2117 = vadd.xlane.f32.xlu0 %v2116_v44  ;;  %v2436_v44 = vadd.f32 %v2435_v14, %v2427_v45  ;;  %v2579_v30 = vsel %vm1842_vm1, %v2566_v37, 0.0  ;;  %v2590_v33 = vmul.f32 %v2562_v9, %v2562_v9  ;;  %v2752_v32 = vmul.f32 %v2724_v1, %v2724_v1  ;;  %v7621_v1 = vld [vmem:[%s9426_s0 + $0x48] sm:$0xff] }
 0x1ff   : > { %v2755_v14 = vsel %vm1842_vm1, %v2748_v34, 0.0  ;;  %v2594_v40 = vmul.f32 %v2566_v37, %v2566_v37  ;;  %v2593_v49 = vmul.f32 %v2565_v7, %v2565_v7  ;;  %v2727_v50 = vsel %vm1842_vm1, %v2720_v18, 0.0  ;;  %v7626_v18 = vld [vmem:[%s9426_s0 + $0x58] sm:$0xff] }
 0x200   : > { %1961 = vadd.xlane.f32.xlu1 %v1960_v12  ;;  %v2280_v12 = vadd.f32 %v2279_v41, %v2269_v63  ;;  %v2589_v63 = vmul.f32 %v7423_v27, %v7423_v27  ;;  %v2599_v41 = vsel %vm1842_vm1, %v2590_v33, 0.0  ;;  %v2726_v27 = vld [vmem:[%s9435_s9 + $0x38] sm:$0xff]  ;;  %v7638_v37 = vpack.c.bf16 %v7626_v18, %v7621_v1 }
 0x201   : > { %v2607_v9 = vsel %vm1842_vm1, %v2594_v40, 0.0  ;;  %v2739_v57 = vsel %vm1842_vm1, %v2726_v27, 0.0  ;;  %v2896_v40 = vld [vmem:[%s9426_s0 + $0x88] sm:$0xff]  ;;  %vm3093_vm2 = vcmask 1039360   ;;  %vm3799_vm3 = vcmask 924672  }
 0x202   : > { %2125 = vadd.xlane.f32.xlu0 %v2124_v52  ;;  %v2444_v52 = vadd.f32 %v2443_v31, %v2431_v55  ;;  %v2751_v55 = vmul.f32 %v2723_v2, %v2723_v2  ;;  %v2763_v31 = vsel %vm1842_vm1, %v2752_v32, 0.0  ;;  %v7689_v32 = vld [vmem:[%s9426_s0 + $0xd0] sm:$0xff]  ;;  %vm3949_vm0 = vcmask 916480  }
 0x204   : > { %1969 = vadd.xlane.f32.xlu1 %v1968_v25  ;;  %v2564_v25 = vld [vmem:[%s9434_s8 + $0x28] sm:$0xff]  ;;  %v2764_v46 = vadd.f32 %v2763_v31, %v2751_v55 }
 0x205   : > { %v2575_v62 = vsel %vm1842_vm1, %v2564_v25, 0.0  ;;  %v2592_v6 = vmul.f32 %v2564_v25, %v2564_v25  ;;  %v2725_v25 = vld [vmem:[%s9435_s9 + $0x30] sm:$0xff] }
 0x206   : > { %2253 = vadd.xlane.f32.xlu0 %v2252_v29  ;;  %v2406_v29 = vld [vmem:[%s9433_s7 + $0x38] sm:$0xff]  ;;  %v2753_v38 = vmul.f32 %v2725_v25, %v2725_v25 }
 0x207   : > { %v2419_v24 = vsel %vm1842_vm1, %v2406_v29, 0.0  ;;  %v2434_v16 = vmul.f32 %v2406_v29, %v2406_v29  ;;  %v2603_v23 = vsel %vm1842_vm1, %v2592_v6, 0.0  ;;  %v2749_v29 = vmul.f32 %v2721_v10, %v2721_v10 }
 0x208   : > { %2089 = vadd.xlane.f32.xlu1 %v2088_v61  ;;  %v2408_v61 = vadd.f32 %v2407_v47, %v2399_v54  ;;  %v2719_v54 = vld [vmem:[%s9435_s9] sm:$0xff]  ;;  %v2750_v47 = vmul.f32 %v2722_v15, %v2722_v15  ;;  %v7585_v15 = vld [vmem:[%s9426_s0 + $0x28] sm:$0xff] }
 0x209   : > { %v2447_v26 = vsel %vm1842_vm1, %v2434_v16, 0.0  ;;  %v2747_v45 = vmul.f32 %v2719_v54, %v2719_v54  ;;  %v7549_v16 = vld [vmem:[%s9426_s0 + $0x8] sm:$0xff] }
 0x20a   : > { %2257 = vadd.xlane.f32.xlu0 %v2256_v4  ;;  %v2576_v4 = vadd.f32 %v2575_v62, %v2563_v59  ;;  %v2759_v59 = vsel %vm1842_vm1, %v2750_v47, 0.0  ;;  %v2754_v62 = vmul.f32 %v2726_v27, %v2726_v27  ;;  %v2900_v27 = vld [vmem:[%s9426_s0 + $0xa8] sm:$0xff] }
 0x20c   : > { %2101 = vadd.xlane.f32.xlu1 %v2100_v8  ;;  %v2420_v8 = vadd.f32 %v2419_v24, %v2405_v0  ;;  %v7501_v24 = vld [vmem:[%s9426_s0] sm:$0xff] }
 0x20e   : > { %2277 = vadd.xlane.f32.xlu0 %v2276_v13  ;;  %v2596_v13 = vadd.f32 %v2595_v5, %v2587_v36  ;;  %v7516_v36 = vld [vmem:[%s9426_s0 + $0x30] sm:$0xff]  ;;  %v7520_v5 = vpack.c.bf16 %v7506_v48, %v7501_v24 }
 0x210   : > { %2121 = vadd.xlane.f32.xlu1 %v2120_v3  ;;  %v2440_v3 = vadd.f32 %v2439_v11, %v2429_v42  ;;  %v7538_v42 = vld [vmem:[%s9426_s0 + $0x50] sm:$0xff] }
 0x212   : > { %2285 = vadd.xlane.f32.xlu0 %v2284_v17  ;;  %v2604_v17 = vadd.f32 %v2603_v23, %v2591_v43  ;;  %v7567_v23 = vld [vmem:[%s9426_s0 + $0x60] sm:$0xff] }
 0x214   : > { %2129 = vadd.xlane.f32.xlu1 %v2128_v60  ;;  %v2448_v60 = vadd.f32 %v2447_v26, %v2433_v19  ;;  %v7590_v26 = vld [vmem:[%s9426_s0 + $0x38] sm:$0xff] }
 0x216   : > { %2413 = vadd.xlane.f32.xlu0 %v2412_v21  ;;  %v2732_v21 = vadd.f32 %v2731_v28, %v2721_v10  ;;  %v7603_v10 = vld [vmem:[%s9426_s0 + $0x80] sm:$0xff]  ;;  %v7608_v28 = vld [vmem:[%s9426_s0 + $0x90] sm:$0xff] }
 0x218   : > { %2249 = vadd.xlane.f32.xlu1 %v2248_v22  ;;  %v2568_v22 = vadd.f32 %v2567_v20, %v2559_v58  ;;  %v2760_v58 = vadd.f32 %v2759_v59, %v2749_v29  ;;  %v7769_v29 = vpack.i.bf16 %v7549_v16, %v7501_v24 }
 0x21a   : > { %2417 = vadd.xlane.f32.xlu0 %v2416_v39  ;;  %v2736_v39 = vadd.f32 %v2735_v35, %v2723_v2  ;;  %v7643_v2 = vld [vmem:[%s9426_s0 + $0xa0] sm:$0xff]  ;;  %v7648_v35 = vld [vmem:[%s9426_s0 + $0xb0] sm:$0xff] }
 0x21b   : > { %v7656_v34 = vpack.c.bf16 %v7648_v35, %v7643_v2 }
 0x21c   : > { %2261 = vadd.xlane.f32.xlu1 %v2260_v51  ;;  %v2580_v51 = vadd.f32 %v2579_v30, %v2565_v7  ;;  %v2892_v7 = vld [vmem:[%s9426_s0 + $0x68] sm:$0xff]  ;;  %v7668_v30 = vld [vmem:[%s9426_s0 + $0x78] sm:$0xff] }
 0x21e   : > { %2437 = vadd.xlane.f32.xlu0 %v2436_v44  ;;  %v2756_v44 = vadd.f32 %v2755_v14, %v2747_v45  ;;  %v7679_v45 = vpack.c.bf16 %v7668_v30, %v2892_v7  ;;  %v7684_v14 = vld [vmem:[%s9426_s0 + $0xc0] sm:$0xff] }
 0x220   : > { %2281 = vadd.xlane.f32.xlu1 %v2280_v12  ;;  %v2600_v12 = vadd.f32 %v2599_v41, %v2589_v63  ;;  %v7697_v63 = vpack.c.bf16 %v7689_v32, %v7684_v14 }
 0x222   : > { %2445 = vadd.xlane.f32.xlu0 %v2444_v52  ;;  %v2608_v52 = vadd.f32 %v2607_v9, %v2593_v49  ;;  %v7725_v49 = vld [vmem:[%s9426_s0 + $0xe0] sm:$0xff]  ;;  %v7730_v9 = vld [vmem:[%s9426_s0 + $0xf0] sm:$0xff] }
 0x224   : > { %2289 = vadd.xlane.f32.xlu1 %v2288_v53  ;;  %v2728_v53 = vadd.f32 %v2727_v50, %v2719_v54 }
 0x226   : > { %2573 = vadd.xlane.f32.xlu0 %v2572_v56  ;;  %v2740_v56 = vadd.f32 %v2739_v57, %v2725_v25 }
 0x228   : > { %2409 = vadd.xlane.f32.xlu1 %v2408_v61  ;;  %v2767_v61 = vsel %vm1842_vm1, %v2754_v62, 0.0  ;;  %v2904_v62 = vld [vmem:[%s9426_s0 + $0xc8] sm:$0xff] }
 0x229   : > { %v2768_v0 = vadd.f32 %v2767_v61, %v2753_v38 }
 0x22a   : > { %2577 = vadd.xlane.f32.xlu0 %v2576_v4  ;;  %v7511_v4 = vld [vmem:[%s9426_s0 + $0x20] sm:$0xff] }
 0x22b   : > { %v7526_v6 = vpack.c.bf16 %v7516_v36, %v7511_v4  ;;  %v7789_v61 = vpack.i.bf16 %v7585_v15, %v7511_v4  ;;  %v2908_v4 = vld [vmem:[%s9426_s0 + $0xe8] sm:$0xff] }
 0x22c   : > { %2421 = vadd.xlane.f32.xlu1 %v2420_v8  ;;  %v7533_v8 = vld [vmem:[%s9426_s0 + $0x40] sm:$0xff] }
 0x22d   : > { %v7544_v11 = vpack.c.bf16 %v7538_v42, %v7533_v8 }
 0x22e   : > { %2597 = vadd.xlane.f32.xlu0 %v2596_v13  ;;  %v7554_v13 = vld [vmem:[%s9426_s0 + $0x18] sm:$0xff] }
 0x22f   : > { %v7562_v43 = vpack.c.bf16 %v7554_v13, %v7549_v16 }
 0x230   : > { %2441 = vadd.xlane.f32.xlu1 %v2440_v3  ;;  %v7572_v3 = vld [vmem:[%s9426_s0 + $0x70] sm:$0xff] }
 0x231   : > { %v7578_v19 = vpack.c.bf16 %v7572_v3, %v7567_v23 }
 0x232   : > { %2605 = vadd.xlane.f32.xlu0 %v2604_v17  ;;  %v7598_v17 = vpack.c.bf16 %v7590_v26, %v7585_v15  ;;  %v2910_v15 = vld [vmem:[%s9426_s0 + $0xf8] sm:$0xff] }
 0x234   : > { %2449 = vadd.xlane.f32.xlu1 %v2448_v60  ;;  %v7614_v60 = vpack.c.bf16 %v7608_v28, %v7603_v10 }
 0x236   : > { %2733 = vadd.xlane.f32.xlu0 %v2732_v21 }
 0x238   : > { %2569 = vadd.xlane.f32.xlu1 %v2568_v22 }
 0x23a   : > { %2737 = vadd.xlane.f32.xlu0 %v2736_v39 }
 0x23c   : > { %2581 = vadd.xlane.f32.xlu1 %v2580_v51 }
 0x23e   : > { %2757 = vadd.xlane.f32.xlu0 %v2756_v44  ;;  %v7709_v44 = vld [vmem:[%s9426_s0 + $0x98] sm:$0xff] }
 0x240   : > { %2601 = vadd.xlane.f32.xlu1 %v2600_v12  ;;  %v7720_v12 = vpack.c.bf16 %v7709_v44, %v2896_v40 }
 0x242   : > { %2765 = vadd.xlane.f32.xlu0 %v2764_v46 }
 0x244   : > { %2609 = vadd.xlane.f32.xlu1 %v2608_v52  ;;  %v7738_v52 = vpack.c.bf16 %v7730_v9, %v7725_v49 }
 0x248   : > { %2729 = vadd.xlane.f32.xlu1 %v2728_v53  ;;  %v7750_v53 = vld [vmem:[%s9426_s0 + $0xb8] sm:$0xff] }
 0x249   : > { %v7761_v47 = vpack.c.bf16 %v7750_v53, %v2900_v27 }
 0x24c   : > { %2741 = vadd.xlane.f32.xlu1 %v2740_v56 }
 0x250   : > { %2761 = vadd.xlane.f32.xlu1 %v2760_v58  ;;  %v7781_v58 = vld [vmem:[%s9426_s0 + $0xd8] sm:$0xff] }
 0x251   : > { %v7796_v24 = vpack.c.bf16 %v7781_v58, %v2904_v62 }
 0x254   : > { %2769 = vadd.xlane.f32.xlu1 %v2768_v0 }
 0x258   : > { %3767 = vrot.lane.b32.xlu0 %v7520_v5, %s6284_s27 }
 0x25c   : > { %3065 = vrot.lane.b32.xlu0 %v7526_v6, %s6285_s30 }
 0x260   : > { %3771 = vrot.lane.b32.xlu0 %v7526_v6, %s6284_s27 }
 0x264   : > { %3069 = vrot.lane.b32.xlu0 %v7544_v11, %s6285_s30 }
 0x265   : > { %3061 = vrot.lane.b32.xlu1 %v7520_v5, %s6285_s30 }
 0x268   : > { %3775 = vrot.lane.b32.xlu0 %v7544_v11, %s6284_s27 }
 0x269   : > { %3063 = vrot.lane.b32.xlu1 %v7562_v43, %s6285_s30 }
 0x26c   : > { %3073 = vrot.lane.b32.xlu0 %v7578_v19, %s6285_s30 }
 0x26d   : > { %3769 = vrot.lane.b32.xlu1 %v7562_v43, %s6284_s27 }
 0x270   : > { %3779 = vrot.lane.b32.xlu0 %v7578_v19, %s6284_s27 }
 0x271   : > { %3067 = vrot.lane.b32.xlu1 %v7598_v17, %s6285_s30 }
 0x273   : > { %v7628_v20 = vpop.xlane.xlu0 %1845 }
 0x274   : > { %3077 = vrot.lane.b32.xlu0 %v7614_v60, %s6285_s30 }
 0x275   : > { %v7632_v21 = vpop.xlane.xlu1 %1859  ;;  %3773 = vrot.lane.b32.xlu1 %v7598_v17, %s6284_s27 }
 0x277   : > { %v7650_v54 = vpop.xlane.xlu0 %1849 }
 0x278   : > { %3783 = vrot.lane.b32.xlu0 %v7614_v60, %s6284_s27 }
 0x279   : > { %v7658_v22 = vpop.xlane.xlu1 %1863  ;;  %3071 = vrot.lane.b32.xlu1 %v7638_v37, %s6285_s30 }
 0x27b   : > { %v7670_v33 = vpop.xlane.xlu0 %1933 }
 0x27c   : > { %3081 = vrot.lane.b32.xlu0 %v7656_v34, %s6285_s30 }
 0x27d   : > { %v7674_v39 = vpop.xlane.xlu1 %1929  ;;  %3777 = vrot.lane.b32.xlu1 %v7638_v37, %s6284_s27 }
 0x27f   : > { %v7691_v51 = vpop.xlane.xlu0 %1965 }
 0x280   : > { %3787 = vrot.lane.b32.xlu0 %v7656_v34, %s6284_s27 }
 0x281   : > { %v7699_v41 = vpop.xlane.xlu1 %1937  ;;  %3075 = vrot.lane.b32.xlu1 %v7679_v45, %s6285_s30 }
 0x283   : > { %v7711_v55 = vpop.xlane.xlu0 %2093 }
 0x284   : > { %9442 = vst [vmem:[#allocation2_spill] sm:$0xff] %v7711_v55  ;;  %3085 = vrot.lane.b32.xlu0 %v7697_v63, %s6285_s30 }
 0x285   : > { %v7715_v31 = vpop.xlane.xlu1 %1941  ;;  %3781 = vrot.lane.b32.xlu1 %v7679_v45, %s6284_s27 }
 0x287   : > { %v7732_v46 = vpop.xlane.xlu0 %2097 }
 0x288   : > { %9443 = vst [vmem:[#allocation3_spill] sm:$0xff] %v7732_v46  ;;  %3791 = vrot.lane.b32.xlu0 %v7697_v63, %s6284_s27 }
 0x289   : > { %v7740_v50 = vpop.xlane.xlu1 %1957  ;;  %3079 = vrot.lane.b32.xlu1 %v7720_v12, %s6285_s30 }
 0x28b   : > { %v7752_v25 = vpop.xlane.xlu0 %2117 }
 0x28c   : > { %9444 = vst [vmem:[#allocation4_spill] sm:$0xff] %v7752_v25  ;;  %3089 = vrot.lane.b32.xlu0 %v7738_v52, %s6285_s30 }
 0x28d   : > { %v7756_v57 = vpop.xlane.xlu1 %1961  ;;  %3785 = vrot.lane.b32.xlu1 %v7720_v12, %s6284_s27 }
 0x28f   : > { %v7763_v56 = vpop.xlane.xlu0 %2125 }
 0x290   : > { %9445 = vst [vmem:[#allocation5_spill] sm:$0xff] %v7763_v56  ;;  %3795 = vrot.lane.b32.xlu0 %v7738_v52, %s6284_s27 }
 0x291   : > { %v7771_v59 = vpop.xlane.xlu1 %1969  ;;  %3083 = vrot.lane.b32.xlu1 %v7761_v47, %s6285_s30 }
 0x292   : > { %9446 = vst [vmem:[#allocation6_spill] sm:$0xff] %v7771_v59 }
 0x293   : > { %v7783_v38 = vpop.xlane.xlu0 %2253 }
 0x294   : > { %9447 = vst [vmem:[#allocation7_spill] sm:$0xff] %v7783_v38  ;;  %5712 = vrot.lane.b32.xlu0 %v7769_v29, %s6286_s23  ;;  %v7804_v38 = vpack.i.bf16 %v7621_v1, %v7533_v8  ;;  %v7821_v8 = vpack.i.bf16 %v2892_v7, %v7567_v23  ;;  %v9440_v23 = vmov 0  }
 0x295   : > { %v7791_v0 = vpop.xlane.xlu1 %2089  ;;  %3789 = vrot.lane.b32.xlu1 %v7761_v47, %s6284_s27  ;;  %3150 = vmatprep.mubr.bf16.mxu1 %v9440_v23 }
 0x296   : > { %9448 = vst [vmem:[#allocation8_spill] sm:$0xff] %v7791_v0  ;;  %3856 = vmatprep.mubr.bf16.mxu0 %v9440_v23  ;;  %6111 = vset.pattern.permute.xlu1 %v9440_v23  ;;  %v9483_v0 = vmov 0  }
 0x297   : > { %v7798_v16 = vpop.xlane.xlu0 %2257  ;;  %6112 = vset.pattern.permute.xlu0 %v9440_v23  ;;  %v7864_v23 = vpack.i.bf16 %v2904_v62, %v7684_v14  ;;  %v7887_v14 = vpack.i.bf16 %v7626_v18, %v7538_v42  ;;  %v7911_v18 = vpack.i.bf16 %v7709_v44, %v7608_v28  ;;  %v7935_v44 = vpack.i.bf16 %v7781_v58, %v7689_v32 }
 0x298   : > { %9449 = vst [vmem:[#allocation9_spill] sm:$0xff] %v7798_v16  ;;  %5722 = vrot.lane.b32.xlu0 %v7789_v61, %s6286_s23 }
 0x299   : > { %v7806_v56 = vpop.xlane.xlu1 %2101  ;;  %3087 = vrot.lane.b32.xlu1 %v7796_v24, %s6285_s30 }
 0x29a   : > { %9450 = vst [vmem:[#allocation10_spill] sm:$0xff] %v7806_v56  ;;  %v7827_v56 = vpack.c.bf16 %v2910_v15, %v2908_v4 }
 0x29b   : > { %v7816_v16 = vpop.xlane.xlu0 %2277 }
 0x29c   : > { %9451 = vst [vmem:[#allocation11_spill] sm:$0xff] %v7816_v16  ;;  %5732 = vrot.lane.b32.xlu0 %v7804_v38, %s6286_s23  ;;  %v7834_v16 = vpack.i.bf16 %v2896_v40, %v7603_v10  ;;  %v7849_v10 = vpack.i.bf16 %v2900_v27, %v7643_v2  ;;  %v7872_v2 = vpack.i.bf16 %v7590_v26, %v7516_v36 }
 0x29d   : > { %v7823_v1 = vpop.xlane.xlu1 %2121  ;;  %3793 = vrot.lane.b32.xlu1 %v7796_v24, %s6284_s27  ;;  %v7899_v26 = vpack.i.bf16 %v7668_v30, %v7572_v3  ;;  %v7923_v30 = vpack.i.bf16 %v7750_v53, %v7648_v35  ;;  %v7946_v53 = vpack.i.bf16 %v2910_v15, %v7730_v9 }
 0x29e   : > { %9452 = vst [vmem:[#allocation12_spill] sm:$0xff] %v7823_v1 }
 0x29f   : > { %v7829_v25 = vpop.xlane.xlu0 %2285 }
 0x2a0   : > { %9453 = vst [vmem:[#allocation13_spill] sm:$0xff] %v7829_v25  ;;  %5742 = vrot.lane.b32.xlu0 %v7821_v8, %s6286_s23  ;;  %v7857_v25 = vpack.i.bf16 %v7554_v13, %v7506_v48  ;;  %v7879_v48 = vpack.i.bf16 %v2908_v4, %v7725_v49 }
 0x2a1   : > { %v7836_v46 = vpop.xlane.xlu1 %2129  ;;  %3091 = vrot.lane.b32.xlu1 %v7827_v56, %s6285_s30  ;;  %s6289_s30 = smov 100  }
 0x2a2   : > { %9454 = vst [vmem:[#allocation14_spill] sm:$0xff] %v7836_v46 }
 0x2a3   : > { %v7843_v7 = vpop.xlane.xlu0 %2413 }
 0x2a4   : > { %9455 = vst [vmem:[#allocation15_spill] sm:$0xff] %v7843_v7  ;;  %5752 = vrot.lane.b32.xlu0 %v7834_v16, %s6286_s23 }
 0x2a5   : > { %v7851_v40 = vpop.xlane.xlu1 %2249  ;;  %3797 = vrot.lane.b32.xlu1 %v7827_v56, %s6284_s27  ;;  %s6288_s27 = smov 126  }
 0x2a6   : > { %9456 = vst [vmem:[#allocation16_spill] sm:$0xff] %v7851_v40 }
 0x2a7   : > { %v7859_v46 = vpop.xlane.xlu0 %2417 }
 0x2a8   : > { %9457 = vst [vmem:[#allocation17_spill] sm:$0xff] %v7859_v46  ;;  %5762 = vrot.lane.b32.xlu0 %v7849_v10, %s6286_s23 }
 0x2a9   : > { %v7866_v7 = vpop.xlane.xlu1 %2261  ;;  %5717 = vrot.lane.b32.xlu1 %v7857_v25, %s6286_s23 }
 0x2aa   : > { %9458 = vst [vmem:[#allocation18_spill] sm:$0xff] %v7866_v7 }
 0x2ab   : > { %v7874_v27 = vpop.xlane.xlu0 %2437 }
 0x2ac   : > { %9459 = vst [vmem:[#allocation19_spill] sm:$0xff] %v7874_v27  ;;  %5772 = vrot.lane.b32.xlu0 %v7864_v23, %s6286_s23 }
 0x2ad   : > { %v7881_v13 = vpop.xlane.xlu1 %2281  ;;  %5727 = vrot.lane.b32.xlu1 %v7872_v2, %s6286_s23 }
 0x2ae   : > { %9460 = vst [vmem:[#allocation20_spill] sm:$0xff] %v7881_v13 }
 0x2af   : > { %v7889_v62 = vpop.xlane.xlu0 %2445 }
 0x2b0   : > { %9461 = vst [vmem:[#allocation21_spill] sm:$0xff] %v7889_v62  ;;  %5782 = vrot.lane.b32.xlu0 %v7879_v48, %s6286_s23 }
 0x2b1   : > { %v7893_v36 = vpop.xlane.xlu1 %2289  ;;  %5737 = vrot.lane.b32.xlu1 %v7887_v14, %s6286_s23 }
 0x2b2   : > { %9462 = vst [vmem:[#allocation22_spill] sm:$0xff] %v7893_v36  ;;  %v2911_v36 = vlaneseq }
 0x2b3   : > { %v7901_v49 = vpop.xlane.xlu0 %2573 }
 0x2b4   : > { %9463 = vst [vmem:[#allocation23_spill] sm:$0xff] %v7901_v49  ;;  %5792 = vrot.lane.b32.xlu0 %v7769_v29, %s6288_s27  ;;  %v8027_v7 = vand.u32 127, %v2911_v36 }
 0x2b5   : > { %v7905_v42 = vpop.xlane.xlu1 %2409  ;;  %5747 = vrot.lane.b32.xlu1 %v7899_v26, %s6286_s23 }
 0x2b6   : > { %9464 = vst [vmem:[#allocation24_spill] sm:$0xff] %v7905_v42  ;;  %v8053_v40 = vmul.u32.u64.low 2454267026, %v8027_v7  ;;  %v8054_v1 = vmul.u32.u64.high 2454267026, %v8027_v7, %v8053_v40 }
 0x2b7   : > { %v7913_v4 = vpop.xlane.xlu0 %2577 }
 0x2b8   : > { %9465 = vst [vmem:[#allocation25_spill] sm:$0xff] %v7913_v4  ;;  %5802 = vrot.lane.b32.xlu0 %v7769_v29, %s6289_s30  ;;  %vm2920_vm5 = vc.u32 %v8053_v40, 2454267026 }
 0x2b9   : > { %v7917_v3 = vpop.xlane.xlu1 %2421  ;;  %5757 = vrot.lane.b32.xlu1 %v7911_v18, %s6286_s23  ;;  %v2921_v55 = vsel %vm2920_vm5, 1, %v9483_v0 }
 0x2ba   : > { %9466 = vst [vmem:[#allocation26_spill] sm:$0xff] %v7917_v3  ;;  %v2922_v40 = vadd.s32 %v8054_v1, %v2921_v55 }
 0x2bb   : > { %v7925_v49 = vpop.xlane.xlu0 %2597 }
 0x2bc   : > { %9467 = vst [vmem:[#allocation27_spill] sm:$0xff] %v7925_v49  ;;  %5812 = vrot.lane.b32.xlu0 %v7789_v61, %s6288_s27 }
 0x2bd   : > { %v7929_v28 = vpop.xlane.xlu1 %2441  ;;  %5767 = vrot.lane.b32.xlu1 %v7923_v30, %s6286_s23 }
 0x2be   : > { %9468 = vst [vmem:[#allocation28_spill] sm:$0xff] %v7929_v28 }
 0x2bf   : > { %v7937_v4 = vpop.xlane.xlu0 %2605 }
 0x2c0   : > { %9469 = vst [vmem:[#allocation29_spill] sm:$0xff] %v7937_v4  ;;  %5822 = vrot.lane.b32.xlu0 %v7789_v61, %s6289_s30 }
 0x2c1   : > { %v7941_v35 = vpop.xlane.xlu1 %2449  ;;  %5777 = vrot.lane.b32.xlu1 %v7935_v44, %s6286_s23 }
 0x2c2   : > { %9470 = vst [vmem:[#allocation30_spill] sm:$0xff] %v7941_v35 }
 0x2c3   : > { %v7948_v49 = vpop.xlane.xlu0 %2733 }
 0x2c4   : > { %9471 = vst [vmem:[#allocation31_spill] sm:$0xff] %v7948_v49  ;;  %5832 = vrot.lane.b32.xlu0 %v7804_v38, %s6288_s27 }
 0x2c5   : > { %v7952_v32 = vpop.xlane.xlu1 %2569  ;;  %5787 = vrot.lane.b32.xlu1 %v7946_v53, %s6286_s23 }
 0x2c6   : > { %9472 = vst [vmem:[#allocation32_spill] sm:$0xff] %v7952_v32 }
 0x2c7   : > { %v7956_v58 = vpop.xlane.xlu0 %2737 }
 0x2c8   : > { %9473 = vst [vmem:[#allocation33_spill] sm:$0xff] %v7956_v58  ;;  %5842 = vrot.lane.b32.xlu0 %v7804_v38, %s6289_s30 }
 0x2c9   : > { %v7960_v4 = vpop.xlane.xlu1 %2581  ;;  %5797 = vrot.lane.b32.xlu1 %v7857_v25, %s6288_s27 }
 0x2ca   : > { %9474 = vst [vmem:[#allocation34_spill] sm:$0xff] %v7960_v4 }
 0x2cb   : > { %v7964_v9 = vpop.xlane.xlu0 %2757 }
 0x2cc   : > { %9475 = vst [vmem:[#allocation35_spill] sm:$0xff] %v7964_v9  ;;  %5852 = vrot.lane.b32.xlu0 %v7821_v8, %s6288_s27 }
 0x2cd   : > { %v7968_v15 = vpop.xlane.xlu1 %2601  ;;  %5807 = vrot.lane.b32.xlu1 %v7857_v25, %s6289_s30 }
 0x2ce   : > { %9476 = vst [vmem:[#allocation36_spill] sm:$0xff] %v7968_v15 }
 0x2cf   : > { %v7972_v49 = vpop.xlane.xlu0 %2765 }
 0x2d0   : > { %9477 = vst [vmem:[#allocation37_spill] sm:$0xff] %v7972_v49  ;;  %5862 = vrot.lane.b32.xlu0 %v7821_v8, %s6289_s30 }
 0x2d1   : > { %v7976_v58 = vpop.xlane.xlu1 %2609  ;;  %5817 = vrot.lane.b32.xlu1 %v7872_v2, %s6288_s27 }
 0x2d2   : > { %9478 = vst [vmem:[#allocation38_spill] sm:$0xff] %v7976_v58 }
 0x2d3   : > { %v3768_v4 = vpop.permute.xlu0 %3767 }
 0x2d4   : > { %5872 = vrot.lane.b32.xlu0 %v7834_v16, %s6288_s27 }
 0x2d5   : > { %v7982_v9 = vpop.xlane.xlu1 %2729  ;;  %5827 = vrot.lane.b32.xlu1 %v7872_v2, %s6289_s30 }
 0x2d6   : > { %9479 = vst [vmem:[#allocation39_spill] sm:$0xff] %v7982_v9 }
 0x2d7   : > { %v3066_v15 = vpop.permute.xlu0 %3065 }
 0x2d8   : > { %5882 = vrot.lane.b32.xlu0 %v7834_v16, %s6289_s30 }
 0x2d9   : > { %v7988_v49 = vpop.xlane.xlu1 %2741  ;;  %5837 = vrot.lane.b32.xlu1 %v7887_v14, %s6288_s27 }
 0x2da   : > { %9480 = vst [vmem:[#allocation40_spill] sm:$0xff] %v7988_v49 }
 0x2db   : > { %v3772_v58 = vpop.permute.xlu0 %3771 }
 0x2dc   : > { %5892 = vrot.lane.b32.xlu0 %v7849_v10, %s6288_s27 }
 0x2dd   : > { %v7994_v32 = vpop.xlane.xlu1 %2761  ;;  %5847 = vrot.lane.b32.xlu1 %v7887_v14, %s6289_s30 }
 0x2de   : > { %9481 = vst [vmem:[#allocation41_spill] sm:$0xff] %v7994_v32 }
 0x2df   : > { %v3070_v9 = vpop.permute.xlu0 %3069 }
 0x2e0   : > { %5902 = vrot.lane.b32.xlu0 %v7849_v10, %s6289_s30 }
 0x2e1   : > { %v8000_v35 = vpop.xlane.xlu1 %2769  ;;  %5857 = vrot.lane.b32.xlu1 %v7899_v26, %s6288_s27 }
 0x2e2   : > { %9482 = vst [vmem:[#allocation42_spill] sm:$0xff] %v8000_v35 }
 0x2e3   : > { %v3776_v49 = vpop.permute.xlu0 %3775 }
 0x2e4   : > { %5912 = vrot.lane.b32.xlu0 %v7864_v23, %s6288_s27 }
 0x2e5   : > { %v3062_v3 = vpop.permute.xlu1 %3061  ;;  %5867 = vrot.lane.b32.xlu1 %v7899_v26, %s6289_s30 }
 0x2e7   : > { %v3074_v32 = vpop.permute.xlu0 %3073 }
 0x2e8   : > { %5922 = vrot.lane.b32.xlu0 %v7864_v23, %s6289_s30 }
 0x2e9   : > { %v3064_v62 = vpop.permute.xlu1 %3063  ;;  %5877 = vrot.lane.b32.xlu1 %v7911_v18, %s6288_s27 }
 0x2ea   : > { %3118 = vmatprep.subr.bf16.mxu1 %v3064_v62  ;;  %v3094_v35 = vsel %vm3093_vm2, %v3062_v3, %v3064_v62 }
 0x2eb   : > { %3119 = vmatpush1.bf16.msra.mxu1 %v3094_v35  ;;  %v3780_v28 = vpop.permute.xlu0 %3779 }
 0x2ec   : > { %5932 = vrot.lane.b32.xlu0 %v7879_v48, %s6288_s27 }
 0x2ed   : > { %v3770_v27 = vpop.permute.xlu1 %3769  ;;  %5887 = vrot.lane.b32.xlu1 %v7911_v18, %s6289_s30 }
 0x2ee   : > { %3824 = vmatprep.subr.bf16.mxu0 %v3770_v27  ;;  %v3800_v46 = vsel %vm3799_vm3, %v3768_v4, %v3770_v27 }
 0x2ef   : > { %3825 = vmatpush1.bf16.msra.mxu0 %v3800_v46  ;;  %v8018_v42 = vpop.permute.xlu0 %3077 }
 0x2f0   : > { %5942 = vrot.lane.b32.xlu0 %v7879_v48, %s6289_s30 }
 0x2f1   : > { %v3068_v62 = vpop.permute.xlu1 %3067  ;;  %5897 = vrot.lane.b32.xlu1 %v7923_v30, %s6288_s27 }
 0x2f2   : > { %3120 = vmatprep.subr.bf16.mxu1 %v3068_v62  ;;  %v3095_v3 = vsel %vm3093_vm2, %v3066_v15, %v3068_v62  ;;  %v2913_v15 = vadd.s32 128, %v8027_v7 }
 0x2f3   : > { %3121 = vmatpush1.bf16.msra.mxu1 %v3095_v3  ;;  %v8025_v35 = vpop.permute.xlu0 %3783 }
 0x2f4   : > { %5952 = vrot.lane.b32.xlu0 %v7769_v29, %s6290_s14 }
 0x2f5   : > { %v3774_v46 = vpop.permute.xlu1 %3773  ;;  %5907 = vrot.lane.b32.xlu1 %v7923_v30, %s6289_s30 }
 0x2f6   : > { %3826 = vmatprep.subr.bf16.mxu0 %v3774_v46  ;;  %v3801_v27 = vsel %vm3799_vm3, %v3772_v58, %v3774_v46  ;;  %v8044_v58 = vmul.u32.u64.low 2454267026, %v2913_v15  ;;  %v8045_v46 = vmul.u32.u64.high 2454267026, %v2913_v15, %v8044_v58 }
 0x2f7   : > { %3827 = vmatpush1.bf16.msra.mxu0 %v3801_v27  ;;  %v8034_v4 = vpop.permute.xlu0 %3081 }
 0x2f8   : > { %4380 = vrot.lane.b32.xlu0 %v7520_v5, %s6291_s16  ;;  %vm2934_vm4 = vc.u32 %v8044_v58, 2454267026 }
 0x2f9   : > { %v3072_v36 = vpop.permute.xlu1 %3071  ;;  %5917 = vrot.lane.b32.xlu1 %v7935_v44, %s6288_s27 }
 0x2fa   : > { %3122 = vmatprep.subr.bf16.mxu1 %v3072_v36  ;;  %v3096_v62 = vsel %vm3093_vm2, %v3070_v9, %v3072_v36 }
 0x2fb   : > { %3123 = vmatpush1.bf16.msra.mxu1 %v3096_v62  ;;  %v8042_v3 = vpop.permute.xlu0 %3787 }
 0x2fc   : > { %5962 = vrot.lane.b32.xlu0 %v7789_v61, %s6290_s14 }
 0x2fd   : > { %v3778_v27 = vpop.permute.xlu1 %3777  ;;  %5927 = vrot.lane.b32.xlu1 %v7935_v44, %s6289_s30 }
 0x2fe   : > { %3828 = vmatprep.subr.bf16.mxu0 %v3778_v27  ;;  %v3802_v13 = vsel %vm3799_vm3, %v3776_v49, %v3778_v27  ;;  %v2935_v49 = vsel %vm2934_vm4, 1, %v9483_v0 }
 0x2ff   : > { %3829 = vmatpush1.bf16.msra.mxu0 %v3802_v13  ;;  %v8056_v9 = vpop.permute.xlu0 %3085  ;;  %v2936_v58 = vadd.s32 %v8045_v46, %v2935_v49 }
 0x300   : > { %4384 = vrot.lane.b32.xlu0 %v7526_v6, %s6291_s16 }
 0x301   : > { %v3076_v36 = vpop.permute.xlu1 %3075  ;;  %5937 = vrot.lane.b32.xlu1 %v7946_v53, %s6288_s27  ;;  %v2937_v59 = vshrl.u32 %v2936_v58, 3 }
 0x302   : > { %3124 = vmatprep.subr.bf16.mxu1 %v3076_v36  ;;  %v3097_v62 = vsel %vm3093_vm2, %v3074_v32, %v3076_v36 }
 0x303   : > { %3125 = vmatpush1.bf16.msra.mxu1 %v3097_v62  ;;  %v8064_v27 = vpop.permute.xlu0 %3791  ;;  %v2938_v55 = vmul.u32 14, %v2937_v59 }
 0x304   : > { %5972 = vrot.lane.b32.xlu0 %v7804_v38, %s6290_s14 }
 0x305   : > { %v3782_v13 = vpop.permute.xlu1 %3781  ;;  %5947 = vrot.lane.b32.xlu1 %v7946_v53, %s6289_s30 }
 0x306   : > { %3830 = vmatprep.subr.bf16.mxu0 %v3782_v13  ;;  %v3803_v32 = vsel %vm3799_vm3, %v3780_v28, %v3782_v13  ;;  %v2923_v28 = vshrl.u32 %v2922_v40, 3 }
 0x307   : > { %3831 = vmatpush1.bf16.msra.mxu0 %v3803_v32  ;;  %v8073_v36 = vpop.permute.xlu0 %3089  ;;  %v2939_v32 = vsub.s32 %v2913_v15, %v2938_v55 }
 0x308   : > { %4388 = vrot.lane.b32.xlu0 %v7544_v11, %s6291_s16 }
 0x309   : > { %v3080_v62 = vpop.permute.xlu1 %3079  ;;  %5957 = vrot.lane.b32.xlu1 %v7857_v25, %s6290_s14  ;;  %vm2943_vm6 = vcmp.ne.s32.totalorder %v2939_v32, 0  ;;  %vm2945_vm7 = vcmp.lt.s32.totalorder %v2939_v32, 0 }
 0x30a   : > { %3126 = vmatprep.subr.bf16.mxu1 %v3080_v62  ;;  %v3098_v46 = vsel %vm3093_vm2, %v8018_v42, %v3080_v62  ;;  %v2924_v42 = vmul.u32 14, %v2923_v28  ;;  %vm2947_vm8 = vmand %vm2945_vm7, %vm2943_vm6  ;;  %vm3336_vm6 = vcmask 1031168   ;;  %vm4188_vm7 = vcmask 818176  }
 0x30b   : > { %3127 = vmatpush1.bf16.msra.mxu1 %v3098_v46  ;;  %v8082_v49 = vpop.permute.xlu0 %3795 }
 0x30c   : > { %5982 = vrot.lane.b32.xlu0 %v7821_v8, %s6290_s14 }
 0x30d   : > { %v3786_v13 = vpop.permute.xlu1 %3785  ;;  %4382 = vrot.lane.b32.xlu1 %v7562_v43, %s6291_s16 }
 0x30e   : > { %3832 = vmatprep.subr.bf16.mxu0 %v3786_v13  ;;  %v3804_v25 = vsel %vm3799_vm3, %v8025_v35, %v3786_v13  ;;  %v2925_v35 = vsub.s32 %v8027_v7, %v2924_v42 }
 0x30f   : > { %3833 = vmatpush1.bf16.msra.mxu0 %v3804_v25  ;;  %v8090_v1 = vpop.permute.xlu0 %5712 }
 0x310   : > { %4392 = vrot.lane.b32.xlu0 %v7578_v19, %s6291_s16  ;;  %vm2942_vm9 = vcmp.ne.s32.totalorder %v2925_v35, 0  ;;  %vm2944_vm10 = vcmp.lt.s32.totalorder %v2925_v35, 0  ;;  %v2948_v28 = vadd.s32 14, %v2925_v35 }
 0x311   : > { %v3084_v58 = vpop.permute.xlu1 %3083  ;;  %5967 = vrot.lane.b32.xlu1 %v7872_v2, %s6290_s14  ;;  %vm2946_vm11 = vmand %vm2944_vm10, %vm2942_vm9  ;;  %vm4412_vm9 = vcmask 809984   ;;  %vm4562_vm10 = vcmask 801792  }
 0x312   : > { %3128 = vmatprep.subr.bf16.mxu1 %v3084_v58  ;;  %v3099_v59 = vsel %vm3093_vm2, %v8034_v4, %v3084_v58  ;;  %v2949_v4 = vadd.s32 14, %v2939_v32  ;;  %v2950_v25 = vsel %vm2946_vm11, %v2948_v28, %v2925_v35 }
 0x313   : > { %3129 = vmatpush1.bf16.msra.mxu1 %v3099_v59  ;;  %v8098_v40 = vpop.permute.xlu0 %5722  ;;  %vm2952_vm14 = vcmp.ge.s32.totalorder %v2950_v25, 1 }
 0x314   : > { %5992 = vrot.lane.b32.xlu0 %v7834_v16, %s6290_s14  ;;  %vm8143_vm15 = vmpackc.low %vm2952_vm14, %vm2952_vm14 }
 0x315   : > { %v3790_v62 = vpop.permute.xlu1 %3789  ;;  %4386 = vrot.lane.b32.xlu1 %v7598_v17, %s6291_s16 }
 0x316   : > { %3834 = vmatprep.subr.bf16.mxu0 %v3790_v62  ;;  %v3805_v2 = vsel %vm3799_vm3, %v8042_v3, %v3790_v62  ;;  %v2951_v3 = vsel %vm2947_vm8, %v2949_v4, %v2939_v32  ;;  %v6113_v32 = vld [vmem:[%s9427_s1 + $0x10] sm:$0xff]   ;;  %v5715_v62 = vunpack.i.h.bf16 %v8090_v1  ;;  %vm3575_vm8 = vcmask 932864  }
 0x317   : > { %3835 = vmatpush1.bf16.msra.mxu0 %v3805_v2  ;;  %v8107_v15 = vpop.permute.xlu0 %5732  ;;  %vm2953_vm12 = vcmp.ge.s32.totalorder %v2951_v3, 1  ;;  %v5714_v2 = vunpack.i.l.bf16 %v8090_v1  ;;  %v5725_v1 = vunpack.i.h.bf16 %v8098_v40 }
 0x318   : > { %4396 = vrot.lane.b32.xlu0 %v7614_v60, %s6291_s16  ;;  %vm8127_vm13 = vmpackc.low %vm2953_vm12, %vm2953_vm12 }
 0x319   : > { %v3088_v7 = vpop.permute.xlu1 %3087  ;;  %5977 = vrot.lane.b32.xlu1 %v7887_v14, %s6290_s14  ;;  %v3950_v28 = vsel %vm3949_vm0, %v5714_v2, %v5715_v62 }
 0x31a   : > { %3130 = vmatprep.subr.bf16.mxu1 %v3088_v7  ;;  %v3100_v46 = vsel %vm3093_vm2, %v8056_v9, %v3088_v7  ;;  %v5724_v7 = vunpack.i.l.bf16 %v8098_v40 }
 0x31b   : > { %3131 = vmatpush1.bf16.msra.mxu1 %v3100_v46  ;;  %v8115_v13 = vpop.permute.xlu0 %5742 }
 0x31c   : > { %6002 = vrot.lane.b32.xlu0 %v7849_v10, %s6290_s14 }
 0x31d   : > { %v3794_v55 = vpop.permute.xlu1 %3793  ;;  %4390 = vrot.lane.b32.xlu1 %v7638_v37, %s6291_s16 }
 0x31e   : > { %3836 = vmatprep.subr.bf16.mxu0 %v3794_v55  ;;  %v3806_v14 = vsel %vm3799_vm3, %v8064_v27, %v3794_v55 }
 0x31f   : > { %3837 = vmatpush1.bf16.msra.mxu0 %v3806_v14  ;;  %v8123_v9 = vpop.permute.xlu0 %5752 }
 0x320   : > { %4400 = vrot.lane.b32.xlu0 %v7656_v34, %s6291_s16 }
 0x321   : > { %v3092_v42 = vpop.permute.xlu1 %3091  ;;  %5987 = vrot.lane.b32.xlu1 %v7899_v26, %s6290_s14 }
 0x322   : > { %3132 = vmatprep.subr.bf16.mxu1 %v3092_v42  ;;  %v3101_v27 = vsel %vm3093_vm2, %v8073_v36, %v3092_v42  ;;  %vm2955_vm2 = vcmp.le.s32.totalorder %v2951_v3, 12 }
 0x323   : > { %3133 = vmatpush1.bf16.msra.mxu1 %v3101_v27  ;;  %v8138_v59 = vpop.permute.xlu0 %5762  ;;  %vm8177_vm4 = vmpackc.low %vm2955_vm2, %vm2955_vm2  ;;  %v3952_v27 = vsel %vm3949_vm0, %v5724_v7, %v5725_v1  ;;  %v5745_v7 = vunpack.i.h.bf16 %v8115_v13 }
 0x324   : > { %5140 = vmatprep.subr.msk.bf16.mxu1 %vm8127_vm13, %v7562_v43  ;;  %6012 = vrot.lane.b32.xlu0 %v7864_v23, %s6290_s14  ;;  %v6114_v43 = vld [vmem:[%s9427_s1 + $0x40] sm:$0xff]  }
 0x325   : > { %v3798_v26 = vpop.permute.xlu1 %3797  ;;  %4394 = vrot.lane.b32.xlu1 %v7679_v45, %s6291_s16 }
 0x326   : > { %3838 = vmatprep.subr.bf16.mxu0 %v3798_v26  ;;  %v3807_v36 = vsel %vm3799_vm3, %v8082_v49, %v3798_v26  ;;  %3151 = vmatmul.mubr.bf16.vlgmr.msra.gmra.mrb[0].mxu1 %v6113_v32  ;;  %vm2954_vm3 = vcmp.le.s32.totalorder %v2950_v25, 12  ;;  %v5735_v26 = vunpack.i.h.bf16 %v8107_v15 }
 0x327   : > { %3839 = vmatpush1.bf16.msra.mxu0 %v3807_v36  ;;  %5143 = vmatpush1.bf16.msk.msra.mxu1 %vm8143_vm15, %v7520_v5  ;;  %v8161_v4 = vpop.permute.xlu0 %5772  ;;  %vm8188_vm5 = vmpackc.low %vm2954_vm3, %vm2954_vm3  ;;  %v5734_v36 = vunpack.i.l.bf16 %v8107_v15 }
 0x328   : > { %5146 = vmatprep.subr.msk.bf16.mxu1 %vm8127_vm13, %v7598_v17  ;;  %3160 = vmatprep.mubr.bf16.mxu1 %v9483_v0  ;;  %v6115_v17 = vld [vmem:[%s9427_s1 + $0x18] sm:$0xff]  }
 0x329   : > { %v5718_v49 = vpop.permute.xlu1 %5717  ;;  %5997 = vrot.lane.b32.xlu1 %v7911_v18, %s6290_s14  ;;  %4404 = vrot.lane.b32.xlu0 %v7697_v63, %s6291_s16 }
 0x32a   : > { %v5720_v5 = vunpack.i.h.bf16 %v5718_v49  ;;  %v5719_v46 = vunpack.i.l.bf16 %v5718_v49  ;;  %3857 = vmatmul.mubr.bf16.vlgmr.msra.gmra.mrb[0].mxu0 %v6114_v43 }
 0x32b   : > { %5149 = vmatpush1.bf16.msk.msra.mxu1 %vm8143_vm15, %v7526_v6  ;;  %v8184_v18 = vpop.permute.xlu0 %5782  ;;  %3866 = vmatprep.mubr.bf16.mxu0 %v9483_v0 }
 0x32c   : > { %v3951_v40 = vsel %vm3949_vm0, %v5719_v46, %v5720_v5  ;;  %v5307_v55 = vpack.c.bf16 %v5720_v5, %v5715_v62  ;;  %5152 = vmatprep.subr.msk.bf16.mxu1 %vm8127_vm13, %v7638_v37  ;;  %v6116_v37 = vld [vmem:[%s9427_s1 + $0x48] sm:$0xff]   ;;  %v5744_v5 = vunpack.i.l.bf16 %v8115_v13  ;;  %v3954_v46 = vsel %vm3949_vm0, %v5734_v36, %v5735_v26 }
 0x32d   : > { %v5310_v25 = vpack.c.bf16 %v3951_v40, %v3950_v28  ;;  %v5728_v42 = vpop.permute.xlu1 %5727  ;;  %4398 = vrot.lane.b32.xlu1 %v7720_v12, %s6291_s16  ;;  %6022 = vrot.lane.b32.xlu0 %v7879_v48, %s6290_s14 }
 0x32e   : > { %v5730_v6 = vunpack.i.h.bf16 %v5728_v42  ;;  %v5729_v32 = vunpack.i.l.bf16 %v5728_v42  ;;  %5308 = vmatprep.subr.msk.bf16.mxu0 %vm8177_vm4, %v5307_v55  ;;  %3161 = vmatmul.mubr.bf16.gmra.mrb[4].mxu1 %v6115_v17  ;;  %v3956_v40 = vsel %vm3949_vm0, %v5744_v5, %v5745_v7 }
 0x32f   : > { %5311 = vmatpush1.bf16.msk.msra.mxu0 %vm8188_vm5, %v5310_v25  ;;  %5155 = vmatpush1.bf16.msk.msra.mxu1 %vm8143_vm15, %v7544_v11  ;;  %v8212_v62 = vpop.permute.xlu0 %5792  ;;  %v5754_v25 = vunpack.i.l.bf16 %v8123_v9 }
 0x330   : > { %v3953_v2 = vsel %vm3949_vm0, %v5729_v32, %v5730_v6  ;;  %v5313_v43 = vpack.c.bf16 %v5730_v6, %v5725_v1  ;;  %5158 = vmatprep.subr.msk.bf16.mxu1 %vm8127_vm13, %v7679_v45  ;;  %3215 = vmatprep.mubr.bf16.mxu1 %v9483_v0 }
 0x331   : > { %v5316_v15 = vpack.c.bf16 %v3953_v2, %v3952_v27  ;;  %v5738_v49 = vpop.permute.xlu1 %5737  ;;  %6007 = vrot.lane.b32.xlu1 %v7923_v30, %s6290_s14  ;;  %4408 = vrot.lane.b32.xlu0 %v7738_v52, %s6291_s16 }
 0x332   : > { %v5740_v11 = vunpack.i.h.bf16 %v5738_v49  ;;  %v5739_v1 = vunpack.i.l.bf16 %v5738_v49  ;;  %5314 = vmatprep.subr.msk.bf16.mxu0 %vm8177_vm4, %v5313_v43  ;;  %3867 = vmatmul.mubr.bf16.gmra.mrb[4].mxu0 %v6116_v37  ;;  %v5775_v49 = vunpack.i.h.bf16 %v8161_v4 }
 0x333   : > { %5317 = vmatpush1.bf16.msk.msra.mxu0 %vm8188_vm5, %v5316_v15  ;;  %5161 = vmatpush1.bf16.msk.msra.mxu1 %vm8143_vm15, %v7578_v19  ;;  %v8233_v45 = vpop.permute.xlu0 %5802 }
 0x334   : > { %v3955_v30 = vsel %vm3949_vm0, %v5739_v1, %v5740_v11  ;;  %v5319_v13 = vpack.c.bf16 %v5740_v11, %v5735_v26  ;;  %5164 = vmatprep.subr.msk.bf16.mxu1 %vm8127_vm13, %v7720_v12  ;;  %4095 = vmatprep.mubr.bf16.mxu0 %v9483_v0  ;;  %v5755_v12 = vunpack.i.h.bf16 %v8123_v9  ;;  %v5765_v9 = vunpack.i.h.bf16 %v8138_v59 }
 0x335   : > { %v5322_v28 = vpack.c.bf16 %v3955_v30, %v3954_v46  ;;  %v5748_v17 = vpop.permute.xlu1 %5747  ;;  %4402 = vrot.lane.b32.xlu1 %v7761_v47, %s6291_s16  ;;  %6032 = vrot.lane.b32.xlu0 %v7769_v29, %s6292_s29  ;;  %v5764_v26 = vunpack.i.l.bf16 %v8138_v59  ;;  %v5784_v46 = vunpack.i.l.bf16 %v8184_v18 }
 0x336   : > { %v5750_v19 = vunpack.i.h.bf16 %v5748_v17  ;;  %v5749_v55 = vunpack.i.l.bf16 %v5748_v17  ;;  %5320 = vmatprep.subr.msk.bf16.mxu0 %vm8177_vm4, %v5319_v13  ;;  %v3958_v37 = vsel %vm3949_vm0, %v5754_v25, %v5755_v12  ;;  %v6199_v17 = vld [vmem:[%s9426_s0 + $0x10] sm:$0xff] }
 0x337   : > { %5323 = vmatpush1.bf16.msk.msra.mxu0 %vm8188_vm5, %v5322_v28  ;;  %5167 = vmatpush1.bf16.msk.msra.mxu1 %vm8143_vm15, %v7614_v60  ;;  %v8254_v42 = vpop.permute.xlu0 %5812  ;;  %v3960_v43 = vsel %vm3949_vm0, %v5764_v26, %v5765_v9  ;;  %v6117_v28 = vld [vmem:[%s9427_s1] sm:$0xff]  }
 0x338   : > { %v3957_v29 = vsel %vm3949_vm0, %v5749_v55, %v5750_v19  ;;  %v5325_v27 = vpack.c.bf16 %v5750_v19, %v5745_v7  ;;  %5170 = vmatprep.subr.msk.bf16.mxu1 %vm8127_vm13, %v7761_v47  ;;  %v5774_v7 = vunpack.i.l.bf16 %v8161_v4  ;;  %v5785_v4 = vunpack.i.h.bf16 %v8184_v18 }
 0x339   : > { %v5328_v6 = vpack.c.bf16 %v3957_v29, %v3956_v40  ;;  %v5758_v32 = vpop.permute.xlu1 %5757  ;;  %6017 = vrot.lane.b32.xlu1 %v7935_v44, %s6290_s14  ;;  %6042 = vrot.lane.b32.xlu0 %v7789_v61, %s6292_s29  ;;  %v6200_v40 = vld [vmem:[%s9426_s0 + $0x18] sm:$0xff] }
 0x33a   : > { %v5760_v60 = vunpack.i.h.bf16 %v5758_v32  ;;  %v5759_v36 = vunpack.i.l.bf16 %v5758_v32  ;;  %5326 = vmatprep.subr.msk.bf16.mxu0 %vm8177_vm4, %v5325_v27  ;;  %v3962_v13 = vsel %vm3949_vm0, %v5774_v7, %v5775_v49  ;;  %v6036_v19 = vpack.i.bf16 %v6200_v40, %v6199_v17 }
 0x33b   : > { %5329 = vmatpush1.bf16.msk.msra.mxu0 %vm8188_vm5, %v5328_v6  ;;  %5173 = vmatpush1.bf16.msk.msra.mxu1 %vm8143_vm15, %v7656_v34  ;;  %v8274_v47 = vpop.permute.xlu0 %5822  ;;  %v3964_v25 = vsel %vm3949_vm0, %v5784_v46, %v5785_v4  ;;  %v5795_v27 = vunpack.i.h.bf16 %v8212_v62  ;;  %v5794_v6 = vunpack.i.l.bf16 %v8212_v62  ;;  %v6202_v62 = vld [vmem:[%s9426_s0 + $0x38] sm:$0xff] }
 0x33c   : > { %v3959_v44 = vsel %vm3949_vm0, %v5759_v36, %v5760_v60  ;;  %v5331_v59 = vpack.c.bf16 %v5760_v60, %v5755_v12  ;;  %5176 = vmatprep.subr.msk.bf16.mxu1 %vm8127_vm13, %v7796_v24  ;;  %v5825_v17 = vunpack.i.h.bf16 %v8274_v47  ;;  %v5824_v40 = vunpack.i.l.bf16 %v8274_v47  ;;  %v6120_v47 = vld [vmem:[%s9427_s1 + $0x58] sm:$0xff]  }
 0x33d   : > { %v5334_v61 = vpack.c.bf16 %v3959_v44, %v3958_v37  ;;  %v5768_v2 = vpop.permute.xlu1 %5767  ;;  %4406 = vrot.lane.b32.xlu1 %v7796_v24, %s6291_s16  ;;  %6052 = vrot.lane.b32.xlu0 %v7804_v38, %s6292_s29  ;;  %v5805_v37 = vunpack.i.h.bf16 %v8233_v45  ;;  %v5804_v44 = vunpack.i.l.bf16 %v8233_v45 }
 0x33e   : > { %v5770_v34 = vunpack.i.h.bf16 %v5768_v2  ;;  %v5769_v15 = vunpack.i.l.bf16 %v5768_v2  ;;  %5332 = vmatprep.subr.msk.bf16.mxu0 %vm8177_vm4, %v5331_v59  ;;  %v3337_v2 = vsel %vm3336_vm6, %v5794_v6, %v5795_v27 }
 0x33f   : > { %5335 = vmatpush1.bf16.msk.msra.mxu0 %vm8188_vm5, %v5334_v61  ;;  %5179 = vmatpush1.bf16.msk.msra.mxu1 %vm8143_vm15, %v7697_v63  ;;  %v8294_v24 = vpop.permute.xlu0 %5832 }
 0x340   : > { %v3961_v38 = vsel %vm3949_vm0, %v5769_v15, %v5770_v34  ;;  %v5337_v5 = vpack.c.bf16 %v5770_v34, %v5765_v9  ;;  %5182 = vmatprep.subr.msk.bf16.mxu1 %vm8127_vm13, %v7827_v56  ;;  %v6201_v9 = vld [vmem:[%s9426_s0 + $0x30] sm:$0xff] }
 0x341   : > { %v5340_v11 = vpack.c.bf16 %v3961_v38, %v3960_v43  ;;  %v5778_v1 = vpop.permute.xlu1 %5777  ;;  %6027 = vrot.lane.b32.xlu1 %v7946_v53, %s6290_s14  ;;  %6062 = vrot.lane.b32.xlu0 %v7821_v8, %s6292_s29  ;;  %v6046_v26 = vpack.i.bf16 %v6202_v62, %v6201_v9  ;;  %v6118_v43 = vld [vmem:[%s9427_s1 + $0x50] sm:$0xff]   ;;  %v6119_v38 = vld [vmem:[%s9427_s1 + $0x8] sm:$0xff]  }
 0x342   : > { %v5780_v63 = vunpack.i.h.bf16 %v5778_v1  ;;  %v5779_v30 = vunpack.i.l.bf16 %v5778_v1  ;;  %5338 = vmatprep.subr.msk.bf16.mxu0 %vm8177_vm4, %v5337_v5  ;;  %v6203_v15 = vld [vmem:[%s9426_s0 + $0x50] sm:$0xff]  ;;  %v4189_v1 = vsel %vm4188_vm7, %v5804_v44, %v5805_v37  ;;  %v6208_v62 = vld [vmem:[%s9426_s0 + $0x98] sm:$0xff]  ;;  %v5834_v44 = vunpack.i.l.bf16 %v8294_v24 }
 0x343   : > { %5341 = vmatpush1.bf16.msk.msra.mxu0 %vm8188_vm5, %v5340_v11  ;;  %5185 = vmatpush1.bf16.msk.msra.mxu1 %vm8143_vm15, %v7738_v52  ;;  %v8317_v53 = vpop.permute.xlu0 %5842  ;;  %v6207_v9 = vld [vmem:[%s9426_s0 + $0x90] sm:$0xff] }
 0x344   : > { %v3963_v8 = vsel %vm3949_vm0, %v5779_v30, %v5780_v63  ;;  %v5343_v18 = vpack.c.bf16 %v5780_v63, %v5775_v49  ;;  %v6204_v49 = vld [vmem:[%s9426_s0 + $0x58] sm:$0xff]  ;;  %v5815_v63 = vunpack.i.h.bf16 %v8254_v42  ;;  %v5814_v30 = vunpack.i.l.bf16 %v8254_v42  ;;  %v6205_v42 = vld [vmem:[%s9426_s0 + $0x70] sm:$0xff] }
 0x345   : > { %v5346_v55 = vpack.c.bf16 %v3963_v8, %v3962_v13  ;;  %v5788_v12 = vpop.permute.xlu1 %5787  ;;  %4410 = vrot.lane.b32.xlu1 %v7827_v56, %s6291_s16  ;;  %6072 = vrot.lane.b32.xlu0 %v7834_v16, %s6292_s29  ;;  %v6056_v7 = vpack.i.bf16 %v6204_v49, %v6203_v15  ;;  %v5844_v15 = vunpack.i.l.bf16 %v8317_v53  ;;  %v6210_v49 = vld [vmem:[%s9426_s0 + $0xb8] sm:$0xff] }
 0x346   : > { %v5790_v52 = vunpack.i.h.bf16 %v5788_v12  ;;  %v5789_v29 = vunpack.i.l.bf16 %v5788_v12  ;;  %5344 = vmatprep.subr.msk.bf16.mxu0 %vm8177_vm4, %v5343_v18  ;;  %3216 = vmatmul.mubr.bf16.vlgmr.msra.gmra.mrb[0].mxu1 %v6117_v28 }
 0x347   : > { %5347 = vmatpush1.bf16.msk.msra.mxu0 %vm8188_vm5, %v5346_v55  ;;  %v8337_v32 = vpop.permute.xlu0 %5852  ;;  %3225 = vmatprep.mubr.bf16.mxu1 %v9483_v0 }
 0x348   : > { %v3965_v56 = vsel %vm3949_vm0, %v5789_v29, %v5790_v52  ;;  %v5349_v16 = vpack.c.bf16 %v5790_v52, %v5785_v4  ;;  %v3339_v52 = vsel %vm3336_vm6, %v5814_v30, %v5815_v63 }
 0x349   : > { %v5352_v60 = vpack.c.bf16 %v3965_v56, %v3964_v25  ;;  %v5798_v36 = vpop.permute.xlu1 %5797  ;;  %6037 = vrot.lane.b32.xlu1 %v6036_v19, %s6292_s29  ;;  %6082 = vrot.lane.b32.xlu0 %v7849_v10, %s6292_s29  ;;  %v6206_v19 = vld [vmem:[%s9426_s0 + $0x78] sm:$0xff] }
 0x34a   : > { %v5800_v59 = vunpack.i.h.bf16 %v5798_v36  ;;  %v5799_v61 = vunpack.i.l.bf16 %v5798_v36  ;;  %5350 = vmatprep.subr.msk.bf16.mxu0 %vm8177_vm4, %v5349_v16  ;;  %v6066_v55 = vpack.i.bf16 %v6206_v19, %v6205_v42  ;;  %v4191_v16 = vsel %vm4188_vm7, %v5824_v40, %v5825_v17 }
 0x34b   : > { %5353 = vmatpush1.bf16.msk.msra.mxu0 %vm8188_vm5, %v5352_v60  ;;  %v8360_v45 = vpop.permute.xlu0 %5862  ;;  %v5855_v40 = vunpack.i.h.bf16 %v8337_v32  ;;  %v5854_v42 = vunpack.i.l.bf16 %v8337_v32  ;;  %v6213_v32 = vld [vmem:[%s9426_s0 + $0xf0] sm:$0xff] }
 0x34c   : > { %v3338_v34 = vsel %vm3336_vm6, %v5799_v61, %v5800_v59  ;;  %v5193_v10 = vpack.c.bf16 %v5800_v59, %v5795_v27 }
 0x34d   : > { %v5196_v5 = vpack.c.bf16 %v3338_v34, %v3337_v2  ;;  %v5808_v11 = vpop.permute.xlu1 %5807  ;;  %6047 = vrot.lane.b32.xlu1 %v6046_v26, %s6292_s29  ;;  %6092 = vrot.lane.b32.xlu0 %v7864_v23, %s6292_s29  ;;  %v6076_v26 = vpack.i.bf16 %v6208_v62, %v6207_v9  ;;  %v3343_v9 = vsel %vm3336_vm6, %v5854_v42, %v5855_v40 }
 0x34e   : > { %v5810_v4 = vunpack.i.h.bf16 %v5808_v11  ;;  %v5809_v46 = vunpack.i.l.bf16 %v5808_v11  ;;  %5194 = vmatprep.subr.msk.bf16.mxu1 %vm8177_vm4, %v5193_v10  ;;  %4096 = vmatmul.mubr.bf16.vlgmr.msra.gmra.mrb[0].mxu0 %v6118_v43  ;;  %v5845_v10 = vunpack.i.h.bf16 %v8317_v53 }
 0x34f   : > { %5197 = vmatpush1.bf16.msk.msra.mxu1 %vm8188_vm5, %v5196_v5  ;;  %v8382_v13 = vpop.permute.xlu0 %5872  ;;  %4105 = vmatprep.mubr.bf16.mxu0 %v9483_v0 }
 0x350   : > { %v4190_v28 = vsel %vm4188_vm7, %v5809_v46, %v5810_v4  ;;  %v5361_v23 = vpack.c.bf16 %v5810_v4, %v5805_v37  ;;  %3226 = vmatmul.mubr.bf16.gmra.mrb[4].mxu1 %v6119_v38  ;;  %v5835_v37 = vunpack.i.h.bf16 %v8294_v24  ;;  %v6209_v24 = vld [vmem:[%s9426_s0 + $0xb0] sm:$0xff]  ;;  %v4193_v30 = vsel %vm4188_vm7, %v5844_v15, %v5845_v10 }
 0x351   : > { %v5364_v8 = vpack.c.bf16 %v4190_v28, %v4189_v1  ;;  %v5818_v18 = vpop.permute.xlu1 %5817  ;;  %6057 = vrot.lane.b32.xlu1 %v6056_v7, %s6292_s29  ;;  %6102 = vrot.lane.b32.xlu0 %v7879_v48, %s6292_s29  ;;  %v6086_v7 = vpack.i.bf16 %v6210_v49, %v6209_v24  ;;  %v6211_v28 = vld [vmem:[%s9426_s0 + $0xd0] sm:$0xff] }
 0x352   : > { %v5820_v12 = vunpack.i.h.bf16 %v5818_v18  ;;  %v5819_v25 = vunpack.i.l.bf16 %v5818_v18  ;;  %5362 = vmatprep.subr.msk.bf16.mxu0 %vm8127_vm13, %v5361_v23  ;;  %3482 = vmatprep.mubr.bf16.mxu1 %v9483_v0  ;;  %v3341_v11 = vsel %vm3336_vm6, %v5834_v44, %v5835_v37  ;;  %v6212_v23 = vld [vmem:[%s9426_s0 + $0xd8] sm:$0xff] }
 0x353   : > { %5365 = vmatpush1.bf16.msk.msra.mxu0 %vm8143_vm15, %v5364_v8  ;;  %v8406_v29 = vpop.permute.xlu0 %5882  ;;  %v6096_v8 = vpack.i.bf16 %v6212_v23, %v6211_v28 }
 0x354   : > { %v3340_v48 = vsel %vm3336_vm6, %v5819_v25, %v5820_v12  ;;  %v5199_v27 = vpack.c.bf16 %v5820_v12, %v5815_v63 }
 0x355   : > { %v5202_v6 = vpack.c.bf16 %v3340_v48, %v3339_v52  ;;  %v5828_v56 = vpop.permute.xlu1 %5827  ;;  %6067 = vrot.lane.b32.xlu1 %v6066_v55, %s6292_s29  ;;  %v5864_v48 = vunpack.i.l.bf16 %v8360_v45 }
 0x356   : > { %v5830_v60 = vunpack.i.h.bf16 %v5828_v56  ;;  %v5829_v36 = vunpack.i.l.bf16 %v5828_v56  ;;  %5200 = vmatprep.subr.msk.bf16.mxu1 %vm8177_vm4, %v5199_v27  ;;  %4106 = vmatmul.mubr.bf16.gmra.mrb[4].mxu0 %v6120_v47  ;;  %v5865_v47 = vunpack.i.h.bf16 %v8360_v45  ;;  %v6214_v27 = vld [vmem:[%s9426_s0 + $0xf8] sm:$0xff] }
 0x357   : > { %5203 = vmatpush1.bf16.msk.msra.mxu1 %vm8188_vm5, %v5202_v6  ;;  %v8423_v59 = vpop.permute.xlu0 %5892  ;;  %4334 = vmatprep.mubr.bf16.mxu0 %v9483_v0  ;;  %v6106_v6 = vpack.i.bf16 %v6214_v27, %v6213_v32 }
 0x358   : > { %v4192_v61 = vsel %vm4188_vm7, %v5829_v36, %v5830_v60  ;;  %v5367_v2 = vpack.c.bf16 %v5830_v60, %v5825_v17 }
 0x359   : > { %v5370_v43 = vpack.c.bf16 %v4192_v61, %v4191_v16  ;;  %v5838_v34 = vpop.permute.xlu1 %5837  ;;  %6077 = vrot.lane.b32.xlu1 %v6076_v26, %s6292_s29 }
 0x35a   : > { %v5840_v38 = vunpack.i.h.bf16 %v5838_v34  ;;  %v5839_v5 = vunpack.i.l.bf16 %v5838_v34  ;;  %5368 = vmatprep.subr.msk.bf16.mxu0 %vm8127_vm13, %v5367_v2  ;;  %v5875_v2 = vunpack.i.h.bf16 %v8382_v13 }
 0x35b   : > { %5371 = vmatpush1.bf16.msk.msra.mxu0 %vm8143_vm15, %v5370_v43  ;;  %v8441_v53 = vpop.permute.xlu0 %5902  ;;  %v5874_v43 = vunpack.i.l.bf16 %v8382_v13 }
 0x35c   : > { %v3342_v1 = vsel %vm3336_vm6, %v5839_v5, %v5840_v38  ;;  %v5205_v4 = vpack.c.bf16 %v5840_v38, %v5835_v37  ;;  %v4195_v37 = vsel %vm4188_vm7, %v5864_v48, %v5865_v47  ;;  %v5884_v38 = vunpack.i.l.bf16 %v8406_v29 }
 0x35d   : > { %v5208_v46 = vpack.c.bf16 %v3342_v1, %v3341_v11  ;;  %v5848_v63 = vpop.permute.xlu1 %5847  ;;  %6087 = vrot.lane.b32.xlu1 %v6086_v7, %s6292_s29  ;;  %v5885_v7 = vunpack.i.h.bf16 %v8406_v29  ;;  %v3345_v1 = vsel %vm3336_vm6, %v5874_v43, %v5875_v2 }
 0x35e   : > { %v5850_v18 = vunpack.i.h.bf16 %v5848_v63  ;;  %v5849_v17 = vunpack.i.l.bf16 %v5848_v63  ;;  %5206 = vmatprep.subr.msk.bf16.mxu1 %vm8177_vm4, %v5205_v4 }
 0x35f   : > { %5209 = vmatpush1.bf16.msk.msra.mxu1 %vm8188_vm5, %v5208_v46  ;;  %v8458_v19 = vpop.permute.xlu0 %5912  ;;  %v4197_v28 = vsel %vm4188_vm7, %v5884_v38, %v5885_v7 }
 0x360   : > { %v4194_v55 = vsel %vm4188_vm7, %v5849_v17, %v5850_v18  ;;  %v5373_v12 = vpack.c.bf16 %v5850_v18, %v5845_v10  ;;  %v5894_v18 = vunpack.i.l.bf16 %v8423_v59 }
 0x361   : > { %v5376_v25 = vpack.c.bf16 %v4194_v55, %v4193_v30  ;;  %v5858_v52 = vpop.permute.xlu1 %5857  ;;  %6097 = vrot.lane.b32.xlu1 %v6096_v8, %s6292_s29  ;;  %v5895_v8 = vunpack.i.h.bf16 %v8423_v59 }
 0x362   : > { %v5860_v56 = vunpack.i.h.bf16 %v5858_v52  ;;  %v5859_v16 = vunpack.i.l.bf16 %v5858_v52  ;;  %5374 = vmatprep.subr.msk.bf16.mxu0 %vm8127_vm13, %v5373_v12  ;;  %v5904_v52 = vunpack.i.l.bf16 %v8441_v53 }
 0x363   : > { %5377 = vmatpush1.bf16.msk.msra.mxu0 %vm8143_vm15, %v5376_v25  ;;  %v8475_v45 = vpop.permute.xlu0 %5922  ;;  %v5905_v25 = vunpack.i.h.bf16 %v8441_v53  ;;  %v3347_v32 = vsel %vm3336_vm6, %v5894_v18, %v5895_v8 }
 0x364   : > { %v3344_v62 = vsel %vm3336_vm6, %v5859_v16, %v5860_v56  ;;  %v5211_v26 = vpack.c.bf16 %v5860_v56, %v5855_v40  ;;  %v5925_v43 = vunpack.i.h.bf16 %v8475_v45 }
 0x365   : > { %v5214_v60 = vpack.c.bf16 %v3344_v62, %v3343_v9  ;;  %v5868_v36 = vpop.permute.xlu1 %5867  ;;  %6107 = vrot.lane.b32.xlu1 %v6106_v6, %s6292_s29  ;;  %v4199_v9 = vsel %vm4188_vm7, %v5904_v52, %v5905_v25 }
 0x366   : > { %v5870_v44 = vunpack.i.h.bf16 %v5868_v36  ;;  %v5869_v61 = vunpack.i.l.bf16 %v5868_v36  ;;  %5212 = vmatprep.subr.msk.bf16.mxu1 %vm8177_vm4, %v5211_v26  ;;  %v5915_v26 = vunpack.i.h.bf16 %v8458_v19 }
 0x367   : > { %5215 = vmatpush1.bf16.msk.msra.mxu1 %vm8188_vm5, %v5214_v60  ;;  %v8486_v34 = vpop.permute.xlu0 %5932  ;;  %v5914_v60 = vunpack.i.l.bf16 %v8458_v19 }
 0x368   : > { %v4196_v10 = vsel %vm4188_vm7, %v5869_v61, %v5870_v44  ;;  %v5379_v15 = vpack.c.bf16 %v5870_v44, %v5865_v47 }
 0x369   : > { %v5382_v24 = vpack.c.bf16 %v4196_v10, %v4195_v37  ;;  %v5878_v49 = vpop.permute.xlu1 %5877  ;;  %v5924_v10 = vunpack.i.l.bf16 %v8475_v45 }
 0x36a   : > { %v5880_v5 = vunpack.i.h.bf16 %v5878_v49  ;;  %v5879_v11 = vunpack.i.l.bf16 %v5878_v49  ;;  %5380 = vmatprep.subr.msk.bf16.mxu0 %vm8127_vm13, %v5379_v15  ;;  %v3349_v49 = vsel %vm3336_vm6, %v5914_v60, %v5915_v26 }
 0x36b   : > { %5383 = vmatpush1.bf16.msk.msra.mxu0 %vm8143_vm15, %v5382_v24  ;;  %v8496_v13 = vpop.permute.xlu0 %5942 }
 0x36c   : > { %v3346_v4 = vsel %vm3336_vm6, %v5879_v11, %v5880_v5  ;;  %v5217_v46 = vpack.c.bf16 %v5880_v5, %v5875_v2  ;;  %v5945_v18 = vunpack.i.h.bf16 %v8496_v13 }
 0x36d   : > { %v5220_v63 = vpack.c.bf16 %v3346_v4, %v3345_v1  ;;  %v5888_v30 = vpop.permute.xlu1 %5887  ;;  %v4201_v1 = vsel %vm4188_vm7, %v5924_v10, %v5925_v43 }
 0x36e   : > { %v5890_v29 = vunpack.i.h.bf16 %v5888_v30  ;;  %v5889_v23 = vunpack.i.l.bf16 %v5888_v30  ;;  %5218 = vmatprep.subr.msk.bf16.mxu1 %vm8177_vm4, %v5217_v46  ;;  %v5935_v46 = vunpack.i.h.bf16 %v8486_v34 }
 0x36f   : > { %5221 = vmatpush1.bf16.msk.msra.mxu1 %vm8188_vm5, %v5220_v63  ;;  %v8506_v17 = vpop.permute.xlu0 %5952  ;;  %v5934_v63 = vunpack.i.l.bf16 %v8486_v34 }
 0x370   : > { %v4198_v40 = vsel %vm4188_vm7, %v5889_v23, %v5890_v29  ;;  %v5385_v42 = vpack.c.bf16 %v5890_v29, %v5885_v7 }
 0x371   : > { %v5388_v55 = vpack.c.bf16 %v4198_v40, %v4197_v28  ;;  %v5898_v12 = vpop.permute.xlu1 %5897  ;;  %v5944_v40 = vunpack.i.l.bf16 %v8496_v13 }
 0x372   : > { %v5900_v47 = vunpack.i.h.bf16 %v5898_v12  ;;  %v5899_v48 = vunpack.i.l.bf16 %v5898_v12  ;;  %5386 = vmatprep.subr.msk.bf16.mxu0 %vm8127_vm13, %v5385_v42  ;;  %v3351_v12 = vsel %vm3336_vm6, %v5934_v63, %v5935_v46 }
 0x373   : > { %5389 = vmatpush1.bf16.msk.msra.mxu0 %vm8143_vm15, %v5388_v55  ;;  %v8516_v59 = vpop.permute.xlu0 %4380 }
 0x374   : > { %v3348_v27 = vsel %vm3336_vm6, %v5899_v48, %v5900_v47  ;;  %v5223_v6 = vpack.c.bf16 %v5900_v47, %v5895_v8 }
 0x375   : > { %v5226_v56 = vpack.c.bf16 %v3348_v27, %v3347_v32  ;;  %v5908_v16 = vpop.permute.xlu1 %5907  ;;  %v4203_v32 = vsel %vm4188_vm7, %v5944_v40, %v5945_v18 }
 0x376   : > { %v5910_v53 = vunpack.i.h.bf16 %v5908_v16  ;;  %v5909_v62 = vunpack.i.l.bf16 %v5908_v16  ;;  %5224 = vmatprep.subr.msk.bf16.mxu1 %vm8177_vm4, %v5223_v6  ;;  %v5955_v6 = vunpack.i.h.bf16 %v8506_v17  ;;  %v6121_v16 = vld [vmem:[%s9427_s1 + $0x20] sm:$0xff]  }
 0x377   : > { %5227 = vmatpush1.bf16.msk.msra.mxu1 %vm8188_vm5, %v5226_v56  ;;  %v8526_v36 = vpop.permute.xlu0 %5962  ;;  %v5954_v56 = vunpack.i.l.bf16 %v8506_v17  ;;  %v6122_v17 = vld [vmem:[%s9427_s1 + $0x60] sm:$0xff]  }
 0x378   : > { %v4200_v37 = vsel %vm4188_vm7, %v5909_v62, %v5910_v53  ;;  %v5391_v44 = vpack.c.bf16 %v5910_v53, %v5905_v25 }
 0x379   : > { %v5394_v61 = vpack.c.bf16 %v4200_v37, %v4199_v9  ;;  %v5918_v2 = vpop.permute.xlu1 %5917 }
 0x37a   : > { %v5920_v15 = vunpack.i.h.bf16 %v5918_v2  ;;  %v5919_v24 = vunpack.i.l.bf16 %v5918_v2  ;;  %5392 = vmatprep.subr.msk.bf16.mxu0 %vm8127_vm13, %v5391_v44 }
 0x37b   : > { %5395 = vmatpush1.bf16.msk.msra.mxu0 %vm8143_vm15, %v5394_v61  ;;  %v8536_v19 = vpop.permute.xlu0 %4384  ;;  %v3576_v61 = vsel %vm3575_vm8, %v5954_v56, %v5955_v6 }
 0x37c   : > { %v3350_v7 = vsel %vm3336_vm6, %v5919_v24, %v5920_v15  ;;  %v5229_v38 = vpack.c.bf16 %v5920_v15, %v5915_v26 }
 0x37d   : > { %v5232_v5 = vpack.c.bf16 %v3350_v7, %v3349_v49  ;;  %v5928_v11 = vpop.permute.xlu1 %5927  ;;  %v5965_v7 = vunpack.i.h.bf16 %v8526_v36 }
 0x37e   : > { %v5930_v45 = vunpack.i.h.bf16 %v5928_v11  ;;  %v5929_v4 = vunpack.i.l.bf16 %v5928_v11  ;;  %5230 = vmatprep.subr.msk.bf16.mxu1 %vm8177_vm4, %v5229_v38  ;;  %v5964_v38 = vunpack.i.l.bf16 %v8526_v36 }
 0x37f   : > { %5233 = vmatpush1.bf16.msk.msra.mxu1 %vm8188_vm5, %v5232_v5  ;;  %v8546_v30 = vpop.permute.xlu0 %5972  ;;  %v6123_v5 = vld [vmem:[%s9427_s1 + $0x28] sm:$0xff]  }
 0x380   : > { %v4202_v28 = vsel %vm4188_vm7, %v5929_v4, %v5930_v45  ;;  %v5397_v29 = vpack.c.bf16 %v5930_v45, %v5925_v43  ;;  %v3578_v4 = vsel %vm3575_vm8, %v5964_v38, %v5965_v7  ;;  %v5974_v40 = vunpack.i.l.bf16 %v8546_v30 }
 0x381   : > { %v5400_v23 = vpack.c.bf16 %v4202_v28, %v4201_v1  ;;  %v5938_v8 = vpop.permute.xlu1 %5937  ;;  %v6124_v28 = vld [vmem:[%s9427_s1 + $0x68] sm:$0xff]  }
 0x382   : > { %v5940_v42 = vunpack.i.h.bf16 %v5938_v8  ;;  %v5939_v55 = vunpack.i.l.bf16 %v5938_v8  ;;  %5398 = vmatprep.subr.msk.bf16.mxu0 %vm8127_vm13, %v5397_v29 }
 0x383   : > { %5401 = vmatpush1.bf16.msk.msra.mxu0 %vm8143_vm15, %v5400_v23  ;;  %v8556_v34 = vpop.permute.xlu0 %4388 }
 0x384   : > { %v3352_v25 = vsel %vm3336_vm6, %v5939_v55, %v5940_v42  ;;  %v5235_v52 = vpack.c.bf16 %v5940_v42, %v5935_v46 }
 0x385   : > { %v5238_v47 = vpack.c.bf16 %v3352_v25, %v3351_v12  ;;  %v5948_v48 = vpop.permute.xlu1 %5947 }
 0x386   : > { %v5950_v13 = vunpack.i.h.bf16 %v5948_v48  ;;  %v5949_v27 = vunpack.i.l.bf16 %v5948_v48  ;;  %5236 = vmatprep.subr.msk.bf16.mxu1 %vm8177_vm4, %v5235_v52 }
 0x387   : > { %5239 = vmatpush1.bf16.msk.msra.mxu1 %vm8188_vm5, %v5238_v47  ;;  %v8569_v9 = vpop.permute.xlu0 %5982 }
 0x388   : > { %v4204_v53 = vsel %vm4188_vm7, %v5949_v27, %v5950_v13  ;;  %v5403_v62 = vpack.c.bf16 %v5950_v13, %v5945_v18  ;;  %v5975_v18 = vunpack.i.h.bf16 %v8546_v30  ;;  %v5985_v27 = vunpack.i.h.bf16 %v8569_v9 }
 0x389   : > { %v5406_v26 = vpack.c.bf16 %v4204_v53, %v4203_v32  ;;  %v5958_v60 = vpop.permute.xlu1 %5957 }
 0x38a   : > { %v5960_v37 = vunpack.i.h.bf16 %v5958_v60  ;;  %v5959_v44 = vunpack.i.l.bf16 %v5958_v60  ;;  %5404 = vmatprep.subr.msk.bf16.mxu0 %vm8127_vm13, %v5403_v62  ;;  %3483 = vmatmul.mubr.bf16.vlgmr.msra.gmra.mrb[0].mxu1 %v6121_v16 }
 0x38b   : > { %5407 = vmatpush1.bf16.msk.msra.mxu0 %vm8143_vm15, %v5406_v26  ;;  %v8580_v2 = vpop.permute.xlu0 %4392  ;;  %3492 = vmatprep.mubr.bf16.mxu1 %v9483_v0 }
 0x38c   : > { %v3577_v43 = vsel %vm3575_vm8, %v5959_v44, %v5960_v37  ;;  %v5247_v10 = vpack.c.bf16 %v5960_v37, %v5955_v6  ;;  %v5984_v6 = vunpack.i.l.bf16 %v8569_v9 }
 0x38d   : > { %v5250_v15 = vpack.c.bf16 %v3577_v43, %v3576_v61  ;;  %v4383_v24 = vpop.permute.xlu1 %4382 }
 0x38e   : > { %v4413_v49 = vsel %vm4412_vm9, %v8516_v59, %v4383_v24  ;;  %5248 = vmatprep.subr.msk.bf16.mxu1 %vm8127_vm13, %v5247_v10  ;;  %4437 = vmatprep.subr.bf16.mxu0 %v4383_v24  ;;  %v3582_v26 = vsel %vm3575_vm8, %v5984_v6, %v5985_v27 }
 0x38f   : > { %5251 = vmatpush1.bf16.msk.msra.mxu1 %vm8143_vm15, %v5250_v15  ;;  %4335 = vmatmul.mubr.bf16.vlgmr.msra.gmra.mrb[0].mxu0 %v6122_v17  ;;  %v8595_v11 = vpop.permute.xlu0 %5992 }
 0x390   : > { %4438 = vmatpush1.bf16.msra.mxu0 %v4413_v49  ;;  %4344 = vmatprep.mubr.bf16.mxu0 %v9483_v0  ;;  %v5995_v9 = vunpack.i.h.bf16 %v8595_v11  ;;  %v5994_v43 = vunpack.i.l.bf16 %v8595_v11 }
 0x391   : > { %v5968_v59 = vpop.permute.xlu1 %5967 }
 0x392   : > { %v5970_v1 = vunpack.i.h.bf16 %v5968_v59  ;;  %v5969_v45 = vunpack.i.l.bf16 %v5968_v59  ;;  %3493 = vmatmul.mubr.bf16.gmra.mrb[4].mxu1 %v6123_v5 }
 0x393   : > { %v4397_v36 = vpop.permute.xlu0 %4396  ;;  %3721 = vmatprep.mubr.bf16.mxu1 %v9483_v0 }
 0x394   : > { %v3579_v46 = vsel %vm3575_vm8, %v5969_v45, %v5970_v1  ;;  %v5253_v63 = vpack.c.bf16 %v5970_v1, %v5965_v7  ;;  %v3584_v7 = vsel %vm3575_vm8, %v5994_v43, %v5995_v9 }
 0x395   : > { %v5256_v29 = vpack.c.bf16 %v3579_v46, %v3578_v4  ;;  %v4387_v23 = vpop.permute.xlu1 %4386 }
 0x396   : > { %v4414_v8 = vsel %vm4412_vm9, %v8536_v19, %v4387_v23  ;;  %5254 = vmatprep.subr.msk.bf16.mxu1 %vm8127_vm13, %v5253_v63  ;;  %4439 = vmatprep.subr.bf16.mxu0 %v4387_v23  ;;  %v3580_v19 = vsel %vm3575_vm8, %v5974_v40, %v5975_v18 }
 0x397   : > { %5257 = vmatpush1.bf16.msk.msra.mxu1 %vm8143_vm15, %v5256_v29  ;;  %4440 = vmatpush1.bf16.msra.mxu0 %v4414_v8  ;;  %v6003_v42 = vpop.permute.xlu0 %6002 }
 0x398   : > { %4345 = vmatmul.mubr.bf16.gmra.mrb[4].mxu0 %v6124_v28  ;;  %v6005_v11 = vunpack.i.h.bf16 %v6003_v42  ;;  %v6004_v45 = vunpack.i.l.bf16 %v6003_v42 }
 0x399   : > { %v5978_v55 = vpop.permute.xlu1 %5977  ;;  %4469 = vmatprep.mubr.bf16.mxu0 %v9483_v0 }
 0x39a   : > { %v5980_v12 = vunpack.i.h.bf16 %v5978_v55  ;;  %v5979_v25 = vunpack.i.l.bf16 %v5978_v55  ;;  %v3586_v29 = vsel %vm3575_vm8, %v6004_v45, %v6005_v11 }
 0x39b   : > { %v4401_v52 = vpop.permute.xlu0 %4400 }
 0x39c   : > { %v3581_v47 = vsel %vm3575_vm8, %v5979_v25, %v5980_v12  ;;  %v5259_v48 = vpack.c.bf16 %v5980_v12, %v5975_v18 }
 0x39d   : > { %v5262_v32 = vpack.c.bf16 %v3581_v47, %v3580_v19  ;;  %v4391_v13 = vpop.permute.xlu1 %4390 }
 0x39e   : > { %v4415_v30 = vsel %vm4412_vm9, %v8556_v34, %v4391_v13  ;;  %5260 = vmatprep.subr.msk.bf16.mxu1 %vm8127_vm13, %v5259_v48  ;;  %4441 = vmatprep.subr.bf16.mxu0 %v4391_v13 }
 0x39f   : > { %5263 = vmatpush1.bf16.msk.msra.mxu1 %vm8143_vm15, %v5262_v32  ;;  %4442 = vmatpush1.bf16.msra.mxu0 %v4415_v30  ;;  %v6013_v56 = vpop.permute.xlu0 %6012 }
 0x3a0   : > { %v6015_v42 = vunpack.i.h.bf16 %v6013_v56  ;;  %v6014_v12 = vunpack.i.l.bf16 %v6013_v56 }
 0x3a1   : > { %v5988_v16 = vpop.permute.xlu1 %5987 }
 0x3a2   : > { %v5990_v53 = vunpack.i.h.bf16 %v5988_v16  ;;  %v5989_v62 = vunpack.i.l.bf16 %v5988_v16  ;;  %v3588_v48 = vsel %vm3575_vm8, %v6014_v12, %v6015_v42 }
 0x3a3   : > { %v4405_v60 = vpop.permute.xlu0 %4404 }
 0x3a4   : > { %v3583_v34 = vsel %vm3575_vm8, %v5989_v62, %v5990_v53  ;;  %v5265_v37 = vpack.c.bf16 %v5990_v53, %v5985_v27 }
 0x3a5   : > { %v5268_v44 = vpack.c.bf16 %v3583_v34, %v3582_v26  ;;  %v4395_v61 = vpop.permute.xlu1 %4394 }
 0x3a6   : > { %v4416_v17 = vsel %vm4412_vm9, %v8580_v2, %v4395_v61  ;;  %5266 = vmatprep.subr.msk.bf16.mxu1 %vm8127_vm13, %v5265_v37  ;;  %4443 = vmatprep.subr.bf16.mxu0 %v4395_v61 }
 0x3a7   : > { %5269 = vmatpush1.bf16.msk.msra.mxu1 %vm8143_vm15, %v5268_v44  ;;  %4444 = vmatpush1.bf16.msra.mxu0 %v4416_v17  ;;  %v6023_v15 = vpop.permute.xlu0 %6022 }
 0x3a8   : > { %v6025_v56 = vunpack.i.h.bf16 %v6023_v15  ;;  %v6024_v16 = vunpack.i.l.bf16 %v6023_v15  ;;  %v6125_v15 = vld [vmem:[%s9427_s1 + $0x30] sm:$0xff]  }
 0x3a9   : > { %v5998_v10 = vpop.permute.xlu1 %5997 }
 0x3aa   : > { %v6000_v24 = vunpack.i.h.bf16 %v5998_v10  ;;  %v5999_v49 = vunpack.i.l.bf16 %v5998_v10  ;;  %v3590_v37 = vsel %vm3575_vm8, %v6024_v16, %v6025_v56 }
 0x3ab   : > { %v4409_v4 = vpop.permute.xlu0 %4408 }
 0x3ac   : > { %v3585_v2 = vsel %vm3575_vm8, %v5999_v49, %v6000_v24  ;;  %v5271_v38 = vpack.c.bf16 %v6000_v24, %v5995_v9  ;;  %v6126_v24 = vld [vmem:[%s9427_s1 + $0x70] sm:$0xff]  }
 0x3ad   : > { %v5274_v5 = vpack.c.bf16 %v3585_v2, %v3584_v7  ;;  %v4399_v59 = vpop.permute.xlu1 %4398 }
 0x3ae   : > { %v4417_v1 = vsel %vm4412_vm9, %v4397_v36, %v4399_v59  ;;  %5272 = vmatprep.subr.msk.bf16.mxu1 %vm8127_vm13, %v5271_v38  ;;  %4445 = vmatprep.subr.bf16.mxu0 %v4399_v59 }
 0x3af   : > { %5275 = vmatpush1.bf16.msk.msra.mxu1 %vm8143_vm15, %v5274_v5  ;;  %4446 = vmatpush1.bf16.msra.mxu0 %v4417_v1  ;;  %v6033_v40 = vpop.permute.xlu0 %6032 }
 0x3b0   : > { %v6035_v9 = vunpack.i.h.bf16 %v6033_v40  ;;  %v6034_v43 = vunpack.i.l.bf16 %v6033_v40 }
 0x3b1   : > { %v6008_v46 = vpop.permute.xlu1 %6007 }
 0x3b2   : > { %v6010_v63 = vunpack.i.h.bf16 %v6008_v46  ;;  %v6009_v28 = vunpack.i.l.bf16 %v6008_v46  ;;  %v4563_v2 = vsel %vm4562_vm10, %v6034_v43, %v6035_v9 }
 0x3b3   : > { %v6043_v32 = vpop.permute.xlu0 %6042 }
 0x3b4   : > { %v3587_v23 = vsel %vm3575_vm8, %v6009_v28, %v6010_v63  ;;  %v5277_v8 = vpack.c.bf16 %v6010_v63, %v6005_v11  ;;  %v6045_v5 = vunpack.i.h.bf16 %v6043_v32  ;;  %v6044_v59 = vunpack.i.l.bf16 %v6043_v32 }
 0x3b5   : > { %v5280_v36 = vpack.c.bf16 %v3587_v23, %v3586_v29  ;;  %v4403_v18 = vpop.permute.xlu1 %4402 }
 0x3b6   : > { %v4418_v55 = vsel %vm4412_vm9, %v4401_v52, %v4403_v18  ;;  %5278 = vmatprep.subr.msk.bf16.mxu1 %vm8127_vm13, %v5277_v8  ;;  %4447 = vmatprep.subr.bf16.mxu0 %v4403_v18  ;;  %v4565_v23 = vsel %vm4562_vm10, %v6044_v59, %v6045_v5  ;;  %v6127_v8 = vld [vmem:[%s9427_s1 + $0x38] sm:$0xff]  }
 0x3b7   : > { %5281 = vmatpush1.bf16.msk.msra.mxu1 %vm8143_vm15, %v5280_v36  ;;  %4448 = vmatpush1.bf16.msra.mxu0 %v4418_v55  ;;  %v6053_v62 = vpop.permute.xlu0 %6052  ;;  %v6128_v36 = vld [vmem:[%s9427_s1 + $0x78] sm:$0xff]  }
 0x3b8   : > { %v6054_v46 = vunpack.i.l.bf16 %v6053_v62 }
 0x3b9   : > { %v6018_v25 = vpop.permute.xlu1 %6017 }
 0x3ba   : > { %v6020_v19 = vunpack.i.h.bf16 %v6018_v25  ;;  %v6019_v47 = vunpack.i.l.bf16 %v6018_v25 }
 0x3bb   : > { %v6063_v49 = vpop.permute.xlu0 %6062 }
 0x3bc   : > { %v3589_v13 = vsel %vm3575_vm8, %v6019_v47, %v6020_v19  ;;  %v5283_v30 = vpack.c.bf16 %v6020_v19, %v6015_v42  ;;  %v6065_v47 = vunpack.i.h.bf16 %v6063_v49 }
 0x3bd   : > { %v5286_v52 = vpack.c.bf16 %v3589_v13, %v3588_v48  ;;  %v4407_v27 = vpop.permute.xlu1 %4406  ;;  %v6064_v48 = vunpack.i.l.bf16 %v6063_v49 }
 0x3be   : > { %v4419_v6 = vsel %vm4412_vm9, %v4405_v60, %v4407_v27  ;;  %5284 = vmatprep.subr.msk.bf16.mxu1 %vm8127_vm13, %v5283_v30  ;;  %4449 = vmatprep.subr.bf16.mxu0 %v4407_v27 }
 0x3bf   : > { %5287 = vmatpush1.bf16.msk.msra.mxu1 %vm8143_vm15, %v5286_v52  ;;  %4450 = vmatpush1.bf16.msra.mxu0 %v4419_v6  ;;  %v6073_v63 = vpop.permute.xlu0 %6072 }
 0x3c0   : > { %v6075_v6 = vunpack.i.h.bf16 %v6073_v63 }
 0x3c1   : > { %v6028_v53 = vpop.permute.xlu1 %6027 }
 0x3c2   : > { %v6030_v26 = vunpack.i.h.bf16 %v6028_v53  ;;  %v6029_v34 = vunpack.i.l.bf16 %v6028_v53 }
 0x3c3   : > { %v6083_v32 = vpop.permute.xlu0 %6082 }
 0x3c4   : > { %v3591_v44 = vsel %vm3575_vm8, %v6029_v34, %v6030_v26  ;;  %v5289_v61 = vpack.c.bf16 %v6030_v26, %v6025_v56  ;;  %v6074_v56 = vunpack.i.l.bf16 %v6073_v63  ;;  %v6084_v43 = vunpack.i.l.bf16 %v6083_v32 }
 0x3c5   : > { %v5292_v60 = vpack.c.bf16 %v3591_v44, %v3590_v37  ;;  %v4411_v17 = vpop.permute.xlu1 %4410 }
 0x3c6   : > { %v4420_v10 = vsel %vm4412_vm9, %v4409_v4, %v4411_v17  ;;  %5290 = vmatprep.subr.msk.bf16.mxu1 %vm8127_vm13, %v5289_v61  ;;  %4451 = vmatprep.subr.bf16.mxu0 %v4411_v17  ;;  %v6055_v4 = vunpack.i.h.bf16 %v6053_v62  ;;  %v4569_v62 = vsel %vm4562_vm10, %v6064_v48, %v6065_v47  ;;  %v4571_v44 = vsel %vm4562_vm10, %v6074_v56, %v6075_v6  ;;  %v6130_v48 = vld [vmem:[%s9427_s1 + $0x88] sm:$0xff]  }
 0x3c7   : > { %5293 = vmatpush1.bf16.msk.msra.mxu1 %vm8143_vm15, %v5292_v60  ;;  %4452 = vmatpush1.bf16.msra.mxu0 %v4420_v10  ;;  %v6093_v61 = vpop.permute.xlu0 %6092 }
 0x3c8   : > { %v4567_v12 = vsel %vm4562_vm10, %v6054_v46, %v6055_v4 }
 0x3c9   : > { %v6038_v7 = vpop.permute.xlu1 %6037 }
 0x3ca   : > { %v6040_v58 = vunpack.i.h.bf16 %v6038_v7  ;;  %v6039_v38 = vunpack.i.l.bf16 %v6038_v7  ;;  %3722 = vmatmul.mubr.bf16.vlgmr.msra.gmra.mrb[0].mxu1 %v6125_v15  ;;  %4470 = vmatmul.mubr.bf16.vlgmr.msra.gmra.mrb[0].mxu0 %v6126_v24  ;;  %v6095_v7 = vunpack.i.h.bf16 %v6093_v61 }
 0x3cb   : > { %3731 = vmatprep.mubr.bf16.mxu1 %v9483_v0  ;;  %4479 = vmatprep.mubr.bf16.mxu0 %v9483_v0  ;;  %v6103_v59 = vpop.permute.xlu0 %6102 }
 0x3cc   : > { %v4564_v1 = vsel %vm4562_vm10, %v6039_v38, %v6040_v58  ;;  %v5421_v11 = vpack.c.bf16 %v6040_v58, %v6035_v9  ;;  %v6085_v9 = vunpack.i.h.bf16 %v6083_v32 }
 0x3cd   : > { %v5424_v35 = vpack.c.bf16 %v4564_v1, %v4563_v2  ;;  %v6048_v45 = vpop.permute.xlu1 %6047  ;;  %v6094_v2 = vunpack.i.l.bf16 %v6093_v61 }
 0x3ce   : > { %v6050_v28 = vunpack.i.h.bf16 %v6048_v45  ;;  %v6049_v29 = vunpack.i.l.bf16 %v6048_v45  ;;  %5422 = vmatprep.subr.msk.bf16.mxu0 %vm8177_vm4, %v5421_v11  ;;  %5471 = vmatprep.subr.msk.bf16.mxu1 %vm8177_vm4, %v5421_v11 }
 0x3cf   : > { %5425 = vmatpush1.bf16.msk.msra.mxu0 %vm8188_vm5, %v5424_v35  ;;  %5479 = vmatpush1.bf16.msk.msra.mxu1 %vm8188_vm5, %v5424_v35 }
 0x3d0   : > { %v4566_v18 = vsel %vm4562_vm10, %v6049_v29, %v6050_v28  ;;  %v5427_v40 = vpack.c.bf16 %v6050_v28, %v6045_v5  ;;  %v4573_v5 = vsel %vm4562_vm10, %v6084_v43, %v6085_v9  ;;  %v6105_v28 = vunpack.i.h.bf16 %v6103_v59 }
 0x3d1   : > { %v5430_v55 = vpack.c.bf16 %v4566_v18, %v4565_v23  ;;  %v6058_v42 = vpop.permute.xlu1 %6057  ;;  %v6104_v29 = vunpack.i.l.bf16 %v6103_v59 }
 0x3d2   : > { %v6060_v25 = vunpack.i.h.bf16 %v6058_v42  ;;  %v6059_v19 = vunpack.i.l.bf16 %v6058_v42  ;;  %3732 = vmatmul.mubr.bf16.gmra.mrb[4].mxu1 %v6127_v8  ;;  %4480 = vmatmul.mubr.bf16.gmra.mrb[4].mxu0 %v6128_v36 }
 0x3d3   : > { %5428 = vmatprep.subr.msk.bf16.mxu0 %vm8177_vm4, %v5427_v40  ;;  %5472 = vmatprep.subr.msk.bf16.mxu1 %vm8177_vm4, %v5427_v40  ;;  %v4577_v42 = vsel %vm4562_vm10, %v6104_v29, %v6105_v28  ;;  %v4894_v29 = vld [vmem:[%s9436_s10 + $0x28] sm:$0xff] }
 0x3d4   : > { %v4568_v13 = vsel %vm4562_vm10, %v6059_v19, %v6060_v25  ;;  %v5433_v30 = vpack.c.bf16 %v6060_v25, %v6055_v4  ;;  %5431 = vmatpush1.bf16.msk.msra.mxu0 %vm8188_vm5, %v5430_v55  ;;  %5480 = vmatpush1.bf16.msk.msra.mxu1 %vm8188_vm5, %v5430_v55  ;;  %v4575_v4 = vsel %vm4562_vm10, %v6094_v2, %v6095_v7 }
 0x3d5   : > { %v5436_v52 = vpack.c.bf16 %v4568_v13, %v4567_v12  ;;  %v6068_v27 = vpop.permute.xlu1 %6067  ;;  %4708 = vmatprep.mubr.bf16.mxu0 %v9483_v0  ;;  %4718 = vmatprep.mubr.bf16.mxu1 %v9483_v0 }
 0x3d6   : > { %v6070_v16 = vunpack.i.h.bf16 %v6068_v27  ;;  %v6069_v53 = vunpack.i.l.bf16 %v6068_v27  ;;  %5434 = vmatprep.subr.msk.bf16.mxu0 %vm8177_vm4, %v5433_v30  ;;  %5473 = vmatprep.subr.msk.bf16.mxu1 %vm8177_vm4, %v5433_v30 }
 0x3d8   : > { %v4570_v26 = vsel %vm4562_vm10, %v6069_v53, %v6070_v16  ;;  %v5439_v34 = vpack.c.bf16 %v6070_v16, %v6065_v47  ;;  %5437 = vmatpush1.bf16.msk.msra.mxu0 %vm8188_vm5, %v5436_v52  ;;  %5481 = vmatpush1.bf16.msk.msra.mxu1 %vm8188_vm5, %v5436_v52  ;;  %v6129_v47 = vld [vmem:[%s9427_s1 + $0x80] sm:$0xff]  }
 0x3d9   : > { %v5442_v0 = vpack.c.bf16 %v4570_v26, %v4569_v62  ;;  %v6078_v37 = vpop.permute.xlu1 %6077 }
 0x3da   : > { %v6080_v60 = vunpack.i.h.bf16 %v6078_v37  ;;  %v6079_v17 = vunpack.i.l.bf16 %v6078_v37  ;;  %5440 = vmatprep.subr.msk.bf16.mxu0 %vm8177_vm4, %v5439_v34  ;;  %5474 = vmatprep.subr.msk.bf16.mxu1 %vm8177_vm4, %v5439_v34 }
 0x3dc   : > { %v4572_v10 = vsel %vm4562_vm10, %v6079_v17, %v6080_v60  ;;  %v5445_v15 = vpack.c.bf16 %v6080_v60, %v6075_v6  ;;  %5443 = vmatpush1.bf16.msk.msra.mxu0 %vm8188_vm5, %v5442_v0  ;;  %5482 = vmatpush1.bf16.msk.msra.mxu1 %vm8188_vm5, %v5442_v0 }
 0x3dd   : > { %v5448_v24 = vpack.c.bf16 %v4572_v10, %v4571_v44  ;;  %v6088_v49 = vpop.permute.xlu1 %6087 }
 0x3de   : > { %v6090_v58 = vunpack.i.h.bf16 %v6088_v49  ;;  %v6089_v38 = vunpack.i.l.bf16 %v6088_v49  ;;  %5446 = vmatprep.subr.msk.bf16.mxu0 %vm8177_vm4, %v5445_v15  ;;  %5475 = vmatprep.subr.msk.bf16.mxu1 %vm8177_vm4, %v5445_v15 }
 0x3e0   : > { %v4574_v1 = vsel %vm4562_vm10, %v6089_v38, %v6090_v58  ;;  %v5451_v11 = vpack.c.bf16 %v6090_v58, %v6085_v9  ;;  %5449 = vmatpush1.bf16.msk.msra.mxu0 %vm8188_vm5, %v5448_v24  ;;  %5483 = vmatpush1.bf16.msk.msra.mxu1 %vm8188_vm5, %v5448_v24 }
 0x3e1   : > { %v5454_v35 = vpack.c.bf16 %v4574_v1, %v4573_v5  ;;  %v6098_v45 = vpop.permute.xlu1 %6097  ;;  %v4890_v5 = vld [vmem:[%s9436_s10 + $0x8] sm:$0xff] }
 0x3e2   : > { %v6100_v46 = vunpack.i.h.bf16 %v6098_v45  ;;  %v6099_v63 = vunpack.i.l.bf16 %v6098_v45  ;;  %5452 = vmatprep.subr.msk.bf16.mxu0 %vm8177_vm4, %v5451_v11  ;;  %5476 = vmatprep.subr.msk.bf16.mxu1 %vm8177_vm4, %v5451_v11 }
 0x3e4   : > { %v4576_v23 = vsel %vm4562_vm10, %v6099_v63, %v6100_v46  ;;  %v5457_v8 = vpack.c.bf16 %v6100_v46, %v6095_v7  ;;  %5455 = vmatpush1.bf16.msk.msra.mxu0 %vm8188_vm5, %v5454_v35  ;;  %5484 = vmatpush1.bf16.msk.msra.mxu1 %vm8188_vm5, %v5454_v35  ;;  %v4897_v46 = vsel %vm1842_vm1, %v4890_v5, 0.0 }
 0x3e5   : > { %v5460_v36 = vpack.c.bf16 %v4576_v23, %v4575_v4  ;;  %v6108_v18 = vpop.permute.xlu1 %6107  ;;  %v4889_v4 = vld [vmem:[%s9436_s10] sm:$0xff] }
 0x3e6   : > { %v6110_v40 = vunpack.i.h.bf16 %v6108_v18  ;;  %v6109_v55 = vunpack.i.l.bf16 %v6108_v18  ;;  %5458 = vmatprep.subr.msk.bf16.mxu0 %vm8177_vm4, %v5457_v8  ;;  %5477 = vmatprep.subr.msk.bf16.mxu1 %vm8177_vm4, %v5457_v8  ;;  %v4898_v23 = vadd.f32 %v4897_v46, %v4889_v4  ;;  %v8798_v8 = vmul.f32 0.0051020407, %v7628_v20  ;;  %v4893_v18 = vld [vmem:[%s9436_s10 + $0x20] sm:$0xff] }
 0x3e8   : > { %v4578_v12 = vsel %vm4562_vm10, %v6109_v55, %v6110_v40  ;;  %v5463_v25 = vpack.c.bf16 %v6110_v40, %v6105_v28  ;;  %5461 = vmatpush1.bf16.msk.msra.mxu0 %vm8188_vm5, %v5460_v36  ;;  %5485 = vmatpush1.bf16.msk.msra.mxu1 %vm8188_vm5, %v5460_v36  ;;  %v4905_v40 = vsel %vm1842_vm1, %v4894_v29, 0.0  ;;  %v4892_v55 = vld [vmem:[%s9436_s10 + $0x18] sm:$0xff] }
 0x3e9   : > { %v5466_v19 = vpack.c.bf16 %v4578_v12, %v4577_v42  ;;  %v4906_v20 = vadd.f32 %v4905_v40, %v4893_v18 }
 0x3ea   : > { %5464 = vmatprep.subr.msk.bf16.mxu0 %vm8177_vm4, %v5463_v25  ;;  %5478 = vmatprep.subr.msk.bf16.mxu1 %vm8177_vm4, %v5463_v25  ;;  %v4891_v25 = vld [vmem:[%s9436_s10 + $0x10] sm:$0xff] }
 0x3eb   : > { %v4919_v40 = vmul.f32 %v4891_v25, %v4891_v25 }
 0x3ec   : > { %5467 = vmatpush1.bf16.msk.msra.mxu0 %vm8188_vm5, %v5466_v19  ;;  %5486 = vmatpush1.bf16.msk.msra.mxu1 %vm8188_vm5, %v5466_v19  ;;  %v4901_v19 = vsel %vm1842_vm1, %v4892_v55, 0.0 }
 0x3ef   : > { %4709 = vmatmul.mubr.bf16.vlgmr.msra.gmra.mrb[0].mxu0 %v6129_v47  ;;  %4719 = vmatmul.mubr.bf16.vlgmr.msra.gmra.mrb[8].mxu1 %v6130_v48  ;;  %v1867_v47 = vmul.f32 %v8798_v8, %v8798_v8  ;;  %v1865_v48 = vmul.f32 0.0051020407, %v7632_v21  ;;  %v4895_v21 = vld [vmem:[%s9436_s10 + $0x30] sm:$0xff] }
 0x49d   : > { %v3723_v32 = vpop.f32.mrb[0].mxu1 }
 0x49e   : > { %v3725_v13 = vpop.f32.mrb[1].mxu1 }
 0x49f   : > { %v3727_v3 = vpop.f32.mrb[2].mxu1 }
 0x4a0   : > { %v3729_v30 = vpop.f32.mrb[3].mxu1 }
 0x4a5   : > { %v3733_v52 = vpop.f32.mrb[4].mxu1  ;;  %v4481_v27 = vpop.f32.mrb[4].mxu0 }
 0x4a6   : > { %v5491_v6 = vadd.f32 %v4481_v27, %v3733_v52  ;;  %v3735_v56 = vpop.f32.mrb[5].mxu1  ;;  %v4483_v16 = vpop.f32.mrb[5].mxu0  ;;  %v4902_v52 = vadd.f32 %v4901_v19, %v4891_v25 }
 0x4a7   : > { %v5493_v53 = vadd.f32 %v4483_v16, %v3735_v56  ;;  %v3737_v62 = vpop.f32.mrb[6].mxu1  ;;  %v4485_v26 = vpop.f32.mrb[6].mxu0  ;;  %v1869_v16 = vsub.f32 %v1865_v48, %v1867_v47  ;;  %v1972_v47 = vmul.f32 0.0051020407, %v7756_v57 }
 0x4a8   : > { %v5495_v34 = vadd.f32 %v4485_v26, %v3737_v62  ;;  %v3739_v0 = vpop.f32.mrb[7].mxu1  ;;  %v4487_v37 = vpop.f32.mrb[7].mxu0  ;;  %v1866_v62 = vmul.f32 0.0051020407, %v7658_v22 }
 0x4a9   : > { %v5497_v44 = vadd.f32 %v4487_v37, %v3739_v0 }
 0x4c2   : > { %v4710_v14 = vpop.f32.mrb[0].mxu0  ;;  %v4720_v61 = vpop.f32.mrb[8].mxu1 }
 0x4c3   : > { %v8763_v60 = vadd.f32 %v4710_v14, %v3723_v32  ;;  %v8765_v17 = vadd.f32 %v5491_v6, %v4720_v61  ;;  %v4712_v9 = vpop.f32.mrb[1].mxu0  ;;  %v4722_v43 = vpop.f32.mrb[9].mxu1  ;;  %v4917_v14 = vmul.f32 %v4889_v4, %v4889_v4  ;;  %v1871_v61 = vmax.f32 %v1869_v16, 0.0  ;;  %v9492_v16 = vld [vmem:[#allocation6_spill] sm:$0xff] }
 0x4c4   : > { %v8767_v10 = vadd.f32 %v4712_v9, %v3725_v13  ;;  %v8769_v15 = vadd.f32 %v5493_v53, %v4722_v43  ;;  %v4714_v24 = vpop.f32.mrb[2].mxu0  ;;  %v4724_v49 = vpop.f32.mrb[10].mxu1  ;;  %v4896_v13 = vld [vmem:[%s9436_s10 + $0x38] sm:$0xff]  ;;  %v4922_v43 = vmul.f32 %v4894_v29, %v4894_v29 }
 0x4c5   : > { %v8771_v7 = vadd.f32 %v4714_v24, %v3727_v3  ;;  %v8773_v2 = vadd.f32 %v5495_v34, %v4724_v49  ;;  %v4716_v58 = vpop.f32.mrb[3].mxu0  ;;  %v4726_v38 = vpop.f32.mrb[11].mxu1  ;;  %v8824_v3 = vmul.f32 0.0051020407, %v7650_v54  ;;  %v4757_v6 = vmul.f32 %v8763_v60, %v8763_v60 }
 0x4c6   : > { %v8778_v59 = vadd.f32 %v4716_v58, %v3729_v30  ;;  %v8780_v1 = vadd.f32 %v5497_v44, %v4726_v38  ;;  %v4737_v11 = vsel %vm1842_vm1, %v8767_v10, 0.0  ;;  %v4745_v28 = vsel %vm1842_vm1, %v8769_v15, 0.0 }
 0x4c7   : > { %v4738_v35 = vadd.f32 %v8763_v60, %v4737_v11  ;;  %v4746_v36 = vadd.f32 %v8765_v17, %v4745_v28  ;;  %v4758_v12 = vmul.f32 %v8767_v10, %v8767_v10  ;;  %v4762_v30 = vmul.f32 %v8769_v15, %v8769_v15 }
 0x4c8   : > { %v4741_v45 = vsel %vm1842_vm1, %v8778_v59, 0.0  ;;  %v4749_v42 = vsel %vm1842_vm1, %v8780_v1, 0.0  ;;  %v4909_v56 = vsel %vm1842_vm1, %v4896_v13, 0.0  ;;  %v4918_v54 = vmul.f32 %v4890_v5, %v4890_v5 }
 0x4c9   : > { %v4742_v63 = vadd.f32 %v8771_v7, %v4741_v45  ;;  %4739 = vadd.xlane.f32.xlu0 %v4738_v35  ;;  %v4750_v32 = vadd.f32 %v8773_v2, %v4749_v42  ;;  %v4765_v27 = vsel %vm1842_vm1, %v4758_v12, 0.0  ;;  %v1868_v53 = vmul.f32 %v8824_v3, %v8824_v3 }
 0x4ca   : > { %v4760_v26 = vmul.f32 %v8778_v59, %v8778_v59  ;;  %v4766_v34 = vadd.f32 %v4765_v27, %v4757_v6  ;;  %v4910_v0 = vadd.f32 %v4909_v56, %v4895_v21  ;;  %v4773_v37 = vsel %vm1842_vm1, %v4762_v30, 0.0 }
 0x4cb   : > { %4743 = vadd.xlane.f32.xlu1 %v4742_v63  ;;  %v4761_v44 = vmul.f32 %v8765_v17, %v8765_v17  ;;  %v4925_v9 = vsel %vm1842_vm1, %v4918_v54, 0.0  ;;  %v1870_v24 = vsub.f32 %v1866_v62, %v1868_v53  ;;  %v4764_v22 = vmul.f32 %v8780_v1, %v8780_v1  ;;  %v1877_v62 = vld [vmem:[%s6377_s15] sm:$0xff] }
 0x4cc   : > { %v4769_v58 = vsel %vm1842_vm1, %v4760_v26, 0.0  ;;  %v4759_v38 = vmul.f32 %v8771_v7, %v8771_v7  ;;  %v4926_v5 = vadd.f32 %v4925_v9, %v4917_v14  ;;  %v4921_v11 = vmul.f32 %v4893_v18, %v4893_v18  ;;  %v9493_v26 = vld [vmem:[#allocation2_spill] sm:$0xff] }
 0x4cd   : > { %4747 = vadd.xlane.f32.xlu0 %v4746_v36  ;;  %v4774_v49 = vadd.f32 %v4773_v37, %v4761_v44  ;;  %v4920_v35 = vmul.f32 %v4892_v55, %v4892_v55  ;;  %v1873_v45 = vadd.f32 1e-05, %v1871_v61  ;;  %v4933_v46 = vsel %vm1842_vm1, %v4922_v43, 0.0  ;;  %v9494_v37 = vld [vmem:[#allocation8_spill] sm:$0xff] }
 0x4ce   : > { %v4770_v4 = vadd.f32 %v4769_v58, %v4759_v38  ;;  %v1872_v63 = vmax.f32 %v1870_v24, 0.0  ;;  %v8851_v28 = vmul.f32 0.0051020407, %v7670_v33  ;;  %v4777_v29 = vsel %vm1842_vm1, %v4764_v22, 0.0  ;;  %v9495_v24 = vld [vmem:[#allocation3_spill] sm:$0xff]  ;;  %v9496_v38 = vld [vmem:[#allocation4_spill] sm:$0xff] }
 0x4cf   : > { %4899 = vadd.xlane.f32.xlu1 %v4898_v23  ;;  %v8855_v23 = vmul.f32 0.0051020407, %v7674_v39  ;;  %v4763_v36 = vmul.f32 %v8773_v2, %v8773_v2  ;;  %v4934_v18 = vadd.f32 %v4933_v46, %v4921_v11  ;;  %v4929_v55 = vsel %vm1842_vm1, %v4920_v35, 0.0 }
 0x4d0   : > { %v4924_v42 = vmul.f32 %v4896_v13, %v4896_v13  ;;  %6131 = vrsqrt.f32 %v1873_v45  ;;  %v1971_v12 = vmul.f32 0.0051020407, %v7740_v50  ;;  %v1976_v19 = vmul.f32 %v8851_v28, %v8851_v28 }
 0x4d1   : > { %4751 = vadd.xlane.f32.xlu0 %v4750_v32  ;;  %v4778_v33 = vadd.f32 %v4777_v29, %v4763_v36  ;;  %v8864_v39 = vmul.f32 0.0051020407, %v7699_v41  ;;  %v1975_v25 = vmul.f32 %v8855_v23, %v8855_v23  ;;  %v4930_v48 = vadd.f32 %v4929_v55, %v4919_v40  ;;  %v9498_v40 = vld [vmem:[#allocation5_spill] sm:$0xff]  ;;  %v1881_v55 = vld [vmem:[%s6382_s18] sm:$0xff] }
 0x4d2   : > { %v4923_v32 = vmul.f32 %v4895_v21, %v4895_v21  ;;  %v4937_v13 = vsel %vm1842_vm1, %v4924_v42, 0.0  ;;  %v1973_v30 = vmul.f32 0.0051020407, %v7691_v51  ;;  %v8874_v27 = vmul.f32 0.0051020407, %v7715_v31 }
 0x4d3   : > { %4907 = vadd.xlane.f32.xlu1 %v4906_v20  ;;  %v1874_v20 = vadd.f32 1e-05, %v1872_v63  ;;  %v1979_v50 = vsub.f32 %v1971_v12, %v1975_v25  ;;  %v1977_v41 = vmul.f32 %v8864_v39, %v8864_v39  ;;  %v1974_v54 = vmul.f32 0.0051020407, %v9492_v16  ;;  %v9499_v25 = vld [vmem:[#allocation10_spill] sm:$0xff] }
 0x4d4   : > { %v4938_v57 = vadd.f32 %v4937_v13, %v4923_v32  ;;  %v1978_v51 = vmul.f32 %v8874_v27, %v8874_v27  ;;  %v8884_v44 = vmul.f32 0.0051020407, %v9494_v37  ;;  %v8887_v22 = vmul.f32 0.0051020407, %v9495_v24  ;;  %v9503_v24 = vld [vmem:[#allocation9_spill] sm:$0xff] }
 0x4d5   : > { %4903 = vadd.xlane.f32.xlu0 %v4902_v52  ;;  %6133 = vrsqrt.f32 %v1874_v20  ;;  %v1980_v52 = vsub.f32 %v1972_v47, %v1976_v19  ;;  %v1983_v6 = vmax.f32 %v1979_v50, 0.0  ;;  %v1981_v56 = vsub.f32 %v1973_v30, %v1977_v41  ;;  %v9500_v50 = vld [vmem:[#allocation14_spill] sm:$0xff] }
 0x4d6   : > { %v1982_v61 = vsub.f32 %v1974_v54, %v1978_v51  ;;  %v2135_v11 = vmul.f32 %v8884_v44, %v8884_v44  ;;  %v2137_v36 = vmul.f32 %v8887_v22, %v8887_v22  ;;  %v2134_v30 = vmul.f32 0.0051020407, %v9500_v50  ;;  %v9501_v54 = vld [vmem:[#allocation16_spill] sm:$0xff]  ;;  %v9502_v51 = vld [vmem:[#allocation7_spill] sm:$0xff] }
 0x4d7   : > { %4767 = vadd.xlane.f32.xlu1 %v4766_v34  ;;  %v1984_v21 = vmax.f32 %v1980_v52, 0.0  ;;  %v8881_v34 = vmul.f32 0.0051020407, %v9493_v26  ;;  %v1985_v31 = vmax.f32 %v1981_v56, 0.0 }
 0x4d8   : > { %v1986_v45 = vmax.f32 %v1982_v61, 0.0  ;;  %v1997_v61 = vld [vmem:[%s6377_s15 + $0x20] sm:$0xff] }
 0x4d9   : > { %4911 = vadd.xlane.f32.xlu0 %v4910_v0  ;;  %v1987_v0 = vadd.f32 1e-05, %v1983_v6  ;;  %v1988_v14 = vadd.f32 1e-05, %v1984_v21  ;;  %v2136_v58 = vmul.f32 %v8881_v34, %v8881_v34  ;;  %v1989_v35 = vadd.f32 1e-05, %v1985_v31 }
 0x4da   : > { %v6132_v53 = vpop.eup %6131  ;;  %v1990_v12 = vadd.f32 1e-05, %v1986_v45  ;;  %v1995_v21 = vld [vmem:[%s6377_s15 + $0x10] sm:$0xff] }
 0x4db   : > { %4775 = vadd.xlane.f32.xlu1 %v4774_v49  ;;  %v1879_v9 = vmul.f32 %v6132_v53, %v1877_v62  ;;  %v1878_v49 = vld [vmem:[%s6377_s15 + $0x8] sm:$0xff]  ;;  %6135 = vrsqrt.f32 %v1987_v0  ;;  %v8912_v53 = vmul.f32 0.0051020407, %v9501_v54  ;;  %v8915_v62 = vmul.f32 0.0051020407, %v9502_v51  ;;  %v9505_v45 = vld [vmem:[#allocation20_spill] sm:$0xff] }
 0x4dc   : > { %6137 = vrsqrt.f32 %v1988_v14  ;;  %v2006_v54 = vld [vmem:[%s6382_s18 + $0x28] sm:$0xff]  ;;  %v2156_v51 = vld [vmem:[%s6377_s15 + $0x38] sm:$0xff] }
 0x4dd   : > { %4771 = vadd.xlane.f32.xlu0 %v4770_v4  ;;  %v9497_v4 = vld [vmem:[#allocation12_spill] sm:$0xff]  ;;  %v1883_v29 = vmul.f32 %v1879_v9, %v8798_v8  ;;  %6139 = vrsqrt.f32 %v1989_v35  ;;  %v1882_v8 = vld [vmem:[%s6382_s18 + $0x8] sm:$0xff] }
 0x4de   : > { %v2132_v46 = vmul.f32 0.0051020407, %v9497_v4  ;;  %6141 = vrsqrt.f32 %v1990_v12  ;;  %v2292_v4 = vmul.f32 0.0051020407, %v9505_v45  ;;  %v2157_v45 = vld [vmem:[%s6377_s15 + $0x40] sm:$0xff] }
 0x4df   : > { %4927 = vadd.xlane.f32.xlu1 %v4926_v5  ;;  %v6134_v43 = vpop.eup %6133  ;;  %v2131_v5 = vmul.f32 0.0051020407, %v9496_v38  ;;  %v1885_v20 = vsub.f32 %v1881_v55, %v1883_v29 }
 0x4e0   : > { %v1880_v63 = vmul.f32 %v6134_v43, %v1878_v49  ;;  %v8919_v49 = vmul.f32 0.0051020407, %v9503_v24 }
 0x4e1   : > { %4779 = vadd.xlane.f32.xlu0 %v4778_v33  ;;  %v2139_v42 = vsub.f32 %v2131_v5, %v2135_v11  ;;  %v2140_v33 = vsub.f32 %v2132_v46, %v2136_v58  ;;  %v9504_v58 = vld [vmem:[#allocation11_spill] sm:$0xff]  ;;  %v2295_v5 = vmul.f32 %v8912_v53, %v8912_v53  ;;  %v2296_v11 = vmul.f32 %v8915_v62, %v8915_v62 }
 0x4e2   : > { %v1884_v19 = vmul.f32 %v1880_v63, %v8824_v3  ;;  %v1996_v3 = vld [vmem:[%s6377_s15 + $0x18] sm:$0xff]  ;;  %v2291_v38 = vmul.f32 0.0051020407, %v9504_v58 }
 0x4e3   : > { %4935 = vadd.xlane.f32.xlu1 %v4934_v18  ;;  %v2133_v18 = vmul.f32 0.0051020407, %v9498_v40  ;;  %v2143_v32 = vmax.f32 %v2139_v42, 0.0  ;;  %v2144_v13 = vmax.f32 %v2140_v33, 0.0  ;;  %v2003_v40 = vld [vmem:[%s6382_s18 + $0x10] sm:$0xff]  ;;  %v2300_v33 = vsub.f32 %v2292_v4, %v2296_v11  ;;  %v9511_v11 = vld [vmem:[#allocation17_spill] sm:$0xff] }
 0x4e4   : > { %v1886_v52 = vsub.f32 %v1882_v8, %v1884_v19  ;;  %v2299_v42 = vsub.f32 %v2291_v38, %v2295_v5  ;;  %v9507_v8 = vld [vmem:[#allocation18_spill] sm:$0xff] }
 0x4e5   : > { %4931 = vadd.xlane.f32.xlu0 %v4930_v48  ;;  %v2141_v47 = vsub.f32 %v2133_v18, %v2137_v36  ;;  %v8903_v48 = vmul.f32 0.0051020407, %v9499_v25  ;;  %v6136_v41 = vpop.eup %6135  ;;  %v2147_v16 = vadd.f32 1e-05, %v2143_v32  ;;  %v2148_v26 = vadd.f32 1e-05, %v2144_v13 }
 0x4e6   : > { %v1999_v31 = vmul.f32 %v6136_v41, %v1995_v21  ;;  %v1998_v36 = vld [vmem:[%s6377_s15 + $0x28] sm:$0xff]  ;;  %v2297_v18 = vmul.f32 %v8919_v49, %v8919_v49  ;;  %v2005_v25 = vld [vmem:[%s6382_s18 + $0x20] sm:$0xff]  ;;  %v8937_v32 = vmul.f32 0.0051020407, %v9507_v8  ;;  %v2004_v13 = vld [vmem:[%s6382_s18 + $0x18] sm:$0xff]  ;;  %v2304_v41 = vmax.f32 %v2300_v33, 0.0 }
 0x4e7   : > { %v2145_v6 = vmax.f32 %v2141_v47, 0.0  ;;  %v2138_v56 = vmul.f32 %v8903_v48, %v8903_v48  ;;  %6143 = vrsqrt.f32 %v2147_v16  ;;  %v2155_v21 = vld [vmem:[%s6377_s15 + $0x30] sm:$0xff] }
 0x4e8   : > { %6145 = vrsqrt.f32 %v2148_v26  ;;  %v2298_v16 = vmul.f32 %v8937_v32, %v8937_v32  ;;  %v2163_v33 = vld [vmem:[%s6382_s18 + $0x30] sm:$0xff] }
 0x4e9   : > { %4939 = vadd.xlane.f32.xlu0 %v4938_v57  ;;  %v6138_v57 = vpop.eup %6137  ;;  %v2142_v0 = vsub.f32 %v2134_v30, %v2138_v56  ;;  %v2149_v43 = vadd.f32 1e-05, %v2145_v6  ;;  %v2303_v30 = vmax.f32 %v2299_v42, 0.0 }
 0x4ea   : > { %v2000_v37 = vmul.f32 %v6138_v57, %v1996_v3  ;;  %v6140_v14 = vpop.eup %6139 }
 0x4eb   : > { %v2146_v35 = vmax.f32 %v2142_v0, 0.0  ;;  %v2001_v46 = vmul.f32 %v6140_v14, %v1997_v61  ;;  %v6142_v29 = vpop.eup %6141  ;;  %6147 = vrsqrt.f32 %v2149_v43  ;;  %v2307_v0 = vadd.f32 1e-05, %v2303_v30  ;;  %v9510_v14 = vld [vmem:[#allocation15_spill] sm:$0xff] }
 0x4ec   : > { %v2002_v19 = vmul.f32 %v6142_v29, %v1998_v36  ;;  %v2008_v47 = vmul.f32 %v2000_v37, %v8851_v28  ;;  %v8951_v61 = vmul.f32 0.0051020407, %v9510_v14  ;;  %v2308_v43 = vadd.f32 1e-05, %v2304_v41 }
 0x4ed   : > { %v2150_v12 = vadd.f32 1e-05, %v2146_v35  ;;  %v8954_v35 = vmul.f32 0.0051020407, %v9511_v11 }
 0x4ee   : > { %v2012_v56 = vsub.f32 %v2004_v13, %v2008_v47  ;;  %v2010_v28 = vmul.f32 %v2002_v19, %v8874_v27  ;;  %v2456_v36 = vmul.f32 %v8951_v61, %v8951_v61  ;;  %v2158_v47 = vld [vmem:[%s6377_s15 + $0x48] sm:$0xff] }
 0x4ef   : > { %6149 = vrsqrt.f32 %v2150_v12 }
 0x4f0   : > { %v2014_v58 = vsub.f32 %v2006_v54, %v2010_v28  ;;  %6151 = vrsqrt.f32 %v2307_v0  ;;  %v2315_v0 = vld [vmem:[%s6377_s15 + $0x50] sm:$0xff] }
 0x4f1   : > { %v6144_v57 = vpop.eup %6143  ;;  %6153 = vrsqrt.f32 %v2308_v43  ;;  %v2166_v43 = vld [vmem:[%s6382_s18 + $0x48] sm:$0xff] }
 0x4f2   : > { %v6146_v3 = vpop.eup %6145  ;;  %v2159_v24 = vmul.f32 %v6144_v57, %v2155_v21  ;;  %v9516_v21 = vld [vmem:[#allocation30_spill] sm:$0xff] }
 0x4f3   : > { %v2160_v38 = vmul.f32 %v6146_v3, %v2156_v51 }
 0x4f4   : > { %1894 = vperm.xlu1 %6111, %v1880_v63   ;;  %v2007_v63 = vmul.f32 %v1999_v31, %v8855_v23 }
 0x4f5   : > { %v6148_v5 = vpop.eup %6147 }
 0x4f6   : > { %v2011_v23 = vsub.f32 %v2003_v40, %v2007_v63  ;;  %v2161_v42 = vmul.f32 %v6148_v5, %v2157_v45  ;;  %v9518_v5 = vld [vmem:[#allocation23_spill] sm:$0xff] }
 0x4f7   : > { %v8987_v11 = vmul.f32 0.0051020407, %v9518_v5  ;;  %v2475_v5 = vld [vmem:[%s6377_s15 + $0x70] sm:$0xff] }
 0x4f8   : > { %1903 = vperm.xlu1 %6111, %v1885_v20   ;;  %v2009_v20 = vmul.f32 %v2001_v46, %v8864_v39  ;;  %v2169_v41 = vmul.f32 %v2161_v42, %v8887_v22 }
 0x4f9   : > { %v6150_v12 = vpop.eup %6149 }
 0x4fa   : > { %v2013_v6 = vsub.f32 %v2005_v25, %v2009_v20  ;;  %v2457_v20 = vmul.f32 %v8954_v35, %v8954_v35  ;;  %v2162_v30 = vmul.f32 %v6150_v12, %v2158_v47  ;;  %v6152_v54 = vpop.eup %6151 }
 0x4fc   : > { %1908 = vperm.xlu1 %6111, %v1886_v52   ;;  %v9508_v52 = vld [vmem:[#allocation22_spill] sm:$0xff]  ;;  %v2170_v22 = vmul.f32 %v2162_v30, %v8903_v48 }
 0x4fd   : > { %v2294_v39 = vmul.f32 0.0051020407, %v9508_v52 }
 0x4ff   : > { %1889 = vperm.xlu0 %6112, %v1879_v9   ;;  %v9506_v9 = vld [vmem:[#allocation13_spill] sm:$0xff]  ;;  %v2302_v27 = vsub.f32 %v2294_v39, %v2298_v16  ;;  %v9515_v39 = vld [vmem:[#allocation26_spill] sm:$0xff]  ;;  %v2454_v16 = vmul.f32 0.0051020407, %v9516_v21 }
 0x500   : > { %2022 = vperm.xlu1 %6111, %v2000_v37   ;;  %v2293_v55 = vmul.f32 0.0051020407, %v9506_v9  ;;  %v9509_v37 = vld [vmem:[#allocation24_spill] sm:$0xff]  ;;  %v8972_v57 = vmul.f32 0.0051020407, %v9515_v39  ;;  %v9523_v21 = vld [vmem:[#allocation34_spill] sm:$0xff] }
 0x501   : > { %v2306_v40 = vmax.f32 %v2302_v27, 0.0  ;;  %v2316_v27 = vld [vmem:[%s6377_s15 + $0x58] sm:$0xff] }
 0x502   : > { %v2301_v50 = vsub.f32 %v2293_v55, %v2297_v18  ;;  %v9513_v18 = vld [vmem:[#allocation28_spill] sm:$0xff]  ;;  %v2167_v55 = vmul.f32 %v2159_v24, %v8884_v44  ;;  %v2168_v44 = vmul.f32 %v2160_v38, %v8881_v34  ;;  %v2458_v14 = vmul.f32 %v8972_v57, %v8972_v57 }
 0x503   : > { %2017 = vperm.xlu0 %6112, %v1999_v31   ;;  %v8948_v31 = vmul.f32 0.0051020407, %v9509_v37  ;;  %v2452_v9 = vmul.f32 0.0051020407, %v9513_v18  ;;  %v2310_v8 = vadd.f32 1e-05, %v2306_v40 }
 0x504   : > { %2027 = vperm.xlu1 %6111, %v2001_v46   ;;  %v2305_v26 = vmax.f32 %v2301_v50, 0.0  ;;  %v9512_v46 = vld [vmem:[#allocation19_spill] sm:$0xff]  ;;  %v2171_v50 = vsub.f32 %v2163_v33, %v2167_v55  ;;  %v2462_v48 = vsub.f32 %v2454_v16, %v2458_v14  ;;  %v2317_v40 = vld [vmem:[%s6377_s15 + $0x60] sm:$0xff]  ;;  %v9519_v18 = vld [vmem:[#allocation25_spill] sm:$0xff]  ;;  %v2616_v33 = vmul.f32 %v8987_v11, %v8987_v11 }
 0x505   : > { %v2451_v63 = vmul.f32 0.0051020407, %v9512_v46  ;;  %v2455_v29 = vmul.f32 %v8948_v31, %v8948_v31  ;;  %v2460_v13 = vsub.f32 %v2452_v9, %v2456_v36  ;;  %v2174_v46 = vsub.f32 %v2166_v43, %v2170_v22  ;;  %v9520_v55 = vld [vmem:[#allocation27_spill] sm:$0xff] }
 0x506   : > { %v2309_v4 = vadd.f32 1e-05, %v2305_v26  ;;  %v6154_v26 = vpop.eup %6153  ;;  %v8991_v9 = vmul.f32 0.0051020407, %v9519_v18  ;;  %v9008_v16 = vmul.f32 0.0051020407, %v9523_v21 }
 0x507   : > { %2032 = vperm.xlu0 %6112, %v2002_v19   ;;  %v9514_v19 = vld [vmem:[#allocation21_spill] sm:$0xff]  ;;  %v2459_v25 = vsub.f32 %v2451_v63, %v2455_v29  ;;  %v2464_v3 = vmax.f32 %v2460_v13, 0.0  ;;  %v2320_v63 = vmul.f32 %v6154_v26, %v2316_v27  ;;  %v2323_v13 = vld [vmem:[%s6382_s18 + $0x50] sm:$0xff]  ;;  %v9525_v14 = vld [vmem:[#allocation39_spill] sm:$0xff] }
 0x508   : > { %2045 = vperm.xlu1 %6111, %v2011_v23   ;;  %v2453_v23 = vmul.f32 0.0051020407, %v9514_v19  ;;  %6155 = vrsqrt.f32 %v2309_v4  ;;  %v2319_v4 = vmul.f32 %v6152_v54, %v2315_v0  ;;  %v9521_v19 = vld [vmem:[#allocation36_spill] sm:$0xff]  ;;  %v2324_v54 = vld [vmem:[%s6382_s18 + $0x58] sm:$0xff]  ;;  %v9524_v0 = vld [vmem:[#allocation38_spill] sm:$0xff] }
 0x509   : > { %v2463_v28 = vmax.f32 %v2459_v25, 0.0  ;;  %6157 = vrsqrt.f32 %v2310_v8  ;;  %v2468_v45 = vadd.f32 1e-05, %v2464_v3 }
 0x50a   : > { %v2461_v52 = vsub.f32 %v2453_v23, %v2457_v20  ;;  %v2466_v20 = vmax.f32 %v2462_v48, 0.0  ;;  %v2612_v23 = vmul.f32 0.0051020407, %v9521_v19  ;;  %v2327_v47 = vmul.f32 %v2319_v4, %v8912_v53  ;;  %v2326_v48 = vld [vmem:[%s6382_s18 + $0x68] sm:$0xff] }
 0x50b   : > { %2050 = vperm.xlu0 %6112, %v2012_v56   ;;  %v2165_v56 = vld [vmem:[%s6382_s18 + $0x40] sm:$0xff]  ;;  %v2328_v53 = vmul.f32 %v2320_v63, %v8915_v62  ;;  %v9014_v62 = vmul.f32 0.0051020407, %v9525_v14 }
 0x50c   : > { %2055 = vperm.xlu1 %6111, %v2013_v6   ;;  %v2164_v6 = vld [vmem:[%s6382_s18 + $0x38] sm:$0xff]  ;;  %v2173_v51 = vsub.f32 %v2165_v56, %v2169_v41  ;;  %v2465_v37 = vmax.f32 %v2461_v52, 0.0  ;;  %v2470_v39 = vadd.f32 1e-05, %v2466_v20  ;;  %v2331_v56 = vsub.f32 %v2323_v13, %v2327_v47 }
 0x50d   : > { %v2172_v34 = vsub.f32 %v2164_v6, %v2168_v44  ;;  %v9522_v44 = vld [vmem:[#allocation29_spill] sm:$0xff]  ;;  %v2620_v6 = vsub.f32 %v2612_v23, %v2616_v33  ;;  %v2332_v43 = vsub.f32 %v2324_v54, %v2328_v53  ;;  %v2477_v23 = vld [vmem:[%s6377_s15 + $0x80] sm:$0xff]  ;;  %v9530_v53 = vld [vmem:[#allocation31_spill] sm:$0xff] }
 0x50e   : > { %v2469_v36 = vadd.f32 1e-05, %v2465_v37  ;;  %v2613_v41 = vmul.f32 0.0051020407, %v9522_v44  ;;  %v2614_v37 = vmul.f32 0.0051020407, %v9524_v0 }
 0x50f   : > { %2060 = vperm.xlu0 %6112, %v2014_v58   ;;  %v9517_v58 = vld [vmem:[#allocation32_spill] sm:$0xff]  ;;  %v2624_v26 = vmax.f32 %v2620_v6, 0.0 }
 0x510   : > { %2182 = vperm.xlu1 %6111, %v2160_v38   ;;  %v8984_v38 = vmul.f32 0.0051020407, %v9517_v58  ;;  %v9529_v6 = vld [vmem:[#allocation40_spill] sm:$0xff] }
 0x512   : > { %v6156_v29 = vpop.eup %6155  ;;  %v2615_v12 = vmul.f32 %v8984_v38, %v8984_v38 }
 0x513   : > { %2177 = vperm.xlu0 %6112, %v2159_v24   ;;  %v2467_v24 = vadd.f32 1e-05, %v2463_v28  ;;  %v2321_v25 = vmul.f32 %v6156_v29, %v2317_v40  ;;  %v6158_v8 = vpop.eup %6157  ;;  %v9526_v29 = vld [vmem:[#allocation33_spill] sm:$0xff]  ;;  %v9527_v40 = vld [vmem:[#allocation35_spill] sm:$0xff] }
 0x514   : > { %2187 = vperm.xlu1 %6111, %v2161_v42   ;;  %v2611_v42 = vmul.f32 0.0051020407, %v9520_v55  ;;  %v2771_v18 = vmul.f32 0.0051020407, %v9527_v40  ;;  %v2628_v55 = vadd.f32 1e-05, %v2624_v26 }
 0x515   : > { %6159 = vrsqrt.f32 %v2467_v24  ;;  %v2329_v3 = vmul.f32 %v2321_v25, %v8919_v49  ;;  %v2486_v40 = vld [vmem:[%s6382_s18 + $0x88] sm:$0xff] }
 0x516   : > { %6161 = vrsqrt.f32 %v2468_v45  ;;  %v2619_v52 = vsub.f32 %v2611_v42, %v2615_v12  ;;  %v2618_v45 = vmul.f32 %v9008_v16, %v9008_v16 }
 0x517   : > { %2192 = vperm.xlu0 %6112, %v2162_v30   ;;  %v2617_v30 = vmul.f32 %v8991_v9, %v8991_v9  ;;  %6163 = vrsqrt.f32 %v2469_v36  ;;  %v9023_v36 = vmul.f32 0.0051020407, %v9526_v29  ;;  %v2635_v29 = vld [vmem:[%s6377_s15 + $0x90] sm:$0xff] }
 0x518   : > { %2205 = vperm.xlu1 %6111, %v2171_v50   ;;  %v2318_v50 = vld [vmem:[%s6377_s15 + $0x68] sm:$0xff]  ;;  %v2623_v22 = vmax.f32 %v2619_v52, 0.0  ;;  %6165 = vrsqrt.f32 %v2470_v39  ;;  %v2622_v42 = vsub.f32 %v2614_v37, %v2618_v45  ;;  %v2483_v39 = vld [vmem:[%s6382_s18 + $0x70] sm:$0xff] }
 0x519   : > { %v2322_v28 = vmul.f32 %v6158_v8, %v2318_v50  ;;  %v2777_v47 = vmul.f32 %v9023_v36, %v9023_v36 }
 0x51a   : > { %v2626_v50 = vmax.f32 %v2622_v42, 0.0 }
 0x51b   : > { %2210 = vperm.xlu0 %6112, %v2172_v34   ;;  %v2325_v34 = vld [vmem:[%s6382_s18 + $0x60] sm:$0xff]  ;;  %v2330_v24 = vmul.f32 %v2322_v28, %v8937_v32  ;;  %v2775_v32 = vmul.f32 %v9014_v62, %v9014_v62 }
 0x51c   : > { %2215 = vperm.xlu1 %6111, %v2173_v51   ;;  %v2621_v51 = vsub.f32 %v2613_v41, %v2617_v30  ;;  %v2333_v27 = vsub.f32 %v2325_v34, %v2329_v3  ;;  %v9039_v3 = vmul.f32 0.0051020407, %v9530_v53  ;;  %v2630_v54 = vadd.f32 1e-05, %v2626_v50  ;;  %v2643_v50 = vld [vmem:[%s6382_s18 + $0x90] sm:$0xff] }
 0x51d   : > { %v2334_v33 = vsub.f32 %v2326_v48, %v2330_v24  ;;  %v2779_v30 = vsub.f32 %v2771_v18, %v2775_v32  ;;  %v2636_v18 = vld [vmem:[%s6377_s15 + $0x98] sm:$0xff]  ;;  %v2795_v53 = vld [vmem:[%s6377_s15 + $0xb0] sm:$0xff] }
 0x51f   : > { %2220 = vperm.xlu0 %6112, %v2174_v46   ;;  %v6160_v49 = vpop.eup %6159  ;;  %v2625_v46 = vmax.f32 %v2621_v51, 0.0  ;;  %v2783_v34 = vmax.f32 %v2779_v30, 0.0  ;;  %v9531_v51 = vld [vmem:[#allocation42_spill] sm:$0xff]  ;;  %v2638_v30 = vld [vmem:[%s6377_s15 + $0xa8] sm:$0xff] }
 0x520   : > { %2342 = vperm.xlu1 %6111, %v2320_v63   ;;  %v6162_v58 = vpop.eup %6161  ;;  %v2627_v63 = vadd.f32 1e-05, %v2623_v22  ;;  %v2479_v12 = vmul.f32 %v6160_v49, %v2475_v5  ;;  %v2484_v49 = vld [vmem:[%s6382_s18 + $0x78] sm:$0xff] }
 0x521   : > { %v6164_v19 = vpop.eup %6163  ;;  %v2629_v13 = vadd.f32 1e-05, %v2625_v46  ;;  %v9532_v5 = vld [vmem:[#allocation41_spill] sm:$0xff] }
 0x522   : > { %6167 = vrsqrt.f32 %v2627_v63  ;;  %v2487_v44 = vmul.f32 %v2479_v12, %v8948_v31  ;;  %v2481_v41 = vmul.f32 %v6164_v19, %v2477_v23  ;;  %v6166_v52 = vpop.eup %6165  ;;  %v2774_v31 = vmul.f32 0.0051020407, %v9531_v51  ;;  %v2637_v23 = vld [vmem:[%s6377_s15 + $0xa0] sm:$0xff] }
 0x523   : > { %2337 = vperm.xlu0 %6112, %v2319_v4   ;;  %v2476_v4 = vld [vmem:[%s6377_s15 + $0x78] sm:$0xff]  ;;  %6169 = vrsqrt.f32 %v2628_v55 }
 0x524   : > { %2347 = vperm.xlu1 %6111, %v2321_v25   ;;  %v2480_v20 = vmul.f32 %v6162_v58, %v2476_v4  ;;  %v9528_v25 = vld [vmem:[#allocation37_spill] sm:$0xff]  ;;  %6171 = vrsqrt.f32 %v2629_v13  ;;  %v2491_v22 = vsub.f32 %v2483_v39, %v2487_v44  ;;  %v2489_v37 = vmul.f32 %v2481_v41, %v8954_v35 }
 0x525   : > { %v2773_v8 = vmul.f32 0.0051020407, %v9528_v25  ;;  %6173 = vrsqrt.f32 %v2630_v54  ;;  %v2787_v58 = vadd.f32 1e-05, %v2783_v34 }
 0x526   : > { %v2488_v0 = vmul.f32 %v2480_v20, %v8951_v61  ;;  %v2772_v61 = vmul.f32 0.0051020407, %v9532_v5  ;;  %v2796_v5 = vld [vmem:[%s6377_s15 + $0xb8] sm:$0xff] }
 0x527   : > { %2352 = vperm.xlu0 %6112, %v2322_v28   ;;  %v2478_v28 = vld [vmem:[%s6377_s15 + $0x88] sm:$0xff]  ;;  %v2781_v21 = vsub.f32 %v2773_v8, %v2777_v47  ;;  %6175 = vrsqrt.f32 %v2787_v58 }
 0x528   : > { %2365 = vperm.xlu1 %6111, %v2331_v56   ;;  %v9035_v56 = vmul.f32 0.0051020407, %v9529_v6  ;;  %v2482_v26 = vmul.f32 %v6166_v52, %v2478_v28  ;;  %v2492_v48 = vsub.f32 %v2484_v49, %v2488_v0  ;;  %v2803_v49 = vld [vmem:[%s6382_s18 + $0xb0] sm:$0xff] }
 0x529   : > { %v2785_v24 = vmax.f32 %v2781_v21, 0.0  ;;  %v2645_v21 = vld [vmem:[%s6382_s18 + $0xa0] sm:$0xff] }
 0x52a   : > { %v2778_v14 = vmul.f32 %v9035_v56, %v9035_v56  ;;  %v2490_v46 = vmul.f32 %v2482_v26, %v8972_v57 }
 0x52b   : > { %2370 = vperm.xlu0 %6112, %v2332_v43   ;;  %v2485_v43 = vld [vmem:[%s6382_s18 + $0x80] sm:$0xff]  ;;  %v2789_v55 = vadd.f32 1e-05, %v2785_v24 }
 0x52c   : > { %2375 = vperm.xlu1 %6111, %v2333_v27   ;;  %v2776_v27 = vmul.f32 %v9039_v3, %v9039_v3  ;;  %v2782_v45 = vsub.f32 %v2774_v31, %v2778_v14  ;;  %v6168_v35 = vpop.eup %6167  ;;  %v2493_v4 = vsub.f32 %v2485_v43, %v2489_v37  ;;  %v2798_v43 = vld [vmem:[%s6377_s15 + $0xc8] sm:$0xff] }
 0x52d   : > { %v6170_v63 = vpop.eup %6169  ;;  %6177 = vrsqrt.f32 %v2789_v55 }
 0x52e   : > { %v2780_v42 = vsub.f32 %v2772_v61, %v2776_v27  ;;  %v2786_v32 = vmax.f32 %v2782_v45, 0.0  ;;  %v6172_v19 = vpop.eup %6171  ;;  %v2805_v61 = vld [vmem:[%s6382_s18 + $0xc0] sm:$0xff] }
 0x52f   : > { %2380 = vperm.xlu0 %6112, %v2334_v33   ;;  %v2494_v33 = vsub.f32 %v2486_v40, %v2490_v46  ;;  %v2641_v8 = vmul.f32 %v6172_v19, %v2637_v23  ;;  %v6174_v13 = vpop.eup %6173  ;;  %v2804_v40 = vld [vmem:[%s6382_s18 + $0xb8] sm:$0xff] }
 0x530   : > { %2502 = vperm.xlu1 %6111, %v2480_v20   ;;  %v2640_v20 = vmul.f32 %v6170_v63, %v2636_v18  ;;  %v2784_v57 = vmax.f32 %v2780_v42, 0.0  ;;  %v2790_v47 = vadd.f32 1e-05, %v2786_v32  ;;  %v2642_v52 = vmul.f32 %v6174_v13, %v2638_v30 }
 0x531   : > { %v2649_v6 = vmul.f32 %v2641_v8, %v8991_v9  ;;  %v6176_v28 = vpop.eup %6175 }
 0x532   : > { %v2788_v44 = vadd.f32 1e-05, %v2784_v57  ;;  %6179 = vrsqrt.f32 %v2790_v47  ;;  %v2648_v39 = vmul.f32 %v2640_v20, %v8987_v11  ;;  %v2799_v54 = vmul.f32 %v6176_v28, %v2795_v53  ;;  %v2797_v11 = vld [vmem:[%s6377_s15 + $0xc0] sm:$0xff] }
 0x533   : > { %2497 = vperm.xlu0 %6112, %v2479_v12   ;;  %v2639_v12 = vmul.f32 %v6168_v35, %v2635_v29  ;;  %v2653_v51 = vsub.f32 %v2645_v21, %v2649_v6  ;;  %v2650_v31 = vmul.f32 %v2642_v52, %v9008_v16 }
 0x534   : > { %2507 = vperm.xlu1 %6111, %v2481_v41   ;;  %6181 = vrsqrt.f32 %v2788_v44  ;;  %v2807_v9 = vmul.f32 %v2799_v54, %v9014_v62 }
 0x535   : > { %v2647_v25 = vmul.f32 %v2639_v12, %v8984_v38  ;;  %v2644_v38 = vld [vmem:[%s6382_s18 + $0x98] sm:$0xff] }
 0x536   : > { %v2652_v34 = vsub.f32 %v2644_v38, %v2648_v39  ;;  %v2811_v27 = vsub.f32 %v2803_v49, %v2807_v9 }
 0x537   : > { %2512 = vperm.xlu0 %6112, %v2482_v26   ;;  %v2651_v41 = vsub.f32 %v2643_v50, %v2647_v25  ;;  %v2646_v26 = vld [vmem:[%s6382_s18 + $0xa8] sm:$0xff] }
 0x538   : > { %2525 = vperm.xlu1 %6111, %v2491_v22   ;;  %v6178_v22 = vpop.eup %6177  ;;  %v2654_v0 = vsub.f32 %v2646_v26, %v2650_v31 }
 0x539   : > { %v2801_v37 = vmul.f32 %v6178_v22, %v2797_v11 }
 0x53b   : > { %2530 = vperm.xlu0 %6112, %v2492_v48   ;;  %v2809_v16 = vmul.f32 %v2801_v37, %v9023_v36 }
 0x53c   : > { %2535 = vperm.xlu1 %6111, %v2493_v4   ;;  %v6180_v14 = vpop.eup %6179  ;;  %v2806_v4 = vld [vmem:[%s6382_s18 + $0xc8] sm:$0xff] }
 0x53d   : > { %v2802_v24 = vmul.f32 %v6180_v14, %v2798_v43  ;;  %v2813_v62 = vsub.f32 %v2805_v61, %v2809_v16 }
 0x53e   : > { %v6182_v58 = vpop.eup %6181 }
 0x53f   : > { %2540 = vperm.xlu0 %6112, %v2494_v33   ;;  %v2800_v45 = vmul.f32 %v6182_v58, %v2796_v5  ;;  %v2810_v35 = vmul.f32 %v2802_v24, %v9035_v56 }
 0x540   : > { %2662 = vperm.xlu1 %6111, %v2640_v20  }
 0x541   : > { %v2814_v63 = vsub.f32 %v2806_v4, %v2810_v35  ;;  %v2808_v29 = vmul.f32 %v2800_v45, %v9039_v3 }
 0x543   : > { %2657 = vperm.xlu0 %6112, %v2639_v12   ;;  %v2812_v55 = vsub.f32 %v2804_v40, %v2808_v29 }
 0x544   : > { %2667 = vperm.xlu1 %6111, %v2641_v8  }
 0x547   : > { %2672 = vperm.xlu0 %6112, %v2642_v52  }
 0x548   : > { %2685 = vperm.xlu1 %6111, %v2651_v41  }
 0x54b   : > { %2690 = vperm.xlu0 %6112, %v2652_v34  }
 0x54c   : > { %2695 = vperm.xlu1 %6111, %v2653_v51  }
 0x54f   : > { %2700 = vperm.xlu0 %6112, %v2654_v0  }
 0x550   : > { %2827 = vperm.xlu1 %6111, %v2801_v37  }
 0x553   : > { %2817 = vperm.xlu0 %6112, %v2799_v54  }
 0x554   : > { %2845 = vperm.xlu1 %6111, %v2811_v27  }
 0x556   : > { %v4740_v48 = vpop.xlane.xlu0 %4739 }
 0x557   : > { %2822 = vperm.xlu0 %6112, %v2800_v45   ;;  %v9077_v12 = vmul.f32 0.0051020407, %v4740_v48  ;;  %v4805_v48 = vld [vmem:[%s6377_s15 + $0xd0] sm:$0xff] }
 0x558   : > { %2855 = vperm.xlu1 %6111, %v2813_v62   ;;  %v4744_v46 = vpop.xlane.xlu1 %4743 }
 0x559   : > { %v4785_v20 = vmul.f32 %v9077_v12, %v9077_v12  ;;  %v9083_v47 = vmul.f32 0.0051020407, %v4744_v46 }
 0x55a   : > { %v4748_v36 = vpop.xlane.xlu0 %4747 }
 0x55b   : > { %2832 = vperm.xlu0 %6112, %v2802_v24   ;;  %v9081_v19 = vmul.f32 0.0051020407, %v4748_v36  ;;  %v4786_v52 = vmul.f32 %v9083_v47, %v9083_v47 }
 0x55c   : > { %2860 = vperm.xlu1 %6111, %v2814_v63   ;;  %v4900_v18 = vpop.xlane.xlu1 %4899 }
 0x55d   : > { %v4787_v8 = vmul.f32 %v9081_v19, %v9081_v19  ;;  %v9089_v39 = vmul.f32 0.0051020407, %v4900_v18 }
 0x55e   : > { %v4752_v42 = vpop.xlane.xlu0 %4751 }
 0x55f   : > { %2850 = vperm.xlu0 %6112, %v2812_v55   ;;  %v9091_v6 = vmul.f32 0.0051020407, %v4752_v42  ;;  %v4945_v22 = vmul.f32 %v9089_v39, %v9089_v39 }
 0x560   : > { %v4908_v32 = vpop.xlane.xlu1 %4907 }
 0x561   : > { %v9093_v34 = vmul.f32 0.0051020407, %v4908_v32  ;;  %v4788_v26 = vmul.f32 %v9091_v6, %v9091_v6 }
 0x562   : > { %v4904_v56 = vpop.xlane.xlu0 %4903 }
 0x563   : > { %v9095_v51 = vmul.f32 0.0051020407, %v4904_v56  ;;  %v4947_v16 = vmul.f32 %v9093_v34, %v9093_v34 }
 0x564   : > { %v4768_v33 = vpop.xlane.xlu1 %4767 }
 0x565   : > { %v4781_v23 = vmul.f32 0.0051020407, %v4768_v33  ;;  %v4946_v24 = vmul.f32 %v9095_v51, %v9095_v51 }
 0x566   : > { %v4912_v57 = vpop.xlane.xlu0 %4911 }
 0x567   : > { %v4789_v3 = vsub.f32 %v4781_v23, %v4785_v20  ;;  %v9105_v5 = vmul.f32 0.0051020407, %v4912_v57  ;;  %v6215_v23 = vld [vmem:[%s9429_s3 + $0x30] sm:$0xff]  ;;  %v6216_v57 = vld [vmem:[%s9429_s3 + $0x38] sm:$0xff] }
 0x568   : > { %v4776_v25 = vpop.xlane.xlu1 %4775 }
 0x569   : > { %v4793_v13 = vmax.f32 %v4789_v3, 0.0  ;;  %v4783_v50 = vmul.f32 0.0051020407, %v4776_v25  ;;  %v4948_v40 = vmul.f32 %v9105_v5, %v9105_v5 }
 0x56a   : > { %v4772_v41 = vpop.xlane.xlu0 %4771 }
 0x56b   : > { %v4797_v30 = vadd.f32 1e-05, %v4793_v13  ;;  %v4791_v44 = vsub.f32 %v4783_v50, %v4787_v8  ;;  %v4782_v28 = vmul.f32 0.0051020407, %v4772_v41  ;;  %v4806_v13 = vld [vmem:[%s6377_s15 + $0xd8] sm:$0xff] }
 0x56c   : > { %v4928_v53 = vpop.xlane.xlu1 %4927 }
 0x56d   : > { %6183 = vrsqrt.f32 %v4797_v30  ;;  %v4795_v38 = vmax.f32 %v4791_v44, 0.0  ;;  %v4790_v21 = vsub.f32 %v4782_v28, %v4786_v52  ;;  %v4941_v54 = vmul.f32 0.0051020407, %v4928_v53 }
 0x56e   : > { %v4780_v31 = vpop.xlane.xlu0 %4779 }
 0x56f   : > { %v4794_v11 = vmax.f32 %v4790_v21, 0.0  ;;  %v4784_v9 = vmul.f32 0.0051020407, %v4780_v31  ;;  %v4799_v14 = vadd.f32 1e-05, %v4795_v38  ;;  %v4949_v43 = vsub.f32 %v4941_v54, %v4945_v22  ;;  %v6217_v54 = vld [vmem:[%s9429_s3 + $0x20] sm:$0xff] }
 0x570   : > { %v4936_v0 = vpop.xlane.xlu1 %4935  ;;  %v6218_v22 = vld [vmem:[%s9429_s3 + $0x28] sm:$0xff] }
 0x571   : > { %v4943_v37 = vmul.f32 0.0051020407, %v4936_v0  ;;  %v4798_v49 = vadd.f32 1e-05, %v4794_v11  ;;  %v4792_v27 = vsub.f32 %v4784_v9, %v4788_v26  ;;  %v4953_v4 = vmax.f32 %v4949_v43, 0.0  ;;  %v4808_v9 = vld [vmem:[%s6377_s15 + $0xe8] sm:$0xff] }
 0x572   : > { %v4932_v58 = vpop.xlane.xlu0 %4931  ;;  %v4807_v0 = vld [vmem:[%s6377_s15 + $0xe0] sm:$0xff] }
 0x573   : > { %6185 = vrsqrt.f32 %v4798_v49  ;;  %v4796_v61 = vmax.f32 %v4792_v27, 0.0  ;;  %v4942_v45 = vmul.f32 0.0051020407, %v4932_v58  ;;  %v4951_v35 = vsub.f32 %v4943_v37, %v4947_v16 }
 0x574   : > { %v1895_v62 = vpop.permute.xlu1 %1894  ;;  %6187 = vrsqrt.f32 %v4799_v14  ;;  %v4957_v56 = vadd.f32 1e-05, %v4953_v4 }
 0x575   : > { %v4800_v46 = vadd.f32 1e-05, %v4796_v61  ;;  %v4950_v63 = vsub.f32 %v4942_v45, %v4946_v24  ;;  %v4955_v32 = vmax.f32 %v4951_v35, 0.0  ;;  %v1899_v3 = vmul.f32 %v6215_v23, %v1895_v62  ;;  %v4813_v45 = vld [vmem:[%s6382_s18 + $0xd0] sm:$0xff]  ;;  %v4814_v35 = vld [vmem:[%s6382_s18 + $0xd8] sm:$0xff] }
 0x576   : > { %v4940_v36 = vpop.xlane.xlu0 %4939  ;;  %v1900_v25 = vmul.f32 %v6216_v57, %v1895_v62  ;;  %v6222_v23 = vld [vmem:[%s9430_s4 + $0x18] sm:$0xff]  ;;  %v6223_v57 = vld [vmem:[%s9430_s4 + $0x20] sm:$0xff] }
 0x577   : > { %v6184_v29 = vpop.eup %6183  ;;  %6189 = vrsqrt.f32 %v4800_v46  ;;  %v4944_v18 = vmul.f32 0.0051020407, %v4940_v36  ;;  %v4954_v33 = vmax.f32 %v4950_v63, 0.0  ;;  %v4959_v50 = vadd.f32 1e-05, %v4955_v32 }
 0x578   : > { %v1904_v55 = vpop.permute.xlu1 %1903  ;;  %v4809_v42 = vmul.f32 %v6184_v29, %v4805_v48  ;;  %6191 = vrsqrt.f32 %v4957_v56  ;;  %v6219_v48 = vld [vmem:[%s9430_s4] sm:$0xff] }
 0x579   : > { %v4952_v20 = vsub.f32 %v4944_v18, %v4948_v40  ;;  %v4958_v52 = vadd.f32 1e-05, %v4954_v33  ;;  %6193 = vrsqrt.f32 %v4959_v50  ;;  %v6221_v33 = vld [vmem:[%s9430_s4 + $0x10] sm:$0xff] }
 0x57a   : > { %4827 = vperm.xlu0 %6112, %v4809_v42   ;;  %v4817_v37 = vmul.f32 %v4809_v42, %v9077_v12  ;;  %v4965_v42 = vld [vmem:[%s6377_s15 + $0xf0] sm:$0xff] }
 0x57b   : > { %v4956_v28 = vmax.f32 %v4952_v20, 0.0  ;;  %6195 = vrsqrt.f32 %v4958_v52 }
 0x57c   : > { %v1909_v8 = vpop.permute.xlu1 %1908  ;;  %v4821_v12 = vsub.f32 %v4813_v45, %v4817_v37  ;;  %v4816_v45 = vld [vmem:[%s6382_s18 + $0xe8] sm:$0xff] }
 0x57d   : > { %v1913_v30 = vadd.f32 %v1909_v8, %v1899_v3  ;;  %v1914_v44 = vadd.f32 %v1909_v8, %v1900_v25  ;;  %v6186_v41 = vpop.eup %6185  ;;  %v4960_v49 = vadd.f32 1e-05, %v4956_v28  ;;  %v6224_v8 = vld [vmem:[%s9430_s4 + $0x28] sm:$0xff] }
 0x57e   : > { %v1890_v53 = vpop.permute.xlu0 %1889  ;;  %v4810_v38 = vmul.f32 %v6186_v41, %v4806_v13  ;;  %v6188_v21 = vpop.eup %6187 }
 0x57f   : > { %1917 = vst [vmem:[%s6387_s21 + $0x10] sm:$0xff] %v1913_v30  ;;  %1918 = vst.msk [vmem:[%s6387_s21 + $0x18] sm:$0xff] %vm1842_vm1, %v1914_v44  ;;  %v1897_v31 = vmul.f32 %v6217_v54, %v1890_v53  ;;  %v1898_v26 = vmul.f32 %v6218_v22, %v1890_v53  ;;  %v4811_v58 = vmul.f32 %v6188_v21, %v4807_v0  ;;  %6197 = vrsqrt.f32 %v4960_v49  ;;  %v4967_v21 = vld [vmem:[%s6377_s15 + $0x100] sm:$0xff]  ;;  %v6225_v22 = vld [vmem:[%s9430_s4 + $0x30] sm:$0xff] }
 0x580   : > { %v2023_v11 = vpop.permute.xlu1 %2022  ;;  %4832 = vperm.xlu1 %6111, %v4810_v38   ;;  %v4818_v61 = vmul.f32 %v4810_v38, %v9083_v47  ;;  %v6220_v47 = vld [vmem:[%s9430_s4 + $0x8] sm:$0xff]  ;;  %v4966_v38 = vld [vmem:[%s6377_s15 + $0xf8] sm:$0xff] }
 0x581   : > { %v6190_v14 = vpop.eup %6189  ;;  %v1911_v43 = vadd.f32 %v1904_v55, %v1897_v31  ;;  %v1912_v27 = vadd.f32 %v1904_v55, %v1898_v26  ;;  %v4819_v36 = vmul.f32 %v4811_v58, %v9081_v19  ;;  %v4815_v55 = vld [vmem:[%s6382_s18 + $0xe0] sm:$0xff]  ;;  %v2037_v20 = vmul.f32 %v6221_v33, %v2023_v11 }
 0x582   : > { %v2018_v16 = vpop.permute.xlu0 %2017  ;;  %v4812_v24 = vmul.f32 %v6190_v14, %v4808_v9  ;;  %v4822_v29 = vsub.f32 %v4814_v35, %v4818_v61  ;;  %v6192_v40 = vpop.eup %6191  ;;  %v2038_v19 = vmul.f32 %v6222_v23, %v2023_v11  ;;  %v6226_v11 = vld [vmem:[%s9430_s4 + $0x38] sm:$0xff]  ;;  %v4968_v61 = vld [vmem:[%s6377_s15 + $0x108] sm:$0xff] }
 0x583   : > { %1915 = vst [vmem:[%s6387_s21] sm:$0xff] %v1911_v43  ;;  %1916 = vst.msk [vmem:[%s6387_s21 + $0x8] sm:$0xff] %vm1842_vm1, %v1912_v27  ;;  %v2035_v4 = vmul.f32 %v6219_v48, %v2018_v16  ;;  %v2036_v46 = vmul.f32 %v6220_v47, %v2018_v16  ;;  %v6194_v3 = vpop.eup %6193  ;;  %v4823_v30 = vsub.f32 %v4815_v55, %v4819_v36  ;;  %v4974_v47 = vld [vmem:[%s6382_s18 + $0xf8] sm:$0xff]  ;;  %v6228_v36 = vld [vmem:[%s9431_s5 + $0x8] sm:$0xff] }
 0x584   : > { %v2028_v62 = vpop.permute.xlu1 %2027  ;;  %4842 = vperm.xlu0 %6112, %v4812_v24   ;;  %4837 = vperm.xlu1 %6111, %v4811_v58   ;;  %v4969_v44 = vmul.f32 %v6192_v40, %v4965_v42  ;;  %v4971_v14 = vmul.f32 %v6194_v3, %v4967_v21  ;;  %v4820_v49 = vmul.f32 %v4812_v24, %v9091_v6 }
 0x585   : > { %v2039_v25 = vmul.f32 %v6223_v57, %v2028_v62  ;;  %v2040_v13 = vmul.f32 %v6224_v8, %v2028_v62  ;;  %v6196_v41 = vpop.eup %6195 }
 0x586   : > { %v2033_v63 = vpop.permute.xlu0 %2032  ;;  %v4970_v37 = vmul.f32 %v6196_v41, %v4966_v38  ;;  %v4977_v62 = vmul.f32 %v4969_v44, %v9089_v39  ;;  %v4824_v48 = vsub.f32 %v4816_v45, %v4820_v49  ;;  %v6233_v38 = vld [vmem:[%s9431_s5 + $0x30] sm:$0xff] }
 0x587   : > { %v2041_v26 = vmul.f32 %v6225_v22, %v2033_v63  ;;  %v2042_v9 = vmul.f32 %v6226_v11, %v2033_v63  ;;  %v4979_v63 = vmul.f32 %v4971_v14, %v9093_v34 }
 0x588   : > { %v2046_v18 = vpop.permute.xlu1 %2045  ;;  %4860 = vperm.xlu0 %6112, %v4822_v29   ;;  %4855 = vperm.xlu1 %6111, %v4821_v12   ;;  %v4978_v6 = vmul.f32 %v4970_v37, %v9095_v51  ;;  %v6227_v29 = vld [vmem:[%s9431_s5] sm:$0xff] }
 0x589   : > { %v2063_v32 = vadd.f32 %v2046_v18, %v2035_v4  ;;  %v2064_v56 = vadd.f32 %v2046_v18, %v2036_v46  ;;  %v6198_v43 = vpop.eup %6197  ;;  %v4973_v4 = vld [vmem:[%s6382_s18 + $0xf0] sm:$0xff] }
 0x58a   : > { %v2051_v50 = vpop.permute.xlu0 %2050  ;;  %v4972_v12 = vmul.f32 %v6198_v43, %v4968_v61  ;;  %v4981_v46 = vsub.f32 %v4973_v4, %v4977_v62  ;;  %v4982_v51 = vsub.f32 %v4974_v47, %v4978_v6  ;;  %v6236_v43 = vld [vmem:[%s9432_s6 + $0x8] sm:$0xff]  ;;  %v6237_v62 = vld [vmem:[%s9432_s6 + $0x10] sm:$0xff]  ;;  %v6239_v4 = vld [vmem:[%s9432_s6 + $0x20] sm:$0xff] }
 0x58b   : > { %2071 = vst [vmem:[%s6387_s21 + $0x20] sm:$0xff] %v2063_v32  ;;  %2072 = vst.msk [vmem:[%s6387_s21 + $0x28] sm:$0xff] %vm1842_vm1, %v2064_v56  ;;  %v2065_v52 = vadd.f32 %v2051_v50, %v2037_v20  ;;  %v2066_v28 = vadd.f32 %v2051_v50, %v2038_v19  ;;  %v4976_v32 = vld [vmem:[%s6382_s18 + $0x108] sm:$0xff]  ;;  %v4975_v56 = vld [vmem:[%s6382_s18 + $0x100] sm:$0xff] }
 0x58c   : > { %v2056_v53 = vpop.permute.xlu1 %2055  ;;  %4865 = vperm.xlu1 %6111, %v4823_v30   ;;  %4987 = vperm.xlu0 %6112, %v4969_v44   ;;  %v4980_v55 = vmul.f32 %v4972_v12, %v9105_v5  ;;  %v6229_v20 = vld [vmem:[%s9431_s5 + $0x10] sm:$0xff]  ;;  %v6230_v19 = vld [vmem:[%s9431_s5 + $0x18] sm:$0xff]  ;;  %v6231_v5 = vld [vmem:[%s9431_s5 + $0x20] sm:$0xff]  ;;  %v4983_v30 = vsub.f32 %v4975_v56, %v4979_v63 }
 0x58d   : > { %v2067_v54 = vadd.f32 %v2056_v53, %v2039_v25  ;;  %v2068_v31 = vadd.f32 %v2056_v53, %v2040_v13  ;;  %2073 = vst [vmem:[%s6387_s21 + $0x30] sm:$0xff] %v2065_v52  ;;  %2074 = vst.msk [vmem:[%s6387_s21 + $0x38] sm:$0xff] %vm1842_vm1, %v2066_v28  ;;  %v6232_v25 = vld [vmem:[%s9431_s5 + $0x28] sm:$0xff] }
 0x58e   : > { %v2061_v0 = vpop.permute.xlu0 %2060  ;;  %v4984_v50 = vsub.f32 %v4976_v32, %v4980_v55  ;;  %v6242_v55 = vld [vmem:[%s9432_s6 + $0x38] sm:$0xff] }
 0x58f   : > { %2075 = vst [vmem:[%s6387_s21 + $0x40] sm:$0xff] %v2067_v54  ;;  %2076 = vst.msk [vmem:[%s6387_s21 + $0x48] sm:$0xff] %vm1842_vm1, %v2068_v31  ;;  %v2069_v27 = vadd.f32 %v2061_v0, %v2041_v26  ;;  %v2070_v16 = vadd.f32 %v2061_v0, %v2042_v9  ;;  %v6234_v54 = vld [vmem:[%s9431_s5 + $0x38] sm:$0xff] }
 0x590   : > { %v2183_v58 = vpop.permute.xlu1 %2182  ;;  %4992 = vperm.xlu1 %6111, %v4970_v37   ;;  %4997 = vperm.xlu0 %6112, %v4971_v14   ;;  %v6235_v14 = vld [vmem:[%s9432_s6] sm:$0xff] }
 0x591   : > { %2077 = vst [vmem:[%s6387_s21 + $0x50] sm:$0xff] %v2069_v27  ;;  %2078 = vst.msk [vmem:[%s6387_s21 + $0x58] sm:$0xff] %vm1842_vm1, %v2070_v16  ;;  %v2197_v23 = vmul.f32 %v6229_v20, %v2183_v58  ;;  %v2198_v3 = vmul.f32 %v6230_v19, %v2183_v58  ;;  %v6243_v19 = vld [vmem:[%s9433_s7] sm:$0xff] }
 0x592   : > { %v2178_v35 = vpop.permute.xlu0 %2177 }
 0x593   : > { %v2195_v39 = vmul.f32 %v6227_v29, %v2178_v35  ;;  %v2196_v40 = vmul.f32 %v6228_v36, %v2178_v35 }
 0x594   : > { %v2188_v24 = vpop.permute.xlu1 %2187  ;;  %5002 = vperm.xlu1 %6111, %v4972_v12   ;;  %4870 = vperm.xlu0 %6112, %v4824_v48   ;;  %v6238_v12 = vld [vmem:[%s9432_s6 + $0x18] sm:$0xff] }
 0x595   : > { %v2199_v57 = vmul.f32 %v6231_v5, %v2188_v24  ;;  %v2200_v8 = vmul.f32 %v6232_v25, %v2188_v24  ;;  %v6240_v24 = vld [vmem:[%s9432_s6 + $0x28] sm:$0xff] }
 0x596   : > { %v2193_v18 = vpop.permute.xlu0 %2192  ;;  %v6244_v5 = vld [vmem:[%s9433_s7 + $0x8] sm:$0xff] }
 0x597   : > { %v2201_v21 = vmul.f32 %v6233_v38, %v2193_v18  ;;  %v2202_v31 = vmul.f32 %v6234_v54, %v2193_v18  ;;  %v6241_v18 = vld [vmem:[%s9432_s6 + $0x30] sm:$0xff]  ;;  %v6248_v38 = vld [vmem:[%s9433_s7 + $0x28] sm:$0xff] }
 0x598   : > { %v2206_v42 = vpop.permute.xlu1 %2205  ;;  %5015 = vperm.xlu1 %6111, %v4981_v46   ;;  %5020 = vperm.xlu0 %6112, %v4982_v51  }
 0x599   : > { %v2223_v34 = vadd.f32 %v2206_v42, %v2195_v39  ;;  %v2224_v33 = vadd.f32 %v2206_v42, %v2196_v40 }
 0x59a   : > { %v2211_v13 = vpop.permute.xlu0 %2210 }
 0x59b   : > { %2231 = vst [vmem:[%s6387_s21 + $0x60] sm:$0xff] %v2223_v34  ;;  %2232 = vst.msk [vmem:[%s6387_s21 + $0x68] sm:$0xff] %vm1842_vm1, %v2224_v33  ;;  %v2225_v44 = vadd.f32 %v2211_v13, %v2197_v23  ;;  %v2226_v41 = vadd.f32 %v2211_v13, %v2198_v3 }
 0x59c   : > { %v2216_v52 = vpop.permute.xlu1 %2215  ;;  %5030 = vperm.xlu0 %6112, %v4984_v50   ;;  %5025 = vperm.xlu1 %6111, %v4983_v30   ;;  %v6245_v30 = vld [vmem:[%s9433_s7 + $0x10] sm:$0xff] }
 0x59d   : > { %v2227_v28 = vadd.f32 %v2216_v52, %v2199_v57  ;;  %v2228_v53 = vadd.f32 %v2216_v52, %v2200_v8  ;;  %2233 = vst [vmem:[%s6387_s21 + $0x70] sm:$0xff] %v2225_v44  ;;  %2234 = vst.msk [vmem:[%s6387_s21 + $0x78] sm:$0xff] %vm1842_vm1, %v2226_v41  ;;  %v6246_v41 = vld [vmem:[%s9433_s7 + $0x18] sm:$0xff] }
 0x59e   : > { %v2221_v22 = vpop.permute.xlu0 %2220 }
 0x59f   : > { %2235 = vst [vmem:[%s6387_s21 + $0x80] sm:$0xff] %v2227_v28  ;;  %2236 = vst.msk [vmem:[%s6387_s21 + $0x88] sm:$0xff] %vm1842_vm1, %v2228_v53  ;;  %v2229_v26 = vadd.f32 %v2221_v22, %v2201_v21  ;;  %v2230_v11 = vadd.f32 %v2221_v22, %v2202_v31  ;;  %v6247_v28 = vld [vmem:[%s9433_s7 + $0x20] sm:$0xff] }
 0x5a0   : > { %v2343_v9 = vpop.permute.xlu1 %2342 }
 0x5a1   : > { %2237 = vst [vmem:[%s6387_s21 + $0x90] sm:$0xff] %v2229_v26  ;;  %2238 = vst.msk [vmem:[%s6387_s21 + $0x98] sm:$0xff] %vm1842_vm1, %v2230_v11  ;;  %v2357_v35 = vmul.f32 %v6237_v62, %v2343_v9  ;;  %v2358_v48 = vmul.f32 %v6238_v12, %v2343_v9  ;;  %v6251_v62 = vld [vmem:[%s9434_s8] sm:$0xff]  ;;  %v6252_v12 = vld [vmem:[%s9434_s8 + $0x8] sm:$0xff] }
 0x5a2   : > { %v2338_v0 = vpop.permute.xlu0 %2337 }
 0x5a3   : > { %v2355_v49 = vmul.f32 %v6235_v14, %v2338_v0  ;;  %v2356_v27 = vmul.f32 %v6236_v43, %v2338_v0  ;;  %v6249_v0 = vld [vmem:[%s9433_s7 + $0x30] sm:$0xff]  ;;  %v6250_v14 = vld [vmem:[%s9433_s7 + $0x38] sm:$0xff] }
 0x5a4   : > { %v2348_v37 = vpop.permute.xlu1 %2347 }
 0x5a5   : > { %v2359_v6 = vmul.f32 %v6239_v4, %v2348_v37  ;;  %v2360_v47 = vmul.f32 %v6240_v24, %v2348_v37 }
 0x5a6   : > { %v2353_v16 = vpop.permute.xlu0 %2352 }
 0x5a7   : > { %v2361_v51 = vmul.f32 %v6241_v18, %v2353_v16  ;;  %v2362_v42 = vmul.f32 %v6242_v55, %v2353_v16  ;;  %v6256_v18 = vld [vmem:[%s9434_s8 + $0x28] sm:$0xff] }
 0x5a8   : > { %v2366_v58 = vpop.permute.xlu1 %2365 }
 0x5a9   : > { %v2383_v61 = vadd.f32 %v2366_v58, %v2355_v49  ;;  %v2384_v45 = vadd.f32 %v2366_v58, %v2356_v27 }
 0x5aa   : > { %v2371_v46 = vpop.permute.xlu0 %2370 }
 0x5ab   : > { %2391 = vst [vmem:[%s6387_s21 + $0xa0] sm:$0xff] %v2383_v61  ;;  %2392 = vst.msk [vmem:[%s6387_s21 + $0xa8] sm:$0xff] %vm1842_vm1, %v2384_v45  ;;  %v2385_v63 = vadd.f32 %v2371_v46, %v2357_v35  ;;  %v2386_v29 = vadd.f32 %v2371_v46, %v2358_v48  ;;  %v6253_v46 = vld [vmem:[%s9434_s8 + $0x10] sm:$0xff] }
 0x5ac   : > { %v2376_v39 = vpop.permute.xlu1 %2375 }
 0x5ad   : > { %v2387_v36 = vadd.f32 %v2376_v39, %v2359_v6  ;;  %v2388_v40 = vadd.f32 %v2376_v39, %v2360_v47  ;;  %2393 = vst [vmem:[%s6387_s21 + $0xb0] sm:$0xff] %v2385_v63  ;;  %2394 = vst.msk [vmem:[%s6387_s21 + $0xb8] sm:$0xff] %vm1842_vm1, %v2386_v29  ;;  %v6254_v29 = vld [vmem:[%s9434_s8 + $0x18] sm:$0xff] }
 0x5ae   : > { %v2381_v32 = vpop.permute.xlu0 %2380 }
 0x5af   : > { %2395 = vst [vmem:[%s6387_s21 + $0xc0] sm:$0xff] %v2387_v36  ;;  %2396 = vst.msk [vmem:[%s6387_s21 + $0xc8] sm:$0xff] %vm1842_vm1, %v2388_v40  ;;  %v2389_v56 = vadd.f32 %v2381_v32, %v2361_v51  ;;  %v2390_v34 = vadd.f32 %v2381_v32, %v2362_v42  ;;  %v6255_v36 = vld [vmem:[%s9434_s8 + $0x20] sm:$0xff] }
 0x5b0   : > { %v2503_v33 = vpop.permute.xlu1 %2502 }
 0x5b1   : > { %2397 = vst [vmem:[%s6387_s21 + $0xd0] sm:$0xff] %v2389_v56  ;;  %2398 = vst.msk [vmem:[%s6387_s21 + $0xd8] sm:$0xff] %vm1842_vm1, %v2390_v34  ;;  %v2517_v44 = vmul.f32 %v6245_v30, %v2503_v33  ;;  %v2518_v52 = vmul.f32 %v6246_v41, %v2503_v33 }
 0x5b2   : > { %v2498_v20 = vpop.permute.xlu0 %2497 }
 0x5b3   : > { %v2515_v3 = vmul.f32 %v6243_v19, %v2498_v20  ;;  %v2516_v57 = vmul.f32 %v6244_v5, %v2498_v20  ;;  %v6257_v20 = vld [vmem:[%s9434_s8 + $0x30] sm:$0xff]  ;;  %v6258_v19 = vld [vmem:[%s9434_s8 + $0x38] sm:$0xff] }
 0x5b4   : > { %v2508_v23 = vpop.permute.xlu1 %2507 }
 0x5b5   : > { %v2519_v53 = vmul.f32 %v6247_v28, %v2508_v23  ;;  %v2520_v21 = vmul.f32 %v6248_v38, %v2508_v23  ;;  %v6261_v38 = vld [vmem:[%s9435_s9 + $0x20] sm:$0xff] }
 0x5b6   : > { %v2513_v25 = vpop.permute.xlu0 %2512 }
 0x5b7   : > { %v2521_v37 = vmul.f32 %v6249_v0, %v2513_v25  ;;  %v2522_v49 = vmul.f32 %v6250_v14, %v2513_v25 }
 0x5b8   : > { %v2526_v8 = vpop.permute.xlu1 %2525 }
 0x5b9   : > { %v2543_v13 = vadd.f32 %v2526_v8, %v2515_v3  ;;  %v2544_v50 = vadd.f32 %v2526_v8, %v2516_v57 }
 0x5ba   : > { %v2531_v54 = vpop.permute.xlu0 %2530 }
 0x5bb   : > { %2551 = vst [vmem:[%s6387_s21 + $0xe0] sm:$0xff] %v2543_v13  ;;  %2552 = vst.msk [vmem:[%s6387_s21 + $0xe8] sm:$0xff] %vm1842_vm1, %v2544_v50  ;;  %v2545_v31 = vadd.f32 %v2531_v54, %v2517_v44  ;;  %v2546_v22 = vadd.f32 %v2531_v54, %v2518_v52  ;;  %v6259_v50 = vld [vmem:[%s9435_s9] sm:$0xff]  ;;  %v6260_v44 = vld [vmem:[%s9435_s9 + $0x8] sm:$0xff] }
 0x5bc   : > { %v2536_v26 = vpop.permute.xlu1 %2535  ;;  %v6262_v54 = vld [vmem:[%s9435_s9 + $0x28] sm:$0xff] }
 0x5bd   : > { %v2547_v11 = vadd.f32 %v2536_v26, %v2519_v53  ;;  %v2548_v9 = vadd.f32 %v2536_v26, %v2520_v21  ;;  %2553 = vst [vmem:[%s6387_s21 + $0xf0] sm:$0xff] %v2545_v31  ;;  %2554 = vst.msk [vmem:[%s6387_s21 + $0xf8] sm:$0xff] %vm1842_vm1, %v2546_v22 }
 0x5be   : > { %v2541_v43 = vpop.permute.xlu0 %2540 }
 0x5bf   : > { %2555 = vst [vmem:[%s6387_s21 + $0x100] sm:$0xff] %v2547_v11  ;;  %2556 = vst.msk [vmem:[%s6387_s21 + $0x108] sm:$0xff] %vm1842_vm1, %v2548_v9  ;;  %v2549_v27 = vadd.f32 %v2541_v43, %v2521_v37  ;;  %v2550_v16 = vadd.f32 %v2541_v43, %v2522_v49  ;;  %v6263_v37 = vld [vmem:[%s9435_s9 + $0x30] sm:$0xff]  ;;  %v6264_v49 = vld [vmem:[%s9435_s9 + $0x38] sm:$0xff] }
 0x5c0   : > { %v2663_v58 = vpop.permute.xlu1 %2662 }
 0x5c1   : > { %2557 = vst [vmem:[%s6387_s21 + $0x110] sm:$0xff] %v2549_v27  ;;  %2558 = vst.msk [vmem:[%s6387_s21 + $0x118] sm:$0xff] %vm1842_vm1, %v2550_v16  ;;  %v2677_v63 = vmul.f32 %v6253_v46, %v2663_v58  ;;  %v2678_v39 = vmul.f32 %v6254_v29, %v2663_v58  ;;  %v6265_v16 = vld [vmem:[%s9435_s9 + $0x10] sm:$0xff] }
 0x5c2   : > { %v2658_v61 = vpop.permute.xlu0 %2657 }
 0x5c3   : > { %v2675_v35 = vmul.f32 %v6251_v62, %v2658_v61  ;;  %v2676_v48 = vmul.f32 %v6252_v12, %v2658_v61  ;;  %v6266_v61 = vld [vmem:[%s9435_s9 + $0x18] sm:$0xff] }
 0x5c4   : > { %v2668_v45 = vpop.permute.xlu1 %2667 }
 0x5c5   : > { %v2679_v40 = vmul.f32 %v6255_v36, %v2668_v45  ;;  %v2680_v51 = vmul.f32 %v6256_v18, %v2668_v45 }
 0x5c6   : > { %v2673_v4 = vpop.permute.xlu0 %2672 }
 0x5c7   : > { %v2681_v23 = vmul.f32 %v6257_v20, %v2673_v4  ;;  %v2682_v3 = vmul.f32 %v6258_v19, %v2673_v4 }
 0x5c8   : > { %v2686_v6 = vpop.permute.xlu1 %2685 }
 0x5c9   : > { %v2703_v24 = vadd.f32 %v2686_v6, %v2675_v35  ;;  %v2704_v47 = vadd.f32 %v2686_v6, %v2676_v48 }
 0x5ca   : > { %v2691_v55 = vpop.permute.xlu0 %2690 }
 0x5cb   : > { %2711 = vst [vmem:[%s6387_s21 + $0x120] sm:$0xff] %v2703_v24  ;;  %2712 = vst.msk [vmem:[%s6387_s21 + $0x128] sm:$0xff] %vm1842_vm1, %v2704_v47  ;;  %v2705_v42 = vadd.f32 %v2691_v55, %v2677_v63  ;;  %v2706_v32 = vadd.f32 %v2691_v55, %v2678_v39 }
 0x5cc   : > { %v2696_v56 = vpop.permute.xlu1 %2695 }
 0x5cd   : > { %v2707_v34 = vadd.f32 %v2696_v56, %v2679_v40  ;;  %v2708_v33 = vadd.f32 %v2696_v56, %v2680_v51  ;;  %2713 = vst [vmem:[%s6387_s21 + $0x130] sm:$0xff] %v2705_v42  ;;  %2714 = vst.msk [vmem:[%s6387_s21 + $0x138] sm:$0xff] %vm1842_vm1, %v2706_v32 }
 0x5ce   : > { %v2701_v5 = vpop.permute.xlu0 %2700 }
 0x5cf   : > { %2715 = vst [vmem:[%s6387_s21 + $0x140] sm:$0xff] %v2707_v34  ;;  %2716 = vst.msk [vmem:[%s6387_s21 + $0x148] sm:$0xff] %vm1842_vm1, %v2708_v33  ;;  %v2709_v57 = vadd.f32 %v2701_v5, %v2681_v23  ;;  %v2710_v25 = vadd.f32 %v2701_v5, %v2682_v3 }
 0x5d0   : > { %v2828_v8 = vpop.permute.xlu1 %2827 }
 0x5d1   : > { %2717 = vst [vmem:[%s6387_s21 + $0x150] sm:$0xff] %v2709_v57  ;;  %2718 = vst.msk [vmem:[%s6387_s21 + $0x158] sm:$0xff] %vm1842_vm1, %v2710_v25  ;;  %v2839_v21 = vmul.f32 %v6261_v38, %v2828_v8  ;;  %v2840_v31 = vmul.f32 %v6262_v54, %v2828_v8  ;;  %v6267_v57 = vld [vmem:[%s9436_s10] sm:$0xff]  ;;  %v6268_v8 = vld [vmem:[%s9436_s10 + $0x8] sm:$0xff] }
 0x5d2   : > { %v2818_v13 = vpop.permute.xlu0 %2817 }
 0x5d3   : > { %v2835_v30 = vmul.f32 %v6259_v50, %v2818_v13  ;;  %v2836_v41 = vmul.f32 %v6260_v44, %v2818_v13 }
 0x5d4   : > { %v2846_v52 = vpop.permute.xlu1 %2845 }
 0x5d5   : > { %v2863_v28 = vadd.f32 %v2846_v52, %v2835_v30  ;;  %v2864_v53 = vadd.f32 %v2846_v52, %v2836_v41 }
 0x5d6   : > { %v2823_v22 = vpop.permute.xlu0 %2822 }
 0x5d7   : > { %2871 = vst [vmem:[%s6387_s21 + $0x160] sm:$0xff] %v2863_v28  ;;  %2872 = vst.msk [vmem:[%s6387_s21 + $0x168] sm:$0xff] %vm1842_vm1, %v2864_v53  ;;  %v2837_v58 = vmul.f32 %v6265_v16, %v2823_v22  ;;  %v2838_v45 = vmul.f32 %v6266_v61, %v2823_v22 }
 0x5d8   : > { %v2856_v26 = vpop.permute.xlu1 %2855 }
 0x5d9   : > { %v2867_v11 = vadd.f32 %v2856_v26, %v2839_v21  ;;  %v2868_v9 = vadd.f32 %v2856_v26, %v2840_v31  ;;  %v6271_v21 = vld [vmem:[%s9436_s10 + $0x20] sm:$0xff]  ;;  %v6272_v31 = vld [vmem:[%s9436_s10 + $0x28] sm:$0xff]  ;;  %v6273_v26 = vld [vmem:[%s9436_s10 + $0x30] sm:$0xff] }
 0x5da   : > { %v2833_v0 = vpop.permute.xlu0 %2832 }
 0x5db   : > { %2875 = vst [vmem:[%s6387_s21 + $0x180] sm:$0xff] %v2867_v11  ;;  %2876 = vst.msk [vmem:[%s6387_s21 + $0x188] sm:$0xff] %vm1842_vm1, %v2868_v9  ;;  %v2841_v14 = vmul.f32 %v6263_v37, %v2833_v0  ;;  %v2842_v43 = vmul.f32 %v6264_v49, %v2833_v0  ;;  %v6274_v9 = vld [vmem:[%s9436_s10 + $0x38] sm:$0xff] }
 0x5dc   : > { %v2861_v27 = vpop.permute.xlu1 %2860 }
 0x5dd   : > { %v2869_v62 = vadd.f32 %v2861_v27, %v2841_v14  ;;  %v2870_v35 = vadd.f32 %v2861_v27, %v2842_v43 }
 0x5de   : > { %v2851_v12 = vpop.permute.xlu0 %2850 }
 0x5df   : > { %2877 = vst [vmem:[%s6387_s21 + $0x190] sm:$0xff] %v2869_v62  ;;  %2878 = vst.msk [vmem:[%s6387_s21 + $0x198] sm:$0xff] %vm1842_vm1, %v2870_v35  ;;  %v2865_v48 = vadd.f32 %v2851_v12, %v2837_v58  ;;  %v2866_v4 = vadd.f32 %v2851_v12, %v2838_v45 }
 0x5e1   : > { %2873 = vst [vmem:[%s6387_s21 + $0x170] sm:$0xff] %v2865_v48  ;;  %2874 = vst.msk [vmem:[%s6387_s21 + $0x178] sm:$0xff] %vm1842_vm1, %v2866_v4 }
 0x5f9   : > { %v4828_v6 = vpop.permute.xlu0 %4827 }
 0x5fa   : > { %v4845_v63 = vmul.f32 %v8763_v60, %v4828_v6  ;;  %v4846_v29 = vmul.f32 %v8767_v10, %v4828_v6 }
 0x5ff   : > { %v4833_v24 = vpop.permute.xlu1 %4832 }
 0x600   : > { %v4847_v39 = vmul.f32 %v8771_v7, %v4833_v24  ;;  %v4848_v36 = vmul.f32 %v8778_v59, %v4833_v24 }
 0x603   : > { %v4843_v47 = vpop.permute.xlu0 %4842  ;;  %v4838_v46 = vpop.permute.xlu1 %4837 }
 0x604   : > { %v4849_v56 = vmul.f32 %v8765_v17, %v4838_v46  ;;  %v4850_v34 = vmul.f32 %v8769_v15, %v4838_v46  ;;  %v4851_v17 = vmul.f32 %v8773_v2, %v4843_v47  ;;  %v4852_v15 = vmul.f32 %v8780_v1, %v4843_v47  ;;  %v6269_v2 = vld [vmem:[%s9436_s10 + $0x10] sm:$0xff]  ;;  %v6270_v1 = vld [vmem:[%s9436_s10 + $0x18] sm:$0xff] }
 0x607   : > { %v4861_v40 = vpop.permute.xlu0 %4860  ;;  %v4856_v18 = vpop.permute.xlu1 %4855 }
 0x608   : > { %v4875_v51 = vadd.f32 %v4861_v40, %v4847_v39  ;;  %v4876_v55 = vadd.f32 %v4861_v40, %v4848_v36  ;;  %v4873_v42 = vadd.f32 %v4856_v18, %v4845_v63  ;;  %v4874_v32 = vadd.f32 %v4856_v18, %v4846_v29 }
 0x60a   : > { %4883 = vst [vmem:[%s6387_s21 + $0x1b0] sm:$0xff] %v4875_v51  ;;  %4884 = vst.msk [vmem:[%s6387_s21 + $0x1b8] sm:$0xff] %vm1842_vm1, %v4876_v55 }
 0x60b   : > { %4881 = vst [vmem:[%s6387_s21 + $0x1a0] sm:$0xff] %v4873_v42  ;;  %4882 = vst.msk [vmem:[%s6387_s21 + $0x1a8] sm:$0xff] %vm1842_vm1, %v4874_v32  ;;  %v4988_v60 = vpop.permute.xlu0 %4987  ;;  %v4866_v10 = vpop.permute.xlu1 %4865 }
 0x60c   : > { %v4877_v7 = vadd.f32 %v4866_v10, %v4849_v56  ;;  %v4878_v59 = vadd.f32 %v4866_v10, %v4850_v34  ;;  %v5005_v25 = vmul.f32 %v6267_v57, %v4988_v60  ;;  %v5006_v13 = vmul.f32 %v6268_v8, %v4988_v60 }
 0x60e   : > { %4885 = vst [vmem:[%s6387_s21 + $0x1c0] sm:$0xff] %v4877_v7  ;;  %4886 = vst.msk [vmem:[%s6387_s21 + $0x1c8] sm:$0xff] %vm1842_vm1, %v4878_v59 }
 0x60f   : > { %v4998_v33 = vpop.permute.xlu0 %4997  ;;  %v4993_v20 = vpop.permute.xlu1 %4992 }
 0x610   : > { %v5007_v50 = vmul.f32 %v6269_v2, %v4993_v20  ;;  %v5008_v30 = vmul.f32 %v6270_v1, %v4993_v20  ;;  %v5009_v54 = vmul.f32 %v6271_v21, %v4998_v33  ;;  %v5010_v22 = vmul.f32 %v6272_v31, %v4998_v33 }
 0x613   : > { %v4871_v23 = vpop.permute.xlu0 %4870  ;;  %v5003_v19 = vpop.permute.xlu1 %5002 }
 0x614   : > { %v4879_v3 = vadd.f32 %v4871_v23, %v4851_v17  ;;  %v4880_v5 = vadd.f32 %v4871_v23, %v4852_v15  ;;  %v5011_v11 = vmul.f32 %v6273_v26, %v5003_v19  ;;  %v5012_v0 = vmul.f32 %v6274_v9, %v5003_v19 }
 0x616   : > { %4887 = vst [vmem:[%s6387_s21 + $0x1d0] sm:$0xff] %v4879_v3  ;;  %4888 = vst.msk [vmem:[%s6387_s21 + $0x1d8] sm:$0xff] %vm1842_vm1, %v4880_v5 }
 0x617   : > { %v5021_v44 = vpop.permute.xlu0 %5020  ;;  %v5016_v41 = vpop.permute.xlu1 %5015 }
 0x618   : > { %v5035_v52 = vadd.f32 %v5021_v44, %v5007_v50  ;;  %v5036_v28 = vadd.f32 %v5021_v44, %v5008_v30  ;;  %v5033_v53 = vadd.f32 %v5016_v41, %v5005_v25  ;;  %v5034_v38 = vadd.f32 %v5016_v41, %v5006_v13 }
 0x61a   : > { %5043 = vst [vmem:[%s6387_s21 + $0x1f0] sm:$0xff] %v5035_v52  ;;  %5044 = vst.msk [vmem:[%s6387_s21 + $0x1f8] sm:$0xff] %vm1842_vm1, %v5036_v28 }
 0x61b   : > { %5041 = vst [vmem:[%s6387_s21 + $0x1e0] sm:$0xff] %v5033_v53  ;;  %5042 = vst.msk [vmem:[%s6387_s21 + $0x1e8] sm:$0xff] %vm1842_vm1, %v5034_v38  ;;  %v5031_v37 = vpop.permute.xlu0 %5030  ;;  %v5026_v14 = vpop.permute.xlu1 %5025 }
 0x61c   : > { %v5039_v49 = vadd.f32 %v5031_v37, %v5011_v11  ;;  %v5040_v43 = vadd.f32 %v5031_v37, %v5012_v0  ;;  %v5037_v27 = vadd.f32 %v5026_v14, %v5009_v54  ;;  %v5038_v16 = vadd.f32 %v5026_v14, %v5010_v22 }
 0x61e   : > { %5047 = vst [vmem:[%s6387_s21 + $0x210] sm:$0xff] %v5039_v49  ;;  %5048 = vst.msk [vmem:[%s6387_s21 + $0x218] sm:$0xff] %vm1842_vm1, %v5040_v43 }
 0x61f   : > { %5045 = vst [vmem:[%s6387_s21 + $0x200] sm:$0xff] %v5037_v27  ;;  %5046 = vst.msk [vmem:[%s6387_s21 + $0x208] sm:$0xff] %vm1842_vm1, %v5038_v16 }
 0x620 PF: > { %s23_s25 = sadd.s32 1, %s6281_s25  }
 0x621   : > { %p20_p6 = scmp.ge.s32.totalorder %s23_s25, 4  }
 0x623   :  { %22 = sbr.rel (!%p20_p6) target bundleno = 1 (0x1), region = 121 }

</bundles_post_ra>
